<compile_context>
chip_gen: v7x
topology: tpu7x:2x2x1
jax: 0.10.0
libtpu: 0.0.40
codegen_flags: <defaults>
</compile_context>

<pallas_src>
import jax
import jax.numpy as jnp
from jax.experimental import pallas as pl
from jax.experimental.pallas import tpu as pltpu

# ----------------------------- small config ---------------------------------
B = 2            # batch
T_FRAMES = 4     # num_frames
C_IN = 3         # in_chans
IMG = 16         # img_size
PATCH = 8        # patch_size
TUBELET = 2      # tubelet_size
EMBED_DIM = 64   # vision_encoder.embed_dim
NUM_HEADS = 4    # vision_encoder.num_heads
DEPTH = 2        # vision_encoder.depth
MLP_HID = 128    # embed_dim * mlp_ratio
CLIP_EMBED_DIM = 48     # vision_encoder.clip_embed_dim
ATTN_POOL_HEADS = 4     # attn_pool_num_heads
ALIGN_DIM = 32          # vision_encoder.align_dim (== text projection dim)
INIT_VALUES = 0.1       # layer-scale init

VOCAB = 128
CTX_LEN = 8             # max_txt_l
TEXT_DIM = 64
TEXT_HEADS = 4
TEXT_DEPTH = 2
TEXT_MLP = 128
PROJ_DIM = 32           # text embed_dim (projection)

TEMP = 0.07             # config.model.temp
TEMP_MIN = 0.01         # config.model.temp_min

NP_T = T_FRAMES // TUBELET
NP_S = IMG // PATCH
N_PATCH = NP_T * NP_S * NP_S        # 8 patches / sample
N_TOK = N_PATCH + 1                 # + cls token = 9
N_PAD = 16                          # tokens padded to a sublane-aligned count
LOG2_NPAD = 4
LOG2_L = 3
PATCH_FEAT = C_IN * TUBELET * PATCH * PATCH   # 384

assert EMBED_DIM == TEXT_DIM
assert ALIGN_DIM == PROJ_DIM
assert MLP_HID == TEXT_MLP == VOCAB            # shared leading dim of the 128-row bank
assert (1 << LOG2_NPAD) == N_PAD and (1 << LOG2_L) == CTX_LEN

# -------------------- packed parameter layout (static) ----------------------
# All tiny per-layer vectors live in one f32 [VEC_NROWS, VEC_W] bank; matmul
# weights with 64 input rows live in one bf16 [64, W64_NCOLS] bank and those
# with 128 input rows in a bf16 [128, W128_NCOLS] bank.  A checkpoint loader
# would scatter the PyTorch tensors to these (row, col) offsets (the Conv3d
# patch weight maps as weight.reshape(D, -1).T -> patch_w).
VEC_W = 3 * EMBED_DIM   # 192

_VEC_ITEMS = (
    [('patch_b', 1), ('cls', 1), ('vis_pos', N_TOK)]
    + [(f'v{i}_{nm}', 1) for i in range(DEPTH)
       for nm in ('n1_g', 'qkv_b', 'qn_g', 'kn_g', 'proj_b', 'ls1',
                  'n2_g', 'fc1_b', 'fc2_b', 'ls2')]
    + [(f'ap_{nm}', 1) for nm in ('nq_g', 'nq_b', 'nk_g', 'nk_b', 'nv_g', 'nv_b',
                                  'q_b', 'k_b', 'v_b', 'proj_b')]
    + [('va_g', 1), ('va_b', 1), ('va_bias', 1)]
    + [('txt_pos', CTX_LEN)]
    + [(f't{i}_{nm}', 1) for i in range(TEXT_DEPTH)
       for nm in ('ln1_g', 'ln1_b', 'qkv_b', 'proj_b', 'ln2_g', 'ln2_b',
                  'fc1_b', 'fc2_b')]
    + [('lnf_g', 1), ('lnf_b', 1)]
)
VEC_ROW = {}
_r = 0
for _nm, _k in _VEC_ITEMS:
    VEC_ROW[_nm] = _r
    _r += _k
VEC_NROWS = _r


def _vec_width(name):
    if name in ('ap_proj_b', 'va_g', 'va_b'):
        return CLIP_EMBED_DIM
    if name == 'va_bias':
        return ALIGN_DIM
    if name.endswith('qkv_b'):
        return 3 * EMBED_DIM
    if name.endswith('fc1_b'):
        return MLP_HID
    return EMBED_DIM


_W64_ITEMS = (
    [(f'v{i}_{nm}', w) for i in range(DEPTH)
     for nm, w in (('qkv', 3 * EMBED_DIM), ('proj', EMBED_DIM), ('fc1', MLP_HID))]
    + [('ap_q', EMBED_DIM), ('ap_k', EMBED_DIM), ('ap_v', EMBED_DIM),
       ('ap_proj', CLIP_EMBED_DIM)]
    + [(f't{i}_{nm}', w) for i in range(TEXT_DEPTH)
       for nm, w in (('qkv', 3 * TEXT_DIM), ('proj', TEXT_DIM), ('fc1', TEXT_MLP))]
    + [('txt_proj', PROJ_DIM)]
)
W64_COL = {}
_c = 0
for _nm, _w in _W64_ITEMS:
    W64_COL[_nm] = (_c, _w)
    _c += _w
W64_NCOLS = _c

_W128_ITEMS = ([(f'v{i}_fc2', EMBED_DIM) for i in range(DEPTH)]
               + [(f't{i}_fc2', TEXT_DIM) for i in range(TEXT_DEPTH)]
               + [('tok_emb', TEXT_DIM)])
W128_COL = {}
_c = 0
for _nm, _w in _W128_ITEMS:
    W128_COL[_nm] = (_c, _w)
    _c += _w
W128_NCOLS = _c


# ------------------------------ kernel helpers -------------------------------
def _mm(a, w):
    """MXU matmul: cast the f32 activation to the (bf16) weight dtype, f32 acc."""
    return jnp.dot(a.astype(w.dtype), w, preferred_element_type=jnp.float32)


def _rms(x, g, eps=1e-6):
    return x * jax.lax.rsqrt(jnp.mean(jnp.square(x), axis=-1, keepdims=True) + eps) * g


def _ln(x, g, b, eps=1e-5):
    mu = jnp.mean(x, axis=-1, keepdims=True)
    var = jnp.mean(jnp.square(x - mu), axis=-1, keepdims=True)
    return (x - mu) * jax.lax.rsqrt(var + eps) * g + b


def _softmax_last(s):
    s = s - jnp.max(s, axis=-1, keepdims=True)
    p = jnp.exp(s)
    return p * pl.reciprocal(jnp.sum(p, axis=-1, keepdims=True), approx=True)


def _gelu(x):
    # TODO(synk): PyTorch nn.GELU defaults to exact erf-GELU; the tanh
    # approximation is used here for a clean TPU EUP lowering.
    return jax.nn.gelu(x, approximate=True)


def _mha(q, k, v, bias, proj_w, heads):
    """Multi-head attention on 2-D slabs.

    q: [Rq, D], k/v: [Rk, D] with all samples stacked; `bias` is an additive
    [Rq, Rk] mask (block-diagonal per sample, plus pad/causal terms), so the
    whole slab is processed with H full-width MXU matmuls instead of
    per-(batch, head) sub-tile slices.  Heads are merged by accumulating
    per-head row-slices of the output projection (no sub-tile stores).
    Returns the projected context (projection bias NOT added).
    """
    d = q.shape[-1]
    hd = d // heads
    scale = hd ** -0.5
    out = None
    for h in range(heads):
        c0 = h * hd
        s = jnp.dot(q[:, c0:c0 + hd] * scale, k[:, c0:c0 + hd].T,
                    preferred_element_type=jnp.float32) + bias
        ctx = jnp.dot(_softmax_last(s), v[:, c0:c0 + hd],
                      preferred_element_type=jnp.float32)
        contrib = _mm(ctx, proj_w[c0:c0 + hd, :])
        out = contrib if out is None else out + contrib
    return out


def _vision_block(x, bias, i, vec, w64, w128):
    d = EMBED_DIM
    h = _rms(x, vec(f'v{i}_n1_g'))
    qkv = _mm(h, w64(f'v{i}_qkv')) + vec(f'v{i}_qkv_b', 3 * d)
    q = _rms(qkv[:, :d], vec(f'v{i}_qn_g'))          # qk_normalization over full D
    k = _rms(qkv[:, d:2 * d], vec(f'v{i}_kn_g'))
    v = qkv[:, 2 * d:]
    attn = _mha(q, k, v, bias, w64(f'v{i}_proj'), NUM_HEADS) + vec(f'v{i}_proj_b')
    x = x + vec(f'v{i}_ls1') * attn                  # layer-scale 1 + residual
    h2 = _rms(x, vec(f'v{i}_n2_g'))
    h2 = _gelu(_mm(h2, w64(f'v{i}_fc1')) + vec(f'v{i}_fc1_b', MLP_HID))
    h2 = _mm(h2, w128(f'v{i}_fc2')) + vec(f'v{i}_fc2_b')
    return x + vec(f'v{i}_ls2') * h2                 # layer-scale 2 + residual


def _text_block(x, bias, i, vec, w64, w128):
    d = TEXT_DIM
    h = _ln(x, vec(f't{i}_ln1_g'), vec(f't{i}_ln1_b'))
    qkv = _mm(h, w64(f't{i}_qkv')) + vec(f't{i}_qkv_b', 3 * d)
    attn = _mha(qkv[:, :d], qkv[:, d:2 * d], qkv[:, 2 * d:], bias,
                w64(f't{i}_proj'), TEXT_HEADS) + vec(f't{i}_proj_b')
    x = x + attn
    h2 = _ln(x, vec(f't{i}_ln2_g'), vec(f't{i}_ln2_b'))
    h2 = _gelu(_mm(h2, w64(f't{i}_fc1')) + vec(f't{i}_fc1_b', TEXT_MLP))
    return x + _mm(h2, w128(f't{i}_fc2')) + vec(f't{i}_fc2_b')


# ------------------------------- fused kernels --------------------------------
def _towers_kernel(patches_ref, ids_col_ref, ids_flat_ref, am_ref,
                   vec_ref, w64_ref, w128_ref, patch_w_ref, va_w_ref, emb_ref):
    """One grid step per tower: program 0 = vision encoder, 1 = text encoder."""
    tower = pl.program_id(0)

    def vec(name, width=EMBED_DIM, nrows=1):
        r = VEC_ROW[name]
        return vec_ref[r:r + nrows, :width]

    def w64(name):
        c, w = W64_COL[name]
        return w64_ref[:, c:c + w]

    def w128(name):
        c, w = W128_COL[name]
        return w128_ref[:, c:c + w]

    # -------------------------------- vision ---------------------------------
    @pl.when(tower == 0)
    def _vision():
        bn = B * N_PAD
        # tubelet Conv3d patch-embed as one [B*N_PATCH, 384] x [384, D] matmul
        pe = _mm(patches_ref[...], patch_w_ref[...]) + vec('patch_b')

        # scatter cls / patch embeddings / pos-embed into the padded token slab
        # (iota selection matmuls -> no sub-tile stores, no concatenates)
        r_tok = jax.lax.broadcasted_iota(jnp.int32, (bn, 1), 0)
        within = jnp.bitwise_and(r_tok, N_PAD - 1)
        bsel = jnp.right_shift(r_tok, LOG2_NPAD)
        is_patch = (within >= 1) & (within <= N_PATCH)
        p_iota = jax.lax.broadcasted_iota(jnp.int32, (bn, B * N_PATCH), 1)
        scat = (is_patch & (p_iota == bsel * N_PATCH + within - 1)).astype(jnp.float32)
        t_iota = jax.lax.broadcasted_iota(jnp.int32, (bn, N_TOK), 1)
        pos_sel = ((within < N_TOK) & (t_iota == within)).astype(jnp.float32)
        x = (jnp.dot(scat, pe, preferred_element_type=jnp.float32)
             + jnp.dot(pos_sel, vec('vis_pos', nrows=N_TOK),
                       preferred_element_type=jnp.float32)
             + (within == 0).astype(jnp.float32) * vec('cls'))

        # additive attention mask: same sample & real (non-pad) key
        rr = jax.lax.broadcasted_iota(jnp.int32, (bn, bn), 0)
        cc = jax.lax.broadcasted_iota(jnp.int32, (bn, bn), 1)
        ok = ((jnp.right_shift(rr, LOG2_NPAD) == jnp.right_shift(cc, LOG2_NPAD))
              & (jnp.bitwise_and(cc, N_PAD - 1) < N_TOK))
        bias = jnp.where(ok, 0.0, -1e9).astype(jnp.float32)

        for i in range(DEPTH):
            x = _vision_block(x, bias, i, vec, w64, w128)

        # clip_projector: AttentionPoolingBlock (query = per-sample token mean)
        qr = jax.lax.broadcasted_iota(jnp.int32, (B, bn), 0)
        qc = jax.lax.broadcasted_iota(jnp.int32, (B, bn), 1)
        own = ((jnp.right_shift(qc, LOG2_NPAD) == qr)
               & (jnp.bitwise_and(qc, N_PAD - 1) < N_TOK))
        xq = jnp.dot(jnp.where(own, 1.0 / N_TOK, 0.0).astype(jnp.float32), x,
                     preferred_element_type=jnp.float32)            # [B, D]
        q = _mm(_ln(xq, vec('ap_nq_g'), vec('ap_nq_b')), w64('ap_q')) + vec('ap_q_b')
        k = _mm(_ln(x, vec('ap_nk_g'), vec('ap_nk_b')), w64('ap_k')) + vec('ap_k_b')
        v = _mm(_ln(x, vec('ap_nv_g'), vec('ap_nv_b')), w64('ap_v')) + vec('ap_v_b')
        pool_bias = jnp.where(own, 0.0, -1e9).astype(jnp.float32)    # [B, bn]
        pooled = (_mha(q, k, v, pool_bias, w64('ap_proj'), ATTN_POOL_HEADS)
                  + vec('ap_proj_b', CLIP_EMBED_DIM))                # [B, clip_dim]

        # vision_align: LayerNorm + Linear -> shared embedding width
        v_out = (_mm(_ln(pooled, vec('va_g', CLIP_EMBED_DIM),
                         vec('va_b', CLIP_EMBED_DIM)), va_w_ref[...])
                 + vec('va_bias', ALIGN_DIM))
        emb_ref[0] = v_out

    # --------------------------------- text ----------------------------------
    @pl.when(tower == 1)
    def _text():
        bl = B * CTX_LEN
        # token-embedding gather as a one-hot matmul (no dynamic indexing)
        voc = jax.lax.broadcasted_iota(jnp.int32, (bl, VOCAB), 1)
        onehot = (voc == ids_col_ref[...]).astype(jnp.float32)
        x = _mm(onehot, w128('tok_emb'))                             # [B*L, D]
        r_tok = jax.lax.broadcasted_iota(jnp.int32, (bl, 1), 0)
        l_iota = jax.lax.broadcasted_iota(jnp.int32, (bl, CTX_LEN), 1)
        pos_sel = (l_iota == jnp.bitwise_and(r_tok, CTX_LEN - 1)).astype(jnp.float32)
        x = x + jnp.dot(pos_sel, vec('txt_pos', nrows=CTX_LEN),
                        preferred_element_type=jnp.float32)

        # additive mask: same sample, causal, and key not padded
        rr = jax.lax.broadcasted_iota(jnp.int32, (bl, bl), 0)
        cc = jax.lax.broadcasted_iota(jnp.int32, (bl, bl), 1)
        ok = ((jnp.right_shift(rr, LOG2_L) == jnp.right_shift(cc, LOG2_L))
              & (jnp.bitwise_and(cc, CTX_LEN - 1) <= jnp.bitwise_and(rr, CTX_LEN - 1))
              & (am_ref[...] > 0))
        bias = jnp.where(ok, 0.0, -1e9).astype(jnp.float32)

        for i in range(TEXT_DEPTH):
            x = _text_block(x, bias, i, vec, w64, w128)
        x = _ln(x, vec('lnf_g'), vec('lnf_b'))

        # EOT pooling: per-sample first-occurrence argmax over token ids, as a
        # one-hot [B, B*L] selection matmul (ids*L - pos breaks ties correctly)
        pr = jax.lax.broadcasted_iota(jnp.int32, (B, bl), 0)
        pc = jax.lax.broadcasted_iota(jnp.int32, (B, bl), 1)
        sameb = jnp.right_shift(pc, LOG2_L) == pr
        score = (ids_flat_ref[...].astype(jnp.float32) * CTX_LEN
                 - jnp.bitwise_and(pc, CTX_LEN - 1).astype(jnp.float32))
        score = jnp.where(sameb, score, -1e6)
        sel = (score == jnp.max(score, axis=-1, keepdims=True)).astype(jnp.float32)
        pooled = jnp.dot(sel, x, preferred_element_type=jnp.float32)  # [B, D]
        emb_ref[0] = _mm(pooled, w64('txt_proj'))                     # [B, PROJ_DIM]


def _vtc_kernel(emb_ref, idx_col_ref, idx_row_ref, temp_ref, o_ref):
    """VTC_VTM_Loss.vtc_loss (single device; all_gather is a no-op here)."""
    v = emb_ref[0]
    t = emb_ref[1]
    # F.normalize(..., eps=1e-12)
    v = v / jnp.maximum(jnp.sqrt(jnp.sum(v * v, axis=-1, keepdims=True)), 1e-12)
    t = t / jnp.maximum(jnp.sqrt(jnp.sum(t * t, axis=-1, keepdims=True)), 1e-12)
    temp = jnp.maximum(temp_ref[...], TEMP_MIN)        # clip_contrastive_temperature
    sim = jnp.dot(v, t.T, preferred_element_type=jnp.float32) / temp

    pos = (idx_col_ref[...] == idx_row_ref[...]).astype(jnp.float32)   # [B, B]
    nb = pos.shape[0]
    tgt_r = pos / jnp.sum(pos, axis=-1, keepdims=True)   # i2t targets (row-norm)
    tgt_c = pos / jnp.sum(pos, axis=0, keepdims=True)    # t2i targets (== tgt.T)

    zr = sim - jnp.max(sim, axis=-1, keepdims=True)
    logp_r = zr - jnp.log(jnp.sum(jnp.exp(zr), axis=-1, keepdims=True))
    zc = sim - jnp.max(sim, axis=0, keepdims=True)
    logp_c = zc - jnp.log(jnp.sum(jnp.exp(zc), axis=0, keepdims=True))

    def total(m):  # sum of all elements -> [1, 1]
        return jnp.sum(jnp.sum(m, axis=-1, keepdims=True), axis=0, keepdims=True)

    o_ref[...] = 0.5 * (total(-logp_r * tgt_r) + total(-logp_c * tgt_c)) / nb


# --------------------------- model forward (glue) ----------------------------
def _full_spec(a):
    nd = a.ndim
    return pl.BlockSpec(a.shape, lambda *_: (0,) * nd)


def forward(params, image, input_ids, attention_mask, idx):
    """InternVideo2_CLIP_small.forward -> dict(loss_vtc=...)."""
    b = image.shape[0]
    # encode_vision preamble: [B,T,C,H,W] -> [B,C,T,H,W] -> tubelet unfold.
    # TODO(synk): kept as a host-side transpose/reshape of the 24 KiB video;
    # folding it into the kernel DMA would need a gather-style index_map.
    x = jnp.transpose(image, (0, 2, 1, 3, 4))
    x = x.reshape(b, C_IN, NP_T, TUBELET, NP_S, PATCH, NP_S, PATCH)
    patches = jnp.transpose(x, (0, 2, 4, 6, 1, 3, 5, 7)).reshape(
        b * N_PATCH, PATCH_FEAT).astype(jnp.float32)

    ids_col = input_ids.reshape(b * CTX_LEN, 1).astype(jnp.int32)
    ids_flat = input_ids.reshape(1, b * CTX_LEN).astype(jnp.int32)
    am_flat = attention_mask.reshape(1, b * CTX_LEN).astype(jnp.int32)

    operands = (patches, ids_col, ids_flat, am_flat,
                params['vec'], params['w64'], params['w128'],
                params['patch_w'], params['va_w'])
    emb = pl.pallas_call(
        _towers_kernel,
        out_shape=jax.ShapeDtypeStruct((2, b, ALIGN_DIM), jnp.float32),
        grid=(2,),                                 # 0: vision tower, 1: text tower
        in_specs=[_full_spec(a) for a in operands],
        out_specs=pl.BlockSpec((1, b, ALIGN_DIM), lambda i: (i, 0, 0)),
        compiler_params=pltpu.CompilerParams(dimension_semantics=("parallel",)),
    )(*operands)

    loss = pl.pallas_call(
        _vtc_kernel,
        out_shape=jax.ShapeDtypeStruct((1, 1), jnp.float32),
        in_specs=[pl.BlockSpec(memory_space=pltpu.MemorySpace.VMEM)] * 4,
        out_specs=pl.BlockSpec(memory_space=pltpu.MemorySpace.VMEM),
    )(emb,
      idx.reshape(b, 1).astype(jnp.int32),
      idx.reshape(1, b).astype(jnp.int32),
      params['temp'].reshape(1, 1))
    return dict(loss_vtc=loss[0, 0])


# ------------------------------ parameter init -------------------------------
def init_params(key):
    keys = iter(jax.random.split(key, 64))

    def rnd(shape, scale=0.02):
        return (scale * jax.random.normal(next(keys), shape)).astype(jnp.float32)

    rows = []
    for name, k in _VEC_ITEMS:
        w = _vec_width(name)
        if name in ('cls', 'vis_pos', 'txt_pos'):
            r = rnd((k, w))
        elif name.endswith('_g'):                    # norm gains
            r = jnp.ones((k, w), jnp.float32)
        elif name.endswith('ls1') or name.endswith('ls2'):
            r = jnp.full((k, w), INIT_VALUES, jnp.float32)
        else:                                        # biases / layer-norm shifts
            r = jnp.zeros((k, w), jnp.float32)
        rows.append(jnp.pad(r, ((0, 0), (0, VEC_W - w))))
    vec = jnp.concatenate(rows, axis=0)              # [VEC_NROWS, 192] f32

    def bank(items, nrows):                          # bf16 matmul weight banks
        return jnp.concatenate([rnd((nrows, w)) for _, w in items],
                               axis=1).astype(jnp.bfloat16)

    return dict(
        vec=vec,
        w64=bank(_W64_ITEMS, EMBED_DIM),             # [64, 1808] bf16
        w128=bank(_W128_ITEMS, MLP_HID),             # [128, 320] bf16
        patch_w=rnd((PATCH_FEAT, EMBED_DIM)).astype(jnp.bfloat16),
        va_w=rnd((CLIP_EMBED_DIM, ALIGN_DIM)).astype(jnp.bfloat16),
        temp=jnp.asarray(TEMP, jnp.float32),
    )


# ----------------------------------- main ------------------------------------
if __name__ == "__main__":
    # TODO(synk): tokenizer, torchvision preprocessing, checkpoint loading and
    # the distributed all_gather inside vtc_loss have no Pallas equivalent and
    # are out of scope (single-device loss shown).
    key = jax.random.PRNGKey(0)
    k_img, k_ids, k_par = jax.random.split(key, 3)

    image = jax.random.normal(k_img, (B, T_FRAMES, C_IN, IMG, IMG), jnp.float32)
    input_ids = jax.random.randint(k_ids, (B, CTX_LEN), 1, VOCAB, dtype=jnp.int32)
    attention_mask = jnp.ones((B, CTX_LEN), jnp.int32)
    idx = jnp.arange(B, dtype=jnp.int32)

    params = init_params(k_par)

    fwd = jax.jit(forward)
    out = fwd(params, image, input_ids, attention_mask, idx)
    loss = jax.block_until_ready(out['loss_vtc'])
    assert loss.shape == () and bool(jnp.isfinite(loss))
    print("KERNEL_OK")
</pallas_src>

<mosaic_0001>
module attributes {stable_mosaic.version = 11 : i64} {
  func.func @_vtc_kernel(%arg0: memref<2x2x32xf32, #tpu.memory_space<vmem>>, %arg1: memref<2x1xi32, #tpu.memory_space<vmem>>, %arg2: memref<1x2xi32, #tpu.memory_space<vmem>>, %arg3: memref<1x1xf32, #tpu.memory_space<vmem>>, %arg4: memref<1x1xf32, #tpu.memory_space<vmem>>) attributes {dimension_semantics = [], scalar_prefetch = 0 : i64, scratch_operands = 0 : i64, tpu.core_type = #tpu.core_type<tc>} {
    %c0 = arith.constant 0 : index
    %c0_0 = arith.constant 0 : index
    %c0_1 = arith.constant 0 : index
    %0 = vector.load %arg0[%c0, %c0_0, %c0_1] : memref<2x2x32xf32, #tpu.memory_space<vmem>>, vector<1x2x32xf32>
    %1 = vector.shape_cast %0 : vector<1x2x32xf32> to vector<2x32xf32>
    %c1 = arith.constant 1 : index
    %c0_2 = arith.constant 0 : index
    %c0_3 = arith.constant 0 : index
    %2 = vector.load %arg0[%c1, %c0_2, %c0_3] : memref<2x2x32xf32, #tpu.memory_space<vmem>>, vector<1x2x32xf32>
    %3 = vector.shape_cast %2 : vector<1x2x32xf32> to vector<2x32xf32>
    %4 = arith.mulf %1, %1 : vector<2x32xf32>
    %cst = arith.constant dense<0.000000e+00> : vector<2xf32>
    %5 = vector.multi_reduction <add>, %4, %cst [1] : vector<2x32xf32> to vector<2xf32>
    %6 = vector.shape_cast %5 : vector<2xf32> to vector<2x1xf32>
    %7 = math.sqrt %6 : vector<2x1xf32>
    %cst_4 = arith.constant 9.99999996E-13 : f32
    %8 = vector.broadcast %cst_4 : f32 to vector<2x1xf32>
    %9 = arith.maximumf %7, %8 : vector<2x1xf32>
    %10 = vector.broadcast %9 : vector<2x1xf32> to vector<2x32xf32>
    %11 = arith.divf %1, %10 : vector<2x32xf32>
    %12 = arith.mulf %3, %3 : vector<2x32xf32>
    %cst_5 = arith.constant dense<0.000000e+00> : vector<2xf32>
    %13 = vector.multi_reduction <add>, %12, %cst_5 [1] : vector<2x32xf32> to vector<2xf32>
    %14 = vector.shape_cast %13 : vector<2xf32> to vector<2x1xf32>
    %15 = math.sqrt %14 : vector<2x1xf32>
    %cst_6 = arith.constant 9.99999996E-13 : f32
    %16 = vector.broadcast %cst_6 : f32 to vector<2x1xf32>
    %17 = arith.maximumf %15, %16 : vector<2x1xf32>
    %18 = vector.broadcast %17 : vector<2x1xf32> to vector<2x32xf32>
    %19 = arith.divf %3, %18 : vector<2x32xf32>
    %c0_7 = arith.constant 0 : index
    %c0_8 = arith.constant 0 : index
    %20 = vector.load %arg3[%c0_7, %c0_8] : memref<1x1xf32, #tpu.memory_space<vmem>>, vector<1x1xf32>
    %cst_9 = arith.constant 0.00999999977 : f32
    %21 = vector.broadcast %cst_9 : f32 to vector<1x1xf32>
    %22 = arith.maximumf %20, %21 : vector<1x1xf32>
    %23 = tpu.transpose %19, [1, 0] : vector<2x32xf32> -> vector<32x2xf32>
    %cst_10 = arith.constant dense<0.000000e+00> : vector<2x2xf32>
    %24 = tpu.matmul %11, %23, %cst_10 {dimension_numbers = #tpu.dot_dimension_numbers<[1], [0], [0], [1], [0, 0, 1, 1], [], []>} : vector<2x32xf32>, vector<32x2xf32>, vector<2x2xf32> -> vector<2x2xf32>
    %25 = vector.broadcast %22 : vector<1x1xf32> to vector<2x2xf32>
    %26 = arith.divf %24, %25 : vector<2x2xf32>
    %c0_11 = arith.constant 0 : index
    %c0_12 = arith.constant 0 : index
    %27 = vector.load %arg1[%c0_11, %c0_12] : memref<2x1xi32, #tpu.memory_space<vmem>>, vector<2x1xi32>
    %c0_13 = arith.constant 0 : index
    %c0_14 = arith.constant 0 : index
    %28 = vector.load %arg2[%c0_13, %c0_14] : memref<1x2xi32, #tpu.memory_space<vmem>>, vector<1x2xi32>
    %29 = vector.broadcast %27 : vector<2x1xi32> to vector<2x2xi32>
    %30 = vector.broadcast %28 : vector<1x2xi32> to vector<2x2xi32>
    %31 = arith.cmpi eq, %29, %30 : vector<2x2xi32>
    %32 = arith.extui %31 : vector<2x2xi1> to vector<2x2xi32>
    %33 = arith.sitofp %32 : vector<2x2xi32> to vector<2x2xf32>
    %cst_15 = arith.constant dense<0.000000e+00> : vector<2xf32>
    %34 = vector.multi_reduction <add>, %33, %cst_15 [1] : vector<2x2xf32> to vector<2xf32>
    %35 = vector.shape_cast %34 : vector<2xf32> to vector<2x1xf32>
    %36 = vector.broadcast %35 : vector<2x1xf32> to vector<2x2xf32>
    %37 = arith.divf %33, %36 : vector<2x2xf32>
    %cst_16 = arith.constant dense<0.000000e+00> : vector<2xf32>
    %38 = vector.multi_reduction <add>, %33, %cst_16 [0] : vector<2x2xf32> to vector<2xf32>
    %39 = vector.shape_cast %38 : vector<2xf32> to vector<1x2xf32>
    %40 = vector.broadcast %39 : vector<1x2xf32> to vector<2x2xf32>
    %41 = arith.divf %33, %40 : vector<2x2xf32>
    %cst_17 = arith.constant dense<0xFF800000> : vector<2xf32>
    %42 = vector.multi_reduction <maximumf>, %26, %cst_17 [1] : vector<2x2xf32> to vector<2xf32>
    %43 = vector.shape_cast %42 : vector<2xf32> to vector<2x1xf32>
    %44 = vector.broadcast %43 : vector<2x1xf32> to vector<2x2xf32>
    %45 = arith.subf %26, %44 : vector<2x2xf32>
    %46 = math.exp %45 : vector<2x2xf32>
    %cst_18 = arith.constant dense<0.000000e+00> : vector<2xf32>
    %47 = vector.multi_reduction <add>, %46, %cst_18 [1] : vector<2x2xf32> to vector<2xf32>
    %48 = vector.shape_cast %47 : vector<2xf32> to vector<2x1xf32>
    %49 = math.log %48 : vector<2x1xf32>
    %50 = vector.broadcast %49 : vector<2x1xf32> to vector<2x2xf32>
    %51 = arith.subf %45, %50 : vector<2x2xf32>
    %cst_19 = arith.constant dense<0xFF800000> : vector<2xf32>
    %52 = vector.multi_reduction <maximumf>, %26, %cst_19 [0] : vector<2x2xf32> to vector<2xf32>
    %53 = vector.shape_cast %52 : vector<2xf32> to vector<1x2xf32>
    %54 = vector.broadcast %53 : vector<1x2xf32> to vector<2x2xf32>
    %55 = arith.subf %26, %54 : vector<2x2xf32>
    %56 = math.exp %55 : vector<2x2xf32>
    %cst_20 = arith.constant dense<0.000000e+00> : vector<2xf32>
    %57 = vector.multi_reduction <add>, %56, %cst_20 [0] : vector<2x2xf32> to vector<2xf32>
    %58 = vector.shape_cast %57 : vector<2xf32> to vector<1x2xf32>
    %59 = math.log %58 : vector<1x2xf32>
    %60 = vector.broadcast %59 : vector<1x2xf32> to vector<2x2xf32>
    %61 = arith.subf %55, %60 : vector<2x2xf32>
    %cst_21 = arith.constant 0.000000e+00 : f32
    %62 = vector.broadcast %cst_21 : f32 to vector<2x2xf32>
    %63 = arith.subf %62, %51 : vector<2x2xf32>
    %64 = arith.mulf %63, %37 : vector<2x2xf32>
    %cst_22 = arith.constant dense<0.000000e+00> : vector<2xf32>
    %65 = vector.multi_reduction <add>, %64, %cst_22 [1] : vector<2x2xf32> to vector<2xf32>
    %66 = vector.shape_cast %65 : vector<2xf32> to vector<2x1xf32>
    %cst_23 = arith.constant dense<0.000000e+00> : vector<1xf32>
    %67 = vector.multi_reduction <add>, %66, %cst_23 [0] : vector<2x1xf32> to vector<1xf32>
    %68 = vector.shape_cast %67 : vector<1xf32> to vector<1x1xf32>
    %cst_24 = arith.constant 0.000000e+00 : f32
    %69 = vector.broadcast %cst_24 : f32 to vector<2x2xf32>
    %70 = arith.subf %69, %61 : vector<2x2xf32>
    %71 = arith.mulf %70, %41 : vector<2x2xf32>
    %cst_25 = arith.constant dense<0.000000e+00> : vector<2xf32>
    %72 = vector.multi_reduction <add>, %71, %cst_25 [1] : vector<2x2xf32> to vector<2xf32>
    %73 = vector.shape_cast %72 : vector<2xf32> to vector<2x1xf32>
    %cst_26 = arith.constant dense<0.000000e+00> : vector<1xf32>
    %74 = vector.multi_reduction <add>, %73, %cst_26 [0] : vector<2x1xf32> to vector<1xf32>
    %75 = vector.shape_cast %74 : vector<1xf32> to vector<1x1xf32>
    %76 = arith.addf %68, %75 : vector<1x1xf32>
    %cst_27 = arith.constant 5.000000e-01 : f32
    %77 = vector.broadcast %cst_27 : f32 to vector<1x1xf32>
    %78 = arith.mulf %77, %76 : vector<1x1xf32>
    %cst_28 = arith.constant 2.000000e+00 : f32
    %79 = vector.broadcast %cst_28 : f32 to vector<1x1xf32>
    %80 = arith.divf %78, %79 : vector<1x1xf32>
    %c0_29 = arith.constant 0 : index
    %c0_30 = arith.constant 0 : index
    %81 = vector.load %arg4[%c0_29, %c0_30] : memref<1x1xf32, #tpu.memory_space<vmem>>, vector<1x1xf32>
    tpu.vector_store %arg4[%c0_29, %c0_30], %80 {strides = array<i32>} : memref<1x1xf32, #tpu.memory_space<vmem>>, vector<1x1xf32>,
    return
  }
}

module attributes {stable_mosaic.version = 11 : i64} {
  func.func @_towers_kernel(%arg0: i32, %arg1: memref<16x384xf32, #tpu.memory_space<vmem>>, %arg2: memref<16x1xi32, #tpu.memory_space<vmem>>, %arg3: memref<1x16xi32, #tpu.memory_space<vmem>>, %arg4: memref<1x16xi32, #tpu.memory_space<vmem>>, %arg5: memref<70x192xf32, #tpu.memory_space<vmem>>, %arg6: memref<64x1808xbf16, #tpu.memory_space<vmem>>, %arg7: memref<128x320xbf16, #tpu.memory_space<vmem>>, %arg8: memref<384x64xbf16, #tpu.memory_space<vmem>>, %arg9: memref<48x32xbf16, #tpu.memory_space<vmem>>, %arg10: memref<1x2x32xf32, #tpu.memory_space<vmem>>) attributes {dimension_semantics = [#tpu.dimension_semantics<parallel>], iteration_bounds = array<i64: 2>, scalar_prefetch = 0 : i64, scratch_operands = 0 : i64, tpu.core_type = #tpu.core_type<tc>, window_params = [{pipeline_mode = #tpu.pipeline_mode<synchronous>, transform_indices = @transform_0, window_bounds = array<i64: 16, 384>}, {pipeline_mode = #tpu.pipeline_mode<synchronous>, transform_indices = @transform_1, window_bounds = array<i64: 16, 1>}, {pipeline_mode = #tpu.pipeline_mode<synchronous>, transform_indices = @transform_2, window_bounds = array<i64: 1, 16>}, {pipeline_mode = #tpu.pipeline_mode<synchronous>, transform_indices = @transform_3, window_bounds = array<i64: 1, 16>}, {pipeline_mode = #tpu.pipeline_mode<synchronous>, transform_indices = @transform_4, window_bounds = array<i64: 70, 192>}, {pipeline_mode = #tpu.pipeline_mode<synchronous>, transform_indices = @transform_5, window_bounds = array<i64: 64, 1808>}, {pipeline_mode = #tpu.pipeline_mode<synchronous>, transform_indices = @transform_6, window_bounds = array<i64: 128, 320>}, {pipeline_mode = #tpu.pipeline_mode<synchronous>, transform_indices = @transform_7, window_bounds = array<i64: 384, 64>}, {pipeline_mode = #tpu.pipeline_mode<synchronous>, transform_indices = @transform_8, window_bounds = array<i64: 48, 32>}, {transform_indices = @transform_9, window_bounds = array<i64: 1, 2, 32>}]} {
    %c0_i32 = arith.constant 0 : i32
    %0 = arith.cmpi eq, %arg0, %c0_i32 : i32
    %1 = arith.extui %0 : i1 to i32
    %c0_i32_0 = arith.constant 0 : i32
    %2 = arith.cmpi ne, %1, %c0_i32_0 : i32
    scf.if %2 {
      %c0 = arith.constant 0 : index
      %c0_2 = arith.constant 0 : index
      %6 = vector.load %arg1[%c0, %c0_2] : memref<16x384xf32, #tpu.memory_space<vmem>>, vector<16x384xf32>
      %c0_3 = arith.constant 0 : index
      %c0_4 = arith.constant 0 : index
      %7 = vector.load %arg8[%c0_3, %c0_4] : memref<384x64xbf16, #tpu.memory_space<vmem>>, vector<384x64xbf16>
      %8 = arith.truncf %6 : vector<16x384xf32> to vector<16x384xbf16>
      %cst = arith.constant dense<0.000000e+00> : vector<16x64xf32>
      %9 = tpu.matmul %8, %7, %cst {dimension_numbers = #tpu.dot_dimension_numbers<[1], [0], [0], [1], [0, 0, 1, 1], [], []>} : vector<16x384xbf16>, vector<384x64xbf16>, vector<16x64xf32> -> vector<16x64xf32>
      %c0_5 = arith.constant 0 : index
      %c0_6 = arith.constant 0 : index
      %10 = vector.load %arg5[%c0_5, %c0_6] : memref<70x192xf32, #tpu.memory_space<vmem>>, vector<1x64xf32>
      %11 = vector.broadcast %10 : vector<1x64xf32> to vector<16x64xf32>
      %12 = arith.addf %9, %11 : vector<16x64xf32>
      %13 = tpu.iota {dimensions = array<i32: 0>} : vector<32x1xi32>
      %c15_i32 = arith.constant 15 : i32
      %14 = vector.broadcast %c15_i32 : i32 to vector<32x1xi32>
      %15 = arith.andi %13, %14 : vector<32x1xi32>
      %c4_i32 = arith.constant 4 : i32
      %16 = vector.broadcast %c4_i32 : i32 to vector<32x1xi32>
      %17 = arith.shrsi %13, %16 : vector<32x1xi32>
      %c1_i32_7 = arith.constant 1 : i32
      %18 = vector.broadcast %c1_i32_7 : i32 to vector<32x1xi32>
      %19 = arith.cmpi sge, %15, %18 : vector<32x1xi32>
      %c8_i32 = arith.constant 8 : i32
      %20 = vector.broadcast %c8_i32 : i32 to vector<32x1xi32>
      %21 = arith.cmpi sle, %15, %20 : vector<32x1xi32>
      %22 = arith.andi %19, %21 : vector<32x1xi1>
      %23 = tpu.iota {dimensions = array<i32: 1>} : vector<32x16xi32>
      %c8_i32_8 = arith.constant 8 : i32
      %24 = vector.broadcast %c8_i32_8 : i32 to vector<32x1xi32>
      %25 = arith.muli %17, %24 : vector<32x1xi32>
      %26 = arith.addi %25, %15 : vector<32x1xi32>
      %c1_i32_9 = arith.constant 1 : i32
      %27 = vector.broadcast %c1_i32_9 : i32 to vector<32x1xi32>
      %28 = arith.subi %26, %27 : vector<32x1xi32>
      %29 = vector.broadcast %28 : vector<32x1xi32> to vector<32x16xi32>
      %30 = arith.cmpi eq, %23, %29 : vector<32x16xi32>
      %31 = vector.broadcast %22 : vector<32x1xi1> to vector<32x16xi1>
      %32 = arith.andi %31, %30 : vector<32x16xi1>
      %33 = arith.extui %32 : vector<32x16xi1> to vector<32x16xi32>
      %34 = arith.sitofp %33 : vector<32x16xi32> to vector<32x16xf32>
      %35 = tpu.iota {dimensions = array<i32: 1>} : vector<32x9xi32>
      %c9_i32 = arith.constant 9 : i32
      %36 = vector.broadcast %c9_i32 : i32 to vector<32x1xi32>
      %37 = arith.cmpi slt, %15, %36 : vector<32x1xi32>
      %38 = vector.broadcast %15 : vector<32x1xi32> to vector<32x9xi32>
      %39 = arith.cmpi eq, %35, %38 : vector<32x9xi32>
      %40 = vector.broadcast %37 : vector<32x1xi1> to vector<32x9xi1>
      %41 = arith.andi %40, %39 : vector<32x9xi1>
      %42 = arith.extui %41 : vector<32x9xi1> to vector<32x9xi32>
      %43 = arith.sitofp %42 : vector<32x9xi32> to vector<32x9xf32>
      %cst_10 = arith.constant dense<0.000000e+00> : vector<32x64xf32>
      %44 = tpu.matmul %34, %12, %cst_10 {dimension_numbers = #tpu.dot_dimension_numbers<[1], [0], [0], [1], [0, 0, 1, 1], [], []>} : vector<32x16xf32>, vector<16x64xf32>, vector<32x64xf32> -> vector<32x64xf32>
      %c2 = arith.constant 2 : index
      %c0_11 = arith.constant 0 : index
      %45 = vector.load %arg5[%c2, %c0_11] : memref<70x192xf32, #tpu.memory_space<vmem>>, vector<9x64xf32>
      %cst_12 = arith.constant dense<0.000000e+00> : vector<32x64xf32>
      %46 = tpu.matmul %43, %45, %cst_12 {dimension_numbers = #tpu.dot_dimension_numbers<[1], [0], [0], [1], [0, 0, 1, 1], [], []>} : vector<32x9xf32>, vector<9x64xf32>, vector<32x64xf32> -> vector<32x64xf32>
      %47 = arith.addf %44, %46 : vector<32x64xf32>
      %c0_i32_13 = arith.constant 0 : i32
      %48 = vector.broadcast %c0_i32_13 : i32 to vector<32x1xi32>
      %49 = arith.cmpi eq, %15, %48 : vector<32x1xi32>
      %50 = arith.extui %49 : vector<32x1xi1> to vector<32x1xi32>
      %51 = arith.sitofp %50 : vector<32x1xi32> to vector<32x1xf32>
      %c1 = arith.constant 1 : index
      %c0_14 = arith.constant 0 : index
      %52 = vector.load %arg5[%c1, %c0_14] : memref<70x192xf32, #tpu.memory_space<vmem>>, vector<1x64xf32>
      %53 = vector.broadcast %51 : vector<32x1xf32> to vector<32x64xf32>
      %54 = vector.broadcast %52 : vector<1x64xf32> to vector<32x64xf32>
      %55 = arith.mulf %53, %54 : vector<32x64xf32>
      %56 = arith.addf %47, %55 : vector<32x64xf32>
      %57 = tpu.iota {dimensions = array<i32: 0>} : vector<32x32xi32>
      %58 = tpu.iota {dimensions = array<i32: 1>} : vector<32x32xi32>
      %c4_i32_15 = arith.constant 4 : i32
      %59 = vector.broadcast %c4_i32_15 : i32 to vector<32x32xi32>
      %60 = arith.shrsi %57, %59 : vector<32x32xi32>
      %c4_i32_16 = arith.constant 4 : i32
      %61 = vector.broadcast %c4_i32_16 : i32 to vector<32x32xi32>
      %62 = arith.shrsi %58, %61 : vector<32x32xi32>
      %63 = arith.cmpi eq, %60, %62 : vector<32x32xi32>
      %c15_i32_17 = arith.constant 15 : i32
      %64 = vector.broadcast %c15_i32_17 : i32 to vector<32x32xi32>
      %65 = arith.andi %58, %64 : vector<32x32xi32>
      %c9_i32_18 = arith.constant 9 : i32
      %66 = vector.broadcast %c9_i32_18 : i32 to vector<32x32xi32>
      %67 = arith.cmpi slt, %65, %66 : vector<32x32xi32>
      %68 = arith.andi %63, %67 : vector<32x32xi1>
      %cst_19 = arith.constant 0.000000e+00 : f32
      %cst_20 = arith.constant -1.000000e+09 : f32
      %69 = vector.broadcast %cst_19 : f32 to vector<32x32xf32>
      %70 = vector.broadcast %cst_20 : f32 to vector<32x32xf32>
      %71 = arith.select %68, %69, %70 : vector<32x32xi1>, vector<32x32xf32>
      %c11 = arith.constant 11 : index
      %c0_21 = arith.constant 0 : index
      %72 = vector.load %arg5[%c11, %c0_21] : memref<70x192xf32, #tpu.memory_space<vmem>>, vector<1x64xf32>
      %73 = arith.mulf %56, %56 : vector<32x64xf32>
      %cst_22 = arith.constant dense<0.000000e+00> : vector<32xf32>
      %74 = vector.multi_reduction <add>, %73, %cst_22 [1] : vector<32x64xf32> to vector<32xf32>
      %75 = vector.shape_cast %74 : vector<32xf32> to vector<32x1xf32>
      %cst_23 = arith.constant 6.400000e+01 : f32
      %76 = vector.broadcast %cst_23 : f32 to vector<32x1xf32>
      %77 = arith.divf %75, %76 : vector<32x1xf32>
      %cst_24 = arith.constant 9.99999997E-7 : f32
      %78 = vector.broadcast %cst_24 : f32 to vector<32x1xf32>
      %79 = arith.addf %77, %78 : vector<32x1xf32>
      %80 = math.rsqrt %79 : vector<32x1xf32>
      %81 = vector.broadcast %80 : vector<32x1xf32> to vector<32x64xf32>
      %82 = arith.mulf %56, %81 : vector<32x64xf32>
      %83 = vector.broadcast %72 : vector<1x64xf32> to vector<32x64xf32>
      %84 = arith.mulf %82, %83 : vector<32x64xf32>
      %c0_25 = arith.constant 0 : index
      %c0_26 = arith.constant 0 : index
      %85 = vector.load %arg6[%c0_25, %c0_26] : memref<64x1808xbf16, #tpu.memory_space<vmem>>, vector<64x192xbf16>
      %86 = arith.truncf %84 : vector<32x64xf32> to vector<32x64xbf16>
      %cst_27 = arith.constant dense<0.000000e+00> : vector<32x192xf32>
      %87 = tpu.matmul %86, %85, %cst_27 {dimension_numbers = #tpu.dot_dimension_numbers<[1], [0], [0], [1], [0, 0, 1, 1], [], []>} : vector<32x64xbf16>, vector<64x192xbf16>, vector<32x192xf32> -> vector<32x192xf32>
      %c12 = arith.constant 12 : index
      %c0_28 = arith.constant 0 : index
      %88 = vector.load %arg5[%c12, %c0_28] : memref<70x192xf32, #tpu.memory_space<vmem>>, vector<1x192xf32>
      %89 = vector.broadcast %88 : vector<1x192xf32> to vector<32x192xf32>
      %90 = arith.addf %87, %89 : vector<32x192xf32>
      %91 = vector.extract_strided_slice %90 {offsets = [0, 0], sizes = [32, 64], strides = [1, 1]} : vector<32x192xf32> to vector<32x64xf32>
      %c13 = arith.constant 13 : index
      %c0_29 = arith.constant 0 : index
      %92 = vector.load %arg5[%c13, %c0_29] : memref<70x192xf32, #tpu.memory_space<vmem>>, vector<1x64xf32>
      %93 = arith.mulf %91, %91 : vector<32x64xf32>
      %cst_30 = arith.constant dense<0.000000e+00> : vector<32xf32>
      %94 = vector.multi_reduction <add>, %93, %cst_30 [1] : vector<32x64xf32> to vector<32xf32>
      %95 = vector.shape_cast %94 : vector<32xf32> to vector<32x1xf32>
      %cst_31 = arith.constant 6.400000e+01 : f32
      %96 = vector.broadcast %cst_31 : f32 to vector<32x1xf32>
      %97 = arith.divf %95, %96 : vector<32x1xf32>
      %cst_32 = arith.constant 9.99999997E-7 : f32
      %98 = vector.broadcast %cst_32 : f32 to vector<32x1xf32>
      %99 = arith.addf %97, %98 : vector<32x1xf32>
      %100 = math.rsqrt %99 : vector<32x1xf32>
      %101 = vector.broadcast %100 : vector<32x1xf32> to vector<32x64xf32>
      %102 = arith.mulf %91, %101 : vector<32x64xf32>
      %103 = vector.broadcast %92 : vector<1x64xf32> to vector<32x64xf32>
      %104 = arith.mulf %102, %103 : vector<32x64xf32>
      %105 = vector.extract_strided_slice %90 {offsets = [0, 64], sizes = [32, 64], strides = [1, 1]} : vector<32x192xf32> to vector<32x64xf32>
      %c14 = arith.constant 14 : index
      %c0_33 = arith.constant 0 : index
      %106 = vector.load %arg5[%c14, %c0_33] : memref<70x192xf32, #tpu.memory_space<vmem>>, vector<1x64xf32>
      %107 = arith.mulf %105, %105 : vector<32x64xf32>
      %cst_34 = arith.constant dense<0.000000e+00> : vector<32xf32>
      %108 = vector.multi_reduction <add>, %107, %cst_34 [1] : vector<32x64xf32> to vector<32xf32>
      %109 = vector.shape_cast %108 : vector<32xf32> to vector<32x1xf32>
      %cst_35 = arith.constant 6.400000e+01 : f32
      %110 = vector.broadcast %cst_35 : f32 to vector<32x1xf32>
      %111 = arith.divf %109, %110 : vector<32x1xf32>
      %cst_36 = arith.constant 9.99999997E-7 : f32
      %112 = vector.broadcast %cst_36 : f32 to vector<32x1xf32>
      %113 = arith.addf %111, %112 : vector<32x1xf32>
      %114 = math.rsqrt %113 : vector<32x1xf32>
      %115 = vector.broadcast %114 : vector<32x1xf32> to vector<32x64xf32>
      %116 = arith.mulf %105, %115 : vector<32x64xf32>
      %117 = vector.broadcast %106 : vector<1x64xf32> to vector<32x64xf32>
      %118 = arith.mulf %116, %117 : vector<32x64xf32>
      %119 = vector.extract_strided_slice %90 {offsets = [0, 128], sizes = [32, 64], strides = [1, 1]} : vector<32x192xf32> to vector<32x64xf32>
      %c0_37 = arith.constant 0 : index
      %c192 = arith.constant 192 : index
      %120 = vector.load %arg6[%c0_37, %c192] : memref<64x1808xbf16, #tpu.memory_space<vmem>>, vector<64x64xbf16>
      %121 = vector.extract_strided_slice %104 {offsets = [0, 0], sizes = [32, 16], strides = [1, 1]} : vector<32x64xf32> to vector<32x16xf32>
      %cst_38 = arith.constant 2.500000e-01 : f32
      %122 = vector.broadcast %cst_38 : f32 to vector<32x16xf32>
      %123 = arith.mulf %121, %122 : vector<32x16xf32>
      %124 = vector.extract_strided_slice %118 {offsets = [0, 0], sizes = [32, 16], strides = [1, 1]} : vector<32x64xf32> to vector<32x16xf32>
      %125 = tpu.transpose %124, [1, 0] : vector<32x16xf32> -> vector<16x32xf32>
      %cst_39 = arith.constant dense<0.000000e+00> : vector<32x32xf32>
      %126 = tpu.matmul %123, %125, %cst_39 {dimension_numbers = #tpu.dot_dimension_numbers<[1], [0], [0], [1], [0, 0, 1, 1], [], []>} : vector<32x16xf32>, vector<16x32xf32>, vector<32x32xf32> -> vector<32x32xf32>
      %127 = arith.addf %126, %71 : vector<32x32xf32>
      %cst_40 = arith.constant dense<0xFF800000> : vector<32xf32>
      %128 = vector.multi_reduction <maximumf>, %127, %cst_40 [1] : vector<32x32xf32> to vector<32xf32>
      %129 = vector.shape_cast %128 : vector<32xf32> to vector<32x1xf32>
      %130 = vector.broadcast %129 : vector<32x1xf32> to vector<32x32xf32>
      %131 = arith.subf %127, %130 : vector<32x32xf32>
      %132 = math.exp %131 : vector<32x32xf32>
      %cst_41 = arith.constant dense<0.000000e+00> : vector<32xf32>
      %133 = vector.multi_reduction <add>, %132, %cst_41 [1] : vector<32x32xf32> to vector<32xf32>
      %134 = vector.shape_cast %133 : vector<32xf32> to vector<32x1xf32>
      %135 = tpu.reciprocal %134 {approx = true} : vector<32x1xf32> -> vector<32x1xf32>
      %136 = vector.broadcast %135 : vector<32x1xf32> to vector<32x32xf32>
      %137 = arith.mulf %132, %136 : vector<32x32xf32>
      %138 = vector.extract_strided_slice %119 {offsets = [0, 0], sizes = [32, 16], strides = [1, 1]} : vector<32x64xf32> to vector<32x16xf32>
      %cst_42 = arith.constant dense<0.000000e+00> : vector<32x16xf32>
      %139 = tpu.matmul %137, %138, %cst_42 {dimension_numbers = #tpu.dot_dimension_numbers<[1], [0], [0], [1], [0, 0, 1, 1], [], []>} : vector<32x32xf32>, vector<32x16xf32>, vector<32x16xf32> -> vector<32x16xf32>
      %140 = vector.extract_strided_slice %120 {offsets = [0, 0], sizes = [16, 64], strides = [1, 1]} : vector<64x64xbf16> to vector<16x64xbf16>
      %141 = arith.truncf %139 : vector<32x16xf32> to vector<32x16xbf16>
      %cst_43 = arith.constant dense<0.000000e+00> : vector<32x64xf32>
      %142 = tpu.matmul %141, %140, %cst_43 {dimension_numbers = #tpu.dot_dimension_numbers<[1], [0], [0], [1], [0, 0, 1, 1], [], []>} : vector<32x16xbf16>, vector<16x64xbf16>, vector<32x64xf32> -> vector<32x64xf32>
      %143 = vector.extract_strided_slice %104 {offsets = [0, 16], sizes = [32, 16], strides = [1, 1]} : vector<32x64xf32> to vector<32x16xf32>
      %cst_44 = arith.constant 2.500000e-01 : f32
      %144 = vector.broadcast %cst_44 : f32 to vector<32x16xf32>
      %145 = arith.mulf %143, %144 : vector<32x16xf32>
      %146 = vector.extract_strided_slice %118 {offsets = [0, 16], sizes = [32, 16], strides = [1, 1]} : vector<32x64xf32> to vector<32x16xf32>
      %147 = tpu.transpose %146, [1, 0] : vector<32x16xf32> -> vector<16x32xf32>
      %cst_45 = arith.constant dense<0.000000e+00> : vector<32x32xf32>
      %148 = tpu.matmul %145, %147, %cst_45 {dimension_numbers = #tpu.dot_dimension_numbers<[1], [0], [0], [1], [0, 0, 1, 1], [], []>} : vector<32x16xf32>, vector<16x32xf32>, vector<32x32xf32> -> vector<32x32xf32>
      %149 = arith.addf %148, %71 : vector<32x32xf32>
      %cst_46 = arith.constant dense<0xFF800000> : vector<32xf32>
      %150 = vector.multi_reduction <maximumf>, %149, %cst_46 [1] : vector<32x32xf32> to vector<32xf32>
      %151 = vector.shape_cast %150 : vector<32xf32> to vector<32x1xf32>
      %152 = vector.broadcast %151 : vector<32x1xf32> to vector<32x32xf32>
      %153 = arith.subf %149, %152 : vector<32x32xf32>
      %154 = math.exp %153 : vector<32x32xf32>
      %cst_47 = arith.constant dense<0.000000e+00> : vector<32xf32>
      %155 = vector.multi_reduction <add>, %154, %cst_47 [1] : vector<32x32xf32> to vector<32xf32>
      %156 = vector.shape_cast %155 : vector<32xf32> to vector<32x1xf32>
      %157 = tpu.reciprocal %156 {approx = true} : vector<32x1xf32> -> vector<32x1xf32>
      %158 = vector.broadcast %157 : vector<32x1xf32> to vector<32x32xf32>
      %159 = arith.mulf %154, %158 : vector<32x32xf32>
      %160 = vector.extract_strided_slice %119 {offsets = [0, 16], sizes = [32, 16], strides = [1, 1]} : vector<32x64xf32> to vector<32x16xf32>
      %cst_48 = arith.constant dense<0.000000e+00> : vector<32x16xf32>
      %161 = tpu.matmul %159, %160, %cst_48 {dimension_numbers = #tpu.dot_dimension_numbers<[1], [0], [0], [1], [0, 0, 1, 1], [], []>} : vector<32x32xf32>, vector<32x16xf32>, vector<32x16xf32> -> vector<32x16xf32>
      %162 = vector.extract_strided_slice %120 {offsets = [16, 0], sizes = [16, 64], strides = [1, 1]} : vector<64x64xbf16> to vector<16x64xbf16>
      %163 = arith.truncf %161 : vector<32x16xf32> to vector<32x16xbf16>
      %cst_49 = arith.constant dense<0.000000e+00> : vector<32x64xf32>
      %164 = tpu.matmul %163, %162, %cst_49 {dimension_numbers = #tpu.dot_dimension_numbers<[1], [0], [0], [1], [0, 0, 1, 1], [], []>} : vector<32x16xbf16>, vector<16x64xbf16>, vector<32x64xf32> -> vector<32x64xf32>
      %165 = arith.addf %142, %164 : vector<32x64xf32>
      %166 = vector.extract_strided_slice %104 {offsets = [0, 32], sizes = [32, 16], strides = [1, 1]} : vector<32x64xf32> to vector<32x16xf32>
      %cst_50 = arith.constant 2.500000e-01 : f32
      %167 = vector.broadcast %cst_50 : f32 to vector<32x16xf32>
      %168 = arith.mulf %166, %167 : vector<32x16xf32>
      %169 = vector.extract_strided_slice %118 {offsets = [0, 32], sizes = [32, 16], strides = [1, 1]} : vector<32x64xf32> to vector<32x16xf32>
      %170 = tpu.transpose %169, [1, 0] : vector<32x16xf32> -> vector<16x32xf32>
      %cst_51 = arith.constant dense<0.000000e+00> : vector<32x32xf32>
      %171 = tpu.matmul %168, %170, %cst_51 {dimension_numbers = #tpu.dot_dimension_numbers<[1], [0], [0], [1], [0, 0, 1, 1], [], []>} : vector<32x16xf32>, vector<16x32xf32>, vector<32x32xf32> -> vector<32x32xf32>
      %172 = arith.addf %171, %71 : vector<32x32xf32>
      %cst_52 = arith.constant dense<0xFF800000> : vector<32xf32>
      %173 = vector.multi_reduction <maximumf>, %172, %cst_52 [1] : vector<32x32xf32> to vector<32xf32>
      %174 = vector.shape_cast %173 : vector<32xf32> to vector<32x1xf32>
      %175 = vector.broadcast %174 : vector<32x1xf32> to vector<32x32xf32>
      %176 = arith.subf %172, %175 : vector<32x32xf32>
      %177 = math.exp %176 : vector<32x32xf32>
      %cst_53 = arith.constant dense<0.000000e+00> : vector<32xf32>
      %178 = vector.multi_reduction <add>, %177, %cst_53 [1] : vector<32x32xf32> to vector<32xf32>
      %179 = vector.shape_cast %178 : vector<32xf32> to vector<32x1xf32>
      %180 = tpu.reciprocal %179 {approx = true} : vector<32x1xf32> -> vector<32x1xf32>
      %181 = vector.broadcast %180 : vector<32x1xf32> to vector<32x32xf32>
      %182 = arith.mulf %177, %181 : vector<32x32xf32>
      %183 = vector.extract_strided_slice %119 {offsets = [0, 32], sizes = [32, 16], strides = [1, 1]} : vector<32x64xf32> to vector<32x16xf32>
      %cst_54 = arith.constant dense<0.000000e+00> : vector<32x16xf32>
      %184 = tpu.matmul %182, %183, %cst_54 {dimension_numbers = #tpu.dot_dimension_numbers<[1], [0], [0], [1], [0, 0, 1, 1], [], []>} : vector<32x32xf32>, vector<32x16xf32>, vector<32x16xf32> -> vector<32x16xf32>
      %185 = vector.extract_strided_slice %120 {offsets = [32, 0], sizes = [16, 64], strides = [1, 1]} : vector<64x64xbf16> to vector<16x64xbf16>
      %186 = arith.truncf %184 : vector<32x16xf32> to vector<32x16xbf16>
      %cst_55 = arith.constant dense<0.000000e+00> : vector<32x64xf32>
      %187 = tpu.matmul %186, %185, %cst_55 {dimension_numbers = #tpu.dot_dimension_numbers<[1], [0], [0], [1], [0, 0, 1, 1], [], []>} : vector<32x16xbf16>, vector<16x64xbf16>, vector<32x64xf32> -> vector<32x64xf32>
      %188 = arith.addf %165, %187 : vector<32x64xf32>
      %189 = vector.extract_strided_slice %104 {offsets = [0, 48], sizes = [32, 16], strides = [1, 1]} : vector<32x64xf32> to vector<32x16xf32>
      %cst_56 = arith.constant 2.500000e-01 : f32
      %190 = vector.broadcast %cst_56 : f32 to vector<32x16xf32>
      %191 = arith.mulf %189, %190 : vector<32x16xf32>
      %192 = vector.extract_strided_slice %118 {offsets = [0, 48], sizes = [32, 16], strides = [1, 1]} : vector<32x64xf32> to vector<32x16xf32>
      %193 = tpu.transpose %192, [1, 0] : vector<32x16xf32> -> vector<16x32xf32>
      %cst_57 = arith.constant dense<0.000000e+00> : vector<32x32xf32>
      %194 = tpu.matmul %191, %193, %cst_57 {dimension_numbers = #tpu.dot_dimension_numbers<[1], [0], [0], [1], [0, 0, 1, 1], [], []>} : vector<32x16xf32>, vector<16x32xf32>, vector<32x32xf32> -> vector<32x32xf32>
      %195 = arith.addf %194, %71 : vector<32x32xf32>
      %cst_58 = arith.constant dense<0xFF800000> : vector<32xf32>
      %196 = vector.multi_reduction <maximumf>, %195, %cst_58 [1] : vector<32x32xf32> to vector<32xf32>
      %197 = vector.shape_cast %196 : vector<32xf32> to vector<32x1xf32>
      %198 = vector.broadcast %197 : vector<32x1xf32> to vector<32x32xf32>
      %199 = arith.subf %195, %198 : vector<32x32xf32>
      %200 = math.exp %199 : vector<32x32xf32>
      %cst_59 = arith.constant dense<0.000000e+00> : vector<32xf32>
      %201 = vector.multi_reduction <add>, %200, %cst_59 [1] : vector<32x32xf32> to vector<32xf32>
      %202 = vector.shape_cast %201 : vector<32xf32> to vector<32x1xf32>
      %203 = tpu.reciprocal %202 {approx = true} : vector<32x1xf32> -> vector<32x1xf32>
      %204 = vector.broadcast %203 : vector<32x1xf32> to vector<32x32xf32>
      %205 = arith.mulf %200, %204 : vector<32x32xf32>
      %206 = vector.extract_strided_slice %119 {offsets = [0, 48], sizes = [32, 16], strides = [1, 1]} : vector<32x64xf32> to vector<32x16xf32>
      %cst_60 = arith.constant dense<0.000000e+00> : vector<32x16xf32>
      %207 = tpu.matmul %205, %206, %cst_60 {dimension_numbers = #tpu.dot_dimension_numbers<[1], [0], [0], [1], [0, 0, 1, 1], [], []>} : vector<32x32xf32>, vector<32x16xf32>, vector<32x16xf32> -> vector<32x16xf32>
      %208 = vector.extract_strided_slice %120 {offsets = [48, 0], sizes = [16, 64], strides = [1, 1]} : vector<64x64xbf16> to vector<16x64xbf16>
      %209 = arith.truncf %207 : vector<32x16xf32> to vector<32x16xbf16>
      %cst_61 = arith.constant dense<0.000000e+00> : vector<32x64xf32>
      %210 = tpu.matmul %209, %208, %cst_61 {dimension_numbers = #tpu.dot_dimension_numbers<[1], [0], [0], [1], [0, 0, 1, 1], [], []>} : vector<32x16xbf16>, vector<16x64xbf16>, vector<32x64xf32> -> vector<32x64xf32>
      %211 = arith.addf %188, %210 : vector<32x64xf32>
      %c15 = arith.constant 15 : index
      %c0_62 = arith.constant 0 : index
      %212 = vector.load %arg5[%c15, %c0_62] : memref<70x192xf32, #tpu.memory_space<vmem>>, vector<1x64xf32>
      %213 = vector.broadcast %212 : vector<1x64xf32> to vector<32x64xf32>
      %214 = arith.addf %211, %213 : vector<32x64xf32>
      %c16 = arith.constant 16 : index
      %c0_63 = arith.constant 0 : index
      %215 = vector.load %arg5[%c16, %c0_63] : memref<70x192xf32, #tpu.memory_space<vmem>>, vector<1x64xf32>
      %216 = vector.broadcast %215 : vector<1x64xf32> to vector<32x64xf32>
      %217 = arith.mulf %216, %214 : vector<32x64xf32>
      %218 = arith.addf %56, %217 : vector<32x64xf32>
      %c17 = arith.constant 17 : index
      %c0_64 = arith.constant 0 : index
      %219 = vector.load %arg5[%c17, %c0_64] : memref<70x192xf32, #tpu.memory_space<vmem>>, vector<1x64xf32>
      %220 = arith.mulf %218, %218 : vector<32x64xf32>
      %cst_65 = arith.constant dense<0.000000e+00> : vector<32xf32>
      %221 = vector.multi_reduction <add>, %220, %cst_65 [1] : vector<32x64xf32> to vector<32xf32>
      %222 = vector.shape_cast %221 : vector<32xf32> to vector<32x1xf32>
      %cst_66 = arith.constant 6.400000e+01 : f32
      %223 = vector.broadcast %cst_66 : f32 to vector<32x1xf32>
      %224 = arith.divf %222, %223 : vector<32x1xf32>
      %cst_67 = arith.constant 9.99999997E-7 : f32
      %225 = vector.broadcast %cst_67 : f32 to vector<32x1xf32>
      %226 = arith.addf %224, %225 : vector<32x1xf32>
      %227 = math.rsqrt %226 : vector<32x1xf32>
      %228 = vector.broadcast %227 : vector<32x1xf32> to vector<32x64xf32>
      %229 = arith.mulf %218, %228 : vector<32x64xf32>
      %230 = vector.broadcast %219 : vector<1x64xf32> to vector<32x64xf32>
      %231 = arith.mulf %229, %230 : vector<32x64xf32>
      %c0_68 = arith.constant 0 : index
      %c256 = arith.constant 256 : index
      %232 = vector.load %arg6[%c0_68, %c256] : memref<64x1808xbf16, #tpu.memory_space<vmem>>, vector<64x128xbf16>
      %233 = arith.truncf %231 : vector<32x64xf32> to vector<32x64xbf16>
      %cst_69 = arith.constant dense<0.000000e+00> : vector<32x128xf32>
      %234 = tpu.matmul %233, %232, %cst_69 {dimension_numbers = #tpu.dot_dimension_numbers<[1], [0], [0], [1], [0, 0, 1, 1], [], []>} : vector<32x64xbf16>, vector<64x128xbf16>, vector<32x128xf32> -> vector<32x128xf32>
      %c18 = arith.constant 18 : index
      %c0_70 = arith.constant 0 : index
      %235 = vector.load %arg5[%c18, %c0_70] : memref<70x192xf32, #tpu.memory_space<vmem>>, vector<1x128xf32>
      %236 = vector.broadcast %235 : vector<1x128xf32> to vector<32x128xf32>
      %237 = arith.addf %234, %236 : vector<32x128xf32>
      %238 = arith.mulf %237, %237 : vector<32x128xf32>
      %239 = arith.mulf %237, %238 : vector<32x128xf32>
      %cst_71 = arith.constant 4.471500e-02 : f32
      %240 = vector.broadcast %cst_71 : f32 to vector<32x128xf32>
      %241 = arith.mulf %240, %239 : vector<32x128xf32>
      %242 = arith.addf %237, %241 : vector<32x128xf32>
      %cst_72 = arith.constant 0.797884583 : f32
      %243 = vector.broadcast %cst_72 : f32 to vector<32x128xf32>
      %244 = arith.mulf %243, %242 : vector<32x128xf32>
      %245 = math.tanh %244 : vector<32x128xf32>
      %cst_73 = arith.constant 1.000000e+00 : f32
      %246 = vector.broadcast %cst_73 : f32 to vector<32x128xf32>
      %247 = arith.addf %246, %245 : vector<32x128xf32>
      %cst_74 = arith.constant 5.000000e-01 : f32
      %248 = vector.broadcast %cst_74 : f32 to vector<32x128xf32>
      %249 = arith.mulf %248, %247 : vector<32x128xf32>
      %250 = arith.mulf %237, %249 : vector<32x128xf32>
      %c0_75 = arith.constant 0 : index
      %c0_76 = arith.constant 0 : index
      %251 = vector.load %arg7[%c0_75, %c0_76] : memref<128x320xbf16, #tpu.memory_space<vmem>>, vector<128x64xbf16>
      %252 = arith.truncf %250 : vector<32x128xf32> to vector<32x128xbf16>
      %cst_77 = arith.constant dense<0.000000e+00> : vector<32x64xf32>
      %253 = tpu.matmul %252, %251, %cst_77 {dimension_numbers = #tpu.dot_dimension_numbers<[1], [0], [0], [1], [0, 0, 1, 1], [], []>} : vector<32x128xbf16>, vector<128x64xbf16>, vector<32x64xf32> -> vector<32x64xf32>
      %c19 = arith.constant 19 : index
      %c0_78 = arith.constant 0 : index
      %254 = vector.load %arg5[%c19, %c0_78] : memref<70x192xf32, #tpu.memory_space<vmem>>, vector<1x64xf32>
      %255 = vector.broadcast %254 : vector<1x64xf32> to vector<32x64xf32>
      %256 = arith.addf %253, %255 : vector<32x64xf32>
      %c20 = arith.constant 20 : index
      %c0_79 = arith.constant 0 : index
      %257 = vector.load %arg5[%c20, %c0_79] : memref<70x192xf32, #tpu.memory_space<vmem>>, vector<1x64xf32>
      %258 = vector.broadcast %257 : vector<1x64xf32> to vector<32x64xf32>
      %259 = arith.mulf %258, %256 : vector<32x64xf32>
      %260 = arith.addf %218, %259 : vector<32x64xf32>
      %c21 = arith.constant 21 : index
      %c0_80 = arith.constant 0 : index
      %261 = vector.load %arg5[%c21, %c0_80] : memref<70x192xf32, #tpu.memory_space<vmem>>, vector<1x64xf32>
      %262 = arith.mulf %260, %260 : vector<32x64xf32>
      %cst_81 = arith.constant dense<0.000000e+00> : vector<32xf32>
      %263 = vector.multi_reduction <add>, %262, %cst_81 [1] : vector<32x64xf32> to vector<32xf32>
      %264 = vector.shape_cast %263 : vector<32xf32> to vector<32x1xf32>
      %cst_82 = arith.constant 6.400000e+01 : f32
      %265 = vector.broadcast %cst_82 : f32 to vector<32x1xf32>
      %266 = arith.divf %264, %265 : vector<32x1xf32>
      %cst_83 = arith.constant 9.99999997E-7 : f32
      %267 = vector.broadcast %cst_83 : f32 to vector<32x1xf32>
      %268 = arith.addf %266, %267 : vector<32x1xf32>
      %269 = math.rsqrt %268 : vector<32x1xf32>
      %270 = vector.broadcast %269 : vector<32x1xf32> to vector<32x64xf32>
      %271 = arith.mulf %260, %270 : vector<32x64xf32>
      %272 = vector.broadcast %261 : vector<1x64xf32> to vector<32x64xf32>
      %273 = arith.mulf %271, %272 : vector<32x64xf32>
      %c0_84 = arith.constant 0 : index
      %c384 = arith.constant 384 : index
      %274 = vector.load %arg6[%c0_84, %c384] : memref<64x1808xbf16, #tpu.memory_space<vmem>>, vector<64x192xbf16>
      %275 = arith.truncf %273 : vector<32x64xf32> to vector<32x64xbf16>
      %cst_85 = arith.constant dense<0.000000e+00> : vector<32x192xf32>
      %276 = tpu.matmul %275, %274, %cst_85 {dimension_numbers = #tpu.dot_dimension_numbers<[1], [0], [0], [1], [0, 0, 1, 1], [], []>} : vector<32x64xbf16>, vector<64x192xbf16>, vector<32x192xf32> -> vector<32x192xf32>
      %c22 = arith.constant 22 : index
      %c0_86 = arith.constant 0 : index
      %277 = vector.load %arg5[%c22, %c0_86] : memref<70x192xf32, #tpu.memory_space<vmem>>, vector<1x192xf32>
      %278 = vector.broadcast %277 : vector<1x192xf32> to vector<32x192xf32>
      %279 = arith.addf %276, %278 : vector<32x192xf32>
      %280 = vector.extract_strided_slice %279 {offsets = [0, 0], sizes = [32, 64], strides = [1, 1]} : vector<32x192xf32> to vector<32x64xf32>
      %c23 = arith.constant 23 : index
      %c0_87 = arith.constant 0 : index
      %281 = vector.load %arg5[%c23, %c0_87] : memref<70x192xf32, #tpu.memory_space<vmem>>, vector<1x64xf32>
      %282 = arith.mulf %280, %280 : vector<32x64xf32>
      %cst_88 = arith.constant dense<0.000000e+00> : vector<32xf32>
      %283 = vector.multi_reduction <add>, %282, %cst_88 [1] : vector<32x64xf32> to vector<32xf32>
      %284 = vector.shape_cast %283 : vector<32xf32> to vector<32x1xf32>
      %cst_89 = arith.constant 6.400000e+01 : f32
      %285 = vector.broadcast %cst_89 : f32 to vector<32x1xf32>
      %286 = arith.divf %284, %285 : vector<32x1xf32>
      %cst_90 = arith.constant 9.99999997E-7 : f32
      %287 = vector.broadcast %cst_90 : f32 to vector<32x1xf32>
      %288 = arith.addf %286, %287 : vector<32x1xf32>
      %289 = math.rsqrt %288 : vector<32x1xf32>
      %290 = vector.broadcast %289 : vector<32x1xf32> to vector<32x64xf32>
      %291 = arith.mulf %280, %290 : vector<32x64xf32>
      %292 = vector.broadcast %281 : vector<1x64xf32> to vector<32x64xf32>
      %293 = arith.mulf %291, %292 : vector<32x64xf32>
      %294 = vector.extract_strided_slice %279 {offsets = [0, 64], sizes = [32, 64], strides = [1, 1]} : vector<32x192xf32> to vector<32x64xf32>
      %c24 = arith.constant 24 : index
      %c0_91 = arith.constant 0 : index
      %295 = vector.load %arg5[%c24, %c0_91] : memref<70x192xf32, #tpu.memory_space<vmem>>, vector<1x64xf32>
      %296 = arith.mulf %294, %294 : vector<32x64xf32>
      %cst_92 = arith.constant dense<0.000000e+00> : vector<32xf32>
      %297 = vector.multi_reduction <add>, %296, %cst_92 [1] : vector<32x64xf32> to vector<32xf32>
      %298 = vector.shape_cast %297 : vector<32xf32> to vector<32x1xf32>
      %cst_93 = arith.constant 6.400000e+01 : f32
      %299 = vector.broadcast %cst_93 : f32 to vector<32x1xf32>
      %300 = arith.divf %298, %299 : vector<32x1xf32>
      %cst_94 = arith.constant 9.99999997E-7 : f32
      %301 = vector.broadcast %cst_94 : f32 to vector<32x1xf32>
      %302 = arith.addf %300, %301 : vector<32x1xf32>
      %303 = math.rsqrt %302 : vector<32x1xf32>
      %304 = vector.broadcast %303 : vector<32x1xf32> to vector<32x64xf32>
      %305 = arith.mulf %294, %304 : vector<32x64xf32>
      %306 = vector.broadcast %295 : vector<1x64xf32> to vector<32x64xf32>
      %307 = arith.mulf %305, %306 : vector<32x64xf32>
      %308 = vector.extract_strided_slice %279 {offsets = [0, 128], sizes = [32, 64], strides = [1, 1]} : vector<32x192xf32> to vector<32x64xf32>
      %c0_95 = arith.constant 0 : index
      %c576 = arith.constant 576 : index
      %309 = vector.load %arg6[%c0_95, %c576] : memref<64x1808xbf16, #tpu.memory_space<vmem>>, vector<64x64xbf16>
      %310 = vector.extract_strided_slice %293 {offsets = [0, 0], sizes = [32, 16], strides = [1, 1]} : vector<32x64xf32> to vector<32x16xf32>
      %cst_96 = arith.constant 2.500000e-01 : f32
      %311 = vector.broadcast %cst_96 : f32 to vector<32x16xf32>
      %312 = arith.mulf %310, %311 : vector<32x16xf32>
      %313 = vector.extract_strided_slice %307 {offsets = [0, 0], sizes = [32, 16], strides = [1, 1]} : vector<32x64xf32> to vector<32x16xf32>
      %314 = tpu.transpose %313, [1, 0] : vector<32x16xf32> -> vector<16x32xf32>
      %cst_97 = arith.constant dense<0.000000e+00> : vector<32x32xf32>
      %315 = tpu.matmul %312, %314, %cst_97 {dimension_numbers = #tpu.dot_dimension_numbers<[1], [0], [0], [1], [0, 0, 1, 1], [], []>} : vector<32x16xf32>, vector<16x32xf32>, vector<32x32xf32> -> vector<32x32xf32>
      %316 = arith.addf %315, %71 : vector<32x32xf32>
      %cst_98 = arith.constant dense<0xFF800000> : vector<32xf32>
      %317 = vector.multi_reduction <maximumf>, %316, %cst_98 [1] : vector<32x32xf32> to vector<32xf32>
      %318 = vector.shape_cast %317 : vector<32xf32> to vector<32x1xf32>
      %319 = vector.broadcast %318 : vector<32x1xf32> to vector<32x32xf32>
      %320 = arith.subf %316, %319 : vector<32x32xf32>
      %321 = math.exp %320 : vector<32x32xf32>
      %cst_99 = arith.constant dense<0.000000e+00> : vector<32xf32>
      %322 = vector.multi_reduction <add>, %321, %cst_99 [1] : vector<32x32xf32> to vector<32xf32>
      %323 = vector.shape_cast %322 : vector<32xf32> to vector<32x1xf32>
      %324 = tpu.reciprocal %323 {approx = true} : vector<32x1xf32> -> vector<32x1xf32>
      %325 = vector.broadcast %324 : vector<32x1xf32> to vector<32x32xf32>
      %326 = arith.mulf %321, %325 : vector<32x32xf32>
      %327 = vector.extract_strided_slice %308 {offsets = [0, 0], sizes = [32, 16], strides = [1, 1]} : vector<32x64xf32> to vector<32x16xf32>
      %cst_100 = arith.constant dense<0.000000e+00> : vector<32x16xf32>
      %328 = tpu.matmul %326, %327, %cst_100 {dimension_numbers = #tpu.dot_dimension_numbers<[1], [0], [0], [1], [0, 0, 1, 1], [], []>} : vector<32x32xf32>, vector<32x16xf32>, vector<32x16xf32> -> vector<32x16xf32>
      %329 = vector.extract_strided_slice %309 {offsets = [0, 0], sizes = [16, 64], strides = [1, 1]} : vector<64x64xbf16> to vector<16x64xbf16>
      %330 = arith.truncf %328 : vector<32x16xf32> to vector<32x16xbf16>
      %cst_101 = arith.constant dense<0.000000e+00> : vector<32x64xf32>
      %331 = tpu.matmul %330, %329, %cst_101 {dimension_numbers = #tpu.dot_dimension_numbers<[1], [0], [0], [1], [0, 0, 1, 1], [], []>} : vector<32x16xbf16>, vector<16x64xbf16>, vector<32x64xf32> -> vector<32x64xf32>
      %332 = vector.extract_strided_slice %293 {offsets = [0, 16], sizes = [32, 16], strides = [1, 1]} : vector<32x64xf32> to vector<32x16xf32>
      %cst_102 = arith.constant 2.500000e-01 : f32
      %333 = vector.broadcast %cst_102 : f32 to vector<32x16xf32>
      %334 = arith.mulf %332, %333 : vector<32x16xf32>
      %335 = vector.extract_strided_slice %307 {offsets = [0, 16], sizes = [32, 16], strides = [1, 1]} : vector<32x64xf32> to vector<32x16xf32>
      %336 = tpu.transpose %335, [1, 0] : vector<32x16xf32> -> vector<16x32xf32>
      %cst_103 = arith.constant dense<0.000000e+00> : vector<32x32xf32>
      %337 = tpu.matmul %334, %336, %cst_103 {dimension_numbers = #tpu.dot_dimension_numbers<[1], [0], [0], [1], [0, 0, 1, 1], [], []>} : vector<32x16xf32>, vector<16x32xf32>, vector<32x32xf32> -> vector<32x32xf32>
      %338 = arith.addf %337, %71 : vector<32x32xf32>
      %cst_104 = arith.constant dense<0xFF800000> : vector<32xf32>
      %339 = vector.multi_reduction <maximumf>, %338, %cst_104 [1] : vector<32x32xf32> to vector<32xf32>
      %340 = vector.shape_cast %339 : vector<32xf32> to vector<32x1xf32>
      %341 = vector.broadcast %340 : vector<32x1xf32> to vector<32x32xf32>
      %342 = arith.subf %338, %341 : vector<32x32xf32>
      %343 = math.exp %342 : vector<32x32xf32>
      %cst_105 = arith.constant dense<0.000000e+00> : vector<32xf32>
      %344 = vector.multi_reduction <add>, %343, %cst_105 [1] : vector<32x32xf32> to vector<32xf32>
      %345 = vector.shape_cast %344 : vector<32xf32> to vector<32x1xf32>
      %346 = tpu.reciprocal %345 {approx = true} : vector<32x1xf32> -> vector<32x1xf32>
      %347 = vector.broadcast %346 : vector<32x1xf32> to vector<32x32xf32>
      %348 = arith.mulf %343, %347 : vector<32x32xf32>
      %349 = vector.extract_strided_slice %308 {offsets = [0, 16], sizes = [32, 16], strides = [1, 1]} : vector<32x64xf32> to vector<32x16xf32>
      %cst_106 = arith.constant dense<0.000000e+00> : vector<32x16xf32>
      %350 = tpu.matmul %348, %349, %cst_106 {dimension_numbers = #tpu.dot_dimension_numbers<[1], [0], [0], [1], [0, 0, 1, 1], [], []>} : vector<32x32xf32>, vector<32x16xf32>, vector<32x16xf32> -> vector<32x16xf32>
      %351 = vector.extract_strided_slice %309 {offsets = [16, 0], sizes = [16, 64], strides = [1, 1]} : vector<64x64xbf16> to vector<16x64xbf16>
      %352 = arith.truncf %350 : vector<32x16xf32> to vector<32x16xbf16>
      %cst_107 = arith.constant dense<0.000000e+00> : vector<32x64xf32>
      %353 = tpu.matmul %352, %351, %cst_107 {dimension_numbers = #tpu.dot_dimension_numbers<[1], [0], [0], [1], [0, 0, 1, 1], [], []>} : vector<32x16xbf16>, vector<16x64xbf16>, vector<32x64xf32> -> vector<32x64xf32>
      %354 = arith.addf %331, %353 : vector<32x64xf32>
      %355 = vector.extract_strided_slice %293 {offsets = [0, 32], sizes = [32, 16], strides = [1, 1]} : vector<32x64xf32> to vector<32x16xf32>
      %cst_108 = arith.constant 2.500000e-01 : f32
      %356 = vector.broadcast %cst_108 : f32 to vector<32x16xf32>
      %357 = arith.mulf %355, %356 : vector<32x16xf32>
      %358 = vector.extract_strided_slice %307 {offsets = [0, 32], sizes = [32, 16], strides = [1, 1]} : vector<32x64xf32> to vector<32x16xf32>
      %359 = tpu.transpose %358, [1, 0] : vector<32x16xf32> -> vector<16x32xf32>
      %cst_109 = arith.constant dense<0.000000e+00> : vector<32x32xf32>
      %360 = tpu.matmul %357, %359, %cst_109 {dimension_numbers = #tpu.dot_dimension_numbers<[1], [0], [0], [1], [0, 0, 1, 1], [], []>} : vector<32x16xf32>, vector<16x32xf32>, vector<32x32xf32> -> vector<32x32xf32>
      %361 = arith.addf %360, %71 : vector<32x32xf32>
      %cst_110 = arith.constant dense<0xFF800000> : vector<32xf32>
      %362 = vector.multi_reduction <maximumf>, %361, %cst_110 [1] : vector<32x32xf32> to vector<32xf32>
      %363 = vector.shape_cast %362 : vector<32xf32> to vector<32x1xf32>
      %364 = vector.broadcast %363 : vector<32x1xf32> to vector<32x32xf32>
      %365 = arith.subf %361, %364 : vector<32x32xf32>
      %366 = math.exp %365 : vector<32x32xf32>
      %cst_111 = arith.constant dense<0.000000e+00> : vector<32xf32>
      %367 = vector.multi_reduction <add>, %366, %cst_111 [1] : vector<32x32xf32> to vector<32xf32>
      %368 = vector.shape_cast %367 : vector<32xf32> to vector<32x1xf32>
      %369 = tpu.reciprocal %368 {approx = true} : vector<32x1xf32> -> vector<32x1xf32>
      %370 = vector.broadcast %369 : vector<32x1xf32> to vector<32x32xf32>
      %371 = arith.mulf %366, %370 : vector<32x32xf32>
      %372 = vector.extract_strided_slice %308 {offsets = [0, 32], sizes = [32, 16], strides = [1, 1]} : vector<32x64xf32> to vector<32x16xf32>
      %cst_112 = arith.constant dense<0.000000e+00> : vector<32x16xf32>
      %373 = tpu.matmul %371, %372, %cst_112 {dimension_numbers = #tpu.dot_dimension_numbers<[1], [0], [0], [1], [0, 0, 1, 1], [], []>} : vector<32x32xf32>, vector<32x16xf32>, vector<32x16xf32> -> vector<32x16xf32>
      %374 = vector.extract_strided_slice %309 {offsets = [32, 0], sizes = [16, 64], strides = [1, 1]} : vector<64x64xbf16> to vector<16x64xbf16>
      %375 = arith.truncf %373 : vector<32x16xf32> to vector<32x16xbf16>
      %cst_113 = arith.constant dense<0.000000e+00> : vector<32x64xf32>
      %376 = tpu.matmul %375, %374, %cst_113 {dimension_numbers = #tpu.dot_dimension_numbers<[1], [0], [0], [1], [0, 0, 1, 1], [], []>} : vector<32x16xbf16>, vector<16x64xbf16>, vector<32x64xf32> -> vector<32x64xf32>
      %377 = arith.addf %354, %376 : vector<32x64xf32>
      %378 = vector.extract_strided_slice %293 {offsets = [0, 48], sizes = [32, 16], strides = [1, 1]} : vector<32x64xf32> to vector<32x16xf32>
      %cst_114 = arith.constant 2.500000e-01 : f32
      %379 = vector.broadcast %cst_114 : f32 to vector<32x16xf32>
      %380 = arith.mulf %378, %379 : vector<32x16xf32>
      %381 = vector.extract_strided_slice %307 {offsets = [0, 48], sizes = [32, 16], strides = [1, 1]} : vector<32x64xf32> to vector<32x16xf32>
      %382 = tpu.transpose %381, [1, 0] : vector<32x16xf32> -> vector<16x32xf32>
      %cst_115 = arith.constant dense<0.000000e+00> : vector<32x32xf32>
      %383 = tpu.matmul %380, %382, %cst_115 {dimension_numbers = #tpu.dot_dimension_numbers<[1], [0], [0], [1], [0, 0, 1, 1], [], []>} : vector<32x16xf32>, vector<16x32xf32>, vector<32x32xf32> -> vector<32x32xf32>
      %384 = arith.addf %383, %71 : vector<32x32xf32>
      %cst_116 = arith.constant dense<0xFF800000> : vector<32xf32>
      %385 = vector.multi_reduction <maximumf>, %384, %cst_116 [1] : vector<32x32xf32> to vector<32xf32>
      %386 = vector.shape_cast %385 : vector<32xf32> to vector<32x1xf32>
      %387 = vector.broadcast %386 : vector<32x1xf32> to vector<32x32xf32>
      %388 = arith.subf %384, %387 : vector<32x32xf32>
      %389 = math.exp %388 : vector<32x32xf32>
      %cst_117 = arith.constant dense<0.000000e+00> : vector<32xf32>
      %390 = vector.multi_reduction <add>, %389, %cst_117 [1] : vector<32x32xf32> to vector<32xf32>
      %391 = vector.shape_cast %390 : vector<32xf32> to vector<32x1xf32>
      %392 = tpu.reciprocal %391 {approx = true} : vector<32x1xf32> -> vector<32x1xf32>
      %393 = vector.broadcast %392 : vector<32x1xf32> to vector<32x32xf32>
      %394 = arith.mulf %389, %393 : vector<32x32xf32>
      %395 = vector.extract_strided_slice %308 {offsets = [0, 48], sizes = [32, 16], strides = [1, 1]} : vector<32x64xf32> to vector<32x16xf32>
      %cst_118 = arith.constant dense<0.000000e+00> : vector<32x16xf32>
      %396 = tpu.matmul %394, %395, %cst_118 {dimension_numbers = #tpu.dot_dimension_numbers<[1], [0], [0], [1], [0, 0, 1, 1], [], []>} : vector<32x32xf32>, vector<32x16xf32>, vector<32x16xf32> -> vector<32x16xf32>
      %397 = vector.extract_strided_slice %309 {offsets = [48, 0], sizes = [16, 64], strides = [1, 1]} : vector<64x64xbf16> to vector<16x64xbf16>
      %398 = arith.truncf %396 : vector<32x16xf32> to vector<32x16xbf16>
      %cst_119 = arith.constant dense<0.000000e+00> : vector<32x64xf32>
      %399 = tpu.matmul %398, %397, %cst_119 {dimension_numbers = #tpu.dot_dimension_numbers<[1], [0], [0], [1], [0, 0, 1, 1], [], []>} : vector<32x16xbf16>, vector<16x64xbf16>, vector<32x64xf32> -> vector<32x64xf32>
      %400 = arith.addf %377, %399 : vector<32x64xf32>
      %c25 = arith.constant 25 : index
      %c0_120 = arith.constant 0 : index
      %401 = vector.load %arg5[%c25, %c0_120] : memref<70x192xf32, #tpu.memory_space<vmem>>, vector<1x64xf32>
      %402 = vector.broadcast %401 : vector<1x64xf32> to vector<32x64xf32>
      %403 = arith.addf %400, %402 : vector<32x64xf32>
      %c26 = arith.constant 26 : index
      %c0_121 = arith.constant 0 : index
      %404 = vector.load %arg5[%c26, %c0_121] : memref<70x192xf32, #tpu.memory_space<vmem>>, vector<1x64xf32>
      %405 = vector.broadcast %404 : vector<1x64xf32> to vector<32x64xf32>
      %406 = arith.mulf %405, %403 : vector<32x64xf32>
      %407 = arith.addf %260, %406 : vector<32x64xf32>
      %c27 = arith.constant 27 : index
      %c0_122 = arith.constant 0 : index
      %408 = vector.load %arg5[%c27, %c0_122] : memref<70x192xf32, #tpu.memory_space<vmem>>, vector<1x64xf32>
      %409 = arith.mulf %407, %407 : vector<32x64xf32>
      %cst_123 = arith.constant dense<0.000000e+00> : vector<32xf32>
      %410 = vector.multi_reduction <add>, %409, %cst_123 [1] : vector<32x64xf32> to vector<32xf32>
      %411 = vector.shape_cast %410 : vector<32xf32> to vector<32x1xf32>
      %cst_124 = arith.constant 6.400000e+01 : f32
      %412 = vector.broadcast %cst_124 : f32 to vector<32x1xf32>
      %413 = arith.divf %411, %412 : vector<32x1xf32>
      %cst_125 = arith.constant 9.99999997E-7 : f32
      %414 = vector.broadcast %cst_125 : f32 to vector<32x1xf32>
      %415 = arith.addf %413, %414 : vector<32x1xf32>
      %416 = math.rsqrt %415 : vector<32x1xf32>
      %417 = vector.broadcast %416 : vector<32x1xf32> to vector<32x64xf32>
      %418 = arith.mulf %407, %417 : vector<32x64xf32>
      %419 = vector.broadcast %408 : vector<1x64xf32> to vector<32x64xf32>
      %420 = arith.mulf %418, %419 : vector<32x64xf32>
      %c0_126 = arith.constant 0 : index
      %c640 = arith.constant 640 : index
      %421 = vector.load %arg6[%c0_126, %c640] : memref<64x1808xbf16, #tpu.memory_space<vmem>>, vector<64x128xbf16>
      %422 = arith.truncf %420 : vector<32x64xf32> to vector<32x64xbf16>
      %cst_127 = arith.constant dense<0.000000e+00> : vector<32x128xf32>
      %423 = tpu.matmul %422, %421, %cst_127 {dimension_numbers = #tpu.dot_dimension_numbers<[1], [0], [0], [1], [0, 0, 1, 1], [], []>} : vector<32x64xbf16>, vector<64x128xbf16>, vector<32x128xf32> -> vector<32x128xf32>
      %c28 = arith.constant 28 : index
      %c0_128 = arith.constant 0 : index
      %424 = vector.load %arg5[%c28, %c0_128] : memref<70x192xf32, #tpu.memory_space<vmem>>, vector<1x128xf32>
      %425 = vector.broadcast %424 : vector<1x128xf32> to vector<32x128xf32>
      %426 = arith.addf %423, %425 : vector<32x128xf32>
      %427 = arith.mulf %426, %426 : vector<32x128xf32>
      %428 = arith.mulf %426, %427 : vector<32x128xf32>
      %cst_129 = arith.constant 4.471500e-02 : f32
      %429 = vector.broadcast %cst_129 : f32 to vector<32x128xf32>
      %430 = arith.mulf %429, %428 : vector<32x128xf32>
      %431 = arith.addf %426, %430 : vector<32x128xf32>
      %cst_130 = arith.constant 0.797884583 : f32
      %432 = vector.broadcast %cst_130 : f32 to vector<32x128xf32>
      %433 = arith.mulf %432, %431 : vector<32x128xf32>
      %434 = math.tanh %433 : vector<32x128xf32>
      %cst_131 = arith.constant 1.000000e+00 : f32
      %435 = vector.broadcast %cst_131 : f32 to vector<32x128xf32>
      %436 = arith.addf %435, %434 : vector<32x128xf32>
      %cst_132 = arith.constant 5.000000e-01 : f32
      %437 = vector.broadcast %cst_132 : f32 to vector<32x128xf32>
      %438 = arith.mulf %437, %436 : vector<32x128xf32>
      %439 = arith.mulf %426, %438 : vector<32x128xf32>
      %c0_133 = arith.constant 0 : index
      %c64 = arith.constant 64 : index
      %440 = vector.load %arg7[%c0_133, %c64] : memref<128x320xbf16, #tpu.memory_space<vmem>>, vector<128x64xbf16>
      %441 = arith.truncf %439 : vector<32x128xf32> to vector<32x128xbf16>
      %cst_134 = arith.constant dense<0.000000e+00> : vector<32x64xf32>
      %442 = tpu.matmul %441, %440, %cst_134 {dimension_numbers = #tpu.dot_dimension_numbers<[1], [0], [0], [1], [0, 0, 1, 1], [], []>} : vector<32x128xbf16>, vector<128x64xbf16>, vector<32x64xf32> -> vector<32x64xf32>
      %c29 = arith.constant 29 : index
      %c0_135 = arith.constant 0 : index
      %443 = vector.load %arg5[%c29, %c0_135] : memref<70x192xf32, #tpu.memory_space<vmem>>, vector<1x64xf32>
      %444 = vector.broadcast %443 : vector<1x64xf32> to vector<32x64xf32>
      %445 = arith.addf %442, %444 : vector<32x64xf32>
      %c30 = arith.constant 30 : index
      %c0_136 = arith.constant 0 : index
      %446 = vector.load %arg5[%c30, %c0_136] : memref<70x192xf32, #tpu.memory_space<vmem>>, vector<1x64xf32>
      %447 = vector.broadcast %446 : vector<1x64xf32> to vector<32x64xf32>
      %448 = arith.mulf %447, %445 : vector<32x64xf32>
      %449 = arith.addf %407, %448 : vector<32x64xf32>
      %450 = tpu.iota {dimensions = array<i32: 0>} : vector<2x32xi32>
      %451 = tpu.iota {dimensions = array<i32: 1>} : vector<2x32xi32>
      %c4_i32_137 = arith.constant 4 : i32
      %452 = vector.broadcast %c4_i32_137 : i32 to vector<2x32xi32>
      %453 = arith.shrsi %451, %452 : vector<2x32xi32>
      %454 = arith.cmpi eq, %453, %450 : vector<2x32xi32>
      %c15_i32_138 = arith.constant 15 : i32
      %455 = vector.broadcast %c15_i32_138 : i32 to vector<2x32xi32>
      %456 = arith.andi %451, %455 : vector<2x32xi32>
      %c9_i32_139 = arith.constant 9 : i32
      %457 = vector.broadcast %c9_i32_139 : i32 to vector<2x32xi32>
      %458 = arith.cmpi slt, %456, %457 : vector<2x32xi32>
      %459 = arith.andi %454, %458 : vector<2x32xi1>
      %cst_140 = arith.constant 0.111111112 : f32
      %cst_141 = arith.constant 0.000000e+00 : f32
      %460 = vector.broadcast %cst_140 : f32 to vector<2x32xf32>
      %461 = vector.broadcast %cst_141 : f32 to vector<2x32xf32>
      %462 = arith.select %459, %460, %461 : vector<2x32xi1>, vector<2x32xf32>
      %cst_142 = arith.constant dense<0.000000e+00> : vector<2x64xf32>
      %463 = tpu.matmul %462, %449, %cst_142 {dimension_numbers = #tpu.dot_dimension_numbers<[1], [0], [0], [1], [0, 0, 1, 1], [], []>} : vector<2x32xf32>, vector<32x64xf32>, vector<2x64xf32> -> vector<2x64xf32>
      %c31 = arith.constant 31 : index
      %c0_143 = arith.constant 0 : index
      %464 = vector.load %arg5[%c31, %c0_143] : memref<70x192xf32, #tpu.memory_space<vmem>>, vector<1x64xf32>
      %c32 = arith.constant 32 : index
      %c0_144 = arith.constant 0 : index
      %465 = vector.load %arg5[%c32, %c0_144] : memref<70x192xf32, #tpu.memory_space<vmem>>, vector<1x64xf32>
      %cst_145 = arith.constant dense<0.000000e+00> : vector<2xf32>
      %466 = vector.multi_reduction <add>, %463, %cst_145 [1] : vector<2x64xf32> to vector<2xf32>
      %467 = vector.shape_cast %466 : vector<2xf32> to vector<2x1xf32>
      %cst_146 = arith.constant 6.400000e+01 : f32
      %468 = vector.broadcast %cst_146 : f32 to vector<2x1xf32>
      %469 = arith.divf %467, %468 : vector<2x1xf32>
      %470 = vector.broadcast %469 : vector<2x1xf32> to vector<2x64xf32>
      %471 = arith.subf %463, %470 : vector<2x64xf32>
      %472 = arith.mulf %471, %471 : vector<2x64xf32>
      %cst_147 = arith.constant dense<0.000000e+00> : vector<2xf32>
      %473 = vector.multi_reduction <add>, %472, %cst_147 [1] : vector<2x64xf32> to vector<2xf32>
      %474 = vector.shape_cast %473 : vector<2xf32> to vector<2x1xf32>
      %cst_148 = arith.constant 6.400000e+01 : f32
      %475 = vector.broadcast %cst_148 : f32 to vector<2x1xf32>
      %476 = arith.divf %474, %475 : vector<2x1xf32>
      %477 = vector.broadcast %469 : vector<2x1xf32> to vector<2x64xf32>
      %478 = arith.subf %463, %477 : vector<2x64xf32>
      %cst_149 = arith.constant 9.99999974E-6 : f32
      %479 = vector.broadcast %cst_149 : f32 to vector<2x1xf32>
      %480 = arith.addf %476, %479 : vector<2x1xf32>
      %481 = math.rsqrt %480 : vector<2x1xf32>
      %482 = vector.broadcast %481 : vector<2x1xf32> to vector<2x64xf32>
      %483 = arith.mulf %478, %482 : vector<2x64xf32>
      %484 = vector.broadcast %464 : vector<1x64xf32> to vector<2x64xf32>
      %485 = arith.mulf %483, %484 : vector<2x64xf32>
      %486 = vector.broadcast %465 : vector<1x64xf32> to vector<2x64xf32>
      %487 = arith.addf %485, %486 : vector<2x64xf32>
      %c0_150 = arith.constant 0 : index
      %c768 = arith.constant 768 : index
      %488 = vector.load %arg6[%c0_150, %c768] : memref<64x1808xbf16, #tpu.memory_space<vmem>>, vector<64x64xbf16>
      %489 = arith.truncf %487 : vector<2x64xf32> to vector<2x64xbf16>
      %cst_151 = arith.constant dense<0.000000e+00> : vector<2x64xf32>
      %490 = tpu.matmul %489, %488, %cst_151 {dimension_numbers = #tpu.dot_dimension_numbers<[1], [0], [0], [1], [0, 0, 1, 1], [], []>} : vector<2x64xbf16>, vector<64x64xbf16>, vector<2x64xf32> -> vector<2x64xf32>
      %c37 = arith.constant 37 : index
      %c0_152 = arith.constant 0 : index
      %491 = vector.load %arg5[%c37, %c0_152] : memref<70x192xf32, #tpu.memory_space<vmem>>, vector<1x64xf32>
      %492 = vector.broadcast %491 : vector<1x64xf32> to vector<2x64xf32>
      %493 = arith.addf %490, %492 : vector<2x64xf32>
      %c33 = arith.constant 33 : index
      %c0_153 = arith.constant 0 : index
      %494 = vector.load %arg5[%c33, %c0_153] : memref<70x192xf32, #tpu.memory_space<vmem>>, vector<1x64xf32>
      %c34 = arith.constant 34 : index
      %c0_154 = arith.constant 0 : index
      %495 = vector.load %arg5[%c34, %c0_154] : memref<70x192xf32, #tpu.memory_space<vmem>>, vector<1x64xf32>
      %cst_155 = arith.constant dense<0.000000e+00> : vector<32xf32>
      %496 = vector.multi_reduction <add>, %449, %cst_155 [1] : vector<32x64xf32> to vector<32xf32>
      %497 = vector.shape_cast %496 : vector<32xf32> to vector<32x1xf32>
      %cst_156 = arith.constant 6.400000e+01 : f32
      %498 = vector.broadcast %cst_156 : f32 to vector<32x1xf32>
      %499 = arith.divf %497, %498 : vector<32x1xf32>
      %500 = vector.broadcast %499 : vector<32x1xf32> to vector<32x64xf32>
      %501 = arith.subf %449, %500 : vector<32x64xf32>
      %502 = arith.mulf %501, %501 : vector<32x64xf32>
      %cst_157 = arith.constant dense<0.000000e+00> : vector<32xf32>
      %503 = vector.multi_reduction <add>, %502, %cst_157 [1] : vector<32x64xf32> to vector<32xf32>
      %504 = vector.shape_cast %503 : vector<32xf32> to vector<32x1xf32>
      %cst_158 = arith.constant 6.400000e+01 : f32
      %505 = vector.broadcast %cst_158 : f32 to vector<32x1xf32>
      %506 = arith.divf %504, %505 : vector<32x1xf32>
      %507 = vector.broadcast %499 : vector<32x1xf32> to vector<32x64xf32>
      %508 = arith.subf %449, %507 : vector<32x64xf32>
      %cst_159 = arith.constant 9.99999974E-6 : f32
      %509 = vector.broadcast %cst_159 : f32 to vector<32x1xf32>
      %510 = arith.addf %506, %509 : vector<32x1xf32>
      %511 = math.rsqrt %510 : vector<32x1xf32>
      %512 = vector.broadcast %511 : vector<32x1xf32> to vector<32x64xf32>
      %513 = arith.mulf %508, %512 : vector<32x64xf32>
      %514 = vector.broadcast %494 : vector<1x64xf32> to vector<32x64xf32>
      %515 = arith.mulf %513, %514 : vector<32x64xf32>
      %516 = vector.broadcast %495 : vector<1x64xf32> to vector<32x64xf32>
      %517 = arith.addf %515, %516 : vector<32x64xf32>
      %c0_160 = arith.constant 0 : index
      %c832 = arith.constant 832 : index
      %518 = vector.load %arg6[%c0_160, %c832] : memref<64x1808xbf16, #tpu.memory_space<vmem>>, vector<64x64xbf16>
      %519 = arith.truncf %517 : vector<32x64xf32> to vector<32x64xbf16>
      %cst_161 = arith.constant dense<0.000000e+00> : vector<32x64xf32>
      %520 = tpu.matmul %519, %518, %cst_161 {dimension_numbers = #tpu.dot_dimension_numbers<[1], [0], [0], [1], [0, 0, 1, 1], [], []>} : vector<32x64xbf16>, vector<64x64xbf16>, vector<32x64xf32> -> vector<32x64xf32>
      %c38 = arith.constant 38 : index
      %c0_162 = arith.constant 0 : index
      %521 = vector.load %arg5[%c38, %c0_162] : memref<70x192xf32, #tpu.memory_space<vmem>>, vector<1x64xf32>
      %522 = vector.broadcast %521 : vector<1x64xf32> to vector<32x64xf32>
      %523 = arith.addf %520, %522 : vector<32x64xf32>
      %c35 = arith.constant 35 : index
      %c0_163 = arith.constant 0 : index
      %524 = vector.load %arg5[%c35, %c0_163] : memref<70x192xf32, #tpu.memory_space<vmem>>, vector<1x64xf32>
      %c36 = arith.constant 36 : index
      %c0_164 = arith.constant 0 : index
      %525 = vector.load %arg5[%c36, %c0_164] : memref<70x192xf32, #tpu.memory_space<vmem>>, vector<1x64xf32>
      %cst_165 = arith.constant dense<0.000000e+00> : vector<32xf32>
      %526 = vector.multi_reduction <add>, %449, %cst_165 [1] : vector<32x64xf32> to vector<32xf32>
      %527 = vector.shape_cast %526 : vector<32xf32> to vector<32x1xf32>
      %cst_166 = arith.constant 6.400000e+01 : f32
      %528 = vector.broadcast %cst_166 : f32 to vector<32x1xf32>
      %529 = arith.divf %527, %528 : vector<32x1xf32>
      %530 = vector.broadcast %529 : vector<32x1xf32> to vector<32x64xf32>
      %531 = arith.subf %449, %530 : vector<32x64xf32>
      %532 = arith.mulf %531, %531 : vector<32x64xf32>
      %cst_167 = arith.constant dense<0.000000e+00> : vector<32xf32>
      %533 = vector.multi_reduction <add>, %532, %cst_167 [1] : vector<32x64xf32> to vector<32xf32>
      %534 = vector.shape_cast %533 : vector<32xf32> to vector<32x1xf32>
      %cst_168 = arith.constant 6.400000e+01 : f32
      %535 = vector.broadcast %cst_168 : f32 to vector<32x1xf32>
      %536 = arith.divf %534, %535 : vector<32x1xf32>
      %537 = vector.broadcast %529 : vector<32x1xf32> to vector<32x64xf32>
      %538 = arith.subf %449, %537 : vector<32x64xf32>
      %cst_169 = arith.constant 9.99999974E-6 : f32
      %539 = vector.broadcast %cst_169 : f32 to vector<32x1xf32>
      %540 = arith.addf %536, %539 : vector<32x1xf32>
      %541 = math.rsqrt %540 : vector<32x1xf32>
      %542 = vector.broadcast %541 : vector<32x1xf32> to vector<32x64xf32>
      %543 = arith.mulf %538, %542 : vector<32x64xf32>
      %544 = vector.broadcast %524 : vector<1x64xf32> to vector<32x64xf32>
      %545 = arith.mulf %543, %544 : vector<32x64xf32>
      %546 = vector.broadcast %525 : vector<1x64xf32> to vector<32x64xf32>
      %547 = arith.addf %545, %546 : vector<32x64xf32>
      %c0_170 = arith.constant 0 : index
      %c896 = arith.constant 896 : index
      %548 = vector.load %arg6[%c0_170, %c896] : memref<64x1808xbf16, #tpu.memory_space<vmem>>, vector<64x64xbf16>
      %549 = arith.truncf %547 : vector<32x64xf32> to vector<32x64xbf16>
      %cst_171 = arith.constant dense<0.000000e+00> : vector<32x64xf32>
      %550 = tpu.matmul %549, %548, %cst_171 {dimension_numbers = #tpu.dot_dimension_numbers<[1], [0], [0], [1], [0, 0, 1, 1], [], []>} : vector<32x64xbf16>, vector<64x64xbf16>, vector<32x64xf32> -> vector<32x64xf32>
      %c39 = arith.constant 39 : index
      %c0_172 = arith.constant 0 : index
      %551 = vector.load %arg5[%c39, %c0_172] : memref<70x192xf32, #tpu.memory_space<vmem>>, vector<1x64xf32>
      %552 = vector.broadcast %551 : vector<1x64xf32> to vector<32x64xf32>
      %553 = arith.addf %550, %552 : vector<32x64xf32>
      %cst_173 = arith.constant 0.000000e+00 : f32
      %cst_174 = arith.constant -1.000000e+09 : f32
      %554 = vector.broadcast %cst_173 : f32 to vector<2x32xf32>
      %555 = vector.broadcast %cst_174 : f32 to vector<2x32xf32>
      %556 = arith.select %459, %554, %555 : vector<2x32xi1>, vector<2x32xf32>
      %c0_175 = arith.constant 0 : index
      %c960 = arith.constant 960 : index
      %557 = vector.load %arg6[%c0_175, %c960] : memref<64x1808xbf16, #tpu.memory_space<vmem>>, vector<64x48xbf16>
      %558 = vector.extract_strided_slice %493 {offsets = [0, 0], sizes = [2, 16], strides = [1, 1]} : vector<2x64xf32> to vector<2x16xf32>
      %cst_176 = arith.constant 2.500000e-01 : f32
      %559 = vector.broadcast %cst_176 : f32 to vector<2x16xf32>
      %560 = arith.mulf %558, %559 : vector<2x16xf32>
      %561 = vector.extract_strided_slice %523 {offsets = [0, 0], sizes = [32, 16], strides = [1, 1]} : vector<32x64xf32> to vector<32x16xf32>
      %562 = tpu.transpose %561, [1, 0] : vector<32x16xf32> -> vector<16x32xf32>
      %cst_177 = arith.constant dense<0.000000e+00> : vector<2x32xf32>
      %563 = tpu.matmul %560, %562, %cst_177 {dimension_numbers = #tpu.dot_dimension_numbers<[1], [0], [0], [1], [0, 0, 1, 1], [], []>} : vector<2x16xf32>, vector<16x32xf32>, vector<2x32xf32> -> vector<2x32xf32>
      %564 = arith.addf %563, %556 : vector<2x32xf32>
      %cst_178 = arith.constant dense<0xFF800000> : vector<2xf32>
      %565 = vector.multi_reduction <maximumf>, %564, %cst_178 [1] : vector<2x32xf32> to vector<2xf32>
      %566 = vector.shape_cast %565 : vector<2xf32> to vector<2x1xf32>
      %567 = vector.broadcast %566 : vector<2x1xf32> to vector<2x32xf32>
      %568 = arith.subf %564, %567 : vector<2x32xf32>
      %569 = math.exp %568 : vector<2x32xf32>
      %cst_179 = arith.constant dense<0.000000e+00> : vector<2xf32>
      %570 = vector.multi_reduction <add>, %569, %cst_179 [1] : vector<2x32xf32> to vector<2xf32>
      %571 = vector.shape_cast %570 : vector<2xf32> to vector<2x1xf32>
      %572 = tpu.reciprocal %571 {approx = true} : vector<2x1xf32> -> vector<2x1xf32>
      %573 = vector.broadcast %572 : vector<2x1xf32> to vector<2x32xf32>
      %574 = arith.mulf %569, %573 : vector<2x32xf32>
      %575 = vector.extract_strided_slice %553 {offsets = [0, 0], sizes = [32, 16], strides = [1, 1]} : vector<32x64xf32> to vector<32x16xf32>
      %cst_180 = arith.constant dense<0.000000e+00> : vector<2x16xf32>
      %576 = tpu.matmul %574, %575, %cst_180 {dimension_numbers = #tpu.dot_dimension_numbers<[1], [0], [0], [1], [0, 0, 1, 1], [], []>} : vector<2x32xf32>, vector<32x16xf32>, vector<2x16xf32> -> vector<2x16xf32>
      %577 = vector.extract_strided_slice %557 {offsets = [0, 0], sizes = [16, 48], strides = [1, 1]} : vector<64x48xbf16> to vector<16x48xbf16>
      %578 = arith.truncf %576 : vector<2x16xf32> to vector<2x16xbf16>
      %cst_181 = arith.constant dense<0.000000e+00> : vector<2x48xf32>
      %579 = tpu.matmul %578, %577, %cst_181 {dimension_numbers = #tpu.dot_dimension_numbers<[1], [0], [0], [1], [0, 0, 1, 1], [], []>} : vector<2x16xbf16>, vector<16x48xbf16>, vector<2x48xf32> -> vector<2x48xf32>
      %580 = vector.extract_strided_slice %493 {offsets = [0, 16], sizes = [2, 16], strides = [1, 1]} : vector<2x64xf32> to vector<2x16xf32>
      %cst_182 = arith.constant 2.500000e-01 : f32
      %581 = vector.broadcast %cst_182 : f32 to vector<2x16xf32>
      %582 = arith.mulf %580, %581 : vector<2x16xf32>
      %583 = vector.extract_strided_slice %523 {offsets = [0, 16], sizes = [32, 16], strides = [1, 1]} : vector<32x64xf32> to vector<32x16xf32>
      %584 = tpu.transpose %583, [1, 0] : vector<32x16xf32> -> vector<16x32xf32>
      %cst_183 = arith.constant dense<0.000000e+00> : vector<2x32xf32>
      %585 = tpu.matmul %582, %584, %cst_183 {dimension_numbers = #tpu.dot_dimension_numbers<[1], [0], [0], [1], [0, 0, 1, 1], [], []>} : vector<2x16xf32>, vector<16x32xf32>, vector<2x32xf32> -> vector<2x32xf32>
      %586 = arith.addf %585, %556 : vector<2x32xf32>
      %cst_184 = arith.constant dense<0xFF800000> : vector<2xf32>
      %587 = vector.multi_reduction <maximumf>, %586, %cst_184 [1] : vector<2x32xf32> to vector<2xf32>
      %588 = vector.shape_cast %587 : vector<2xf32> to vector<2x1xf32>
      %589 = vector.broadcast %588 : vector<2x1xf32> to vector<2x32xf32>
      %590 = arith.subf %586, %589 : vector<2x32xf32>
      %591 = math.exp %590 : vector<2x32xf32>
      %cst_185 = arith.constant dense<0.000000e+00> : vector<2xf32>
      %592 = vector.multi_reduction <add>, %591, %cst_185 [1] : vector<2x32xf32> to vector<2xf32>
      %593 = vector.shape_cast %592 : vector<2xf32> to vector<2x1xf32>
      %594 = tpu.reciprocal %593 {approx = true} : vector<2x1xf32> -> vector<2x1xf32>
      %595 = vector.broadcast %594 : vector<2x1xf32> to vector<2x32xf32>
      %596 = arith.mulf %591, %595 : vector<2x32xf32>
      %597 = vector.extract_strided_slice %553 {offsets = [0, 16], sizes = [32, 16], strides = [1, 1]} : vector<32x64xf32> to vector<32x16xf32>
      %cst_186 = arith.constant dense<0.000000e+00> : vector<2x16xf32>
      %598 = tpu.matmul %596, %597, %cst_186 {dimension_numbers = #tpu.dot_dimension_numbers<[1], [0], [0], [1], [0, 0, 1, 1], [], []>} : vector<2x32xf32>, vector<32x16xf32>, vector<2x16xf32> -> vector<2x16xf32>
      %599 = vector.extract_strided_slice %557 {offsets = [16, 0], sizes = [16, 48], strides = [1, 1]} : vector<64x48xbf16> to vector<16x48xbf16>
      %600 = arith.truncf %598 : vector<2x16xf32> to vector<2x16xbf16>
      %cst_187 = arith.constant dense<0.000000e+00> : vector<2x48xf32>
      %601 = tpu.matmul %600, %599, %cst_187 {dimension_numbers = #tpu.dot_dimension_numbers<[1], [0], [0], [1], [0, 0, 1, 1], [], []>} : vector<2x16xbf16>, vector<16x48xbf16>, vector<2x48xf32> -> vector<2x48xf32>
      %602 = arith.addf %579, %601 : vector<2x48xf32>
      %603 = vector.extract_strided_slice %493 {offsets = [0, 32], sizes = [2, 16], strides = [1, 1]} : vector<2x64xf32> to vector<2x16xf32>
      %cst_188 = arith.constant 2.500000e-01 : f32
      %604 = vector.broadcast %cst_188 : f32 to vector<2x16xf32>
      %605 = arith.mulf %603, %604 : vector<2x16xf32>
      %606 = vector.extract_strided_slice %523 {offsets = [0, 32], sizes = [32, 16], strides = [1, 1]} : vector<32x64xf32> to vector<32x16xf32>
      %607 = tpu.transpose %606, [1, 0] : vector<32x16xf32> -> vector<16x32xf32>
      %cst_189 = arith.constant dense<0.000000e+00> : vector<2x32xf32>
      %608 = tpu.matmul %605, %607, %cst_189 {dimension_numbers = #tpu.dot_dimension_numbers<[1], [0], [0], [1], [0, 0, 1, 1], [], []>} : vector<2x16xf32>, vector<16x32xf32>, vector<2x32xf32> -> vector<2x32xf32>
      %609 = arith.addf %608, %556 : vector<2x32xf32>
      %cst_190 = arith.constant dense<0xFF800000> : vector<2xf32>
      %610 = vector.multi_reduction <maximumf>, %609, %cst_190 [1] : vector<2x32xf32> to vector<2xf32>
      %611 = vector.shape_cast %610 : vector<2xf32> to vector<2x1xf32>
      %612 = vector.broadcast %611 : vector<2x1xf32> to vector<2x32xf32>
      %613 = arith.subf %609, %612 : vector<2x32xf32>
      %614 = math.exp %613 : vector<2x32xf32>
      %cst_191 = arith.constant dense<0.000000e+00> : vector<2xf32>
      %615 = vector.multi_reduction <add>, %614, %cst_191 [1] : vector<2x32xf32> to vector<2xf32>
      %616 = vector.shape_cast %615 : vector<2xf32> to vector<2x1xf32>
      %617 = tpu.reciprocal %616 {approx = true} : vector<2x1xf32> -> vector<2x1xf32>
      %618 = vector.broadcast %617 : vector<2x1xf32> to vector<2x32xf32>
      %619 = arith.mulf %614, %618 : vector<2x32xf32>
      %620 = vector.extract_strided_slice %553 {offsets = [0, 32], sizes = [32, 16], strides = [1, 1]} : vector<32x64xf32> to vector<32x16xf32>
      %cst_192 = arith.constant dense<0.000000e+00> : vector<2x16xf32>
      %621 = tpu.matmul %619, %620, %cst_192 {dimension_numbers = #tpu.dot_dimension_numbers<[1], [0], [0], [1], [0, 0, 1, 1], [], []>} : vector<2x32xf32>, vector<32x16xf32>, vector<2x16xf32> -> vector<2x16xf32>
      %622 = vector.extract_strided_slice %557 {offsets = [32, 0], sizes = [16, 48], strides = [1, 1]} : vector<64x48xbf16> to vector<16x48xbf16>
      %623 = arith.truncf %621 : vector<2x16xf32> to vector<2x16xbf16>
      %cst_193 = arith.constant dense<0.000000e+00> : vector<2x48xf32>
      %624 = tpu.matmul %623, %622, %cst_193 {dimension_numbers = #tpu.dot_dimension_numbers<[1], [0], [0], [1], [0, 0, 1, 1], [], []>} : vector<2x16xbf16>, vector<16x48xbf16>, vector<2x48xf32> -> vector<2x48xf32>
      %625 = arith.addf %602, %624 : vector<2x48xf32>
      %626 = vector.extract_strided_slice %493 {offsets = [0, 48], sizes = [2, 16], strides = [1, 1]} : vector<2x64xf32> to vector<2x16xf32>
      %cst_194 = arith.constant 2.500000e-01 : f32
      %627 = vector.broadcast %cst_194 : f32 to vector<2x16xf32>
      %628 = arith.mulf %626, %627 : vector<2x16xf32>
      %629 = vector.extract_strided_slice %523 {offsets = [0, 48], sizes = [32, 16], strides = [1, 1]} : vector<32x64xf32> to vector<32x16xf32>
      %630 = tpu.transpose %629, [1, 0] : vector<32x16xf32> -> vector<16x32xf32>
      %cst_195 = arith.constant dense<0.000000e+00> : vector<2x32xf32>
      %631 = tpu.matmul %628, %630, %cst_195 {dimension_numbers = #tpu.dot_dimension_numbers<[1], [0], [0], [1], [0, 0, 1, 1], [], []>} : vector<2x16xf32>, vector<16x32xf32>, vector<2x32xf32> -> vector<2x32xf32>
      %632 = arith.addf %631, %556 : vector<2x32xf32>
      %cst_196 = arith.constant dense<0xFF800000> : vector<2xf32>
      %633 = vector.multi_reduction <maximumf>, %632, %cst_196 [1] : vector<2x32xf32> to vector<2xf32>
      %634 = vector.shape_cast %633 : vector<2xf32> to vector<2x1xf32>
      %635 = vector.broadcast %634 : vector<2x1xf32> to vector<2x32xf32>
      %636 = arith.subf %632, %635 : vector<2x32xf32>
      %637 = math.exp %636 : vector<2x32xf32>
      %cst_197 = arith.constant dense<0.000000e+00> : vector<2xf32>
      %638 = vector.multi_reduction <add>, %637, %cst_197 [1] : vector<2x32xf32> to vector<2xf32>
      %639 = vector.shape_cast %638 : vector<2xf32> to vector<2x1xf32>
      %640 = tpu.reciprocal %639 {approx = true} : vector<2x1xf32> -> vector<2x1xf32>
      %641 = vector.broadcast %640 : vector<2x1xf32> to vector<2x32xf32>
      %642 = arith.mulf %637, %641 : vector<2x32xf32>
      %643 = vector.extract_strided_slice %553 {offsets = [0, 48], sizes = [32, 16], strides = [1, 1]} : vector<32x64xf32> to vector<32x16xf32>
      %cst_198 = arith.constant dense<0.000000e+00> : vector<2x16xf32>
      %644 = tpu.matmul %642, %643, %cst_198 {dimension_numbers = #tpu.dot_dimension_numbers<[1], [0], [0], [1], [0, 0, 1, 1], [], []>} : vector<2x32xf32>, vector<32x16xf32>, vector<2x16xf32> -> vector<2x16xf32>
      %645 = vector.extract_strided_slice %557 {offsets = [48, 0], sizes = [16, 48], strides = [1, 1]} : vector<64x48xbf16> to vector<16x48xbf16>
      %646 = arith.truncf %644 : vector<2x16xf32> to vector<2x16xbf16>
      %cst_199 = arith.constant dense<0.000000e+00> : vector<2x48xf32>
      %647 = tpu.matmul %646, %645, %cst_199 {dimension_numbers = #tpu.dot_dimension_numbers<[1], [0], [0], [1], [0, 0, 1, 1], [], []>} : vector<2x16xbf16>, vector<16x48xbf16>, vector<2x48xf32> -> vector<2x48xf32>
      %648 = arith.addf %625, %647 : vector<2x48xf32>
      %c40 = arith.constant 40 : index
      %c0_200 = arith.constant 0 : index
      %649 = vector.load %arg5[%c40, %c0_200] : memref<70x192xf32, #tpu.memory_space<vmem>>, vector<1x48xf32>
      %650 = vector.broadcast %649 : vector<1x48xf32> to vector<2x48xf32>
      %651 = arith.addf %648, %650 : vector<2x48xf32>
      %c41 = arith.constant 41 : index
      %c0_201 = arith.constant 0 : index
      %652 = vector.load %arg5[%c41, %c0_201] : memref<70x192xf32, #tpu.memory_space<vmem>>, vector<1x48xf32>
      %c42 = arith.constant 42 : index
      %c0_202 = arith.constant 0 : index
      %653 = vector.load %arg5[%c42, %c0_202] : memref<70x192xf32, #tpu.memory_space<vmem>>, vector<1x48xf32>
      %cst_203 = arith.constant dense<0.000000e+00> : vector<2xf32>
      %654 = vector.multi_reduction <add>, %651, %cst_203 [1] : vector<2x48xf32> to vector<2xf32>
      %655 = vector.shape_cast %654 : vector<2xf32> to vector<2x1xf32>
      %cst_204 = arith.constant 4.800000e+01 : f32
      %656 = vector.broadcast %cst_204 : f32 to vector<2x1xf32>
      %657 = arith.divf %655, %656 : vector<2x1xf32>
      %658 = vector.broadcast %657 : vector<2x1xf32> to vector<2x48xf32>
      %659 = arith.subf %651, %658 : vector<2x48xf32>
      %660 = arith.mulf %659, %659 : vector<2x48xf32>
      %cst_205 = arith.constant dense<0.000000e+00> : vector<2xf32>
      %661 = vector.multi_reduction <add>, %660, %cst_205 [1] : vector<2x48xf32> to vector<2xf32>
      %662 = vector.shape_cast %661 : vector<2xf32> to vector<2x1xf32>
      %cst_206 = arith.constant 4.800000e+01 : f32
      %663 = vector.broadcast %cst_206 : f32 to vector<2x1xf32>
      %664 = arith.divf %662, %663 : vector<2x1xf32>
      %665 = vector.broadcast %657 : vector<2x1xf32> to vector<2x48xf32>
      %666 = arith.subf %651, %665 : vector<2x48xf32>
      %cst_207 = arith.constant 9.99999974E-6 : f32
      %667 = vector.broadcast %cst_207 : f32 to vector<2x1xf32>
      %668 = arith.addf %664, %667 : vector<2x1xf32>
      %669 = math.rsqrt %668 : vector<2x1xf32>
      %670 = vector.broadcast %669 : vector<2x1xf32> to vector<2x48xf32>
      %671 = arith.mulf %666, %670 : vector<2x48xf32>
      %672 = vector.broadcast %652 : vector<1x48xf32> to vector<2x48xf32>
      %673 = arith.mulf %671, %672 : vector<2x48xf32>
      %674 = vector.broadcast %653 : vector<1x48xf32> to vector<2x48xf32>
      %675 = arith.addf %673, %674 : vector<2x48xf32>
      %c0_208 = arith.constant 0 : index
      %c0_209 = arith.constant 0 : index
      %676 = vector.load %arg9[%c0_208, %c0_209] : memref<48x32xbf16, #tpu.memory_space<vmem>>, vector<48x32xbf16>
      %677 = arith.truncf %675 : vector<2x48xf32> to vector<2x48xbf16>
      %cst_210 = arith.constant dense<0.000000e+00> : vector<2x32xf32>
      %678 = tpu.matmul %677, %676, %cst_210 {dimension_numbers = #tpu.dot_dimension_numbers<[1], [0], [0], [1], [0, 0, 1, 1], [], []>} : vector<2x48xbf16>, vector<48x32xbf16>, vector<2x32xf32> -> vector<2x32xf32>
      %c43 = arith.constant 43 : index
      %c0_211 = arith.constant 0 : index
      %679 = vector.load %arg5[%c43, %c0_211] : memref<70x192xf32, #tpu.memory_space<vmem>>, vector<1x32xf32>
      %680 = vector.broadcast %679 : vector<1x32xf32> to vector<2x32xf32>
      %681 = arith.addf %678, %680 : vector<2x32xf32>
      %c0_212 = arith.constant 0 : index
      %c0_213 = arith.constant 0 : index
      %c0_214 = arith.constant 0 : index
      %682 = vector.load %arg10[%c0_212, %c0_213, %c0_214] : memref<1x2x32xf32, #tpu.memory_space<vmem>>, vector<1x2x32xf32>
      %683 = vector.shape_cast %682 : vector<1x2x32xf32> to vector<2x32xf32>
      %684 = vector.shape_cast %681 : vector<2x32xf32> to vector<1x2x32xf32>
      tpu.vector_store %arg10[%c0_212, %c0_213, %c0_214], %684 {strides = array<i32>} : memref<1x2x32xf32, #tpu.memory_space<vmem>>, vector<1x2x32xf32>,
    } else {
    }
    %c1_i32 = arith.constant 1 : i32
    %3 = arith.cmpi eq, %arg0, %c1_i32 : i32
    %4 = arith.extui %3 : i1 to i32
    %c0_i32_1 = arith.constant 0 : i32
    %5 = arith.cmpi ne, %4, %c0_i32_1 : i32
    scf.if %5 {
      %6 = tpu.iota {dimensions = array<i32: 1>} : vector<16x128xi32>
      %c0 = arith.constant 0 : index
      %c0_2 = arith.constant 0 : index
      %7 = vector.load %arg2[%c0, %c0_2] : memref<16x1xi32, #tpu.memory_space<vmem>>, vector<16x1xi32>
      %8 = vector.broadcast %7 : vector<16x1xi32> to vector<16x128xi32>
      %9 = arith.cmpi eq, %6, %8 : vector<16x128xi32>
      %10 = arith.extui %9 : vector<16x128xi1> to vector<16x128xi32>
      %11 = arith.sitofp %10 : vector<16x128xi32> to vector<16x128xf32>
      %c0_3 = arith.constant 0 : index
      %c256 = arith.constant 256 : index
      %12 = vector.load %arg7[%c0_3, %c256] : memref<128x320xbf16, #tpu.memory_space<vmem>>, vector<128x64xbf16>
      %13 = arith.truncf %11 : vector<16x128xf32> to vector<16x128xbf16>
      %cst = arith.constant dense<0.000000e+00> : vector<16x64xf32>
      %14 = tpu.matmul %13, %12, %cst {dimension_numbers = #tpu.dot_dimension_numbers<[1], [0], [0], [1], [0, 0, 1, 1], [], []>} : vector<16x128xbf16>, vector<128x64xbf16>, vector<16x64xf32> -> vector<16x64xf32>
      %15 = tpu.iota {dimensions = array<i32: 0>} : vector<16x1xi32>
      %16 = tpu.iota {dimensions = array<i32: 1>} : vector<16x8xi32>
      %c7_i32 = arith.constant 7 : i32
      %17 = vector.broadcast %c7_i32 : i32 to vector<16x1xi32>
      %18 = arith.andi %15, %17 : vector<16x1xi32>
      %19 = vector.broadcast %18 : vector<16x1xi32> to vector<16x8xi32>
      %20 = arith.cmpi eq, %16, %19 : vector<16x8xi32>
      %21 = arith.extui %20 : vector<16x8xi1> to vector<16x8xi32>
      %22 = arith.sitofp %21 : vector<16x8xi32> to vector<16x8xf32>
      %c44 = arith.constant 44 : index
      %c0_4 = arith.constant 0 : index
      %23 = vector.load %arg5[%c44, %c0_4] : memref<70x192xf32, #tpu.memory_space<vmem>>, vector<8x64xf32>
      %cst_5 = arith.constant dense<0.000000e+00> : vector<16x64xf32>
      %24 = tpu.matmul %22, %23, %cst_5 {dimension_numbers = #tpu.dot_dimension_numbers<[1], [0], [0], [1], [0, 0, 1, 1], [], []>} : vector<16x8xf32>, vector<8x64xf32>, vector<16x64xf32> -> vector<16x64xf32>
      %25 = arith.addf %14, %24 : vector<16x64xf32>
      %26 = tpu.iota {dimensions = array<i32: 0>} : vector<16x16xi32>
      %27 = tpu.iota {dimensions = array<i32: 1>} : vector<16x16xi32>
      %c3_i32 = arith.constant 3 : i32
      %28 = vector.broadcast %c3_i32 : i32 to vector<16x16xi32>
      %29 = arith.shrsi %26, %28 : vector<16x16xi32>
      %c3_i32_6 = arith.constant 3 : i32
      %30 = vector.broadcast %c3_i32_6 : i32 to vector<16x16xi32>
      %31 = arith.shrsi %27, %30 : vector<16x16xi32>
      %32 = arith.cmpi eq, %29, %31 : vector<16x16xi32>
      %c7_i32_7 = arith.constant 7 : i32
      %33 = vector.broadcast %c7_i32_7 : i32 to vector<16x16xi32>
      %34 = arith.andi %27, %33 : vector<16x16xi32>
      %c7_i32_8 = arith.constant 7 : i32
      %35 = vector.broadcast %c7_i32_8 : i32 to vector<16x16xi32>
      %36 = arith.andi %26, %35 : vector<16x16xi32>
      %37 = arith.cmpi sle, %34, %36 : vector<16x16xi32>
      %38 = arith.andi %32, %37 : vector<16x16xi1>
      %c0_9 = arith.constant 0 : index
      %c0_10 = arith.constant 0 : index
      %39 = vector.load %arg4[%c0_9, %c0_10] : memref<1x16xi32, #tpu.memory_space<vmem>>, vector<1x16xi32>
      %c0_i32_11 = arith.constant 0 : i32
      %40 = vector.broadcast %c0_i32_11 : i32 to vector<1x16xi32>
      %41 = arith.cmpi sgt, %39, %40 : vector<1x16xi32>
      %42 = vector.broadcast %41 : vector<1x16xi1> to vector<16x16xi1>
      %43 = arith.andi %38, %42 : vector<16x16xi1>
      %cst_12 = arith.constant 0.000000e+00 : f32
      %cst_13 = arith.constant -1.000000e+09 : f32
      %44 = vector.broadcast %cst_12 : f32 to vector<16x16xf32>
      %45 = vector.broadcast %cst_13 : f32 to vector<16x16xf32>
      %46 = arith.select %43, %44, %45 : vector<16x16xi1>, vector<16x16xf32>
      %c52 = arith.constant 52 : index
      %c0_14 = arith.constant 0 : index
      %47 = vector.load %arg5[%c52, %c0_14] : memref<70x192xf32, #tpu.memory_space<vmem>>, vector<1x64xf32>
      %c53 = arith.constant 53 : index
      %c0_15 = arith.constant 0 : index
      %48 = vector.load %arg5[%c53, %c0_15] : memref<70x192xf32, #tpu.memory_space<vmem>>, vector<1x64xf32>
      %cst_16 = arith.constant dense<0.000000e+00> : vector<16xf32>
      %49 = vector.multi_reduction <add>, %25, %cst_16 [1] : vector<16x64xf32> to vector<16xf32>
      %50 = vector.shape_cast %49 : vector<16xf32> to vector<16x1xf32>
      %cst_17 = arith.constant 6.400000e+01 : f32
      %51 = vector.broadcast %cst_17 : f32 to vector<16x1xf32>
      %52 = arith.divf %50, %51 : vector<16x1xf32>
      %53 = vector.broadcast %52 : vector<16x1xf32> to vector<16x64xf32>
      %54 = arith.subf %25, %53 : vector<16x64xf32>
      %55 = arith.mulf %54, %54 : vector<16x64xf32>
      %cst_18 = arith.constant dense<0.000000e+00> : vector<16xf32>
      %56 = vector.multi_reduction <add>, %55, %cst_18 [1] : vector<16x64xf32> to vector<16xf32>
      %57 = vector.shape_cast %56 : vector<16xf32> to vector<16x1xf32>
      %cst_19 = arith.constant 6.400000e+01 : f32
      %58 = vector.broadcast %cst_19 : f32 to vector<16x1xf32>
      %59 = arith.divf %57, %58 : vector<16x1xf32>
      %60 = vector.broadcast %52 : vector<16x1xf32> to vector<16x64xf32>
      %61 = arith.subf %25, %60 : vector<16x64xf32>
      %cst_20 = arith.constant 9.99999974E-6 : f32
      %62 = vector.broadcast %cst_20 : f32 to vector<16x1xf32>
      %63 = arith.addf %59, %62 : vector<16x1xf32>
      %64 = math.rsqrt %63 : vector<16x1xf32>
      %65 = vector.broadcast %64 : vector<16x1xf32> to vector<16x64xf32>
      %66 = arith.mulf %61, %65 : vector<16x64xf32>
      %67 = vector.broadcast %47 : vector<1x64xf32> to vector<16x64xf32>
      %68 = arith.mulf %66, %67 : vector<16x64xf32>
      %69 = vector.broadcast %48 : vector<1x64xf32> to vector<16x64xf32>
      %70 = arith.addf %68, %69 : vector<16x64xf32>
      %c0_21 = arith.constant 0 : index
      %c1008 = arith.constant 1008 : index
      %71 = vector.load %arg6[%c0_21, %c1008] : memref<64x1808xbf16, #tpu.memory_space<vmem>>, vector<64x192xbf16>
      %72 = arith.truncf %70 : vector<16x64xf32> to vector<16x64xbf16>
      %cst_22 = arith.constant dense<0.000000e+00> : vector<16x192xf32>
      %73 = tpu.matmul %72, %71, %cst_22 {dimension_numbers = #tpu.dot_dimension_numbers<[1], [0], [0], [1], [0, 0, 1, 1], [], []>} : vector<16x64xbf16>, vector<64x192xbf16>, vector<16x192xf32> -> vector<16x192xf32>
      %c54 = arith.constant 54 : index
      %c0_23 = arith.constant 0 : index
      %74 = vector.load %arg5[%c54, %c0_23] : memref<70x192xf32, #tpu.memory_space<vmem>>, vector<1x192xf32>
      %75 = vector.broadcast %74 : vector<1x192xf32> to vector<16x192xf32>
      %76 = arith.addf %73, %75 : vector<16x192xf32>
      %77 = vector.extract_strided_slice %76 {offsets = [0, 0], sizes = [16, 64], strides = [1, 1]} : vector<16x192xf32> to vector<16x64xf32>
      %78 = vector.extract_strided_slice %76 {offsets = [0, 64], sizes = [16, 64], strides = [1, 1]} : vector<16x192xf32> to vector<16x64xf32>
      %79 = vector.extract_strided_slice %76 {offsets = [0, 128], sizes = [16, 64], strides = [1, 1]} : vector<16x192xf32> to vector<16x64xf32>
      %c0_24 = arith.constant 0 : index
      %c1200 = arith.constant 1200 : index
      %80 = vector.load %arg6[%c0_24, %c1200] : memref<64x1808xbf16, #tpu.memory_space<vmem>>, vector<64x64xbf16>
      %81 = vector.extract_strided_slice %77 {offsets = [0, 0], sizes = [16, 16], strides = [1, 1]} : vector<16x64xf32> to vector<16x16xf32>
      %cst_25 = arith.constant 2.500000e-01 : f32
      %82 = vector.broadcast %cst_25 : f32 to vector<16x16xf32>
      %83 = arith.mulf %81, %82 : vector<16x16xf32>
      %84 = vector.extract_strided_slice %78 {offsets = [0, 0], sizes = [16, 16], strides = [1, 1]} : vector<16x64xf32> to vector<16x16xf32>
      %85 = tpu.transpose %84, [1, 0] : vector<16x16xf32> -> vector<16x16xf32>
      %cst_26 = arith.constant dense<0.000000e+00> : vector<16x16xf32>
      %86 = tpu.matmul %83, %85, %cst_26 {dimension_numbers = #tpu.dot_dimension_numbers<[1], [0], [0], [1], [0, 0, 1, 1], [], []>} : vector<16x16xf32>, vector<16x16xf32>, vector<16x16xf32> -> vector<16x16xf32>
      %87 = arith.addf %86, %46 : vector<16x16xf32>
      %cst_27 = arith.constant dense<0xFF800000> : vector<16xf32>
      %88 = vector.multi_reduction <maximumf>, %87, %cst_27 [1] : vector<16x16xf32> to vector<16xf32>
      %89 = vector.shape_cast %88 : vector<16xf32> to vector<16x1xf32>
      %90 = vector.broadcast %89 : vector<16x1xf32> to vector<16x16xf32>
      %91 = arith.subf %87, %90 : vector<16x16xf32>
      %92 = math.exp %91 : vector<16x16xf32>
      %cst_28 = arith.constant dense<0.000000e+00> : vector<16xf32>
      %93 = vector.multi_reduction <add>, %92, %cst_28 [1] : vector<16x16xf32> to vector<16xf32>
      %94 = vector.shape_cast %93 : vector<16xf32> to vector<16x1xf32>
      %95 = tpu.reciprocal %94 {approx = true} : vector<16x1xf32> -> vector<16x1xf32>
      %96 = vector.broadcast %95 : vector<16x1xf32> to vector<16x16xf32>
      %97 = arith.mulf %92, %96 : vector<16x16xf32>
      %98 = vector.extract_strided_slice %79 {offsets = [0, 0], sizes = [16, 16], strides = [1, 1]} : vector<16x64xf32> to vector<16x16xf32>
      %cst_29 = arith.constant dense<0.000000e+00> : vector<16x16xf32>
      %99 = tpu.matmul %97, %98, %cst_29 {dimension_numbers = #tpu.dot_dimension_numbers<[1], [0], [0], [1], [0, 0, 1, 1], [], []>} : vector<16x16xf32>, vector<16x16xf32>, vector<16x16xf32> -> vector<16x16xf32>
      %100 = vector.extract_strided_slice %80 {offsets = [0, 0], sizes = [16, 64], strides = [1, 1]} : vector<64x64xbf16> to vector<16x64xbf16>
      %101 = arith.truncf %99 : vector<16x16xf32> to vector<16x16xbf16>
      %cst_30 = arith.constant dense<0.000000e+00> : vector<16x64xf32>
      %102 = tpu.matmul %101, %100, %cst_30 {dimension_numbers = #tpu.dot_dimension_numbers<[1], [0], [0], [1], [0, 0, 1, 1], [], []>} : vector<16x16xbf16>, vector<16x64xbf16>, vector<16x64xf32> -> vector<16x64xf32>
      %103 = vector.extract_strided_slice %77 {offsets = [0, 16], sizes = [16, 16], strides = [1, 1]} : vector<16x64xf32> to vector<16x16xf32>
      %cst_31 = arith.constant 2.500000e-01 : f32
      %104 = vector.broadcast %cst_31 : f32 to vector<16x16xf32>
      %105 = arith.mulf %103, %104 : vector<16x16xf32>
      %106 = vector.extract_strided_slice %78 {offsets = [0, 16], sizes = [16, 16], strides = [1, 1]} : vector<16x64xf32> to vector<16x16xf32>
      %107 = tpu.transpose %106, [1, 0] : vector<16x16xf32> -> vector<16x16xf32>
      %cst_32 = arith.constant dense<0.000000e+00> : vector<16x16xf32>
      %108 = tpu.matmul %105, %107, %cst_32 {dimension_numbers = #tpu.dot_dimension_numbers<[1], [0], [0], [1], [0, 0, 1, 1], [], []>} : vector<16x16xf32>, vector<16x16xf32>, vector<16x16xf32> -> vector<16x16xf32>
      %109 = arith.addf %108, %46 : vector<16x16xf32>
      %cst_33 = arith.constant dense<0xFF800000> : vector<16xf32>
      %110 = vector.multi_reduction <maximumf>, %109, %cst_33 [1] : vector<16x16xf32> to vector<16xf32>
      %111 = vector.shape_cast %110 : vector<16xf32> to vector<16x1xf32>
      %112 = vector.broadcast %111 : vector<16x1xf32> to vector<16x16xf32>
      %113 = arith.subf %109, %112 : vector<16x16xf32>
      %114 = math.exp %113 : vector<16x16xf32>
      %cst_34 = arith.constant dense<0.000000e+00> : vector<16xf32>
      %115 = vector.multi_reduction <add>, %114, %cst_34 [1] : vector<16x16xf32> to vector<16xf32>
      %116 = vector.shape_cast %115 : vector<16xf32> to vector<16x1xf32>
      %117 = tpu.reciprocal %116 {approx = true} : vector<16x1xf32> -> vector<16x1xf32>
      %118 = vector.broadcast %117 : vector<16x1xf32> to vector<16x16xf32>
      %119 = arith.mulf %114, %118 : vector<16x16xf32>
      %120 = vector.extract_strided_slice %79 {offsets = [0, 16], sizes = [16, 16], strides = [1, 1]} : vector<16x64xf32> to vector<16x16xf32>
      %cst_35 = arith.constant dense<0.000000e+00> : vector<16x16xf32>
      %121 = tpu.matmul %119, %120, %cst_35 {dimension_numbers = #tpu.dot_dimension_numbers<[1], [0], [0], [1], [0, 0, 1, 1], [], []>} : vector<16x16xf32>, vector<16x16xf32>, vector<16x16xf32> -> vector<16x16xf32>
      %122 = vector.extract_strided_slice %80 {offsets = [16, 0], sizes = [16, 64], strides = [1, 1]} : vector<64x64xbf16> to vector<16x64xbf16>
      %123 = arith.truncf %121 : vector<16x16xf32> to vector<16x16xbf16>
      %cst_36 = arith.constant dense<0.000000e+00> : vector<16x64xf32>
      %124 = tpu.matmul %123, %122, %cst_36 {dimension_numbers = #tpu.dot_dimension_numbers<[1], [0], [0], [1], [0, 0, 1, 1], [], []>} : vector<16x16xbf16>, vector<16x64xbf16>, vector<16x64xf32> -> vector<16x64xf32>
      %125 = arith.addf %102, %124 : vector<16x64xf32>
      %126 = vector.extract_strided_slice %77 {offsets = [0, 32], sizes = [16, 16], strides = [1, 1]} : vector<16x64xf32> to vector<16x16xf32>
      %cst_37 = arith.constant 2.500000e-01 : f32
      %127 = vector.broadcast %cst_37 : f32 to vector<16x16xf32>
      %128 = arith.mulf %126, %127 : vector<16x16xf32>
      %129 = vector.extract_strided_slice %78 {offsets = [0, 32], sizes = [16, 16], strides = [1, 1]} : vector<16x64xf32> to vector<16x16xf32>
      %130 = tpu.transpose %129, [1, 0] : vector<16x16xf32> -> vector<16x16xf32>
      %cst_38 = arith.constant dense<0.000000e+00> : vector<16x16xf32>
      %131 = tpu.matmul %128, %130, %cst_38 {dimension_numbers = #tpu.dot_dimension_numbers<[1], [0], [0], [1], [0, 0, 1, 1], [], []>} : vector<16x16xf32>, vector<16x16xf32>, vector<16x16xf32> -> vector<16x16xf32>
      %132 = arith.addf %131, %46 : vector<16x16xf32>
      %cst_39 = arith.constant dense<0xFF800000> : vector<16xf32>
      %133 = vector.multi_reduction <maximumf>, %132, %cst_39 [1] : vector<16x16xf32> to vector<16xf32>
      %134 = vector.shape_cast %133 : vector<16xf32> to vector<16x1xf32>
      %135 = vector.broadcast %134 : vector<16x1xf32> to vector<16x16xf32>
      %136 = arith.subf %132, %135 : vector<16x16xf32>
      %137 = math.exp %136 : vector<16x16xf32>
      %cst_40 = arith.constant dense<0.000000e+00> : vector<16xf32>
      %138 = vector.multi_reduction <add>, %137, %cst_40 [1] : vector<16x16xf32> to vector<16xf32>
      %139 = vector.shape_cast %138 : vector<16xf32> to vector<16x1xf32>
      %140 = tpu.reciprocal %139 {approx = true} : vector<16x1xf32> -> vector<16x1xf32>
      %141 = vector.broadcast %140 : vector<16x1xf32> to vector<16x16xf32>
      %142 = arith.mulf %137, %141 : vector<16x16xf32>
      %143 = vector.extract_strided_slice %79 {offsets = [0, 32], sizes = [16, 16], strides = [1, 1]} : vector<16x64xf32> to vector<16x16xf32>
      %cst_41 = arith.constant dense<0.000000e+00> : vector<16x16xf32>
      %144 = tpu.matmul %142, %143, %cst_41 {dimension_numbers = #tpu.dot_dimension_numbers<[1], [0], [0], [1], [0, 0, 1, 1], [], []>} : vector<16x16xf32>, vector<16x16xf32>, vector<16x16xf32> -> vector<16x16xf32>
      %145 = vector.extract_strided_slice %80 {offsets = [32, 0], sizes = [16, 64], strides = [1, 1]} : vector<64x64xbf16> to vector<16x64xbf16>
      %146 = arith.truncf %144 : vector<16x16xf32> to vector<16x16xbf16>
      %cst_42 = arith.constant dense<0.000000e+00> : vector<16x64xf32>
      %147 = tpu.matmul %146, %145, %cst_42 {dimension_numbers = #tpu.dot_dimension_numbers<[1], [0], [0], [1], [0, 0, 1, 1], [], []>} : vector<16x16xbf16>, vector<16x64xbf16>, vector<16x64xf32> -> vector<16x64xf32>
      %148 = arith.addf %125, %147 : vector<16x64xf32>
      %149 = vector.extract_strided_slice %77 {offsets = [0, 48], sizes = [16, 16], strides = [1, 1]} : vector<16x64xf32> to vector<16x16xf32>
      %cst_43 = arith.constant 2.500000e-01 : f32
      %150 = vector.broadcast %cst_43 : f32 to vector<16x16xf32>
      %151 = arith.mulf %149, %150 : vector<16x16xf32>
      %152 = vector.extract_strided_slice %78 {offsets = [0, 48], sizes = [16, 16], strides = [1, 1]} : vector<16x64xf32> to vector<16x16xf32>
      %153 = tpu.transpose %152, [1, 0] : vector<16x16xf32> -> vector<16x16xf32>
      %cst_44 = arith.constant dense<0.000000e+00> : vector<16x16xf32>
      %154 = tpu.matmul %151, %153, %cst_44 {dimension_numbers = #tpu.dot_dimension_numbers<[1], [0], [0], [1], [0, 0, 1, 1], [], []>} : vector<16x16xf32>, vector<16x16xf32>, vector<16x16xf32> -> vector<16x16xf32>
      %155 = arith.addf %154, %46 : vector<16x16xf32>
      %cst_45 = arith.constant dense<0xFF800000> : vector<16xf32>
      %156 = vector.multi_reduction <maximumf>, %155, %cst_45 [1] : vector<16x16xf32> to vector<16xf32>
      %157 = vector.shape_cast %156 : vector<16xf32> to vector<16x1xf32>
      %158 = vector.broadcast %157 : vector<16x1xf32> to vector<16x16xf32>
      %159 = arith.subf %155, %158 : vector<16x16xf32>
      %160 = math.exp %159 : vector<16x16xf32>
      %cst_46 = arith.constant dense<0.000000e+00> : vector<16xf32>
      %161 = vector.multi_reduction <add>, %160, %cst_46 [1] : vector<16x16xf32> to vector<16xf32>
      %162 = vector.shape_cast %161 : vector<16xf32> to vector<16x1xf32>
      %163 = tpu.reciprocal %162 {approx = true} : vector<16x1xf32> -> vector<16x1xf32>
      %164 = vector.broadcast %163 : vector<16x1xf32> to vector<16x16xf32>
      %165 = arith.mulf %160, %164 : vector<16x16xf32>
      %166 = vector.extract_strided_slice %79 {offsets = [0, 48], sizes = [16, 16], strides = [1, 1]} : vector<16x64xf32> to vector<16x16xf32>
      %cst_47 = arith.constant dense<0.000000e+00> : vector<16x16xf32>
      %167 = tpu.matmul %165, %166, %cst_47 {dimension_numbers = #tpu.dot_dimension_numbers<[1], [0], [0], [1], [0, 0, 1, 1], [], []>} : vector<16x16xf32>, vector<16x16xf32>, vector<16x16xf32> -> vector<16x16xf32>
      %168 = vector.extract_strided_slice %80 {offsets = [48, 0], sizes = [16, 64], strides = [1, 1]} : vector<64x64xbf16> to vector<16x64xbf16>
      %169 = arith.truncf %167 : vector<16x16xf32> to vector<16x16xbf16>
      %cst_48 = arith.constant dense<0.000000e+00> : vector<16x64xf32>
      %170 = tpu.matmul %169, %168, %cst_48 {dimension_numbers = #tpu.dot_dimension_numbers<[1], [0], [0], [1], [0, 0, 1, 1], [], []>} : vector<16x16xbf16>, vector<16x64xbf16>, vector<16x64xf32> -> vector<16x64xf32>
      %171 = arith.addf %148, %170 : vector<16x64xf32>
      %c55 = arith.constant 55 : index
      %c0_49 = arith.constant 0 : index
      %172 = vector.load %arg5[%c55, %c0_49] : memref<70x192xf32, #tpu.memory_space<vmem>>, vector<1x64xf32>
      %173 = vector.broadcast %172 : vector<1x64xf32> to vector<16x64xf32>
      %174 = arith.addf %171, %173 : vector<16x64xf32>
      %175 = arith.addf %25, %174 : vector<16x64xf32>
      %c56 = arith.constant 56 : index
      %c0_50 = arith.constant 0 : index
      %176 = vector.load %arg5[%c56, %c0_50] : memref<70x192xf32, #tpu.memory_space<vmem>>, vector<1x64xf32>
      %c57 = arith.constant 57 : index
      %c0_51 = arith.constant 0 : index
      %177 = vector.load %arg5[%c57, %c0_51] : memref<70x192xf32, #tpu.memory_space<vmem>>, vector<1x64xf32>
      %cst_52 = arith.constant dense<0.000000e+00> : vector<16xf32>
      %178 = vector.multi_reduction <add>, %175, %cst_52 [1] : vector<16x64xf32> to vector<16xf32>
      %179 = vector.shape_cast %178 : vector<16xf32> to vector<16x1xf32>
      %cst_53 = arith.constant 6.400000e+01 : f32
      %180 = vector.broadcast %cst_53 : f32 to vector<16x1xf32>
      %181 = arith.divf %179, %180 : vector<16x1xf32>
      %182 = vector.broadcast %181 : vector<16x1xf32> to vector<16x64xf32>
      %183 = arith.subf %175, %182 : vector<16x64xf32>
      %184 = arith.mulf %183, %183 : vector<16x64xf32>
      %cst_54 = arith.constant dense<0.000000e+00> : vector<16xf32>
      %185 = vector.multi_reduction <add>, %184, %cst_54 [1] : vector<16x64xf32> to vector<16xf32>
      %186 = vector.shape_cast %185 : vector<16xf32> to vector<16x1xf32>
      %cst_55 = arith.constant 6.400000e+01 : f32
      %187 = vector.broadcast %cst_55 : f32 to vector<16x1xf32>
      %188 = arith.divf %186, %187 : vector<16x1xf32>
      %189 = vector.broadcast %181 : vector<16x1xf32> to vector<16x64xf32>
      %190 = arith.subf %175, %189 : vector<16x64xf32>
      %cst_56 = arith.constant 9.99999974E-6 : f32
      %191 = vector.broadcast %cst_56 : f32 to vector<16x1xf32>
      %192 = arith.addf %188, %191 : vector<16x1xf32>
      %193 = math.rsqrt %192 : vector<16x1xf32>
      %194 = vector.broadcast %193 : vector<16x1xf32> to vector<16x64xf32>
      %195 = arith.mulf %190, %194 : vector<16x64xf32>
      %196 = vector.broadcast %176 : vector<1x64xf32> to vector<16x64xf32>
      %197 = arith.mulf %195, %196 : vector<16x64xf32>
      %198 = vector.broadcast %177 : vector<1x64xf32> to vector<16x64xf32>
      %199 = arith.addf %197, %198 : vector<16x64xf32>
      %c0_57 = arith.constant 0 : index
      %c1264 = arith.constant 1264 : index
      %200 = vector.load %arg6[%c0_57, %c1264] : memref<64x1808xbf16, #tpu.memory_space<vmem>>, vector<64x128xbf16>
      %201 = arith.truncf %199 : vector<16x64xf32> to vector<16x64xbf16>
      %cst_58 = arith.constant dense<0.000000e+00> : vector<16x128xf32>
      %202 = tpu.matmul %201, %200, %cst_58 {dimension_numbers = #tpu.dot_dimension_numbers<[1], [0], [0], [1], [0, 0, 1, 1], [], []>} : vector<16x64xbf16>, vector<64x128xbf16>, vector<16x128xf32> -> vector<16x128xf32>
      %c58 = arith.constant 58 : index
      %c0_59 = arith.constant 0 : index
      %203 = vector.load %arg5[%c58, %c0_59] : memref<70x192xf32, #tpu.memory_space<vmem>>, vector<1x128xf32>
      %204 = vector.broadcast %203 : vector<1x128xf32> to vector<16x128xf32>
      %205 = arith.addf %202, %204 : vector<16x128xf32>
      %206 = arith.mulf %205, %205 : vector<16x128xf32>
      %207 = arith.mulf %205, %206 : vector<16x128xf32>
      %cst_60 = arith.constant 4.471500e-02 : f32
      %208 = vector.broadcast %cst_60 : f32 to vector<16x128xf32>
      %209 = arith.mulf %208, %207 : vector<16x128xf32>
      %210 = arith.addf %205, %209 : vector<16x128xf32>
      %cst_61 = arith.constant 0.797884583 : f32
      %211 = vector.broadcast %cst_61 : f32 to vector<16x128xf32>
      %212 = arith.mulf %211, %210 : vector<16x128xf32>
      %213 = math.tanh %212 : vector<16x128xf32>
      %cst_62 = arith.constant 1.000000e+00 : f32
      %214 = vector.broadcast %cst_62 : f32 to vector<16x128xf32>
      %215 = arith.addf %214, %213 : vector<16x128xf32>
      %cst_63 = arith.constant 5.000000e-01 : f32
      %216 = vector.broadcast %cst_63 : f32 to vector<16x128xf32>
      %217 = arith.mulf %216, %215 : vector<16x128xf32>
      %218 = arith.mulf %205, %217 : vector<16x128xf32>
      %c0_64 = arith.constant 0 : index
      %c128 = arith.constant 128 : index
      %219 = vector.load %arg7[%c0_64, %c128] : memref<128x320xbf16, #tpu.memory_space<vmem>>, vector<128x64xbf16>
      %220 = arith.truncf %218 : vector<16x128xf32> to vector<16x128xbf16>
      %cst_65 = arith.constant dense<0.000000e+00> : vector<16x64xf32>
      %221 = tpu.matmul %220, %219, %cst_65 {dimension_numbers = #tpu.dot_dimension_numbers<[1], [0], [0], [1], [0, 0, 1, 1], [], []>} : vector<16x128xbf16>, vector<128x64xbf16>, vector<16x64xf32> -> vector<16x64xf32>
      %222 = arith.addf %175, %221 : vector<16x64xf32>
      %c59 = arith.constant 59 : index
      %c0_66 = arith.constant 0 : index
      %223 = vector.load %arg5[%c59, %c0_66] : memref<70x192xf32, #tpu.memory_space<vmem>>, vector<1x64xf32>
      %224 = vector.broadcast %223 : vector<1x64xf32> to vector<16x64xf32>
      %225 = arith.addf %222, %224 : vector<16x64xf32>
      %c60 = arith.constant 60 : index
      %c0_67 = arith.constant 0 : index
      %226 = vector.load %arg5[%c60, %c0_67] : memref<70x192xf32, #tpu.memory_space<vmem>>, vector<1x64xf32>
      %c61 = arith.constant 61 : index
      %c0_68 = arith.constant 0 : index
      %227 = vector.load %arg5[%c61, %c0_68] : memref<70x192xf32, #tpu.memory_space<vmem>>, vector<1x64xf32>
      %cst_69 = arith.constant dense<0.000000e+00> : vector<16xf32>
      %228 = vector.multi_reduction <add>, %225, %cst_69 [1] : vector<16x64xf32> to vector<16xf32>
      %229 = vector.shape_cast %228 : vector<16xf32> to vector<16x1xf32>
      %cst_70 = arith.constant 6.400000e+01 : f32
      %230 = vector.broadcast %cst_70 : f32 to vector<16x1xf32>
      %231 = arith.divf %229, %230 : vector<16x1xf32>
      %232 = vector.broadcast %231 : vector<16x1xf32> to vector<16x64xf32>
      %233 = arith.subf %225, %232 : vector<16x64xf32>
      %234 = arith.mulf %233, %233 : vector<16x64xf32>
      %cst_71 = arith.constant dense<0.000000e+00> : vector<16xf32>
      %235 = vector.multi_reduction <add>, %234, %cst_71 [1] : vector<16x64xf32> to vector<16xf32>
      %236 = vector.shape_cast %235 : vector<16xf32> to vector<16x1xf32>
      %cst_72 = arith.constant 6.400000e+01 : f32
      %237 = vector.broadcast %cst_72 : f32 to vector<16x1xf32>
      %238 = arith.divf %236, %237 : vector<16x1xf32>
      %239 = vector.broadcast %231 : vector<16x1xf32> to vector<16x64xf32>
      %240 = arith.subf %225, %239 : vector<16x64xf32>
      %cst_73 = arith.constant 9.99999974E-6 : f32
      %241 = vector.broadcast %cst_73 : f32 to vector<16x1xf32>
      %242 = arith.addf %238, %241 : vector<16x1xf32>
      %243 = math.rsqrt %242 : vector<16x1xf32>
      %244 = vector.broadcast %243 : vector<16x1xf32> to vector<16x64xf32>
      %245 = arith.mulf %240, %244 : vector<16x64xf32>
      %246 = vector.broadcast %226 : vector<1x64xf32> to vector<16x64xf32>
      %247 = arith.mulf %245, %246 : vector<16x64xf32>
      %248 = vector.broadcast %227 : vector<1x64xf32> to vector<16x64xf32>
      %249 = arith.addf %247, %248 : vector<16x64xf32>
      %c0_74 = arith.constant 0 : index
      %c1392 = arith.constant 1392 : index
      %250 = vector.load %arg6[%c0_74, %c1392] : memref<64x1808xbf16, #tpu.memory_space<vmem>>, vector<64x192xbf16>
      %251 = arith.truncf %249 : vector<16x64xf32> to vector<16x64xbf16>
      %cst_75 = arith.constant dense<0.000000e+00> : vector<16x192xf32>
      %252 = tpu.matmul %251, %250, %cst_75 {dimension_numbers = #tpu.dot_dimension_numbers<[1], [0], [0], [1], [0, 0, 1, 1], [], []>} : vector<16x64xbf16>, vector<64x192xbf16>, vector<16x192xf32> -> vector<16x192xf32>
      %c62 = arith.constant 62 : index
      %c0_76 = arith.constant 0 : index
      %253 = vector.load %arg5[%c62, %c0_76] : memref<70x192xf32, #tpu.memory_space<vmem>>, vector<1x192xf32>
      %254 = vector.broadcast %253 : vector<1x192xf32> to vector<16x192xf32>
      %255 = arith.addf %252, %254 : vector<16x192xf32>
      %256 = vector.extract_strided_slice %255 {offsets = [0, 0], sizes = [16, 64], strides = [1, 1]} : vector<16x192xf32> to vector<16x64xf32>
      %257 = vector.extract_strided_slice %255 {offsets = [0, 64], sizes = [16, 64], strides = [1, 1]} : vector<16x192xf32> to vector<16x64xf32>
      %258 = vector.extract_strided_slice %255 {offsets = [0, 128], sizes = [16, 64], strides = [1, 1]} : vector<16x192xf32> to vector<16x64xf32>
      %c0_77 = arith.constant 0 : index
      %c1584 = arith.constant 1584 : index
      %259 = vector.load %arg6[%c0_77, %c1584] : memref<64x1808xbf16, #tpu.memory_space<vmem>>, vector<64x64xbf16>
      %260 = vector.extract_strided_slice %256 {offsets = [0, 0], sizes = [16, 16], strides = [1, 1]} : vector<16x64xf32> to vector<16x16xf32>
      %cst_78 = arith.constant 2.500000e-01 : f32
      %261 = vector.broadcast %cst_78 : f32 to vector<16x16xf32>
      %262 = arith.mulf %260, %261 : vector<16x16xf32>
      %263 = vector.extract_strided_slice %257 {offsets = [0, 0], sizes = [16, 16], strides = [1, 1]} : vector<16x64xf32> to vector<16x16xf32>
      %264 = tpu.transpose %263, [1, 0] : vector<16x16xf32> -> vector<16x16xf32>
      %cst_79 = arith.constant dense<0.000000e+00> : vector<16x16xf32>
      %265 = tpu.matmul %262, %264, %cst_79 {dimension_numbers = #tpu.dot_dimension_numbers<[1], [0], [0], [1], [0, 0, 1, 1], [], []>} : vector<16x16xf32>, vector<16x16xf32>, vector<16x16xf32> -> vector<16x16xf32>
      %266 = arith.addf %265, %46 : vector<16x16xf32>
      %cst_80 = arith.constant dense<0xFF800000> : vector<16xf32>
      %267 = vector.multi_reduction <maximumf>, %266, %cst_80 [1] : vector<16x16xf32> to vector<16xf32>
      %268 = vector.shape_cast %267 : vector<16xf32> to vector<16x1xf32>
      %269 = vector.broadcast %268 : vector<16x1xf32> to vector<16x16xf32>
      %270 = arith.subf %266, %269 : vector<16x16xf32>
      %271 = math.exp %270 : vector<16x16xf32>
      %cst_81 = arith.constant dense<0.000000e+00> : vector<16xf32>
      %272 = vector.multi_reduction <add>, %271, %cst_81 [1] : vector<16x16xf32> to vector<16xf32>
      %273 = vector.shape_cast %272 : vector<16xf32> to vector<16x1xf32>
      %274 = tpu.reciprocal %273 {approx = true} : vector<16x1xf32> -> vector<16x1xf32>
      %275 = vector.broadcast %274 : vector<16x1xf32> to vector<16x16xf32>
      %276 = arith.mulf %271, %275 : vector<16x16xf32>
      %277 = vector.extract_strided_slice %258 {offsets = [0, 0], sizes = [16, 16], strides = [1, 1]} : vector<16x64xf32> to vector<16x16xf32>
      %cst_82 = arith.constant dense<0.000000e+00> : vector<16x16xf32>
      %278 = tpu.matmul %276, %277, %cst_82 {dimension_numbers = #tpu.dot_dimension_numbers<[1], [0], [0], [1], [0, 0, 1, 1], [], []>} : vector<16x16xf32>, vector<16x16xf32>, vector<16x16xf32> -> vector<16x16xf32>
      %279 = vector.extract_strided_slice %259 {offsets = [0, 0], sizes = [16, 64], strides = [1, 1]} : vector<64x64xbf16> to vector<16x64xbf16>
      %280 = arith.truncf %278 : vector<16x16xf32> to vector<16x16xbf16>
      %cst_83 = arith.constant dense<0.000000e+00> : vector<16x64xf32>
      %281 = tpu.matmul %280, %279, %cst_83 {dimension_numbers = #tpu.dot_dimension_numbers<[1], [0], [0], [1], [0, 0, 1, 1], [], []>} : vector<16x16xbf16>, vector<16x64xbf16>, vector<16x64xf32> -> vector<16x64xf32>
      %282 = vector.extract_strided_slice %256 {offsets = [0, 16], sizes = [16, 16], strides = [1, 1]} : vector<16x64xf32> to vector<16x16xf32>
      %cst_84 = arith.constant 2.500000e-01 : f32
      %283 = vector.broadcast %cst_84 : f32 to vector<16x16xf32>
      %284 = arith.mulf %282, %283 : vector<16x16xf32>
      %285 = vector.extract_strided_slice %257 {offsets = [0, 16], sizes = [16, 16], strides = [1, 1]} : vector<16x64xf32> to vector<16x16xf32>
      %286 = tpu.transpose %285, [1, 0] : vector<16x16xf32> -> vector<16x16xf32>
      %cst_85 = arith.constant dense<0.000000e+00> : vector<16x16xf32>
      %287 = tpu.matmul %284, %286, %cst_85 {dimension_numbers = #tpu.dot_dimension_numbers<[1], [0], [0], [1], [0, 0, 1, 1], [], []>} : vector<16x16xf32>, vector<16x16xf32>, vector<16x16xf32> -> vector<16x16xf32>
      %288 = arith.addf %287, %46 : vector<16x16xf32>
      %cst_86 = arith.constant dense<0xFF800000> : vector<16xf32>
      %289 = vector.multi_reduction <maximumf>, %288, %cst_86 [1] : vector<16x16xf32> to vector<16xf32>
      %290 = vector.shape_cast %289 : vector<16xf32> to vector<16x1xf32>
      %291 = vector.broadcast %290 : vector<16x1xf32> to vector<16x16xf32>
      %292 = arith.subf %288, %291 : vector<16x16xf32>
      %293 = math.exp %292 : vector<16x16xf32>
      %cst_87 = arith.constant dense<0.000000e+00> : vector<16xf32>
      %294 = vector.multi_reduction <add>, %293, %cst_87 [1] : vector<16x16xf32> to vector<16xf32>
      %295 = vector.shape_cast %294 : vector<16xf32> to vector<16x1xf32>
      %296 = tpu.reciprocal %295 {approx = true} : vector<16x1xf32> -> vector<16x1xf32>
      %297 = vector.broadcast %296 : vector<16x1xf32> to vector<16x16xf32>
      %298 = arith.mulf %293, %297 : vector<16x16xf32>
      %299 = vector.extract_strided_slice %258 {offsets = [0, 16], sizes = [16, 16], strides = [1, 1]} : vector<16x64xf32> to vector<16x16xf32>
      %cst_88 = arith.constant dense<0.000000e+00> : vector<16x16xf32>
      %300 = tpu.matmul %298, %299, %cst_88 {dimension_numbers = #tpu.dot_dimension_numbers<[1], [0], [0], [1], [0, 0, 1, 1], [], []>} : vector<16x16xf32>, vector<16x16xf32>, vector<16x16xf32> -> vector<16x16xf32>
      %301 = vector.extract_strided_slice %259 {offsets = [16, 0], sizes = [16, 64], strides = [1, 1]} : vector<64x64xbf16> to vector<16x64xbf16>
      %302 = arith.truncf %300 : vector<16x16xf32> to vector<16x16xbf16>
      %cst_89 = arith.constant dense<0.000000e+00> : vector<16x64xf32>
      %303 = tpu.matmul %302, %301, %cst_89 {dimension_numbers = #tpu.dot_dimension_numbers<[1], [0], [0], [1], [0, 0, 1, 1], [], []>} : vector<16x16xbf16>, vector<16x64xbf16>, vector<16x64xf32> -> vector<16x64xf32>
      %304 = arith.addf %281, %303 : vector<16x64xf32>
      %305 = vector.extract_strided_slice %256 {offsets = [0, 32], sizes = [16, 16], strides = [1, 1]} : vector<16x64xf32> to vector<16x16xf32>
      %cst_90 = arith.constant 2.500000e-01 : f32
      %306 = vector.broadcast %cst_90 : f32 to vector<16x16xf32>
      %307 = arith.mulf %305, %306 : vector<16x16xf32>
      %308 = vector.extract_strided_slice %257 {offsets = [0, 32], sizes = [16, 16], strides = [1, 1]} : vector<16x64xf32> to vector<16x16xf32>
      %309 = tpu.transpose %308, [1, 0] : vector<16x16xf32> -> vector<16x16xf32>
      %cst_91 = arith.constant dense<0.000000e+00> : vector<16x16xf32>
      %310 = tpu.matmul %307, %309, %cst_91 {dimension_numbers = #tpu.dot_dimension_numbers<[1], [0], [0], [1], [0, 0, 1, 1], [], []>} : vector<16x16xf32>, vector<16x16xf32>, vector<16x16xf32> -> vector<16x16xf32>
      %311 = arith.addf %310, %46 : vector<16x16xf32>
      %cst_92 = arith.constant dense<0xFF800000> : vector<16xf32>
      %312 = vector.multi_reduction <maximumf>, %311, %cst_92 [1] : vector<16x16xf32> to vector<16xf32>
      %313 = vector.shape_cast %312 : vector<16xf32> to vector<16x1xf32>
      %314 = vector.broadcast %313 : vector<16x1xf32> to vector<16x16xf32>
      %315 = arith.subf %311, %314 : vector<16x16xf32>
      %316 = math.exp %315 : vector<16x16xf32>
      %cst_93 = arith.constant dense<0.000000e+00> : vector<16xf32>
      %317 = vector.multi_reduction <add>, %316, %cst_93 [1] : vector<16x16xf32> to vector<16xf32>
      %318 = vector.shape_cast %317 : vector<16xf32> to vector<16x1xf32>
      %319 = tpu.reciprocal %318 {approx = true} : vector<16x1xf32> -> vector<16x1xf32>
      %320 = vector.broadcast %319 : vector<16x1xf32> to vector<16x16xf32>
      %321 = arith.mulf %316, %320 : vector<16x16xf32>
      %322 = vector.extract_strided_slice %258 {offsets = [0, 32], sizes = [16, 16], strides = [1, 1]} : vector<16x64xf32> to vector<16x16xf32>
      %cst_94 = arith.constant dense<0.000000e+00> : vector<16x16xf32>
      %323 = tpu.matmul %321, %322, %cst_94 {dimension_numbers = #tpu.dot_dimension_numbers<[1], [0], [0], [1], [0, 0, 1, 1], [], []>} : vector<16x16xf32>, vector<16x16xf32>, vector<16x16xf32> -> vector<16x16xf32>
      %324 = vector.extract_strided_slice %259 {offsets = [32, 0], sizes = [16, 64], strides = [1, 1]} : vector<64x64xbf16> to vector<16x64xbf16>
      %325 = arith.truncf %323 : vector<16x16xf32> to vector<16x16xbf16>
      %cst_95 = arith.constant dense<0.000000e+00> : vector<16x64xf32>
      %326 = tpu.matmul %325, %324, %cst_95 {dimension_numbers = #tpu.dot_dimension_numbers<[1], [0], [0], [1], [0, 0, 1, 1], [], []>} : vector<16x16xbf16>, vector<16x64xbf16>, vector<16x64xf32> -> vector<16x64xf32>
      %327 = arith.addf %304, %326 : vector<16x64xf32>
      %328 = vector.extract_strided_slice %256 {offsets = [0, 48], sizes = [16, 16], strides = [1, 1]} : vector<16x64xf32> to vector<16x16xf32>
      %cst_96 = arith.constant 2.500000e-01 : f32
      %329 = vector.broadcast %cst_96 : f32 to vector<16x16xf32>
      %330 = arith.mulf %328, %329 : vector<16x16xf32>
      %331 = vector.extract_strided_slice %257 {offsets = [0, 48], sizes = [16, 16], strides = [1, 1]} : vector<16x64xf32> to vector<16x16xf32>
      %332 = tpu.transpose %331, [1, 0] : vector<16x16xf32> -> vector<16x16xf32>
      %cst_97 = arith.constant dense<0.000000e+00> : vector<16x16xf32>
      %333 = tpu.matmul %330, %332, %cst_97 {dimension_numbers = #tpu.dot_dimension_numbers<[1], [0], [0], [1], [0, 0, 1, 1], [], []>} : vector<16x16xf32>, vector<16x16xf32>, vector<16x16xf32> -> vector<16x16xf32>
      %334 = arith.addf %333, %46 : vector<16x16xf32>
      %cst_98 = arith.constant dense<0xFF800000> : vector<16xf32>
      %335 = vector.multi_reduction <maximumf>, %334, %cst_98 [1] : vector<16x16xf32> to vector<16xf32>
      %336 = vector.shape_cast %335 : vector<16xf32> to vector<16x1xf32>
      %337 = vector.broadcast %336 : vector<16x1xf32> to vector<16x16xf32>
      %338 = arith.subf %334, %337 : vector<16x16xf32>
      %339 = math.exp %338 : vector<16x16xf32>
      %cst_99 = arith.constant dense<0.000000e+00> : vector<16xf32>
      %340 = vector.multi_reduction <add>, %339, %cst_99 [1] : vector<16x16xf32> to vector<16xf32>
      %341 = vector.shape_cast %340 : vector<16xf32> to vector<16x1xf32>
      %342 = tpu.reciprocal %341 {approx = true} : vector<16x1xf32> -> vector<16x1xf32>
      %343 = vector.broadcast %342 : vector<16x1xf32> to vector<16x16xf32>
      %344 = arith.mulf %339, %343 : vector<16x16xf32>
      %345 = vector.extract_strided_slice %258 {offsets = [0, 48], sizes = [16, 16], strides = [1, 1]} : vector<16x64xf32> to vector<16x16xf32>
      %cst_100 = arith.constant dense<0.000000e+00> : vector<16x16xf32>
      %346 = tpu.matmul %344, %345, %cst_100 {dimension_numbers = #tpu.dot_dimension_numbers<[1], [0], [0], [1], [0, 0, 1, 1], [], []>} : vector<16x16xf32>, vector<16x16xf32>, vector<16x16xf32> -> vector<16x16xf32>
      %347 = vector.extract_strided_slice %259 {offsets = [48, 0], sizes = [16, 64], strides = [1, 1]} : vector<64x64xbf16> to vector<16x64xbf16>
      %348 = arith.truncf %346 : vector<16x16xf32> to vector<16x16xbf16>
      %cst_101 = arith.constant dense<0.000000e+00> : vector<16x64xf32>
      %349 = tpu.matmul %348, %347, %cst_101 {dimension_numbers = #tpu.dot_dimension_numbers<[1], [0], [0], [1], [0, 0, 1, 1], [], []>} : vector<16x16xbf16>, vector<16x64xbf16>, vector<16x64xf32> -> vector<16x64xf32>
      %350 = arith.addf %327, %349 : vector<16x64xf32>
      %c63 = arith.constant 63 : index
      %c0_102 = arith.constant 0 : index
      %351 = vector.load %arg5[%c63, %c0_102] : memref<70x192xf32, #tpu.memory_space<vmem>>, vector<1x64xf32>
      %352 = vector.broadcast %351 : vector<1x64xf32> to vector<16x64xf32>
      %353 = arith.addf %350, %352 : vector<16x64xf32>
      %354 = arith.addf %225, %353 : vector<16x64xf32>
      %c64 = arith.constant 64 : index
      %c0_103 = arith.constant 0 : index
      %355 = vector.load %arg5[%c64, %c0_103] : memref<70x192xf32, #tpu.memory_space<vmem>>, vector<1x64xf32>
      %c65 = arith.constant 65 : index
      %c0_104 = arith.constant 0 : index
      %356 = vector.load %arg5[%c65, %c0_104] : memref<70x192xf32, #tpu.memory_space<vmem>>, vector<1x64xf32>
      %cst_105 = arith.constant dense<0.000000e+00> : vector<16xf32>
      %357 = vector.multi_reduction <add>, %354, %cst_105 [1] : vector<16x64xf32> to vector<16xf32>
      %358 = vector.shape_cast %357 : vector<16xf32> to vector<16x1xf32>
      %cst_106 = arith.constant 6.400000e+01 : f32
      %359 = vector.broadcast %cst_106 : f32 to vector<16x1xf32>
      %360 = arith.divf %358, %359 : vector<16x1xf32>
      %361 = vector.broadcast %360 : vector<16x1xf32> to vector<16x64xf32>
      %362 = arith.subf %354, %361 : vector<16x64xf32>
      %363 = arith.mulf %362, %362 : vector<16x64xf32>
      %cst_107 = arith.constant dense<0.000000e+00> : vector<16xf32>
      %364 = vector.multi_reduction <add>, %363, %cst_107 [1] : vector<16x64xf32> to vector<16xf32>
      %365 = vector.shape_cast %364 : vector<16xf32> to vector<16x1xf32>
      %cst_108 = arith.constant 6.400000e+01 : f32
      %366 = vector.broadcast %cst_108 : f32 to vector<16x1xf32>
      %367 = arith.divf %365, %366 : vector<16x1xf32>
      %368 = vector.broadcast %360 : vector<16x1xf32> to vector<16x64xf32>
      %369 = arith.subf %354, %368 : vector<16x64xf32>
      %cst_109 = arith.constant 9.99999974E-6 : f32
      %370 = vector.broadcast %cst_109 : f32 to vector<16x1xf32>
      %371 = arith.addf %367, %370 : vector<16x1xf32>
      %372 = math.rsqrt %371 : vector<16x1xf32>
      %373 = vector.broadcast %372 : vector<16x1xf32> to vector<16x64xf32>
      %374 = arith.mulf %369, %373 : vector<16x64xf32>
      %375 = vector.broadcast %355 : vector<1x64xf32> to vector<16x64xf32>
      %376 = arith.mulf %374, %375 : vector<16x64xf32>
      %377 = vector.broadcast %356 : vector<1x64xf32> to vector<16x64xf32>
      %378 = arith.addf %376, %377 : vector<16x64xf32>
      %c0_110 = arith.constant 0 : index
      %c1648 = arith.constant 1648 : index
      %379 = vector.load %arg6[%c0_110, %c1648] : memref<64x1808xbf16, #tpu.memory_space<vmem>>, vector<64x128xbf16>
      %380 = arith.truncf %378 : vector<16x64xf32> to vector<16x64xbf16>
      %cst_111 = arith.constant dense<0.000000e+00> : vector<16x128xf32>
      %381 = tpu.matmul %380, %379, %cst_111 {dimension_numbers = #tpu.dot_dimension_numbers<[1], [0], [0], [1], [0, 0, 1, 1], [], []>} : vector<16x64xbf16>, vector<64x128xbf16>, vector<16x128xf32> -> vector<16x128xf32>
      %c66 = arith.constant 66 : index
      %c0_112 = arith.constant 0 : index
      %382 = vector.load %arg5[%c66, %c0_112] : memref<70x192xf32, #tpu.memory_space<vmem>>, vector<1x128xf32>
      %383 = vector.broadcast %382 : vector<1x128xf32> to vector<16x128xf32>
      %384 = arith.addf %381, %383 : vector<16x128xf32>
      %385 = arith.mulf %384, %384 : vector<16x128xf32>
      %386 = arith.mulf %384, %385 : vector<16x128xf32>
      %cst_113 = arith.constant 4.471500e-02 : f32
      %387 = vector.broadcast %cst_113 : f32 to vector<16x128xf32>
      %388 = arith.mulf %387, %386 : vector<16x128xf32>
      %389 = arith.addf %384, %388 : vector<16x128xf32>
      %cst_114 = arith.constant 0.797884583 : f32
      %390 = vector.broadcast %cst_114 : f32 to vector<16x128xf32>
      %391 = arith.mulf %390, %389 : vector<16x128xf32>
      %392 = math.tanh %391 : vector<16x128xf32>
      %cst_115 = arith.constant 1.000000e+00 : f32
      %393 = vector.broadcast %cst_115 : f32 to vector<16x128xf32>
      %394 = arith.addf %393, %392 : vector<16x128xf32>
      %cst_116 = arith.constant 5.000000e-01 : f32
      %395 = vector.broadcast %cst_116 : f32 to vector<16x128xf32>
      %396 = arith.mulf %395, %394 : vector<16x128xf32>
      %397 = arith.mulf %384, %396 : vector<16x128xf32>
      %c0_117 = arith.constant 0 : index
      %c192 = arith.constant 192 : index
      %398 = vector.load %arg7[%c0_117, %c192] : memref<128x320xbf16, #tpu.memory_space<vmem>>, vector<128x64xbf16>
      %399 = arith.truncf %397 : vector<16x128xf32> to vector<16x128xbf16>
      %cst_118 = arith.constant dense<0.000000e+00> : vector<16x64xf32>
      %400 = tpu.matmul %399, %398, %cst_118 {dimension_numbers = #tpu.dot_dimension_numbers<[1], [0], [0], [1], [0, 0, 1, 1], [], []>} : vector<16x128xbf16>, vector<128x64xbf16>, vector<16x64xf32> -> vector<16x64xf32>
      %401 = arith.addf %354, %400 : vector<16x64xf32>
      %c67 = arith.constant 67 : index
      %c0_119 = arith.constant 0 : index
      %402 = vector.load %arg5[%c67, %c0_119] : memref<70x192xf32, #tpu.memory_space<vmem>>, vector<1x64xf32>
      %403 = vector.broadcast %402 : vector<1x64xf32> to vector<16x64xf32>
      %404 = arith.addf %401, %403 : vector<16x64xf32>
      %c68 = arith.constant 68 : index
      %c0_120 = arith.constant 0 : index
      %405 = vector.load %arg5[%c68, %c0_120] : memref<70x192xf32, #tpu.memory_space<vmem>>, vector<1x64xf32>
      %c69 = arith.constant 69 : index
      %c0_121 = arith.constant 0 : index
      %406 = vector.load %arg5[%c69, %c0_121] : memref<70x192xf32, #tpu.memory_space<vmem>>, vector<1x64xf32>
      %cst_122 = arith.constant dense<0.000000e+00> : vector<16xf32>
      %407 = vector.multi_reduction <add>, %404, %cst_122 [1] : vector<16x64xf32> to vector<16xf32>
      %408 = vector.shape_cast %407 : vector<16xf32> to vector<16x1xf32>
      %cst_123 = arith.constant 6.400000e+01 : f32
      %409 = vector.broadcast %cst_123 : f32 to vector<16x1xf32>
      %410 = arith.divf %408, %409 : vector<16x1xf32>
      %411 = vector.broadcast %410 : vector<16x1xf32> to vector<16x64xf32>
      %412 = arith.subf %404, %411 : vector<16x64xf32>
      %413 = arith.mulf %412, %412 : vector<16x64xf32>
      %cst_124 = arith.constant dense<0.000000e+00> : vector<16xf32>
      %414 = vector.multi_reduction <add>, %413, %cst_124 [1] : vector<16x64xf32> to vector<16xf32>
      %415 = vector.shape_cast %414 : vector<16xf32> to vector<16x1xf32>
      %cst_125 = arith.constant 6.400000e+01 : f32
      %416 = vector.broadcast %cst_125 : f32 to vector<16x1xf32>
      %417 = arith.divf %415, %416 : vector<16x1xf32>
      %418 = vector.broadcast %410 : vector<16x1xf32> to vector<16x64xf32>
      %419 = arith.subf %404, %418 : vector<16x64xf32>
      %cst_126 = arith.constant 9.99999974E-6 : f32
      %420 = vector.broadcast %cst_126 : f32 to vector<16x1xf32>
      %421 = arith.addf %417, %420 : vector<16x1xf32>
      %422 = math.rsqrt %421 : vector<16x1xf32>
      %423 = vector.broadcast %422 : vector<16x1xf32> to vector<16x64xf32>
      %424 = arith.mulf %419, %423 : vector<16x64xf32>
      %425 = vector.broadcast %405 : vector<1x64xf32> to vector<16x64xf32>
      %426 = arith.mulf %424, %425 : vector<16x64xf32>
      %427 = vector.broadcast %406 : vector<1x64xf32> to vector<16x64xf32>
      %428 = arith.addf %426, %427 : vector<16x64xf32>
      %429 = tpu.iota {dimensions = array<i32: 0>} : vector<2x16xi32>
      %430 = tpu.iota {dimensions = array<i32: 1>} : vector<2x16xi32>
      %c3_i32_127 = arith.constant 3 : i32
      %431 = vector.broadcast %c3_i32_127 : i32 to vector<2x16xi32>
      %432 = arith.shrsi %430, %431 : vector<2x16xi32>
      %433 = arith.cmpi eq, %432, %429 : vector<2x16xi32>
      %c0_128 = arith.constant 0 : index
      %c0_129 = arith.constant 0 : index
      %434 = vector.load %arg3[%c0_128, %c0_129] : memref<1x16xi32, #tpu.memory_space<vmem>>, vector<1x16xi32>
      %435 = arith.sitofp %434 : vector<1x16xi32> to vector<1x16xf32>
      %cst_130 = arith.constant 8.000000e+00 : f32
      %436 = vector.broadcast %cst_130 : f32 to vector<1x16xf32>
      %437 = arith.mulf %435, %436 : vector<1x16xf32>
      %c7_i32_131 = arith.constant 7 : i32
      %438 = vector.broadcast %c7_i32_131 : i32 to vector<2x16xi32>
      %439 = arith.andi %430, %438 : vector<2x16xi32>
      %440 = arith.sitofp %439 : vector<2x16xi32> to vector<2x16xf32>
      %441 = vector.broadcast %437 : vector<1x16xf32> to vector<2x16xf32>
      %442 = arith.subf %441, %440 : vector<2x16xf32>
      %cst_132 = arith.constant -1.000000e+06 : f32
      %443 = vector.broadcast %cst_132 : f32 to vector<2x16xf32>
      %444 = arith.select %433, %442, %443 : vector<2x16xi1>, vector<2x16xf32>
      %cst_133 = arith.constant dense<0xFF800000> : vector<2xf32>
      %445 = vector.multi_reduction <maximumf>, %444, %cst_133 [1] : vector<2x16xf32> to vector<2xf32>
      %446 = vector.shape_cast %445 : vector<2xf32> to vector<2x1xf32>
      %447 = vector.broadcast %446 : vector<2x1xf32> to vector<2x16xf32>
      %448 = arith.cmpf oeq, %444, %447 : vector<2x16xf32>
      %449 = arith.extui %448 : vector<2x16xi1> to vector<2x16xi32>
      %450 = arith.sitofp %449 : vector<2x16xi32> to vector<2x16xf32>
      %cst_134 = arith.constant dense<0.000000e+00> : vector<2x64xf32>
      %451 = tpu.matmul %450, %428, %cst_134 {dimension_numbers = #tpu.dot_dimension_numbers<[1], [0], [0], [1], [0, 0, 1, 1], [], []>} : vector<2x16xf32>, vector<16x64xf32>, vector<2x64xf32> -> vector<2x64xf32>
      %c0_135 = arith.constant 0 : index
      %c1776 = arith.constant 1776 : index
      %452 = vector.load %arg6[%c0_135, %c1776] : memref<64x1808xbf16, #tpu.memory_space<vmem>>, vector<64x32xbf16>
      %453 = arith.truncf %451 : vector<2x64xf32> to vector<2x64xbf16>
      %cst_136 = arith.constant dense<0.000000e+00> : vector<2x32xf32>
      %454 = tpu.matmul %453, %452, %cst_136 {dimension_numbers = #tpu.dot_dimension_numbers<[1], [0], [0], [1], [0, 0, 1, 1], [], []>} : vector<2x64xbf16>, vector<64x32xbf16>, vector<2x32xf32> -> vector<2x32xf32>
      %c0_137 = arith.constant 0 : index
      %c0_138 = arith.constant 0 : index
      %c0_139 = arith.constant 0 : index
      %455 = vector.load %arg10[%c0_137, %c0_138, %c0_139] : memref<1x2x32xf32, #tpu.memory_space<vmem>>, vector<1x2x32xf32>
      %456 = vector.shape_cast %455 : vector<1x2x32xf32> to vector<2x32xf32>
      %457 = vector.shape_cast %454 : vector<2x32xf32> to vector<1x2x32xf32>
      tpu.vector_store %arg10[%c0_137, %c0_138, %c0_139], %457 {strides = array<i32>} : memref<1x2x32xf32, #tpu.memory_space<vmem>>, vector<1x2x32xf32>,
    } else {
    }
    return
  }
  func.func @transform_0(%arg0: i32) -> (i32, i32) {
    %c0_i32 = arith.constant 0 : i32
    %c0_i32_0 = arith.constant 0 : i32
    %c0_i32_1 = arith.constant 0 : i32
    return %c0_i32, %c0_i32_0 : i32, i32
  }
  func.func @transform_1(%arg0: i32) -> (i32, i32) {
    %c0_i32 = arith.constant 0 : i32
    %c0_i32_0 = arith.constant 0 : i32
    %c0_i32_1 = arith.constant 0 : i32
    return %c0_i32, %c0_i32_0 : i32, i32
  }
  func.func @transform_2(%arg0: i32) -> (i32, i32) {
    %c0_i32 = arith.constant 0 : i32
    %c0_i32_0 = arith.constant 0 : i32
    %c0_i32_1 = arith.constant 0 : i32
    return %c0_i32, %c0_i32_0 : i32, i32
  }
  func.func @transform_3(%arg0: i32) -> (i32, i32) {
    %c0_i32 = arith.constant 0 : i32
    %c0_i32_0 = arith.constant 0 : i32
    %c0_i32_1 = arith.constant 0 : i32
    return %c0_i32, %c0_i32_0 : i32, i32
  }
  func.func @transform_4(%arg0: i32) -> (i32, i32) {
    %c0_i32 = arith.constant 0 : i32
    %c0_i32_0 = arith.constant 0 : i32
    %c0_i32_1 = arith.constant 0 : i32
    return %c0_i32, %c0_i32_0 : i32, i32
  }
  func.func @transform_5(%arg0: i32) -> (i32, i32) {
    %c0_i32 = arith.constant 0 : i32
    %c0_i32_0 = arith.constant 0 : i32
    %c0_i32_1 = arith.constant 0 : i32
    return %c0_i32, %c0_i32_0 : i32, i32
  }
  func.func @transform_6(%arg0: i32) -> (i32, i32) {
    %c0_i32 = arith.constant 0 : i32
    %c0_i32_0 = arith.constant 0 : i32
    %c0_i32_1 = arith.constant 0 : i32
    return %c0_i32, %c0_i32_0 : i32, i32
  }
  func.func @transform_7(%arg0: i32) -> (i32, i32) {
    %c0_i32 = arith.constant 0 : i32
    %c0_i32_0 = arith.constant 0 : i32
    %c0_i32_1 = arith.constant 0 : i32
    return %c0_i32, %c0_i32_0 : i32, i32
  }
  func.func @transform_8(%arg0: i32) -> (i32, i32) {
    %c0_i32 = arith.constant 0 : i32
    %c0_i32_0 = arith.constant 0 : i32
    %c0_i32_1 = arith.constant 0 : i32
    return %c0_i32, %c0_i32_0 : i32, i32
  }
  func.func @transform_9(%arg0: i32) -> (i32, i32, i32) {
    %c0_i32 = arith.constant 0 : i32
    %c0_i32_0 = arith.constant 0 : i32
    %c0_i32_1 = arith.constant 0 : i32
    return %arg0, %c0_i32, %c0_i32_0 : i32, i32, i32
  }
}

</mosaic_0001>

<bundles_post_ra>
// kernel: forward.3
= control target key start
LH: loop header
LB: loop body
LE: loop exit
PB: predicated region body
PF: predicated region fallthrough
CT: control target
= control target key end

     0   :  { %s370_s0 = inlined_call_operand.vmem [shape: f32[2,2,32], index: 0, kind: input, shape index: {}]   ;;  %s371_s1 = inlined_call_operand.vmem [shape: s32[2,1], index: 1, kind: input, shape index: {}]   ;;  %s372_s2 = inlined_call_operand.vmem [shape: s32[1,2], index: 2, kind: input, shape index: {}]   ;;  %s373_s3 = inlined_call_operand.<no memory space> [shape: f32[1,1], index: 3, kind: input, shape index: {}]   ;;  %s374_s4 = inlined_call_operand.hbm [shape: f32[1,1], index: 4, kind: output, shape index: {}]  }
   0x1   :  { %v9_v0 = vstv %s373_s3 }
   0x2   :  { %10 = vst [vmem:[#allocation2] sm:$0x1] %v9_v0 }
   0x3   :  { %v244_v1 = vld [vmem:[%s370_s0 + $0x2] sm:$0x3]  ;;  %vm24_vm0 = vcmask 254976   ;;  %v20_v2 = vld [vmem:[%s370_s0] sm:$0x3] }
   0x4   :  { %v38_v3 = vmul.f32 %v244_v1, %v244_v1  ;;  %v23_v4 = vmul.f32 %v20_v2, %v20_v2 }
   0x5   :  { %11 = vsyncpa [#allocation4], 0  ;;  %v308_v7 = vmov 0.0   ;;  %vm309_vm1 = vmmov 0   ;;  %v132_v9 = vlaneseq  ;;  %v142_v10 = vld [vmem:[%s371_s1] sm:$0x3] }
   0x6   :  { %v39_v5 = vsel %vm24_vm0, %v38_v3, 0.0  ;;  %v25_v6 = vsel %vm24_vm0, %v23_v4, 0.0  ;;  %251 = vmatprep.subr.mxu0 %v308_v7  ;;  %253 = vmatprep.mubr.msk.f32.mxu0 %vm309_vm1, %v308_v7  ;;  %v310_v11 = vmov 0   ;;  %vm54_vm6 = vcmask 261120   ;;  %v247_v42 = vld [vmem:[%s372_s2] ss:$0 sm:$0xff] }
   0x7   :  { %40 = vadd.xlane.f32.xlu0 %v39_v5  ;;  %260 = vset.pattern.permute.xlu1 %v310_v11  ;;  %v133_v13 = vshrl.u32 %v132_v9, 7  ;;  %vm154_vm7 = vcmask 9216   ;;  %vm204_vm9 = vcmask 1041408   ;;  %s311_s2 = smov [#allocation3]   ;;  %vm228_vm10 = vcmask 0  }
   0x8   :  { %261 = vset.pattern.permute.xlu0 %v310_v11  ;;  %s236_s22 = sshll.u32 %s311_s2, 4  ;;  %s237_s22 = int_to_ptr.vmem [resolvable:$true] %s236_s22 }
   0x9   :  { %v52_v8 = vld [vmem:[#allocation2] sm:$0x1]  ;;  %v134_v14 = vsub.s32 0, %v133_v13  ;;  %s284_s23 = scalar_lea.vmem %s237_s22, 16  ;;  %s288_s24 = scalar_lea.vmem %s237_s22, 32 }
   0xa   :  { %v53_v12 = vmax.f32 %v52_v8, 0.01  ;;  %p285_p0 = scmp.ne.s32.totalorder %s237_s22, %s284_s23  ;;  %p289_p1 = scmp.lt.s32.totalorder %s237_s22, %s237_s22 }
   0xb   :  { %26 = vadd.xlane.f32.xlu0 %v25_v6  ;;  %p290_p2 = scmp.lt.s32.totalorder %s288_s24, %s284_s23 }
   0xc   :  { %v135_v15 = vrot.slane %v53_v12, %v134_v14 }
   0xd   :  { %p291_p3 = por %p290_p2, %p289_p1 }
   0xe   :  { %137 = vperm.xlu1 %260, %v135_v15  }
   0xf   :  { %p292_p4 = pnand %p291_p3, %p285_p0 }
  0x21   :  { %145 = vperm.xlu0 %261, %v142_v10  }
  0x8d   :  { %v138_v34 = vpop.permute.xlu1 %137 }
  0x94   :  { %v41_v16 = vpop.xlane.xlu0 %40 }
  0x95   :  { %262 = vrsqrt.f32 %v41_v16  ;;  %vm44_vm2 = vcmp.eq.f32.partialorder %v41_v16, inf  ;;  %v47_v20 = vand.u32 2147483648, %v41_v16  ;;  %vm46_vm3 = vcmp.eq.f32.partialorder %v41_v16, 0.0 }
  0x98   :  { %v27_v17 = vpop.xlane.xlu0 %26 }
  0x99   :  { %264 = vrsqrt.f32 %v27_v17  ;;  %vm30_vm4 = vcmp.eq.f32.partialorder %v27_v17, inf  ;;  %v33_v26 = vand.u32 2147483648, %v27_v17  ;;  %vm32_vm5 = vcmp.eq.f32.partialorder %v27_v17, 0.0 }
  0x9f   :  { %v263_v18 = vpop.eup %262 }
  0xa0   :  { %v43_v19 = vmul.f32 %v263_v18, %v41_v16  ;;  %v146_v43 = vpop.permute.xlu0 %145 }
  0xa1   :  { %vm151_vm8 = vcmp.eq.s32.totalorder %v146_v43, %v247_v42 }
  0xa2   :  { %v45_v21 = vsel %vm44_vm2, %v41_v16, %v43_v19  ;;  %v248_v47 = vsel %vm151_vm8, 1.0, %v308_v7 }
  0xa3   :  { %v265_v22 = vpop.eup %264  ;;  %v48_v23 = vsel %vm46_vm3, %v47_v20, %v45_v21  ;;  %v155_v49 = vsel %vm154_vm7, %v248_v47, 0.0 }
  0xa4   :  { %v49_v24 = vmax.f32 %v48_v23, 1e-12  ;;  %v29_v25 = vmul.f32 %v265_v22, %v27_v17  ;;  %v160_v52 = vrot.slane %v155_v49, 4 }
  0xa6   :  { %266 = vrcp.f32 %v49_v24  ;;  %v31_v27 = vsel %vm30_vm4, %v27_v17, %v29_v25  ;;  %v161_v53 = vadd.f32 %v160_v52, %v155_v49 }
  0xa7   :  { %v34_v28 = vsel %vm32_vm5, %v33_v26, %v31_v27 }
  0xa8   :  { %v35_v29 = vmax.f32 %v34_v28, 1e-12  ;;  %v162_v54 = vrot.slane %v161_v53, 2 }
  0xaa   :  { %268 = vrcp.f32 %v35_v29  ;;  %v163_v56 = vadd.f32 %v162_v54, %v161_v53 }
  0xab   :  { %270 = vrcp.f32 %v138_v34 }
  0xac   :  { %v164_v60 = vrot.slane %v163_v56, 1 }
  0xae   :  { %v165_v63 = vadd.f32 %v164_v60, %v163_v56 }
  0xb0   :  { %v267_v30 = vpop.eup %266 }
  0xb1   :  { %v51_v31 = vmul.f32 %v267_v30, %v244_v1 }
  0xb3   :  { %252 = vmatpush3.xpose.msk.msra.mxu0 %vm54_vm6, %v51_v31 }
  0xb4   :  { %v269_v32 = vpop.eup %268 }
  0xb5   :  { %v37_v33 = vmul.f32 %v269_v32, %v20_v2  ;;  %v271_v35 = vpop.eup %270 }
  0xb7   :  { %254 = vmatmul.mubr.msk.f32.vlgmr.msra.gmra.mrb[0].mxu0 %vm54_vm6, %v37_v33 }
 0x18a   :  { %v127_v36 = vpop.f32.mrb[0].mxu0 }
 0x18b   :  { %v141_v37 = vmul.f32 %v271_v35, %v127_v36  ;;  %v255_v38 = vpop.f32.mrb[1].mxu0 }
 0x18d   :  { %v168_v39 = vsel %vm154_vm7, %v141_v37, -inf }
 0x18e   :  { %169 = vmax.xlane.f32.xlu1 %v168_v39  ;;  %v180_v40 = vrot.slane %v168_v39, 4 }
 0x190   :  { %v181_v41 = vmax.f32 %v168_v39, %v180_v40 }
 0x192   :  { %v182_v44 = vrot.slane %v181_v41, 2 }
 0x194   :  { %v183_v45 = vmax.f32 %v181_v41, %v182_v44 }
 0x196   :  { %v184_v46 = vrot.slane %v183_v45, 1 }
 0x198   :  { %v185_v48 = vmax.f32 %v183_v45, %v184_v46 }
 0x19a   :  { %v186_v50 = vsub.f32 %v141_v37, %v185_v48 }
 0x19c   :  { %v187_v51 = vmul.f32 1.442695, %v186_v50 }
 0x19e   :  { %272 = vpow2.f32 %v187_v51 }
 0x19f   :  { %274 = vrcp.f32 %v165_v63 }
 0x1a8   :  { %v273_v55 = vpop.eup %272 }
 0x1a9   :  { %v189_v57 = vsel %vm154_vm7, %v273_v55, 0.0  ;;  %v275_v2 = vpop.eup %274 }
 0x1aa   :  { %v190_v58 = vrot.slane %v189_v57, 4  ;;  %v167_v5 = vmul.f32 %v275_v2, %v248_v47 }
 0x1ac   :  { %v191_v59 = vadd.f32 %v190_v58, %v189_v57 }
 0x1ae   :  { %v192_v61 = vrot.slane %v191_v59, 2 }
 0x1b0   :  { %v193_v62 = vadd.f32 %v192_v61, %v191_v59 }
 0x1b2   :  { %v194_v0 = vrot.slane %v193_v62, 1 }
 0x1b4   :  { %v195_v1 = vadd.f32 %v194_v0, %v193_v62 }
 0x1b6   :  { %276 = vlog2.f32 %v195_v1 }
 0x1c0   :  { %v277_v3 = vpop.eup %276 }
 0x1c1   :  { %v197_v4 = vmul.f32 0.6931472, %v277_v3 }
 0x1c3   :  { %v198_v6 = vsub.f32 %v186_v50, %v197_v4 }
 0x1c5   :  { %v212_v7 = vsub.f32 0.0, %v198_v6 }
 0x1c7   :  { %v213_v8 = vmul.f32 %v212_v7, %v167_v5 }
 0x1c9   :  { %v214_v9 = vsel %vm154_vm7, %v213_v8, 0.0 }
 0x1ca   :  { %215 = vadd.xlane.f32.xlu0 %v214_v9 }
 0x21b   :  { %v170_v10 = vpop.xlane.xlu1 %169 }
 0x21c   :  { %v171_v11 = vsub.f32 %v141_v37, %v170_v10 }
 0x21e   :  { %v172_v12 = vmul.f32 1.442695, %v171_v11 }
 0x220   :  { %278 = vpow2.f32 %v172_v12 }
 0x22a   :  { %v279_v13 = vpop.eup %278 }
 0x22b   :  { %v174_v14 = vsel %vm154_vm7, %v279_v13, 0.0 }
 0x22c   :  { %175 = vadd.xlane.f32.xlu1 %v174_v14 }
 0x230   :  { %156 = vadd.xlane.f32.xlu1 %v155_v49 }
 0x257   :  { %v216_v25 = vpop.xlane.xlu0 %215 }
 0x258   :  { %v217_v26 = vsel %vm204_vm9, %v216_v25, 0.0 }
 0x259   :  { %v218_v27 = vrot.slane %v217_v26, 4 }
 0x25b   :  { %v219_v28 = vadd.f32 %v218_v27, %v217_v26 }
 0x25d   :  { %v220_v29 = vrot.slane %v219_v28, 2 }
 0x25f   :  { %v221_v33 = vadd.f32 %v220_v29, %v219_v28 }
 0x261   :  { %v222_v36 = vrot.slane %v221_v33, 1 }
 0x263   :  { %v223_v39 = vadd.f32 %v222_v36, %v221_v33 }
 0x2b9   :  { %v176_v15 = vpop.xlane.xlu1 %175 }
 0x2ba   :  { %280 = vlog2.f32 %v176_v15 }
 0x2bd   :  { %v157_v16 = vpop.xlane.xlu1 %156 }
 0x2be   :  { %282 = vrcp.f32 %v157_v16 }
 0x2c4   :  { %v281_v17 = vpop.eup %280 }
 0x2c5   :  { %v178_v18 = vmul.f32 0.6931472, %v281_v17 }
 0x2c7   :  { %v179_v19 = vsub.f32 %v171_v11, %v178_v18 }
 0x2c8   :  { %v283_v20 = vpop.eup %282 }
 0x2c9   :  { %v159_v21 = vmul.f32 %v283_v20, %v248_v47  ;;  %v199_v22 = vsub.f32 0.0, %v179_v19 }
 0x2cb   :  { %v200_v23 = vmul.f32 %v199_v22, %v159_v21 }
 0x2cd   :  { %v201_v24 = vsel %vm154_vm7, %v200_v23, 0.0 }
 0x2ce   :  { %202 = vadd.xlane.f32.xlu1 %v201_v24 }
 0x35b   :  { %v203_v30 = vpop.xlane.xlu1 %202 }
 0x35c   :  { %v205_v31 = vsel %vm204_vm9, %v203_v30, 0.0 }
 0x35d   :  { %v206_v32 = vrot.slane %v205_v31, 4 }
 0x35f   :  { %v207_v34 = vadd.f32 %v206_v32, %v205_v31 }
 0x361   :  { %v208_v35 = vrot.slane %v207_v34, 2 }
 0x363   :  { %v209_v37 = vadd.f32 %v208_v35, %v207_v34 }
 0x365   :  { %v210_v38 = vrot.slane %v209_v37, 1 }
 0x367   :  { %v211_v40 = vadd.f32 %v210_v38, %v209_v37 }
 0x369   :  { %v224_v41 = vadd.f32 %v223_v39, %v211_v40 }
 0x36b   :  { %v225_v42 = vmul.f32 0.5, %v224_v41 }
 0x36d   :  { %v227_v43 = vmul.f32 0.5, %v225_v42 }
 0x36f   :  { %229 = vst.msk [vmem:[#allocation3] sm:$0x1] %vm228_vm10, %v227_v43 }
 0x370   :  { %295 = shalt.err (!%p292_p4)
}
 0x371   :  { %s296_s27 = scalar_lea.hbm %s374_s4, 16 }
 0x372   :  { %p297_p5 = scmp.ne.s32.totalorder %s374_s4, %s296_s27  ;;  %p300_p6 = scmp.lt.u32.totalorder %s296_s27, %s374_s4 }
 0x374   :  { %p302_p7 = pnand %p300_p6, %p297_p5 }
 0x376   :  { %305 = shalt.err (!%p302_p7)
}
 0x377   :  { %239 = dma.vmem_to_hbm [thread:$0]  %s237_s22, 16, %s374_s4, [#allocation4]  }
 0x378   :  { %306 = dma.done.wait [#allocation4], 16  }
 0x379   :  { %307 = vsyncadd [#allocation4], 4294967280 }
 0x37a   :  { %243 = vsyncpa [#allocation4], 1 }

// kernel: forward.2
= control target key start
LH: loop header
LB: loop body
LE: loop exit
PB: predicated region body
PF: predicated region fallthrough
CT: control target
= control target key end

     0   :  { %s12431_s30 = smov 0   ;;  %s14796_s0 = inlined_call_operand.vmem [shape: f32[16,384], index: 0, kind: input, shape index: {}]   ;;  %s14797_s1 = inlined_call_operand.vmem [shape: s32[16,1], index: 1, kind: input, shape index: {}]   ;;  %s14798_s2 = inlined_call_operand.vmem [shape: s32[1,16], index: 2, kind: input, shape index: {}]   ;;  %s14799_s3 = inlined_call_operand.vmem [shape: s32[1,16], index: 3, kind: input, shape index: {}]   ;;  %s14800_s4 = inlined_call_operand.vmem [shape: f32[70,192], index: 4, kind: input, shape index: {}]   ;;  %s14801_s5 = inlined_call_operand.vmem [shape: bf16[64,1808], index: 5, kind: input, shape index: {}]   ;;  %s14802_s6 = inlined_call_operand.vmem [shape: bf16[128,320], index: 6, kind: input, shape index: {}]   ;;  %s14803_s7 = inlined_call_operand.vmem [shape: bf16[384,64], index: 7, kind: input, shape index: {}]   ;;  %s14804_s8 = inlined_call_operand.vmem [shape: bf16[48,32], index: 8, kind: input, shape index: {}]   ;;  %s14805_s9 = inlined_call_operand.vmem [shape: f32[2,2,32], index: 9, kind: output, shape index: {}]  }
   0x1 LB: > { %s12437_s10 = sadd.s32 4294967295, %s12353_s30   ;;  %p9556_p0 = scmp.ge.s32.totalorder %s12353_s30, 1  ;;  %s12353_s30 = sphi %s12431_s30, %s19_s30  }
   0x2   : > { %p277_p1 = scmp.lt.s32.totalorder %s12353_s30, 3 }
   0x4   : > { %p278_p2 = pnand %p9556_p0, %p277_p1 }
   0x5   : > { %p307_p3 = scmp.lt.s32.totalorder (!%p278_p2), %s12437_s10, 1  ;;  %p9558_p4 = scmp.ne.s32.totalorder (!%p278_p2), %s12437_s10, 0 }
   0x6   : > { %281 = sbr.rel (%p278_p2) target bundleno = 19857 (0x4d91), region = 56 }
   0xd   : > { %s308_s11 = scalar_select %p307_p3, %s12437_s10, 1 }
   0xe   : > { %315 = sbr.rel (%p9558_p4) target bundleno = 10802 (0x2a32), region = 60  ;;  %v11773_v0 = vld [vmem:[%s14803_s7 + $0x40] sm:$0xff] (!%p9558_p4)   ;;  %v12355_v2 = vmov (!%p9558_p4), 0.0   ;;  %vm12356_vm0 = vmmov (!%p9558_p4), 0   ;;  %v11776_v4 = vld [vmem:[%s14803_s7 + $0x48] sm:$0xff] (!%p9558_p4)   ;;  %v11779_v7 = vld [vmem:[%s14803_s7 + $0x50] sm:$0xff] (!%p9558_p4)   ;;  %v600_v34 = vlaneseq (!%p9558_p4) }
   0xf   : > { %s9557_s12 = sshll.u32 %s308_s11, 1  ;;  %v11774_v1 = vld [vmem:[%s14803_s7] sm:$0xff] (!%p9558_p4)   ;;  %10383 = vmatprep.subr.bf16.mxu1 (!%p9558_p4), %v12355_v2  ;;  %9954 = vmatprep.subr.bf16.mxu0 (!%p9558_p4), %v11773_v0  ;;  %v11777_v5 = vld [vmem:[%s14803_s7 + $0x8] sm:$0xff] (!%p9558_p4)   ;;  %v11780_v8 = vld [vmem:[%s14803_s7 + $0x10] sm:$0xff] (!%p9558_p4)   ;;  %vm695_vm1 = vcmask (!%p9558_p4), 1045504   ;;  %vm713_vm2 = vcmask (!%p9558_p4), 1040384  }
  0x10   : > { %s12446_s15 = scalar_lea.vmem %s14805_s9, %s9557_s12  ;;  %v11775_v3 = vld [vmem:[%s14803_s7 + $0x80] sm:$0xff] (!%p9558_p4)   ;;  %10399 = vmatprep.mubr.msk.bf16.mxu1 (!%p9558_p4), %vm12356_vm0, %v12355_v2  ;;  %9955 = vmatpush3.bf16.msra.mxu0 (!%p9558_p4), %v11774_v1  ;;  %v11778_v6 = vld [vmem:[%s14803_s7 + $0x88] sm:$0xff] (!%p9558_p4)   ;;  %v11781_v9 = vld [vmem:[%s14803_s7 + $0x90] sm:$0xff] (!%p9558_p4)   ;;  %v12549_v35 = vshrl.u32 (!%p9558_p4), %v600_v34, 7  ;;  %vm12357_vm3 = vmmov (!%p9558_p4), 1   ;;  %v12574_v52 = vand.u32 (!%p9558_p4), 127, %v600_v34 }
  0x11   : > { %10384 = vmatpush3.bf16.msra.mxu1 (!%p9558_p4), %v11775_v3  ;;  %9956 = vmatprep.subr.bf16.mxu0 (!%p9558_p4), %v11776_v4  ;;  %v11782_v10 = vld [vmem:[%s14803_s7 + $0x58] sm:$0xff] (!%p9558_p4)   ;;  %v11785_v13 = vld [vmem:[%s14803_s7 + $0x60] sm:$0xff] (!%p9558_p4)   ;;  %v11788_v16 = vld [vmem:[%s14803_s7 + $0x68] sm:$0xff] (!%p9558_p4)   ;;  %vm700_vm9 = vcmask (!%p9558_p4), 72704   ;;  %vm801_vm11 = vcmask (!%p9558_p4), 130048   ;;  %s12359_s13 = smov (!%p9558_p4), 64  }
  0x12   : > { %10385 = vmatprep.subr.bf16.mxu1 (!%p9558_p4), %v12355_v2  ;;  %v11783_v11 = vld [vmem:[%s14803_s7 + $0x18] sm:$0xff] (!%p9558_p4)   ;;  %v11786_v14 = vld [vmem:[%s14803_s7 + $0x20] sm:$0xff] (!%p9558_p4)   ;;  %v11789_v17 = vld [vmem:[%s14803_s7 + $0x28] sm:$0xff] (!%p9558_p4)   ;;  %v12552_v36 = vadd.s32 (!%p9558_p4), 8, %v12549_v35  ;;  %v609_v37 = vshra.s32 (!%p9558_p4), %v12549_v35, 4  ;;  %v12563_v43 = vand.u32 (!%p9558_p4), 15, %v12549_v35 }
  0x13   : > { %v11784_v12 = vld [vmem:[%s14803_s7 + $0x98] sm:$0xff] (!%p9558_p4)   ;;  %v11787_v15 = vld [vmem:[%s14803_s7 + $0xa0] sm:$0xff] (!%p9558_p4)   ;;  %v11790_v18 = vld [vmem:[%s14803_s7 + $0xa8] sm:$0xff] (!%p9558_p4)   ;;  %v12571_v47 = vadd.s32 (!%p9558_p4), 16, %v12549_v35  ;;  %v12578_v56 = vadd.s32 (!%p9558_p4), 24, %v12549_v35  ;;  %s12360_s19 = smov (!%p9558_p4), 48  }
  0x14   : > { %9957 = vmatpush3.bf16.msra.mxu0 (!%p9558_p4), %v11777_v5  ;;  %v11791_v19 = vld [vmem:[%s14803_s7 + $0x70] sm:$0xff] (!%p9558_p4)   ;;  %v317_v21 = vld [vmem:[%s14796_s0 + $0x8] sm:$0xff] (!%p9558_p4)  ;;  %v320_v22 = vld [vmem:[%s14796_s0 + $0x20] sm:$0xff] (!%p9558_p4)  ;;  %v610_v40 = vshra.s32 (!%p9558_p4), %v12552_v36, 4  ;;  %v627_v44 = vmul.u32 (!%p9558_p4), 8, %v609_v37  ;;  %v606_v45 = vand.u32 (!%p9558_p4), 15, %v12552_v36  ;;  %vm667_vm5 = vcmp.eq.s32.totalorder (!%p9558_p4), %v12574_v52, %v12563_v43 }
  0x15   : > { %10386 = vmatpush3.bf16.msra.mxu1 %v11778_v6  ;;  %9958 = vmatprep.subr.bf16.mxu0 %v11779_v7  ;;  %v11792_v20 = vld [vmem:[%s14803_s7 + $0x30] sm:$0xff]   ;;  %v11794_v24 = vld [vmem:[%s14803_s7 + $0x78] sm:$0xff]   ;;  %v371_v25 = vpack.c.bf16 %v320_v22, %v317_v21  ;;  %v316_v27 = vld [vmem:[%s14796_s0] sm:$0xff]  ;;  %v611_v55 = vshra.s32 %v12571_v47, 4  ;;  %vm613_vm6 = vcmp.ge.s32.totalorder %v12563_v43, 1  ;;  %v9591_v57 = vsel %vm667_vm5, 1.0, %v12355_v2 }
  0x16   : > { %10387 = vmatprep.subr.bf16.mxu1 %v12355_v2  ;;  %v11793_v23 = vld [vmem:[%s14803_s7 + $0xb0] sm:$0xff]   ;;  %v11795_v26 = vld [vmem:[%s14803_s7 + $0x38] sm:$0xff]   ;;  %v321_v31 = vld [vmem:[%s14796_s0 + $0x28] sm:$0xff]  ;;  %v628_v46 = vmul.u32 8, %v610_v40  ;;  %v631_v49 = vadd.s32 %v627_v44, %v12563_v43  ;;  %vm664_vm8 = vcmp.lt.s32.totalorder %v606_v45, 9  ;;  %v12586_v58 = vand.u32 15, %v12571_v47 }
  0x17   : > { %v319_v28 = vld [vmem:[%s14796_s0 + $0x18] sm:$0xff]  ;;  %550 = vmatprep.mubr.bf16.mxu0 %v371_v25  ;;  %v318_v30 = vld [vmem:[%s14796_s0 + $0x10] sm:$0xff]  ;;  %v691_v38 = vld [vmem:[%s14800_s4] sm:$0xfc]  ;;  %vm668_vm12 = vcmp.eq.s32.totalorder %v12574_v52, %v606_v45  ;;  %vm618_vm14 = vcmp.le.s32.totalorder %v606_v45, 8  ;;  %v629_v60 = vmul.u32 8, %v611_v55 }
  0x18   : > { %9959 = vmatpush3.bf16.msra.mxu0 %v11780_v8  ;;  %v11796_v29 = vld [vmem:[%s14803_s7 + $0xb8] sm:$0xff]   ;;  %v370_v32 = vpack.c.bf16 %v319_v28, %v316_v27  ;;  %v372_v33 = vpack.c.bf16 %v321_v31, %v318_v30  ;;  %v692_v39 = vld [vmem:[%s14800_s4 + $0x10] sm:$0x7]  ;;  %v696_v41 = vrot.slane %v691_v38, 2  ;;  %v632_v51 = vadd.s32 %v628_v46, %v606_v45  ;;  %vm11197_vm4 = vmpackc.low %vm713_vm2, %vm12357_vm3  ;;  %s12361_s20 = smov 112   ;;  %s12362_s21 = smov 32  }
  0x19   : > { %10388 = vmatpush3.bf16.msra.mxu1 %v11781_v9  ;;  %9960 = vmatprep.subr.bf16.mxu0 %v11782_v10  ;;  %v697_v42 = vrot.slane %v692_v39, 2  ;;  %v9583_v53 = vadd.s32 4294967295, %v631_v49  ;;  %vm680_vm13 = vmand %vm664_vm8, %vm668_vm12  ;;  %v612_v61 = vshra.s32 %v12578_v56, 4  ;;  %vm669_vm2 = vcmp.eq.s32.totalorder %v12574_v52, %v12586_v58  ;;  %v11805_v9 = vld [vmem:[%s14801_s5 + $0xf4] ss:$60 sps:$4 sm:$0xff]   ;;  %s12363_s22 = smov 96  }
  0x1a   : > { %10389 = vmatprep.subr.bf16.mxu1 %v12355_v2  ;;  %v9584_v54 = vadd.s32 4294967295, %v632_v51  ;;  %v9592_v62 = vsel %vm680_vm13, 1.0, %v12355_v2  ;;  %v608_v0 = vand.u32 15, %v12578_v56  ;;  %v9593_v1 = vsel %vm669_vm2, 1.0, %v12355_v2  ;;  %s12365_s23 = smov 16   ;;  %s12366_s24 = smov 80  }
  0x1b   : > { %v698_v48 = vsel %vm695_vm1, %v696_v41, %v697_v42  ;;  %vm639_vm7 = vcmp.eq.s32.totalorder %v12574_v52, %v9583_v53  ;;  %v633_v3 = vadd.s32 %v629_v60, %v12586_v58  ;;  %v630_v5 = vmul.u32 8, %v612_v61 }
  0x1c   : > { %9961 = vmatpush3.bf16.msra.mxu0 %v11783_v11  ;;  %v11196_v50 = vpack.c.bf16 %v697_v42, %v698_v48  ;;  %vm651_vm10 = vmand %vm613_vm6, %vm639_vm7  ;;  %vm640_vm15 = vcmp.eq.s32.totalorder %v12574_v52, %v9584_v54  ;;  %vm666_vm3 = vcmp.lt.s32.totalorder %v608_v0, 9  ;;  %vm620_vm7 = vcmp.le.s32.totalorder %v608_v0, 8 }
  0x1d   : > { %10390 = vmatpush3.bf16.msra.mxu1 %v11784_v12  ;;  %9962 = vmatprep.subr.bf16.mxu0 %v11785_v13  ;;  %v9587_v59 = vsel %vm651_vm10, 1.0, %v12355_v2  ;;  %vm12597_vm1 = vmand %vm618_vm14, %vm640_vm15  ;;  %v9585_v4 = vadd.s32 4294967295, %v633_v3  ;;  %v634_v7 = vadd.s32 %v630_v5, %v608_v0  ;;  %v373_v12 = vld [vmem:[%s14800_s4] ss:$0 sm:$0xff]  ;;  %vm899_vm13 = vcmp.eq.s32.totalorder %v12563_v43, 0 }
  0x1e   : > { %10391 = vmatprep.subr.bf16.mxu1 %v12355_v2  ;;  %v9604_v34 = vsel %vm899_vm13, 1.0, %v12355_v2  ;;  %vm901_vm14 = vcmp.eq.s32.totalorder %v12586_v58, 0  ;;  %vm940_vm15 = vcmask 523264   ;;  %v11799_v5 = vld [vmem:[%s14801_s5 + $0x4] ss:$60 sps:$4 sm:$0xff]  }
  0x1f   : > { %vm641_vm6 = vcmp.eq.s32.totalorder %v12574_v52, %v9585_v4  ;;  %v9586_v8 = vadd.s32 4294967295, %v634_v7  ;;  %v9605_v45 = vsel %vm901_vm14, 1.0, %v12355_v2  ;;  %v11802_v7 = vld [vmem:[%s14801_s5 + $0x7c] ss:$60 sps:$4 sm:$0xff]  }
  0x20   : > { %9963 = vmatpush3.bf16.msra.mxu0 %v11786_v14 }
  0x21   : > { %10392 = vmatpush3.bf16.msra.mxu1 %v11787_v15  ;;  %9964 = vmatprep.subr.bf16.mxu0 %v11788_v16  ;;  %vm642_vm8 = vcmp.eq.s32.totalorder %v12574_v52, %v9586_v8  ;;  %v11800_v8 = vld [vmem:[%s14801_s5 + $0x78] ss:$60 sps:$4 sm:$0xff]  }
  0x22   : > { %10393 = vmatprep.subr.bf16.mxu1 %v12355_v2  ;;  %vm12615_vm10 = vmand %vm620_vm7, %vm642_vm8 }
  0x23   : > { %v9590_v28 = vsel %vm12615_vm10, 1.0, %v12355_v2 }
  0x24   : > { %9965 = vmatpush3.bf16.msra.mxu0 %v11789_v17 }
  0x25   : > { %10394 = vmatpush3.bf16.msra.mxu1 %v11790_v18  ;;  %9966 = vmatprep.subr.bf16.mxu0 %v11791_v19 }
  0x26   : > { %10395 = vmatprep.subr.bf16.mxu1 %v12355_v2 }
  0x28   : > { %9967 = vmatpush3.bf16.msra.mxu0 %v11792_v20 }
  0x29   : > { %10396 = vmatpush3.bf16.msra.mxu1 %v11793_v23  ;;  %9968 = vmatprep.subr.bf16.mxu0 %v11794_v24 }
  0x2a   : > { %10397 = vmatprep.subr.bf16.mxu1 %v12355_v2 }
  0x2c   : > { %9969 = vmatpush3.bf16.msra.mxu0 %v11795_v26  ;;  %v9588_v26 = vsel %vm12597_vm1, 1.0, %v12355_v2  ;;  %vm12797_vm1 = vmpackc.low %vm801_vm11, %vm801_vm11 }
  0x2d   : > { %10398 = vmatpush3.bf16.msra.mxu1 %v11796_v29 }
  0x2e   : > { %11198 = vmatprep.subr.msk.bf16.mxu1 %vm11197_vm4, %v11196_v50 }
  0x2f   : > { %551 = vmatmul.mubr.bf16.vlgmr.msra.gmra.mrb[0].mxu0 %v370_v32 }
  0x30   : > { %10400 = vmatmul.mubr.bf16.vlgmr.msra.gmra.mrb[0].mxu1 %v372_v33  ;;  %10417 = vmatprep.mubr.msk.f32.mxu0 %vm801_vm11, %v9587_v59  ;;  %v911_v33 = vld [vmem:[%s14800_s4 + $0x1] ss:$0 sm:$0xff] }
  0x31   : > { %11201 = vmatpush3.bf16.msk.msra.mxu1 %vm11197_vm4, %v11196_v50  ;;  %10407 = vmatprep.mubr.msk.f32.mxu1 %vm700_vm9, %v9591_v57  ;;  %vm670_vm4 = vcmp.eq.s32.totalorder %v12574_v52, %v608_v0  ;;  %v913_v39 = vmul.f32 0.0, %v911_v33  ;;  %v912_v41 = vmul.f32 %v9604_v34, %v911_v33  ;;  %v914_v50 = vmul.f32 %v9605_v45, %v911_v33 }
  0x32   : > { %vm682_vm5 = vmand %vm666_vm3, %vm670_vm4  ;;  %1043 = vmatprep.subr.bf16.mxu1 %v11799_v5 }
  0x33   : > { %v9594_v6 = vsel %vm682_vm5, 1.0, %v12355_v2 }
  0x38   : > { %10408 = vmatmul.mubr.msk.f32.vlgmr.msra.gmra.mrb[4].mxu1 %vm700_vm9, %v9592_v62 }
  0x39   : > { %10410 = vmatprep.mubr.msk.f32.mxu1 %vm700_vm9, %v9593_v1 }
  0x3c   : > { %10411 = vmatmul.mubr.msk.f32.gmra.mrb[6].mxu1 %vm700_vm9, %v9594_v6  ;;  %vm615_vm9 = vcmp.ge.s32.totalorder %v12586_v58, 1  ;;  %v11797_v6 = vld [vmem:[%s14801_s5] ss:$60 sps:$4 sm:$0xff]  }
  0x3d   : > { %vm653_vm12 = vmand %vm615_vm9, %vm641_vm6  ;;  %1044 = vmatpush1.bf16.msra.mxu1 %v11797_v6  ;;  %vm1315_vm9 = vcmask 261120  }
  0x3e   : > { %v9589_v27 = vsel %vm653_vm12, 1.0, %v12355_v2  ;;  %1045 = vmatprep.subr.bf16.mxu1 %v11802_v7 }
  0x41   : > { %1046 = vmatpush1.bf16.msra.mxu1 %v11800_v8 }
  0x42   : > { %1047 = vmatprep.subr.bf16.mxu1 %v11805_v9 }
 0x102   : > { %v9970_v10 = vpop.f32.mrb[0].mxu0 }
 0x103   : > { %v9971_v11 = vpop.f32.mrb[1].mxu0  ;;  %v593_v13 = vpop.f32.mrb[0].mxu1 }
 0x104   : > { %v9972_v14 = vadd.f32 %v9971_v11, %v9970_v10  ;;  %v9973_v15 = vpop.f32.mrb[2].mxu0  ;;  %v10401_v16 = vpop.f32.mrb[1].mxu1  ;;  %v11803_v10 = vld [vmem:[%s14801_s5 + $0xf0] ss:$60 sps:$4 sm:$0xff]  }
 0x105   : > { %v9974_v17 = vpop.f32.mrb[3].mxu0  ;;  %v596_v18 = vpop.f32.mrb[2].mxu1  ;;  %1048 = vmatpush1.bf16.msra.mxu1 %v11803_v10  ;;  %v11808_v11 = vld [vmem:[%s14801_s5 + $0x16c] ss:$60 sps:$4 sm:$0xff]  }
 0x106   : > { %v553_v19 = vadd.f32 %v9972_v14, %v373_v12  ;;  %v9975_v20 = vadd.f32 %v9974_v17, %v9973_v15  ;;  %v10402_v21 = vpop.f32.mrb[3].mxu1  ;;  %1049 = vmatprep.subr.bf16.mxu1 %v11808_v11 }
 0x108   : > { %v594_v22 = vadd.f32 %v593_v13, %v553_v19  ;;  %v556_v23 = vadd.f32 %v9975_v20, %v373_v12  ;;  %v11806_v12 = vld [vmem:[%s14801_s5 + $0x168] ss:$60 sps:$4 sm:$0xff]   ;;  %v12358_v13 = vmov 0  }
 0x109   : > { %1050 = vmatpush1.bf16.msra.mxu1 %v11806_v12  ;;  %1075 = vmatprep.mubr.bf16.mxu1 %v12358_v13 }
 0x10a   : > { %v597_v24 = vadd.f32 %v596_v18, %v556_v23 }
 0x10b   : > { %v10409_v29 = vpop.f32.mrb[4].mxu1 }
 0x10c   : > { %v11202_v25 = vpack.c.bf16 %v597_v24, %v594_v22  ;;  %v782_v30 = vpop.f32.mrb[5].mxu1 }
 0x10e   : > { %11203 = vmatprep.subr.bf16.mxu0 %v11202_v25 }
 0x10f   : > { %11205 = vmatpush3.bf16.msra.mxu0 %v11202_v25  ;;  %v10412_v31 = vpop.f32.mrb[6].mxu1 }
 0x110   : > { %v792_v32 = vpop.f32.mrb[7].mxu1 }
 0x112   : > { %10418 = vmatmul.mubr.msk.f32.vlgmr.msra.gmra.mrb[4].mxu0 %vm801_vm11, %v9588_v26 }
 0x113   : > { %10420 = vmatprep.mubr.msk.f32.mxu0 %vm801_vm11, %v9589_v27 }
 0x116   : > { %10421 = vmatmul.mubr.msk.f32.gmra.mrb[6].mxu0 %vm801_vm11, %v9590_v28 }
 0x1e5   : > { %v10419_v38 = vpop.f32.mrb[4].mxu0 }
 0x1e6   : > { %v886_v42 = vadd.f32 %v10419_v38, %v10409_v29  ;;  %v880_v44 = vpop.f32.mrb[5].mxu0  ;;  %v935_v29 = vld [vmem:[%s14800_s4 + $0x13] ss:$0 sm:$0xff] }
 0x1e7   : > { %v881_v46 = vadd.f32 %v880_v44, %v782_v30 }
 0x1e8   : > { %v12642_v48 = vadd.f32 %v913_v39, %v886_v42 }
 0x1e9   : > { %v12644_v49 = vadd.f32 %v912_v41, %v881_v46  ;;  %v10422_v43 = vpop.f32.mrb[6].mxu0  ;;  %v989_v46 = vsub.s32 0, %v12549_v35 }
 0x1ea   : > { %v896_v51 = vadd.f32 %v10422_v43, %v10412_v31  ;;  %v890_v53 = vpop.f32.mrb[7].mxu0  ;;  %v937_v62 = vmul.f32 %v12642_v48, %v12642_v48  ;;  %v9606_v43 = vld [vmem:[%s14800_s4 + $0x14] ss:$8 sm:$0x3] }
 0x1eb   : > { %v891_v54 = vadd.f32 %v890_v53, %v792_v32  ;;  %v936_v57 = vmul.f32 %v12644_v49, %v12644_v49 }
 0x1ec   : > { %v12648_v58 = vadd.f32 %v913_v39, %v896_v51  ;;  %v944_v3 = vsel %vm940_vm15, %v937_v62, 0.0  ;;  %v990_v51 = vrot.slane %v9606_v43, %v989_v46 }
 0x1ed   : > { %v12650_v59 = vadd.f32 %v914_v50, %v891_v54  ;;  %v941_v60 = vsel %vm940_vm15, %v936_v57, 0.0  ;;  %v993_v50 = vsub.s32 1, %v12549_v35 }
 0x1ee   : > { %942 = vadd.xlane.f32.xlu0 %v941_v60  ;;  %v939_v0 = vmul.f32 %v12648_v58, %v12648_v58 }
 0x1ef   : > { %v938_v63 = vmul.f32 %v12650_v59, %v12650_v59  ;;  %v994_v54 = vrot.slane %v9606_v43, %v993_v50 }
 0x1f0   : > { %v950_v4 = vsel %vm940_vm15, %v939_v0, 0.0 }
 0x1f1   : > { %v947_v1 = vsel %vm940_vm15, %v938_v63, 0.0 }
 0x1f2   : > { %948 = vadd.xlane.f32.xlu1 %v947_v1  ;;  %945 = vadd.xlane.f32.xlu0 %v944_v3 }
 0x1f6   : > { %951 = vadd.xlane.f32.xlu1 %v950_v4 }
 0x27b   : > { %v943_v14 = vpop.xlane.xlu0 %942 }
 0x27c   : > { %v954_v15 = vmul.f32 0.015625, %v943_v14 }
 0x27e   : > { %v958_v16 = vadd.f32 1e-06, %v954_v15 }
 0x27f   : > { %v949_v17 = vpop.xlane.xlu1 %948  ;;  %v946_v18 = vpop.xlane.xlu0 %945 }
 0x280   : > { %v955_v19 = vmul.f32 0.015625, %v946_v18  ;;  %11856 = vrsqrt.f32 %v958_v16  ;;  %v956_v20 = vmul.f32 0.015625, %v949_v17 }
 0x282   : > { %v959_v21 = vadd.f32 1e-06, %v955_v19  ;;  %v960_v24 = vadd.f32 1e-06, %v956_v20 }
 0x283   : > { %v952_v22 = vpop.xlane.xlu1 %951 }
 0x284   : > { %v957_v23 = vmul.f32 0.015625, %v952_v22  ;;  %11858 = vrsqrt.f32 %v959_v21 }
 0x286   : > { %v961_v25 = vadd.f32 1e-06, %v957_v23 }
 0x288   : > { %11860 = vrsqrt.f32 %v961_v25 }
 0x289   : > { %11862 = vrsqrt.f32 %v960_v24 }
 0x28a   : > { %v11857_v26 = vpop.eup %11856 }
 0x28b   : > { %v966_v27 = vmul.f32 %v11857_v26, %v12644_v49 }
 0x28d   : > { %v970_v32 = vmul.f32 %v966_v27, %v935_v29 }
 0x28e   : > { %v11859_v28 = vpop.eup %11858 }
 0x28f   : > { %v967_v30 = vmul.f32 %v11859_v28, %v12642_v48 }
 0x291   : > { %v971_v33 = vmul.f32 %v967_v30, %v935_v29  ;;  %v1133_v30 = vld [vmem:[%s14800_s4 + $0x16] ss:$0 sm:$0xff] }
 0x292   : > { %v11861_v31 = vpop.eup %11860 }
 0x293   : > { %v11863_v34 = vpop.eup %11862  ;;  %v982_v38 = vpack.c.bf16 %v971_v33, %v970_v32  ;;  %v969_v39 = vmul.f32 %v11861_v31, %v12648_v58 }
 0x294   : > { %v968_v41 = vmul.f32 %v11863_v34, %v12650_v59 }
 0x295   : > { %9615 = vmatmul.mubr.msk.bf16.vlgmr.msra.gmra.mrb[8].mxu1 %vm940_vm15, %v982_v38  ;;  %v973_v42 = vmul.f32 %v969_v39, %v935_v29 }
 0x296   : > { %1085 = vmatprep.mubr.bf16.mxu1 %v12358_v13  ;;  %v972_v44 = vmul.f32 %v968_v41, %v935_v29 }
 0x298   : > { %v983_v45 = vpack.c.bf16 %v973_v42, %v972_v44 }
 0x29d   : > { %9616 = vmatmul.mubr.msk.bf16.gmra.mrb[12].mxu1 %vm940_vm15, %v983_v45 }
 0x368   : > { %v1077_v53 = vpop.f32.mrb[8].mxu1 }
 0x369   : > { %v12706_v57 = vadd.f32 %v1077_v53, %v990_v51  ;;  %v1079_v60 = vpop.f32.mrb[9].mxu1 }
 0x36a   : > { %v1081_v62 = vpop.f32.mrb[10].mxu1  ;;  %v1080_v3 = vadd.f32 %v1079_v60, %v994_v54 }
 0x36b   : > { %v12708_v63 = vadd.f32 %v1081_v62, %v990_v51  ;;  %v1083_v0 = vpop.f32.mrb[11].mxu1  ;;  %v1097_v1 = vmul.f32 %v12706_v57, %v12706_v57 }
 0x36c   : > { %v1084_v4 = vadd.f32 %v1083_v0, %v994_v54 }
 0x36d   : > { %1138 = vrot.lane.b32.xlu0 %v1097_v1, %s12359_s13  ;;  %v1098_v5 = vmul.f32 %v12708_v63, %v12708_v63  ;;  %v1101_v29 = vsel %vm940_vm15, %v1097_v1, 0.0 }
 0x36e   : > { %v11218_v6 = vpack.c.bf16 %v1084_v4, %v1080_v3  ;;  %v12715_v7 = vpack.i.bf16 %v1084_v4, %v1080_v3 }
 0x36f   : > { %1140 = vrot.lane.b32.xlu1 %v1098_v5, %s12359_s13  ;;  %v1104_v31 = vsel %vm940_vm15, %v1098_v5, 0.0 }
 0x370   : > { %v1087_v8 = vpop.f32.mrb[12].mxu1  ;;  %11219 = vmatprep.subr.bf16.mxu1 %v11218_v6 }
 0x371   : > { %v12718_v9 = vadd.f32 %v1087_v8, %v990_v51  ;;  %v1089_v10 = vpop.f32.mrb[13].mxu1  ;;  %11221 = vmatpush3.bf16.msra.mxu1 %v11218_v6 }
 0x372   : > { %v1091_v11 = vpop.f32.mrb[14].mxu1  ;;  %v1090_v16 = vadd.f32 %v1089_v10, %v994_v54 }
 0x373   : > { %v12720_v12 = vadd.f32 %v1091_v11, %v990_v51  ;;  %v1093_v14 = vpop.f32.mrb[15].mxu1  ;;  %v1099_v15 = vmul.f32 %v12718_v9, %v12718_v9 }
 0x374   : > { %v1094_v17 = vadd.f32 %v1093_v14, %v994_v54 }
 0x375   : > { %1142 = vrot.lane.b32.xlu1 %v1099_v15, %s12359_s13  ;;  %v1100_v20 = vmul.f32 %v12720_v12, %v12720_v12  ;;  %v1107_v32 = vsel %vm940_vm15, %v1099_v15, 0.0 }
 0x376   : > { %v11222_v18 = vpack.c.bf16 %v1094_v17, %v1090_v16  ;;  %v12725_v19 = vpack.i.bf16 %v1094_v17, %v1090_v16 }
 0x377   : > { %v1110_v33 = vsel %vm940_vm15, %v1100_v20, 0.0 }
 0x378   : > { %11223 = vmatprep.subr.bf16.mxu1 %v11222_v18 }
 0x379   : > { %1144 = vrot.lane.b32.xlu1 %v1100_v20, %s12359_s13  ;;  %11225 = vmatpush3.bf16.msra.mxu1 %v11222_v18 }
 0x3df   : > { %v1139_v21 = vpop.permute.xlu0 %1138 }
 0x3e0   : > { %v1150_v22 = vsel %vm940_vm15, %v1139_v21, 0.0 }
 0x3e1   : > { %v1141_v23 = vpop.permute.xlu1 %1140  ;;  %1151 = vadd.xlane.f32.xlu0 %v1150_v22 }
 0x3e2   : > { %v1153_v24 = vsel %vm940_vm15, %v1141_v23, 0.0 }
 0x3e3   : > { %1154 = vadd.xlane.f32.xlu1 %v1153_v24 }
 0x3e7   : > { %v1143_v25 = vpop.permute.xlu1 %1142 }
 0x3e8   : > { %v1156_v26 = vsel %vm940_vm15, %v1143_v25, 0.0 }
 0x3e9   : > { %1157 = vadd.xlane.f32.xlu0 %v1156_v26 }
 0x3eb   : > { %v1145_v27 = vpop.permute.xlu1 %1144 }
 0x3ec   : > { %v1159_v28 = vsel %vm940_vm15, %v1145_v27, 0.0 }
 0x3ed   : > { %1160 = vadd.xlane.f32.xlu0 %v1159_v28 }
 0x3f1   : > { %1102 = vadd.xlane.f32.xlu0 %v1101_v29 }
 0x3f4   : > { %1179 = vrot.lane.b32.xlu1 %v1133_v30, %s12359_s13 }
 0x3f5   : > { %1105 = vadd.xlane.f32.xlu0 %v1104_v31 }
 0x3f9   : > { %1108 = vadd.xlane.f32.xlu0 %v1107_v32  ;;  %v1096_v32 = vld [vmem:[%s14800_s4 + $0x15] ss:$0 sm:$0xff] }
 0x3fd   : > { %1111 = vadd.xlane.f32.xlu0 %v1110_v33 }
 0x46e   : > { %v1152_v34 = vpop.xlane.xlu0 %1151 }
 0x46f   : > { %v1162_v38 = vmul.f32 0.015625, %v1152_v34 }
 0x470   : > { %v1155_v39 = vpop.xlane.xlu1 %1154 }
 0x471   : > { %v1166_v41 = vadd.f32 1e-06, %v1162_v38  ;;  %v1163_v42 = vmul.f32 0.015625, %v1155_v39 }
 0x473   : > { %11864 = vrsqrt.f32 %v1166_v41  ;;  %v1167_v44 = vadd.f32 1e-06, %v1163_v42 }
 0x474   : > { %v1180_v5 = vpop.permute.xlu1 %1179 }
 0x475   : > { %11866 = vrsqrt.f32 %v1167_v44 }
 0x476   : > { %v1158_v45 = vpop.xlane.xlu0 %1157 }
 0x477   : > { %v1164_v43 = vmul.f32 0.015625, %v1158_v45 }
 0x479   : > { %v1168_v51 = vadd.f32 1e-06, %v1164_v43 }
 0x47a   : > { %v1161_v53 = vpop.xlane.xlu0 %1160 }
 0x47b   : > { %11868 = vrsqrt.f32 %v1168_v51  ;;  %v1165_v54 = vmul.f32 0.015625, %v1161_v53 }
 0x47d   : > { %v11865_v60 = vpop.eup %11864  ;;  %v1169_v62 = vadd.f32 1e-06, %v1165_v54 }
 0x47e   : > { %v1103_v0 = vpop.xlane.xlu0 %1102  ;;  %v1174_v1 = vmul.f32 %v11865_v60, %v12706_v57 }
 0x47f   : > { %v11867_v3 = vpop.eup %11866  ;;  %11870 = vrsqrt.f32 %v1169_v62  ;;  %v1113_v4 = vmul.f32 0.015625, %v1103_v0 }
 0x480   : > { %v1175_v6 = vmul.f32 %v11867_v3, %v12708_v63  ;;  %v1182_v10 = vmul.f32 %v1180_v5, %v1174_v1 }
 0x481   : > { %v1117_v8 = vadd.f32 1e-06, %v1113_v4 }
 0x482   : > { %v1183_v11 = vmul.f32 %v1180_v5, %v1175_v6  ;;  %v1106_v14 = vpop.xlane.xlu0 %1105 }
 0x483   : > { %11872 = vrsqrt.f32 %v1117_v8  ;;  %v1114_v15 = vmul.f32 0.015625, %v1106_v14 }
 0x484   : > { %v12744_v16 = vpack.i.bf16 %v1183_v11, %v1182_v10 }
 0x485   : > { %v11869_v17 = vpop.eup %11868  ;;  %v1118_v18 = vadd.f32 1e-06, %v1114_v15 }
 0x486   : > { %11574 = vrot.lane.b32.xlu0 %v12744_v16, %s12359_s13  ;;  %v1109_v20 = vpop.xlane.xlu0 %1108  ;;  %v1176_v22 = vmul.f32 %v11869_v17, %v12718_v9 }
 0x487   : > { %v1115_v21 = vmul.f32 0.015625, %v1109_v20  ;;  %11874 = vrsqrt.f32 %v1118_v18 }
 0x488   : > { %v1184_v28 = vmul.f32 %v1180_v5, %v1176_v22 }
 0x489   : > { %v11871_v23 = vpop.eup %11870  ;;  %v1119_v24 = vadd.f32 1e-06, %v1115_v21 }
 0x48a   : > { %v1177_v25 = vmul.f32 %v11871_v23, %v12720_v12  ;;  %v1112_v26 = vpop.xlane.xlu0 %1111 }
 0x48b   : > { %v1116_v27 = vmul.f32 0.015625, %v1112_v26  ;;  %11876 = vrsqrt.f32 %v1119_v24 }
 0x48c   : > { %v1185_v29 = vmul.f32 %v1180_v5, %v1177_v25 }
 0x48d   : > { %v11873_v30 = vpop.eup %11872  ;;  %v1120_v31 = vadd.f32 1e-06, %v1116_v27 }
 0x48e   : > { %v12753_v33 = vpack.i.bf16 %v1185_v29, %v1184_v28  ;;  %v1125_v34 = vmul.f32 %v11873_v30, %v12706_v57 }
 0x48f   : > { %11878 = vrsqrt.f32 %v1120_v31 }
 0x490   : > { %11579 = vrot.lane.b32.xlu1 %v12753_v33, %s12359_s13  ;;  %v1129_v38 = vmul.f32 %v1125_v34, %v1096_v32 }
 0x491   : > { %v11875_v41 = vpop.eup %11874 }
 0x492   : > { %v12758_v39 = vmul.f32 0.25, %v1129_v38  ;;  %v1126_v42 = vmul.f32 %v11875_v41, %v12708_v63 }
 0x494   : > { %11584 = vrot.lane.b32.xlu1 %v12744_v16, %s12360_s19  ;;  %10431 = vmatprep.mubr.msk.f32.mxu0 %vm801_vm11, %v12758_v39  ;;  %v1130_v45 = vmul.f32 %v1126_v42, %v1096_v32 }
 0x495   : > { %v11877_v44 = vpop.eup %11876 }
 0x496   : > { %v1127_v51 = vmul.f32 %v11877_v44, %v12718_v9  ;;  %v12771_v54 = vmul.f32 0.25, %v1130_v45  ;;  %v925_v45 = vand.u32 15, %v12574_v52 }
 0x498   : > { %11589 = vrot.lane.b32.xlu1 %v12753_v33, %s12360_s19  ;;  %v1131_v63 = vmul.f32 %v1127_v51, %v1096_v32  ;;  %vm12843_vm2 = vcmp.lt.s32.totalorder %v925_v45, 9 }
 0x499   : > { %v11879_v57 = vpop.eup %11878 }
 0x49a   : > { %v1128_v43 = vmul.f32 %v11879_v57, %v12720_v12  ;;  %v12779_v62 = vmul.f32 0.25, %v1131_v63  ;;  %v12840_v57 = vshra.s32 %v12574_v52, 4  ;;  %v12364_v52 = vmov -1e+09  }
 0x49c   : > { %1459 = vrot.lane.b32.xlu1 %v12758_v39, %s12361_s20  ;;  %v1132_v53 = vmul.f32 %v1128_v43, %v1096_v32  ;;  %vm922_vm3 = vcmp.eq.s32.totalorder %v610_v40, %v12840_v57  ;;  %vm921_vm4 = vcmp.eq.s32.totalorder %v609_v37, %v12840_v57  ;;  %vm923_vm7 = vcmp.eq.s32.totalorder %v611_v55, %v12840_v57 }
 0x49d   : > { %vm928_vm5 = vmand %vm922_vm3, %vm12843_vm2  ;;  %vm924_vm8 = vcmp.eq.s32.totalorder %v612_v61, %v12840_v57  ;;  %vm4704_vm13 = vcmp.eq.s32.totalorder %v12840_v57, %v12549_v35  ;;  %vm4782_vm3 = vcmask 517120  }
 0x49e   : > { %v12773_v60 = vmul.f32 0.25, %v1132_v53  ;;  %vm927_vm6 = vmand %vm921_vm4, %vm12843_vm2  ;;  %v12861_v51 = vsel %vm928_vm5, 0.0, %v12364_v52 }
 0x49f   : > { %v12864_v36 = vsel %vm927_vm6, 0.0, %v12364_v52  ;;  %vm929_vm10 = vmand %vm923_vm7, %vm12843_vm2 }
 0x4a0   : > { %1461 = vrot.lane.b32.xlu1 %v12771_v54, %s12361_s20  ;;  %1465 = vrot.lane.b32.xlu0 %v12773_v60, %s12361_s20  ;;  %vm930_vm12 = vmand %vm924_vm8, %vm12843_vm2  ;;  %v12876_v53 = vsel %vm929_vm10, 0.0, %v12364_v52 }
 0x4a1   : > { %vm13661_vm14 = vmand %vm4704_vm13, %vm12843_vm2 }
 0x4a4   : > { %1463 = vrot.lane.b32.xlu1 %v12779_v62, %s12361_s20  ;;  %11599 = vrot.lane.b32.xlu0 %v12753_v33, %s12362_s21 }
 0x4a8   : > { %11594 = vrot.lane.b32.xlu1 %v12744_v16, %s12362_s21  ;;  %1863 = vrot.lane.b32.xlu0 %v12771_v54, %s12363_s22 }
 0x4ac   : > { %1861 = vrot.lane.b32.xlu1 %v12758_v39, %s12363_s22  ;;  %1867 = vrot.lane.b32.xlu0 %v12773_v60, %s12363_s22 }
 0x4b0   : > { %1865 = vrot.lane.b32.xlu1 %v12779_v62, %s12363_s22 }
 0x4f8   : > { %v11575_v9 = vpop.permute.xlu0 %11574 }
 0x4f9   : > { %v11577_v12 = vunpack.i.h.bf16 %v11575_v9  ;;  %v11576_v0 = vunpack.i.l.bf16 %v11575_v9  ;;  %v12881_v9 = vsel %vm930_vm12, 0.0, %v12364_v52 }
 0x4fb   : > { %v11206_v3 = vpack.c.bf16 %v11577_v12, %v11576_v0 }
 0x4fd   : > { %11208 = vmatprep.subr.msk.bf16.mxu0 %vm12797_vm1, %v11206_v3 }
 0x4fe   : > { %11211 = vmatpush3.bf16.xpose.msk.msra.mxu0 %vm12797_vm1, %v11206_v3 }
 0x502   : > { %v11580_v4 = vpop.permute.xlu1 %11579 }
 0x503   : > { %v11582_v5 = vunpack.i.h.bf16 %v11580_v4  ;;  %v11581_v6 = vunpack.i.l.bf16 %v11580_v4 }
 0x505   : > { %v11212_v8 = vpack.c.bf16 %v11582_v5, %v11581_v6 }
 0x506   : > { %v11585_v10 = vpop.permute.xlu1 %11584 }
 0x507   : > { %v11587_v11 = vunpack.i.h.bf16 %v11585_v10  ;;  %v11586_v14 = vunpack.i.l.bf16 %v11585_v10  ;;  %11214 = vmatprep.subr.msk.bf16.mxu0 %vm12797_vm1, %v11212_v8 }
 0x508   : > { %11217 = vmatpush3.bf16.xpose.msk.msra.mxu0 %vm12797_vm1, %v11212_v8 }
 0x509   : > { %v11226_v15 = vpack.c.bf16 %v11587_v11, %v11586_v14 }
 0x50a   : > { %v11590_v17 = vpop.permute.xlu1 %11589 }
 0x50b   : > { %v11592_v18 = vunpack.i.h.bf16 %v11590_v17  ;;  %v11591_v20 = vunpack.i.l.bf16 %v11590_v17  ;;  %11228 = vmatprep.subr.msk.bf16.mxu0 %vm12797_vm1, %v11226_v15 }
 0x50d   : > { %v11232_v22 = vpack.c.bf16 %v11592_v18, %v11591_v20 }
 0x50e   : > { %v1460_v21 = vpop.permute.xlu1 %1459 }
 0x50f   : > { %10432 = vmatmul.mubr.msk.f32.vlgmr.msra.gmra.mrb[8].mxu0 %vm801_vm11, %v12771_v54 }
 0x510   : > { %10434 = vmatprep.mubr.msk.f32.mxu0 %vm801_vm11, %v12779_v62  ;;  %11231 = vmatpush3.bf16.xpose.msk.msra.mxu0 %vm12797_vm1, %v11226_v15 }
 0x511   : > { %11234 = vmatprep.subr.msk.bf16.mxu0 %vm12797_vm1, %v11232_v22 }
 0x512   : > { %v1462_v23 = vpop.permute.xlu1 %1461  ;;  %v1466_v24 = vpop.permute.xlu0 %1465 }
 0x513   : > { %10435 = vmatmul.mubr.msk.f32.gmra.mrb[10].mxu0 %vm801_vm11, %v12773_v60 }
 0x514   : > { %10459 = vmatprep.mubr.msk.f32.mxu0 %vm801_vm11, %v1460_v21 }
 0x516   : > { %v1464_v25 = vpop.permute.xlu1 %1463  ;;  %v11600_v26 = vpop.permute.xlu0 %11599 }
 0x517   : > { %v11602_v28 = vunpack.i.h.bf16 %v11600_v26  ;;  %v11601_v29 = vunpack.i.l.bf16 %v11600_v26 }
 0x518   : > { %11237 = vmatpush3.bf16.xpose.msk.msra.mxu0 %vm12797_vm1, %v11232_v22 }
 0x519   : > { %v11252_v34 = vpack.c.bf16 %v11602_v28, %v11601_v29 }
 0x51a   : > { %v11595_v27 = vpop.permute.xlu1 %11594  ;;  %v1864_v41 = vpop.permute.xlu0 %1863 }
 0x51b   : > { %v11597_v30 = vunpack.i.h.bf16 %v11595_v27  ;;  %v11596_v31 = vunpack.i.l.bf16 %v11595_v27 }
 0x51d   : > { %v11246_v32 = vpack.c.bf16 %v11597_v30, %v11596_v31 }
 0x51e   : > { %v1862_v38 = vpop.permute.xlu1 %1861  ;;  %v1868_v44 = vpop.permute.xlu0 %1867 }
 0x51f   : > { %10460 = vmatmul.mubr.msk.f32.vlgmr.msra.gmra.mrb[12].mxu0 %vm801_vm11, %v1462_v23  ;;  %11248 = vmatprep.subr.msk.bf16.mxu0 %vm12797_vm1, %v11246_v32 }
 0x520   : > { %10462 = vmatprep.mubr.msk.f32.mxu0 %vm801_vm11, %v1464_v25  ;;  %11251 = vmatpush3.bf16.xpose.msk.msra.mxu0 %vm12797_vm1, %v11246_v32 }
 0x521   : > { %11254 = vmatprep.subr.msk.bf16.mxu0 %vm12797_vm1, %v11252_v34 }
 0x522   : > { %v1866_v42 = vpop.permute.xlu1 %1865 }
 0x523   : > { %10463 = vmatmul.mubr.msk.f32.gmra.mrb[14].mxu0 %vm801_vm11, %v1466_v24 }
 0x524   : > { %10499 = vmatprep.mubr.msk.f32.mxu0 %vm801_vm11, %v1862_v38 }
 0x528   : > { %11257 = vmatpush3.bf16.xpose.msk.msra.mxu0 %vm12797_vm1, %v11252_v34 }
 0x52f   : > { %10500 = vmatmul.mubr.msk.f32.vlgmr.msra.gmra.mrb[16].mxu0 %vm801_vm11, %v1864_v41 }
 0x530   : > { %10502 = vmatprep.mubr.msk.f32.mxu0 %vm801_vm11, %v1866_v42 }
 0x533   : > { %10503 = vmatmul.mubr.msk.f32.gmra.mrb[18].mxu0 %vm801_vm11, %v1868_v44 }
 0x5e2   : > { %v10433_v37 = vpop.f32.mrb[8].mxu0 }
 0x5e3   : > { %v1302_v40 = vadd.f32 %v10433_v37, %v12861_v51  ;;  %v1296_v47 = vpop.f32.mrb[9].mxu0 }
 0x5e4   : > { %v1297_v55 = vadd.f32 %v1296_v47, %v12864_v36 }
 0x5e5   : > { %v1319_v63 = vsel %vm1315_vm9, %v1302_v40, -inf }
 0x5e6   : > { %1320 = vmax.xlane.f32.xlu0 %v1319_v63  ;;  %v10436_v56 = vpop.f32.mrb[10].mxu0  ;;  %v1316_v61 = vsel %vm1315_vm9, %v1297_v55, -inf }
 0x5e7   : > { %v1306_v12 = vpop.f32.mrb[11].mxu0  ;;  %1317 = vmax.xlane.f32.xlu1 %v1316_v61  ;;  %v1312_v3 = vadd.f32 %v10436_v56, %v12881_v9 }
 0x5e8   : > { %v1307_v0 = vadd.f32 %v1306_v12, %v12876_v53 }
 0x5e9   : > { %v1325_v5 = vsel %vm1315_vm9, %v1312_v3, -inf }
 0x5ea   : > { %v1322_v4 = vsel %vm1315_vm9, %v1307_v0, -inf }
 0x5eb   : > { %1323 = vmax.xlane.f32.xlu0 %v1322_v4 }
 0x5ef   : > { %1326 = vmax.xlane.f32.xlu0 %v1325_v5 }
 0x5f2   : > { %v10461_v6 = vpop.f32.mrb[12].mxu0 }
 0x5f3   : > { %v1563_v8 = vadd.f32 %v10461_v6, %v12861_v51  ;;  %v1557_v10 = vpop.f32.mrb[13].mxu0 }
 0x5f4   : > { %v1558_v11 = vadd.f32 %v1557_v10, %v12864_v36 }
 0x5f5   : > { %v1579_v14 = vsel %vm1315_vm9, %v1563_v8, -inf }
 0x5f6   : > { %v10464_v15 = vpop.f32.mrb[14].mxu0  ;;  %1580 = vmax.xlane.f32.xlu0 %v1579_v14  ;;  %v1576_v17 = vsel %vm1315_vm9, %v1558_v11, -inf }
 0x5f7   : > { %v1573_v18 = vadd.f32 %v10464_v15, %v12881_v9  ;;  %v1567_v20 = vpop.f32.mrb[15].mxu0  ;;  %1577 = vmax.xlane.f32.xlu1 %v1576_v17 }
 0x5f8   : > { %v1568_v21 = vadd.f32 %v1567_v20, %v12876_v53 }
 0x5f9   : > { %v1585_v22 = vsel %vm1315_vm9, %v1573_v18, -inf }
 0x5fa   : > { %1586 = vmax.xlane.f32.xlu0 %v1585_v22  ;;  %v1582_v23 = vsel %vm1315_vm9, %v1568_v21, -inf }
 0x5fb   : > { %1583 = vmax.xlane.f32.xlu1 %v1582_v23 }
 0x602   : > { %v12895_v24 = vpop.f32.mrb[16].mxu0 }
 0x603   : > { %v12897_v25 = vpop.f32.mrb[17].mxu0 }
 0x606   : > { %v12899_v26 = vpop.f32.mrb[18].mxu0 }
 0x607   : > { %v12901_v27 = vpop.f32.mrb[19].mxu0 }
 0x673   : > { %v1321_v28 = vpop.xlane.xlu0 %1320 }
 0x674   : > { %v1329_v29 = vsub.f32 %v1302_v40, %v1321_v28  ;;  %v1318_v30 = vpop.xlane.xlu1 %1317 }
 0x675   : > { %v1328_v31 = vsub.f32 %v1297_v55, %v1318_v30 }
 0x676   : > { %v1334_v32 = vmul.f32 1.442695, %v1329_v29 }
 0x677   : > { %v1332_v34 = vmul.f32 1.442695, %v1328_v31 }
 0x678   : > { %11880 = vpow2.f32 %v1334_v32  ;;  %v1324_v38 = vpop.xlane.xlu0 %1323 }
 0x679   : > { %11882 = vpow2.f32 %v1332_v34  ;;  %v1330_v41 = vsub.f32 %v1307_v0, %v1324_v38  ;;  %v12953_v34 = vadd.f32 %v12895_v24, %v12861_v51 }
 0x67b   : > { %v1336_v42 = vmul.f32 1.442695, %v1330_v41 }
 0x67c   : > { %v1327_v44 = vpop.xlane.xlu0 %1326 }
 0x67d   : > { %11884 = vpow2.f32 %v1336_v42  ;;  %v1331_v45 = vsub.f32 %v1312_v3, %v1327_v44 }
 0x67f   : > { %v1338_v37 = vmul.f32 1.442695, %v1331_v45 }
 0x681   : > { %11886 = vpow2.f32 %v1338_v37 }
 0x682   : > { %v12903_v47 = vpop.eup %11880 }
 0x683   : > { %v12905_v63 = vpop.eup %11882  ;;  %v1581_v56 = vpop.xlane.xlu0 %1580  ;;  %v1343_v40 = vsel %vm1315_vm9, %v12903_v47, 0.0 }
 0x684   : > { %v1589_v55 = vsub.f32 %v1563_v8, %v1581_v56  ;;  %1344 = vadd.xlane.f32.xlu0 %v1343_v40  ;;  %v1578_v61 = vpop.xlane.xlu1 %1577  ;;  %v1340_v12 = vsel %vm1315_vm9, %v12905_v63, 0.0 }
 0x685   : > { %v1588_v0 = vsub.f32 %v1558_v11, %v1578_v61  ;;  %1341 = vadd.xlane.f32.xlu1 %v1340_v12 }
 0x686   : > { %v1594_v4 = vmul.f32 1.442695, %v1589_v55 }
 0x687   : > { %v12911_v3 = vpop.eup %11884  ;;  %v1592_v5 = vmul.f32 1.442695, %v1588_v0  ;;  %v1587_v6 = vpop.xlane.xlu0 %1586 }
 0x688   : > { %11888 = vpow2.f32 %v1594_v4  ;;  %v1591_v10 = vsub.f32 %v1573_v18, %v1587_v6  ;;  %v1584_v14 = vpop.xlane.xlu1 %1583  ;;  %v1346_v15 = vsel %vm1315_vm9, %v12911_v3, 0.0 }
 0x689   : > { %11890 = vpow2.f32 %v1592_v5  ;;  %v1590_v8 = vsub.f32 %v1568_v21, %v1584_v14  ;;  %1347 = vadd.xlane.f32.xlu1 %v1346_v15 }
 0x68a   : > { %v1598_v17 = vmul.f32 1.442695, %v1591_v10 }
 0x68b   : > { %v12915_v20 = vpop.eup %11886  ;;  %v1596_v22 = vmul.f32 1.442695, %v1590_v8 }
 0x68c   : > { %11892 = vpow2.f32 %v1598_v17  ;;  %v1349_v11 = vsel %vm1315_vm9, %v12915_v20, 0.0 }
 0x68d   : > { %11894 = vpow2.f32 %v1596_v22  ;;  %1350 = vadd.xlane.f32.xlu0 %v1349_v11 }
 0x692   : > { %v12919_v23 = vpop.eup %11888 }
 0x693   : > { %v12921_v18 = vpop.eup %11890  ;;  %v1603_v28 = vsel %vm1315_vm9, %v12919_v23, 0.0 }
 0x694   : > { %1604 = vadd.xlane.f32.xlu0 %v1603_v28  ;;  %v1600_v21 = vsel %vm1315_vm9, %v12921_v18, 0.0 }
 0x695   : > { %1601 = vadd.xlane.f32.xlu1 %v1600_v21 }
 0x696   : > { %v12927_v29 = vpop.eup %11892 }
 0x697   : > { %v12929_v30 = vpop.eup %11894  ;;  %v1609_v31 = vsel %vm1315_vm9, %v12927_v29, 0.0 }
 0x698   : > { %1610 = vadd.xlane.f32.xlu0 %v1609_v31  ;;  %v1606_v32 = vsel %vm1315_vm9, %v12929_v30, 0.0 }
 0x699   : > { %1607 = vadd.xlane.f32.xlu1 %v1606_v32 }
 0x6aa   : > { %11604 = vrot.lane.b32.xlu1 %v12715_v7, %s12361_s20 }
 0x6ae   : > { %11609 = vrot.lane.b32.xlu0 %v12725_v19, %s12361_s20  ;;  %11614 = vrot.lane.b32.xlu1 %v12744_v16, %s12365_s23  ;;  %v12957_v16 = vadd.f32 %v12901_v27, %v12876_v53 }
 0x6b2   : > { %2202 = vrot.lane.b32.xlu0 %v12771_v54, %s12366_s24  ;;  %11619 = vrot.lane.b32.xlu1 %v12753_v33, %s12365_s23  ;;  %v1981_v33 = vsel %vm1315_vm9, %v12953_v34, -inf  ;;  %v12963_v54 = vadd.f32 %v12899_v26, %v12881_v9  ;;  %v11809_v26 = vld [vmem:[%s14801_s5 + $0x7c] ss:$60 sps:$4 sm:$0xff]  }
 0x6b6   : > { %2206 = vrot.lane.b32.xlu0 %v12773_v60, %s12366_s24  ;;  %2200 = vrot.lane.b32.xlu1 %v12758_v39, %s12366_s24  ;;  %v1984_v39 = vsel %vm1315_vm9, %v12957_v16, -inf  ;;  %v12969_v60 = vadd.f32 %v12897_v25, %v12864_v36 }
 0x6b8   : > { %v1978_v24 = vsel %vm1315_vm9, %v12969_v60, -inf }
 0x6ba   : > { %2204 = vrot.lane.b32.xlu1 %v12779_v62, %s12366_s24  ;;  %v1987_v62 = vsel %vm1315_vm9, %v12963_v54, -inf }
 0x6d5   : > { %1982 = vmax.xlane.f32.xlu0 %v1981_v33 }
 0x6d9   : > { %1985 = vmax.xlane.f32.xlu0 %v1984_v39 }
 0x6dd   : > { %1988 = vmax.xlane.f32.xlu0 %v1987_v62 }
 0x6de   : > { %1979 = vmax.xlane.f32.xlu1 %v1978_v24 }
 0x6ef   : > { %1740 = vrot.lane.b32.xlu1 %v11809_v26, %s12359_s13 }
 0x711   : > { %v1345_v27 = vpop.xlane.xlu0 %1344 }
 0x712   : > { %11896 = vrcp.f32 %v1345_v27  ;;  %v1342_v38 = vpop.xlane.xlu1 %1341 }
 0x713   : > { %11898 = vrcp.f32 %v1342_v38 }
 0x716   : > { %v1348_v25 = vpop.xlane.xlu1 %1347 }
 0x717   : > { %11900 = vrcp.f32 %v1348_v25 }
 0x71a   : > { %v1351_v41 = vpop.xlane.xlu0 %1350 }
 0x71b   : > { %11902 = vrcp.f32 %v1351_v41 }
 0x71c   : > { %v11897_v42 = vpop.eup %11896 }
 0x71d   : > { %v11899_v44 = vpop.eup %11898  ;;  %v1357_v37 = vmul.f32 %v11897_v42, %v12903_v47 }
 0x71e   : > { %v1356_v45 = vmul.f32 %v11899_v44, %v12905_v63 }
 0x720   : > { %10445 = vmatprep.mubr.msk.f32.mxu1 %vm1315_vm9, %v1356_v45 }
 0x721   : > { %v11901_v56 = vpop.eup %11900  ;;  %v1605_v40 = vpop.xlane.xlu0 %1604  ;;  %10446 = vmatmul.mubr.msk.f32.vlgmr.msra.gmra.mrb[16].mxu1 %vm1315_vm9, %v1357_v37 }
 0x722   : > { %v1602_v55 = vpop.xlane.xlu1 %1601  ;;  %v1358_v61 = vmul.f32 %v11901_v56, %v12911_v3 }
 0x723   : > { %11904 = vrcp.f32 %v1602_v55 }
 0x724   : > { %10448 = vmatprep.mubr.msk.f32.mxu1 %vm1315_vm9, %v1358_v61  ;;  %11906 = vrcp.f32 %v1605_v40 }
 0x725   : > { %v11903_v12 = vpop.eup %11902  ;;  %v1611_v0 = vpop.xlane.xlu0 %1610 }
 0x726   : > { %v1608_v4 = vpop.xlane.xlu1 %1607  ;;  %v1359_v5 = vmul.f32 %v11903_v12, %v12915_v20 }
 0x727   : > { %11908 = vrcp.f32 %v1608_v4 }
 0x728   : > { %10449 = vmatmul.mubr.msk.f32.gmra.mrb[18].mxu1 %vm1315_vm9, %v1359_v5  ;;  %11910 = vrcp.f32 %v1611_v0 }
 0x729   : > { %v11610_v47 = vpop.permute.xlu0 %11609 }
 0x72a   : > { %v11605_v63 = vpop.permute.xlu1 %11604  ;;  %v11612_v6 = vunpack.i.h.bf16 %v11610_v47  ;;  %v11611_v10 = vunpack.i.l.bf16 %v11610_v47 }
 0x72b   : > { %v11607_v14 = vunpack.i.h.bf16 %v11605_v63  ;;  %v11606_v15 = vunpack.i.l.bf16 %v11605_v63 }
 0x72c   : > { %v11242_v20 = vpack.c.bf16 %v11612_v6, %v11611_v10 }
 0x72d   : > { %v11905_v3 = vpop.eup %11904  ;;  %v11238_v8 = vpack.c.bf16 %v11607_v14, %v11606_v15  ;;  %v11810_v14 = vld [vmem:[%s14801_s5 + $0x4] ss:$60 sps:$4 sm:$0xff]  }
 0x72e   : > { %v11615_v17 = vpop.permute.xlu1 %11614  ;;  %v1616_v22 = vmul.f32 %v11905_v3, %v12921_v18  ;;  %v11907_v31 = vpop.eup %11906 }
 0x72f   : > { %v11617_v11 = vunpack.i.h.bf16 %v11615_v17  ;;  %v11616_v28 = vunpack.i.l.bf16 %v11615_v17  ;;  %11239 = vmatprep.subr.bf16.mxu1 %v11238_v8  ;;  %v1617_v18 = vmul.f32 %v11907_v31, %v12919_v23  ;;  %v2203_v23 = vpop.permute.xlu0 %2202 }
 0x730   : > { %11241 = vmatpush3.bf16.msra.mxu1 %v11238_v8  ;;  %10473 = vmatprep.mubr.msk.f32.mxu1 %vm1315_vm9, %v1616_v22 }
 0x731   : > { %v11266_v21 = vpack.c.bf16 %v11617_v11, %v11616_v28  ;;  %11243 = vmatprep.subr.bf16.mxu1 %v11242_v20  ;;  %v11909_v33 = vpop.eup %11908 }
 0x732   : > { %v11620_v32 = vpop.permute.xlu1 %11619  ;;  %v11911_v26 = vpop.eup %11910  ;;  %v1618_v38 = vmul.f32 %v11909_v33, %v12929_v30 }
 0x733   : > { %v11622_v39 = vunpack.i.h.bf16 %v11620_v32  ;;  %v11621_v62 = vunpack.i.l.bf16 %v11620_v32  ;;  %11268 = vmatprep.subr.msk.bf16.mxu0 %vm12797_vm1, %v11266_v21  ;;  %v1619_v25 = vmul.f32 %v11911_v26, %v12927_v29  ;;  %v2207_v30 = vpop.permute.xlu0 %2206 }
 0x734   : > { %11245 = vmatpush3.bf16.msra.mxu1 %v11242_v20  ;;  %11271 = vmatpush3.bf16.xpose.msk.msra.mxu0 %vm12797_vm1, %v11266_v21 }
 0x735   : > { %v11272_v24 = vpack.c.bf16 %v11622_v39, %v11621_v62 }
 0x736   : > { %v2201_v27 = vpop.permute.xlu1 %2200 }
 0x737   : > { %10474 = vmatmul.mubr.msk.f32.vlgmr.msra.gmra.mrb[20].mxu1 %vm1315_vm9, %v1617_v18  ;;  %11274 = vmatprep.subr.msk.bf16.mxu0 %vm12797_vm1, %v11272_v24 }
 0x738   : > { %10533 = vmatprep.mubr.msk.f32.mxu0 %vm801_vm11, %v2201_v27  ;;  %10476 = vmatprep.mubr.msk.f32.mxu1 %vm1315_vm9, %v1618_v38 }
 0x73a   : > { %v2205_v41 = vpop.permute.xlu1 %2204 }
 0x73b   : > { %10477 = vmatmul.mubr.msk.f32.gmra.mrb[22].mxu1 %vm1315_vm9, %v1619_v25 }
 0x73c   : > { %11277 = vmatpush3.bf16.xpose.msk.msra.mxu0 %vm12797_vm1, %v11272_v24 }
 0x743   : > { %10534 = vmatmul.mubr.msk.f32.vlgmr.msra.gmra.mrb[20].mxu0 %vm801_vm11, %v2203_v23 }
 0x744   : > { %10536 = vmatprep.mubr.msk.f32.mxu0 %vm801_vm11, %v2205_v41 }
 0x747   : > { %10537 = vmatmul.mubr.msk.f32.gmra.mrb[22].mxu0 %vm801_vm11, %v2207_v30 }
 0x762   : > { %v1983_v42 = vpop.xlane.xlu0 %1982 }
 0x763   : > { %v1991_v44 = vsub.f32 %v12953_v34, %v1983_v42 }
 0x765   : > { %v1996_v45 = vmul.f32 1.442695, %v1991_v44 }
 0x766   : > { %v1986_v37 = vpop.xlane.xlu0 %1985 }
 0x767   : > { %11912 = vpow2.f32 %v1996_v45  ;;  %v1992_v29 = vsub.f32 %v12957_v16, %v1986_v37 }
 0x769   : > { %v1998_v12 = vmul.f32 1.442695, %v1992_v29 }
 0x76a   : > { %v1989_v56 = vpop.xlane.xlu0 %1988 }
 0x76b   : > { %v1993_v40 = vsub.f32 %v12963_v54, %v1989_v56  ;;  %v1980_v55 = vpop.xlane.xlu1 %1979 }
 0x76c   : > { %v1990_v61 = vsub.f32 %v12969_v60, %v1980_v55 }
 0x76d   : > { %v2000_v0 = vmul.f32 1.442695, %v1993_v40 }
 0x76e   : > { %v1994_v4 = vmul.f32 1.442695, %v1990_v61 }
 0x76f   : > { %11914 = vpow2.f32 %v2000_v0  ;;  %v1741_v10 = vpop.permute.xlu1 %1740 }
 0x770   : > { %11916 = vpow2.f32 %v1994_v4  ;;  %10479 = vmatprep.subr.bf16.mxu1 %v1741_v10 }
 0x771   : > { %v13011_v5 = vpop.eup %11912  ;;  %11918 = vpow2.f32 %v1998_v12  ;;  %10480 = vmatpush3.bf16.msra.mxu1 %v1741_v10 }
 0x772   : > { %v2005_v34 = vsel %vm1315_vm9, %v13011_v5, 0.0 }
 0x773   : > { %2006 = vadd.xlane.f32.xlu0 %v2005_v34 }
 0x779   : > { %v13015_v47 = vpop.eup %11914 }
 0x77a   : > { %v13017_v16 = vpop.eup %11916  ;;  %v2011_v54 = vsel %vm1315_vm9, %v13015_v47, 0.0 }
 0x77b   : > { %v13021_v60 = vpop.eup %11918  ;;  %2012 = vadd.xlane.f32.xlu0 %v2011_v54  ;;  %v2002_v63 = vsel %vm1315_vm9, %v13017_v16, 0.0 }
 0x77c   : > { %2003 = vadd.xlane.f32.xlu1 %v2002_v63  ;;  %v2008_v6 = vsel %vm1315_vm9, %v13021_v60, 0.0 }
 0x77f   : > { %2009 = vadd.xlane.f32.xlu0 %v2008_v6 }
 0x78d   : > { %11624 = vrot.lane.b32.xlu1 %v12715_v7, %s12363_s22 }
 0x791   : > { %11629 = vrot.lane.b32.xlu1 %v12725_v19, %s12363_s22 }
 0x795   : > { %1803 = vrot.lane.b32.xlu0 %v11810_v14, %s12359_s13 }
 0x7f4   : > { %v10447_v15 = vpop.f32.mrb[16].mxu1 }
 0x7f5   : > { %v1438_v3 = vpop.f32.mrb[17].mxu1 }
 0x7f6   : > { %v1457_v8 = vpack.c.bf16 %v10447_v15, %v1438_v3 }
 0x7fb   : > { %v10450_v17 = vpop.f32.mrb[18].mxu1 }
 0x7fc   : > { %v1448_v22 = vpop.f32.mrb[19].mxu1 }
 0x7fd   : > { %v1458_v11 = vpack.c.bf16 %v10450_v17, %v1448_v22 }
 0x800   : > { %v2007_v28 = vpop.xlane.xlu0 %2006 }
 0x808   : > { %v2013_v20 = vpop.xlane.xlu0 %2012 }
 0x809   : > { %v2004_v21 = vpop.xlane.xlu1 %2003 }
 0x80a   : > { %v10475_v31 = vpop.f32.mrb[20].mxu1  ;;  %11920 = vrcp.f32 %v2004_v21 }
 0x80b   : > { %v1714_v32 = vpop.f32.mrb[21].mxu1  ;;  %11922 = vrcp.f32 %v2007_v28 }
 0x80c   : > { %v1733_v33 = vpack.c.bf16 %v10475_v31, %v1714_v32  ;;  %v2010_v39 = vpop.xlane.xlu0 %2009 }
 0x80d   : > { %v11625_v62 = vpop.permute.xlu1 %11624  ;;  %11924 = vrcp.f32 %v2010_v39 }
 0x80e   : > { %v11627_v18 = vunpack.i.h.bf16 %v11625_v62  ;;  %v11626_v24 = vunpack.i.l.bf16 %v11625_v62  ;;  %v10478_v26 = vpop.f32.mrb[22].mxu1  ;;  %10481 = vmatprep.mubr.msk.bf16.mxu1 %vm801_vm11, %v1733_v33  ;;  %11926 = vrcp.f32 %v2013_v20 }
 0x80f   : > { %v1724_v27 = vpop.f32.mrb[23].mxu1 }
 0x810   : > { %v1734_v38 = vpack.c.bf16 %v10478_v26, %v1724_v27  ;;  %v1804_v25 = vpop.permute.xlu0 %1803  ;;  %v11258_v23 = vpack.c.bf16 %v11627_v18, %v11626_v24 }
 0x811   : > { %10485 = vmatprep.subr.bf16.mxu1 %v1804_v25  ;;  %v11630_v30 = vpop.permute.xlu1 %11629 }
 0x812   : > { %10482 = vmatmul.mubr.msk.bf16.vlgmr.msra.gmra.mrb[24].mxu1 %vm801_vm11, %v1734_v38  ;;  %v11632_v29 = vunpack.i.h.bf16 %v11630_v30  ;;  %v11631_v56 = vunpack.i.l.bf16 %v11630_v30  ;;  %v11812_v30 = vld [vmem:[%s14801_s5 + $0x16c] ss:$60 sps:$4 sm:$0xff]  }
 0x813   : > { %10486 = vmatpush3.bf16.msra.mxu1 %v1804_v25  ;;  %10487 = vmatprep.mubr.msk.bf16.mxu1 %vm801_vm11, %v1457_v8 }
 0x814   : > { %11259 = vmatprep.subr.bf16.mxu1 %v11258_v23  ;;  %v11921_v61 = vpop.eup %11920  ;;  %v11262_v63 = vpack.c.bf16 %v11632_v29, %v11631_v56 }
 0x815   : > { %v2018_v6 = vmul.f32 %v11921_v61, %v13017_v16  ;;  %v11923_v10 = vpop.eup %11922  ;;  %v11811_v16 = vld [vmem:[%s14801_s5 + $0xf4] ss:$60 sps:$4 sm:$0xff]  }
 0x816   : > { %v10535_v41 = vpop.f32.mrb[20].mxu0  ;;  %v2019_v15 = vmul.f32 %v11923_v10, %v13011_v5 }
 0x817   : > { %v2304_v42 = vadd.f32 %v10535_v41, %v12861_v51  ;;  %v2298_v44 = vpop.f32.mrb[21].mxu0  ;;  %v11925_v14 = vpop.eup %11924 }
 0x818   : > { %v2299_v45 = vadd.f32 %v2298_v44, %v12864_v36  ;;  %v11927_v3 = vpop.eup %11926  ;;  %v2020_v8 = vmul.f32 %v11925_v14, %v13021_v60 }
 0x819   : > { %v2320_v37 = vsel %vm1315_vm9, %v2304_v42, -inf  ;;  %v2021_v17 = vmul.f32 %v11927_v3, %v13015_v47 }
 0x81a   : > { %2321 = vmax.xlane.f32.xlu0 %v2320_v37  ;;  %v10538_v40 = vpop.f32.mrb[22].mxu0  ;;  %v2317_v55 = vsel %vm1315_vm9, %v2299_v45, -inf }
 0x81b   : > { %v2314_v12 = vadd.f32 %v10538_v40, %v12881_v9  ;;  %v2308_v0 = vpop.f32.mrb[23].mxu0  ;;  %2318 = vmax.xlane.f32.xlu1 %v2317_v55 }
 0x81c   : > { %v2309_v4 = vadd.f32 %v2308_v0, %v12876_v53 }
 0x81d   : > { %v2326_v34 = vsel %vm1315_vm9, %v2314_v12, -inf }
 0x81e   : > { %2327 = vmax.xlane.f32.xlu0 %v2326_v34  ;;  %10488 = vmatmul.mubr.msk.bf16.vlgmr.msra.gmra.mrb[24].mxu1 %vm801_vm11, %v1458_v11  ;;  %v2323_v54 = vsel %vm1315_vm9, %v2309_v4, -inf }
 0x81f   : > { %11261 = vmatpush3.bf16.msra.mxu1 %v11258_v23  ;;  %2324 = vmax.xlane.f32.xlu1 %v2323_v54 }
 0x820   : > { %11263 = vmatprep.subr.bf16.mxu1 %v11262_v63  ;;  %10513 = vmatprep.mubr.msk.f32.mxu1 %vm1315_vm9, %v2018_v6 }
 0x823   : > { %11265 = vmatpush3.bf16.msra.mxu1 %v11262_v63 }
 0x826   : > { %10514 = vmatmul.mubr.msk.f32.vlgmr.msra.gmra.mrb[28].mxu1 %vm1315_vm9, %v2019_v15 }
 0x827   : > { %10516 = vmatprep.mubr.msk.f32.mxu1 %vm1315_vm9, %v2020_v8 }
 0x82a   : > { %10517 = vmatmul.mubr.msk.f32.gmra.mrb[30].mxu1 %vm1315_vm9, %v2021_v17 }
 0x830   : > { %2138 = vrot.lane.b32.xlu1 %v11811_v16, %s12359_s13 }
 0x8a7   : > { %v2322_v22 = vpop.xlane.xlu0 %2321 }
 0x8a8   : > { %v2330_v11 = vsub.f32 %v2304_v42, %v2322_v22  ;;  %v2319_v5 = vpop.xlane.xlu1 %2318 }
 0x8a9   : > { %v2329_v28 = vsub.f32 %v2299_v45, %v2319_v5 }
 0x8aa   : > { %v2335_v20 = vmul.f32 1.442695, %v2330_v11 }
 0x8ab   : > { %v2333_v60 = vmul.f32 1.442695, %v2329_v28  ;;  %v2328_v21 = vpop.xlane.xlu0 %2327 }
 0x8ac   : > { %11928 = vpow2.f32 %v2335_v20  ;;  %v2332_v31 = vsub.f32 %v2314_v12, %v2328_v21  ;;  %v2325_v32 = vpop.xlane.xlu1 %2324 }
 0x8ad   : > { %11930 = vpow2.f32 %v2333_v60  ;;  %v2331_v47 = vsub.f32 %v2309_v4, %v2325_v32  ;;  %v2539_v32 = vld [vmem:[%s14800_s4 + $0x17] ss:$0 sm:$0xff] }
 0x8ae   : > { %v2339_v33 = vmul.f32 1.442695, %v2332_v31 }
 0x8af   : > { %v2337_v39 = vmul.f32 1.442695, %v2331_v47 }
 0x8b0   : > { %11932 = vpow2.f32 %v2339_v33  ;;  %v2139_v62 = vpop.permute.xlu1 %2138  ;;  %v2544_v33 = vld [vmem:[%s14800_s4 + $0x20] ss:$0 sm:$0xff] }
 0x8b1   : > { %11934 = vpow2.f32 %v2337_v39  ;;  %10519 = vmatprep.subr.bf16.mxu1 %v2139_v62 }
 0x8b2   : > { %10520 = vmatpush3.bf16.msra.mxu1 %v2139_v62 }
 0x8b6   : > { %v11929_v18 = vpop.eup %11928 }
 0x8b7   : > { %v11931_v24 = vpop.eup %11930  ;;  %v2344_v26 = vsel %vm1315_vm9, %v11929_v18, 0.0 }
 0x8b8   : > { %2345 = vadd.xlane.f32.xlu0 %v2344_v26  ;;  %v2341_v27 = vsel %vm1315_vm9, %v11931_v24, 0.0 }
 0x8b9   : > { %2342 = vadd.xlane.f32.xlu1 %v2341_v27 }
 0x8ba   : > { %v11933_v38 = vpop.eup %11932 }
 0x8bb   : > { %v11935_v25 = vpop.eup %11934  ;;  %v2350_v23 = vsel %vm1315_vm9, %v11933_v38, 0.0 }
 0x8bc   : > { %2351 = vadd.xlane.f32.xlu0 %v2350_v23  ;;  %v2347_v41 = vsel %vm1315_vm9, %v11935_v25, 0.0 }
 0x8bd   : > { %2348 = vadd.xlane.f32.xlu1 %v2347_v41 }
 0x8ce   : > { %11639 = vrot.lane.b32.xlu1 %v12725_v19, %s12366_s24 }
 0x8d2   : > { %11634 = vrot.lane.b32.xlu0 %v12715_v7, %s12366_s24  ;;  %2477 = vrot.lane.b32.xlu1 %v11812_v30, %s12359_s13 }
 0x8f9   : > { %v10515_v42 = vpop.f32.mrb[28].mxu1 }
 0x8fa   : > { %v2112_v44 = vpop.f32.mrb[29].mxu1 }
 0x8fb   : > { %v2131_v45 = vpack.c.bf16 %v10515_v42, %v2112_v44 }
 0x8fd   : > { %v10518_v37 = vpop.f32.mrb[30].mxu1  ;;  %10521 = vmatprep.mubr.msk.bf16.mxu1 %vm801_vm11, %v2131_v45 }
 0x8fe   : > { %v2122_v29 = vpop.f32.mrb[31].mxu1 }
 0x8ff   : > { %v2132_v56 = vpack.c.bf16 %v10518_v37, %v2122_v29 }
 0x901   : > { %10522 = vmatmul.mubr.msk.bf16.vlgmr.msra.gmra.mrb[24].mxu1 %vm801_vm11, %v2132_v56 }
 0x945   : > { %v2346_v19 = vpop.xlane.xlu0 %2345 }
 0x946   : > { %v2343_v40 = vpop.xlane.xlu1 %2342 }
 0x947   : > { %11936 = vrcp.f32 %v2343_v40 }
 0x948   : > { %11938 = vrcp.f32 %v2346_v19 }
 0x949   : > { %v2352_v7 = vpop.xlane.xlu0 %2351 }
 0x94a   : > { %v2349_v55 = vpop.xlane.xlu1 %2348 }
 0x94b   : > { %11940 = vrcp.f32 %v2349_v55  ;;  %v11814_v55 = vld [vmem:[%s14801_s5 + $0x80] ss:$60 sps:$4 sm:$0xff]  }
 0x94c   : > { %11942 = vrcp.f32 %v2352_v7 }
 0x94d   : > { %v11635_v61 = vpop.permute.xlu0 %11634 }
 0x94e   : > { %v11637_v12 = vunpack.i.h.bf16 %v11635_v61  ;;  %v11636_v0 = vunpack.i.l.bf16 %v11635_v61  ;;  %v11640_v4 = vpop.permute.xlu1 %11639  ;;  %v11815_v61 = vld [vmem:[%s14801_s5 + $0xf8] ss:$60 sps:$4 sm:$0xff]  }
 0x94f   : > { %v11642_v34 = vunpack.i.h.bf16 %v11640_v4  ;;  %v11641_v54 = vunpack.i.l.bf16 %v11640_v4 }
 0x950   : > { %v11278_v63 = vpack.c.bf16 %v11637_v12, %v11636_v0  ;;  %v11816_v12 = vld [vmem:[%s14801_s5 + $0x170] ss:$60 sps:$4 sm:$0xff]  }
 0x951   : > { %v11937_v6 = vpop.eup %11936  ;;  %v11282_v10 = vpack.c.bf16 %v11642_v34, %v11641_v54 }
 0x952   : > { %11279 = vmatprep.subr.bf16.mxu1 %v11278_v63  ;;  %v2357_v14 = vmul.f32 %v11937_v6, %v11931_v24  ;;  %v11939_v15 = vpop.eup %11938  ;;  %v2478_v11 = vpop.permute.xlu1 %2477 }
 0x953   : > { %11281 = vmatpush3.bf16.msra.mxu1 %v11278_v63  ;;  %v2358_v8 = vmul.f32 %v11939_v15, %v11929_v18 }
 0x954   : > { %11283 = vmatprep.subr.bf16.mxu1 %v11282_v10  ;;  %10547 = vmatprep.mubr.msk.f32.mxu1 %vm1315_vm9, %v2357_v14 }
 0x955   : > { %v11941_v3 = vpop.eup %11940 }
 0x956   : > { %v11943_v17 = vpop.eup %11942  ;;  %v2359_v16 = vmul.f32 %v11941_v3, %v11935_v25 }
 0x957   : > { %11285 = vmatpush3.bf16.msra.mxu1 %v11282_v10  ;;  %v2360_v22 = vmul.f32 %v11943_v17, %v11933_v38 }
 0x958   : > { %10553 = vmatprep.subr.bf16.mxu1 %v2478_v11 }
 0x95a   : > { %10548 = vmatmul.mubr.msk.f32.vlgmr.msra.gmra.mrb[32].mxu1 %vm1315_vm9, %v2358_v8 }
 0x95b   : > { %10550 = vmatprep.mubr.msk.f32.mxu1 %vm1315_vm9, %v2359_v16  ;;  %10554 = vmatpush3.bf16.msra.mxu1 %v2478_v11 }
 0x95e   : > { %10551 = vmatmul.mubr.msk.f32.gmra.mrb[34].mxu1 %vm1315_vm9, %v2360_v22 }
 0xa2d   : > { %v10549_v5 = vpop.f32.mrb[32].mxu1 }
 0xa2e   : > { %v2451_v28 = vpop.f32.mrb[33].mxu1 }
 0xa2f   : > { %v2470_v20 = vpack.c.bf16 %v10549_v5, %v2451_v28  ;;  %v2553_v28 = vld [vmem:[%s14800_s4 + $0x21] ss:$0 sm:$0xff] }
 0xa31   : > { %v10552_v60 = vpop.f32.mrb[34].mxu1  ;;  %10555 = vmatprep.mubr.msk.bf16.mxu1 %vm801_vm11, %v2470_v20 }
 0xa32   : > { %v2461_v21 = vpop.f32.mrb[35].mxu1 }
 0xa33   : > { %v2471_v31 = vpack.c.bf16 %v10552_v60, %v2461_v21 }
 0xa35   : > { %10556 = vmatmul.mubr.msk.bf16.vlgmr.msra.gmra.mrb[24].mxu1 %vm801_vm11, %v2471_v31 }
 0xb08   : > { %v10557_v47 = vpop.f32.mrb[24].mxu1 }
 0xb09   : > { %v2542_v39 = vadd.f32 %v10557_v47, %v2539_v32  ;;  %v2520_v62 = vpop.f32.mrb[25].mxu1 }
 0xb0a   : > { %v2540_v18 = vadd.f32 %v2539_v32, %v2520_v62  ;;  %v10558_v24 = vpop.f32.mrb[26].mxu1 }
 0xb0b   : > { %v2547_v26 = vmul.f32 %v2544_v33, %v2542_v39  ;;  %v2543_v27 = vadd.f32 %v10558_v24, %v2539_v32  ;;  %v2523_v38 = vpop.f32.mrb[27].mxu1  ;;  %v11817_v24 = vld [vmem:[%s14802_s6] ss:$12 sps:$4 sm:$0xff]  }
 0xb0c   : > { %v2545_v25 = vmul.f32 %v2544_v33, %v2540_v18  ;;  %v2541_v23 = vadd.f32 %v2539_v32, %v2523_v38  ;;  %10571 = vmatprep.subr.bf16.mxu1 %v11817_v24  ;;  %v11820_v38 = vld [vmem:[%s14802_s6 + $0x48] ss:$12 sps:$4 sm:$0xff]  }
 0xb0d   : > { %v13086_v41 = vadd.f32 %v2547_v26, %v12650_v59  ;;  %v2548_v30 = vmul.f32 %v2544_v33, %v2543_v27  ;;  %10572 = vmatpush3.bf16.msra.mxu1 %v11817_v24  ;;  %v11818_v26 = vld [vmem:[%s14802_s6 + $0x18] ss:$12 sps:$4 sm:$0xff]   ;;  %v11819_v27 = vld [vmem:[%s14802_s6 + $0x30] ss:$12 sps:$4 sm:$0xff]  }
 0xb0e   : > { %v13089_v42 = vadd.f32 %v2545_v25, %v12644_v49  ;;  %v2546_v44 = vmul.f32 %v2544_v33, %v2541_v23  ;;  %10573 = vmatprep.subr.bf16.mxu1 %v11818_v26  ;;  %v11821_v25 = vld [vmem:[%s14802_s6 + $0x60] ss:$12 sps:$4 sm:$0xff]   ;;  %v11822_v23 = vld [vmem:[%s14802_s6 + $0x78] ss:$12 sps:$4 sm:$0xff]  }
 0xb0f   : > { %v2556_v45 = vmul.f32 %v13086_v41, %v13086_v41  ;;  %v13099_v56 = vadd.f32 %v2548_v30, %v12648_v58  ;;  %v11813_v58 = vld [vmem:[%s14801_s5 + $0x8] ss:$60 sps:$4 sm:$0xff]   ;;  %v11823_v30 = vld [vmem:[%s14802_s6 + $0x90] ss:$12 sps:$4 sm:$0xff]  }
 0xb10   : > { %v13094_v37 = vadd.f32 %v2546_v44, %v12642_v48  ;;  %v2554_v29 = vmul.f32 %v13089_v42, %v13089_v42  ;;  %10559 = vmatprep.subr.bf16.mxu0 %v11813_v58  ;;  %v11824_v44 = vld [vmem:[%s14802_s6 + $0xa8] ss:$12 sps:$4 sm:$0xff]  }
 0xb11   : > { %v2564_v59 = vsel %vm940_vm15, %v2556_v45, 0.0  ;;  %v2557_v48 = vmul.f32 %v13099_v56, %v13099_v56  ;;  %10560 = vmatpush3.bf16.msra.mxu0 %v11813_v58  ;;  %10574 = vmatpush3.bf16.msra.mxu1 %v11818_v26  ;;  %v2600_v45 = vld [vmem:[%s14800_s4 + $0x22] ss:$0 sm:$0xff] }
 0xb12   : > { %2565 = vadd.xlane.f32.xlu0 %v2564_v59  ;;  %v2558_v19 = vsel %vm940_vm15, %v2554_v29, 0.0  ;;  %v2555_v49 = vmul.f32 %v13094_v37, %v13094_v37  ;;  %10561 = vmatprep.subr.bf16.mxu0 %v11814_v55 }
 0xb13   : > { %2559 = vadd.xlane.f32.xlu1 %v2558_v19  ;;  %v2567_v7 = vsel %vm940_vm15, %v2557_v48, 0.0  ;;  %10575 = vmatprep.subr.bf16.mxu1 %v11819_v27 }
 0xb14   : > { %v2561_v40 = vsel %vm940_vm15, %v2555_v49, 0.0 }
 0xb15   : > { %10562 = vmatpush3.bf16.msra.mxu0 %v11814_v55  ;;  %10576 = vmatpush3.bf16.msra.mxu1 %v11819_v27 }
 0xb16   : > { %2562 = vadd.xlane.f32.xlu0 %v2561_v40  ;;  %10563 = vmatprep.subr.bf16.mxu0 %v11815_v61 }
 0xb17   : > { %10577 = vmatprep.subr.bf16.mxu1 %v11820_v38 }
 0xb19   : > { %10564 = vmatpush3.bf16.msra.mxu0 %v11815_v61  ;;  %10578 = vmatpush3.bf16.msra.mxu1 %v11820_v38 }
 0xb1a   : > { %2568 = vadd.xlane.f32.xlu0 %v2567_v7  ;;  %10565 = vmatprep.subr.bf16.mxu0 %v11816_v12 }
 0xb1b   : > { %10579 = vmatprep.subr.bf16.mxu1 %v11821_v25 }
 0xb1d   : > { %10566 = vmatpush3.bf16.msra.mxu0 %v11816_v12  ;;  %10580 = vmatpush3.bf16.msra.mxu1 %v11821_v25 }
 0xb1e   : > { %10581 = vmatprep.subr.bf16.mxu1 %v11822_v23 }
 0xb21   : > { %10582 = vmatpush3.bf16.msra.mxu1 %v11822_v23 }
 0xb22   : > { %10583 = vmatprep.subr.bf16.mxu1 %v11823_v30 }
 0xb25   : > { %10584 = vmatpush3.bf16.msra.mxu1 %v11823_v30 }
 0xb26   : > { %10585 = vmatprep.subr.bf16.mxu1 %v11824_v44 }
 0xb29   : > { %10586 = vmatpush3.bf16.msra.mxu1 %v11824_v44 }
 0xb9f   : > { %v2566_v0 = vpop.xlane.xlu0 %2565 }
 0xba0   : > { %v2572_v4 = vmul.f32 0.015625, %v2566_v0  ;;  %v2560_v34 = vpop.xlane.xlu1 %2559 }
 0xba1   : > { %v2570_v54 = vmul.f32 0.015625, %v2560_v34 }
 0xba2   : > { %v2576_v63 = vadd.f32 1e-06, %v2572_v4 }
 0xba3   : > { %v2574_v6 = vadd.f32 1e-06, %v2570_v54  ;;  %v2563_v10 = vpop.xlane.xlu0 %2562 }
 0xba4   : > { %v2571_v14 = vmul.f32 0.015625, %v2563_v10 }
 0xba5   : > { %11944 = vrsqrt.f32 %v2574_v6 }
 0xba6   : > { %v2575_v15 = vadd.f32 1e-06, %v2571_v14  ;;  %11946 = vrsqrt.f32 %v2576_v63 }
 0xba7   : > { %v2569_v3 = vpop.xlane.xlu0 %2568 }
 0xba8   : > { %11948 = vrsqrt.f32 %v2575_v15  ;;  %v2573_v8 = vmul.f32 0.015625, %v2569_v3 }
 0xbaa   : > { %v2577_v17 = vadd.f32 1e-06, %v2573_v8 }
 0xbac   : > { %11950 = vrsqrt.f32 %v2577_v17 }
 0xbaf   : > { %v11945_v16 = vpop.eup %11944 }
 0xbb0   : > { %v11947_v22 = vpop.eup %11946  ;;  %v2582_v11 = vmul.f32 %v11945_v16, %v13089_v42 }
 0xbb1   : > { %v2584_v60 = vmul.f32 %v11947_v22, %v13086_v41 }
 0xbb2   : > { %v11949_v5 = vpop.eup %11948  ;;  %v2586_v21 = vmul.f32 %v2582_v11, %v2553_v28 }
 0xbb3   : > { %v2583_v20 = vmul.f32 %v11949_v5, %v13094_v37  ;;  %v2588_v39 = vmul.f32 %v2584_v60, %v2553_v28 }
 0xbb5   : > { %v2587_v31 = vmul.f32 %v2583_v20, %v2553_v28 }
 0xbb6   : > { %v11951_v32 = vpop.eup %11950 }
 0xbb7   : > { %v2585_v47 = vmul.f32 %v11951_v32, %v13099_v56  ;;  %v2598_v33 = vpack.c.bf16 %v2587_v31, %v2586_v21 }
 0xbb9   : > { %v2589_v62 = vmul.f32 %v2585_v47, %v2553_v28  ;;  %10567 = vmatprep.mubr.msk.bf16.mxu0 %vm940_vm15, %v2598_v33 }
 0xbbb   : > { %v2599_v18 = vpack.c.bf16 %v2589_v62, %v2588_v39 }
 0xbbd   : > { %10568 = vmatmul.mubr.msk.bf16.vlgmr.msra.gmra.mrb[24].mxu0 %vm940_vm15, %v2599_v18 }
 0xbbe   : > { %2979 = vmatprep.mubr.bf16.mxu0 %v12358_v13 }
 0xc90   : > { %v10569_v29 = vpop.f32.mrb[24].mxu0 }
 0xc91   : > { %v2674_v59 = vadd.f32 %v10569_v29, %v2600_v45  ;;  %v2665_v19 = vpop.f32.mrb[25].mxu0 }
 0xc92   : > { %v2666_v49 = vadd.f32 %v2665_v19, %v2600_v45  ;;  %v10570_v40 = vpop.f32.mrb[26].mxu0  ;;  %v2832_v19 = vld [vmem:[%s14800_s4 + $0x24] ss:$0 sm:$0xff] }
 0xc93   : > { %v2682_v48 = vmul.f32 %v2674_v59, %v2674_v59  ;;  %v2677_v7 = vadd.f32 %v10570_v40, %v2600_v45  ;;  %v2668_v58 = vpop.f32.mrb[27].mxu0 }
 0xc94   : > { %v2680_v55 = vmul.f32 %v2666_v49, %v2666_v49  ;;  %v2669_v61 = vadd.f32 %v2668_v58, %v2600_v45  ;;  %v2734_v45 = vld [vmem:[%s14800_s4 + $0x23] ss:$0 sm:$0xff] }
 0xc95   : > { %v2686_v12 = vmul.f32 %v2682_v48, %v2674_v59  ;;  %v2683_v0 = vmul.f32 %v2677_v7, %v2677_v7 }
 0xc96   : > { %v2684_v4 = vmul.f32 %v2680_v55, %v2666_v49  ;;  %v2681_v34 = vmul.f32 %v2669_v61, %v2669_v61 }
 0xc97   : > { %v2690_v54 = vmul.f32 0.044715, %v2686_v12  ;;  %v2687_v63 = vmul.f32 %v2683_v0, %v2677_v7 }
 0xc98   : > { %v2688_v6 = vmul.f32 0.044715, %v2684_v4  ;;  %v2685_v10 = vmul.f32 %v2681_v34, %v2669_v61 }
 0xc99   : > { %v2694_v14 = vadd.f32 %v2690_v54, %v2674_v59  ;;  %v2691_v15 = vmul.f32 0.044715, %v2687_v63 }
 0xc9a   : > { %v2692_v3 = vadd.f32 %v2688_v6, %v2666_v49  ;;  %v2689_v8 = vmul.f32 0.044715, %v2685_v10 }
 0xc9b   : > { %v2698_v17 = vmul.f32 0.7978846, %v2694_v14  ;;  %v2695_v16 = vadd.f32 %v2691_v15, %v2677_v7 }
 0xc9c   : > { %v2696_v22 = vmul.f32 0.7978846, %v2692_v3  ;;  %v2693_v11 = vadd.f32 %v2689_v8, %v2669_v61  ;;  %v11827_v8 = vld [vmem:[%s14801_s5 + $0x10] ss:$60 sps:$4 sm:$0xff]  }
 0xc9d   : > { %11952 = vtanh.f32 %v2698_v17  ;;  %v2699_v5 = vmul.f32 0.7978846, %v2695_v16  ;;  %v11825_v17 = vld [vmem:[%s14801_s5 + $0xc] ss:$60 sps:$4 sm:$0xff]   ;;  %2947 = vmatprep.subr.bf16.mxu0 %v11827_v8 }
 0xc9e   : > { %11954 = vtanh.f32 %v2696_v22  ;;  %v2697_v28 = vmul.f32 0.7978846, %v2693_v11  ;;  %2948 = vmatpush1.bf16.msra.mxu0 %v11825_v17  ;;  %v11830_v16 = vld [vmem:[%s14801_s5 + $0x88] ss:$60 sps:$4 sm:$0xff]   ;;  %v11833_v11 = vld [vmem:[%s14801_s5 + $0x100] ss:$60 sps:$4 sm:$0xff]  }
 0xc9f   : > { %11956 = vtanh.f32 %v2699_v5  ;;  %v11828_v22 = vld [vmem:[%s14801_s5 + $0x84] ss:$60 sps:$4 sm:$0xff]   ;;  %2949 = vmatprep.subr.bf16.mxu0 %v11830_v16  ;;  %v11831_v5 = vld [vmem:[%s14801_s5 + $0xfc] ss:$60 sps:$4 sm:$0xff]  }
 0xca0   : > { %11958 = vtanh.f32 %v2697_v28  ;;  %v11834_v28 = vld [vmem:[%s14801_s5 + $0x174] ss:$60 sps:$4 sm:$0xff]  }
 0xca2   : > { %2950 = vmatpush1.bf16.msra.mxu0 %v11828_v22 }
 0xca3   : > { %2951 = vmatprep.subr.bf16.mxu0 %v11833_v11 }
 0xca6   : > { %2952 = vmatpush1.bf16.msra.mxu0 %v11831_v5 }
 0xca7   : > { %v11953_v20 = vpop.eup %11952 }
 0xca8   : > { %v11955_v60 = vpop.eup %11954  ;;  %v2706_v21 = vadd.f32 1.0, %v11953_v20  ;;  %v11836_v20 = vld [vmem:[%s14801_s5 + $0x178] ss:$60 sps:$4 sm:$0xff]  }
 0xca9   : > { %v11957_v31 = vpop.eup %11956  ;;  %v2704_v32 = vadd.f32 1.0, %v11955_v60  ;;  %2953 = vmatprep.subr.bf16.mxu0 %v11836_v20 }
 0xcaa   : > { %v11959_v47 = vpop.eup %11958  ;;  %v2710_v33 = vmul.f32 0.5, %v2706_v21  ;;  %v2707_v39 = vadd.f32 1.0, %v11957_v31  ;;  %2954 = vmatpush1.bf16.msra.mxu0 %v11834_v28 }
 0xcab   : > { %v2705_v62 = vadd.f32 1.0, %v11959_v47  ;;  %v2708_v18 = vmul.f32 0.5, %v2704_v32 }
 0xcac   : > { %v2711_v24 = vmul.f32 0.5, %v2707_v39  ;;  %v2714_v27 = vmul.f32 %v2710_v33, %v2674_v59 }
 0xcad   : > { %v2709_v26 = vmul.f32 0.5, %v2705_v62  ;;  %v2712_v25 = vmul.f32 %v2708_v18, %v2666_v49 }
 0xcae   : > { %v2715_v38 = vmul.f32 %v2711_v24, %v2677_v7 }
 0xcaf   : > { %v2713_v23 = vmul.f32 %v2709_v26, %v2669_v61 }
 0xcb0   : > { %v2733_v30 = vpack.c.bf16 %v2715_v38, %v2714_v27 }
 0xcb1   : > { %v2732_v44 = vpack.c.bf16 %v2713_v23, %v2712_v25 }
 0xcb3   : > { %10587 = vmatprep.mubr.bf16.mxu1 %v2732_v44 }
 0xcb4   : > { %10588 = vmatmul.mubr.bf16.vlgmr.msra.gmra.mrb[36].mxu1 %v2733_v30  ;;  %v2841_v30 = vld [vmem:[%s14800_s4 + $0x25] ss:$0 sm:$0xff] }
 0xd87   : > { %v10589_v29 = vpop.f32.mrb[36].mxu1 }
 0xd88   : > { %v2826_v40 = vadd.f32 %v10589_v29, %v2734_v45  ;;  %v2817_v48 = vpop.f32.mrb[37].mxu1 }
 0xd89   : > { %v2818_v58 = vadd.f32 %v2817_v48, %v2734_v45  ;;  %v10590_v59 = vpop.f32.mrb[38].mxu1 }
 0xd8a   : > { %v2835_v7 = vmul.f32 %v2832_v19, %v2826_v40  ;;  %v2829_v49 = vadd.f32 %v10590_v59, %v2734_v45  ;;  %v2820_v55 = vpop.f32.mrb[39].mxu1 }
 0xd8b   : > { %v2833_v61 = vmul.f32 %v2832_v19, %v2818_v58  ;;  %v2821_v12 = vadd.f32 %v2820_v55, %v2734_v45 }
 0xd8c   : > { %v2836_v0 = vmul.f32 %v2832_v19, %v2829_v49  ;;  %v13165_v4 = vadd.f32 %v2835_v7, %v13086_v41 }
 0xd8d   : > { %v13168_v34 = vadd.f32 %v2833_v61, %v13089_v42  ;;  %v2834_v54 = vmul.f32 %v2832_v19, %v2821_v12  ;;  %v9691_v61 = vld [vmem:[%s14800_s4 + $0x26] ss:$8 sm:$0x3] }
 0xd8e   : > { %v13171_v63 = vadd.f32 %v2836_v0, %v13099_v56  ;;  %v2844_v41 = vmul.f32 %v13165_v4, %v13165_v4  ;;  %v2894_v12 = vrot.slane %v9691_v61, %v989_v46 }
 0xd8f   : > { %v13174_v6 = vadd.f32 %v2834_v54, %v13094_v37  ;;  %v2842_v10 = vmul.f32 %v13168_v34, %v13168_v34  ;;  %v2898_v54 = vrot.slane %v9691_v61, %v993_v50 }
 0xd90   : > { %v2845_v56 = vmul.f32 %v13171_v63, %v13171_v63  ;;  %v2852_v37 = vsel %vm940_vm15, %v2844_v41, 0.0 }
 0xd91   : > { %v2846_v14 = vsel %vm940_vm15, %v2842_v10, 0.0  ;;  %v2843_v15 = vmul.f32 %v13174_v6, %v13174_v6 }
 0xd92   : > { %2847 = vadd.xlane.f32.xlu1 %v2846_v14  ;;  %v2855_v3 = vsel %vm940_vm15, %v2845_v56, 0.0 }
 0xd93   : > { %v2849_v42 = vsel %vm940_vm15, %v2843_v15, 0.0 }
 0xd94   : > { %2850 = vadd.xlane.f32.xlu0 %v2849_v42 }
 0xd96   : > { %2853 = vadd.xlane.f32.xlu1 %v2852_v37 }
 0xd98   : > { %2856 = vadd.xlane.f32.xlu0 %v2855_v3 }
 0xe1f   : > { %v2848_v60 = vpop.xlane.xlu1 %2847 }
 0xe20   : > { %v2858_v21 = vmul.f32 0.015625, %v2848_v60 }
 0xe21   : > { %v2851_v31 = vpop.xlane.xlu0 %2850 }
 0xe22   : > { %v2862_v32 = vadd.f32 1e-06, %v2858_v21  ;;  %v2859_v47 = vmul.f32 0.015625, %v2851_v31 }
 0xe23   : > { %v2854_v33 = vpop.xlane.xlu1 %2853 }
 0xe24   : > { %11960 = vrsqrt.f32 %v2862_v32  ;;  %v2863_v39 = vadd.f32 1e-06, %v2859_v47  ;;  %v2860_v62 = vmul.f32 0.015625, %v2854_v33 }
 0xe25   : > { %v2857_v18 = vpop.xlane.xlu0 %2856 }
 0xe26   : > { %11962 = vrsqrt.f32 %v2863_v39  ;;  %v2864_v24 = vadd.f32 1e-06, %v2860_v62  ;;  %v2861_v26 = vmul.f32 0.015625, %v2857_v18 }
 0xe28   : > { %v2865_v27 = vadd.f32 1e-06, %v2861_v26  ;;  %11964 = vrsqrt.f32 %v2864_v24 }
 0xe2a   : > { %11966 = vrsqrt.f32 %v2865_v27 }
 0xe2e   : > { %v11961_v38 = vpop.eup %11960 }
 0xe2f   : > { %v2870_v25 = vmul.f32 %v11961_v38, %v13168_v34 }
 0xe30   : > { %v11963_v23 = vpop.eup %11962 }
 0xe31   : > { %v2871_v44 = vmul.f32 %v11963_v23, %v13174_v6  ;;  %v2874_v29 = vmul.f32 %v2870_v25, %v2841_v30 }
 0xe32   : > { %v11965_v45 = vpop.eup %11964 }
 0xe33   : > { %v2875_v19 = vmul.f32 %v2871_v44, %v2841_v30  ;;  %v2872_v59 = vmul.f32 %v11965_v45, %v13165_v4  ;;  %v3037_v44 = vld [vmem:[%s14800_s4 + $0x30] ss:$0 sm:$0xff] }
 0xe34   : > { %v11967_v40 = vpop.eup %11966 }
 0xe35   : > { %v2886_v48 = vpack.c.bf16 %v2875_v19, %v2874_v29  ;;  %v2873_v58 = vmul.f32 %v11967_v40, %v13171_v63  ;;  %v2876_v49 = vmul.f32 %v2872_v59, %v2841_v30 }
 0xe37   : > { %9700 = vmatmul.mubr.msk.bf16.vlgmr.msra.gmra.mrb[28].mxu0 %vm940_vm15, %v2886_v48  ;;  %v2877_v7 = vmul.f32 %v2873_v58, %v2841_v30 }
 0xe38   : > { %2989 = vmatprep.mubr.bf16.mxu0 %v12358_v13 }
 0xe39   : > { %v2887_v55 = vpack.c.bf16 %v2877_v7, %v2876_v49 }
 0xe3f   : > { %9701 = vmatmul.mubr.msk.bf16.gmra.mrb[32].mxu0 %vm940_vm15, %v2887_v55 }
 0xf0a   : > { %v2981_v0 = vpop.f32.mrb[28].mxu0 }
 0xf0b   : > { %v13229_v10 = vadd.f32 %v2981_v0, %v2894_v12  ;;  %v2983_v14 = vpop.f32.mrb[29].mxu0 }
 0xf0c   : > { %v2985_v13 = vpop.f32.mrb[30].mxu0  ;;  %v2984_v56 = vadd.f32 %v2983_v14, %v2898_v54 }
 0xf0d   : > { %v13231_v15 = vadd.f32 %v2985_v13, %v2894_v12  ;;  %v2987_v41 = vpop.f32.mrb[31].mxu0  ;;  %v3001_v42 = vmul.f32 %v13229_v10, %v13229_v10 }
 0xf0e   : > { %v2988_v37 = vadd.f32 %v2987_v41, %v2898_v54 }
 0xf0f   : > { %3042 = vrot.lane.b32.xlu1 %v3001_v42, %s12359_s13  ;;  %v3002_v46 = vmul.f32 %v13231_v15, %v13231_v15  ;;  %v3005_v18 = vsel %vm940_vm15, %v3001_v42, 0.0 }
 0xf10   : > { %v11298_v3 = vpack.c.bf16 %v2988_v37, %v2984_v56  ;;  %v13238_v8 = vpack.i.bf16 %v2988_v37, %v2984_v56 }
 0xf11   : > { %3044 = vrot.lane.b32.xlu0 %v3002_v46, %s12359_s13  ;;  %v3008_v26 = vsel %vm940_vm15, %v3002_v46, 0.0 }
 0xf12   : > { %v2991_v50 = vpop.f32.mrb[32].mxu0  ;;  %11299 = vmatprep.subr.bf16.mxu1 %v11298_v3 }
 0xf13   : > { %v13241_v17 = vadd.f32 %v2991_v50, %v2894_v12  ;;  %v2993_v16 = vpop.f32.mrb[33].mxu0  ;;  %11301 = vmatpush3.bf16.msra.mxu1 %v11298_v3 }
 0xf14   : > { %v2995_v22 = vpop.f32.mrb[34].mxu0  ;;  %v2994_v20 = vadd.f32 %v2993_v16, %v2898_v54 }
 0xf15   : > { %v13243_v11 = vadd.f32 %v2995_v22, %v2894_v12  ;;  %v2997_v5 = vpop.f32.mrb[35].mxu0  ;;  %v3003_v28 = vmul.f32 %v13241_v17, %v13241_v17 }
 0xf16   : > { %v2998_v60 = vadd.f32 %v2997_v5, %v2898_v54 }
 0xf17   : > { %3046 = vrot.lane.b32.xlu1 %v3003_v28, %s12359_s13  ;;  %v3004_v32 = vmul.f32 %v13243_v11, %v13243_v11  ;;  %v3011_v25 = vsel %vm940_vm15, %v3003_v28, 0.0 }
 0xf18   : > { %v11302_v21 = vpack.c.bf16 %v2998_v60, %v2994_v20  ;;  %v13248_v31 = vpack.i.bf16 %v2998_v60, %v2994_v20 }
 0xf19   : > { %v3014_v30 = vsel %vm940_vm15, %v3004_v32, 0.0 }
 0xf1a   : > { %11303 = vmatprep.subr.bf16.mxu1 %v11302_v21 }
 0xf1b   : > { %11305 = vmatpush3.bf16.msra.mxu1 %v11302_v21  ;;  %3048 = vrot.lane.b32.xlu1 %v3004_v32, %s12359_s13  ;;  %v3000_v32 = vld [vmem:[%s14800_s4 + $0x27] ss:$0 sm:$0xff] }
 0xf81   : > { %v3043_v47 = vpop.permute.xlu1 %3042 }
 0xf82   : > { %v3054_v33 = vsel %vm940_vm15, %v3043_v47, 0.0 }
 0xf83   : > { %v3045_v39 = vpop.permute.xlu0 %3044  ;;  %3055 = vadd.xlane.f32.xlu1 %v3054_v33 }
 0xf84   : > { %v3057_v62 = vsel %vm940_vm15, %v3045_v39, 0.0 }
 0xf85   : > { %3058 = vadd.xlane.f32.xlu0 %v3057_v62 }
 0xf87   : > { %3006 = vadd.xlane.f32.xlu1 %v3005_v18 }
 0xf89   : > { %v3047_v24 = vpop.permute.xlu1 %3046 }
 0xf8a   : > { %v3060_v27 = vsel %vm940_vm15, %v3047_v24, 0.0 }
 0xf8b   : > { %3009 = vadd.xlane.f32.xlu1 %v3008_v26  ;;  %3061 = vadd.xlane.f32.xlu0 %v3060_v27 }
 0xf8d   : > { %v3049_v38 = vpop.permute.xlu1 %3048 }
 0xf8e   : > { %v3063_v23 = vsel %vm940_vm15, %v3049_v38, 0.0 }
 0xf8f   : > { %3012 = vadd.xlane.f32.xlu1 %v3011_v25  ;;  %3064 = vadd.xlane.f32.xlu0 %v3063_v23 }
 0xf93   : > { %3015 = vadd.xlane.f32.xlu1 %v3014_v30 }
 0xfa5   : > { %3083 = vrot.lane.b32.xlu0 %v3037_v44, %s12359_s13 }
0x1010   : > { %v3056_v45 = vpop.xlane.xlu1 %3055 }
0x1011   : > { %v3066_v29 = vmul.f32 0.015625, %v3056_v45 }
0x1012   : > { %v3059_v19 = vpop.xlane.xlu0 %3058 }
0x1013   : > { %v3070_v40 = vadd.f32 1e-06, %v3066_v29  ;;  %v3067_v48 = vmul.f32 0.015625, %v3059_v19 }
0x1014   : > { %v3007_v58 = vpop.xlane.xlu1 %3006 }
0x1015   : > { %11968 = vrsqrt.f32 %v3070_v40  ;;  %v3071_v59 = vadd.f32 1e-06, %v3067_v48  ;;  %v3017_v7 = vmul.f32 0.015625, %v3007_v58 }
0x1017   : > { %11970 = vrsqrt.f32 %v3071_v59  ;;  %v3021_v49 = vadd.f32 1e-06, %v3017_v7 }
0x1018   : > { %v3062_v55 = vpop.xlane.xlu0 %3061  ;;  %v3010_v61 = vpop.xlane.xlu1 %3009 }
0x1019   : > { %11972 = vrsqrt.f32 %v3021_v49  ;;  %v3068_v12 = vmul.f32 0.015625, %v3062_v55  ;;  %v3018_v0 = vmul.f32 0.015625, %v3010_v61 }
0x101b   : > { %v3072_v54 = vadd.f32 1e-06, %v3068_v12  ;;  %v3022_v14 = vadd.f32 1e-06, %v3018_v0 }
0x101c   : > { %v3065_v13 = vpop.xlane.xlu0 %3064  ;;  %v3013_v41 = vpop.xlane.xlu1 %3012 }
0x101d   : > { %11974 = vrsqrt.f32 %v3072_v54  ;;  %v3069_v42 = vmul.f32 0.015625, %v3065_v13  ;;  %v3019_v46 = vmul.f32 0.015625, %v3013_v41 }
0x101e   : > { %11976 = vrsqrt.f32 %v3022_v14 }
0x101f   : > { %v11969_v56 = vpop.eup %11968  ;;  %v3073_v37 = vadd.f32 1e-06, %v3069_v42  ;;  %v3023_v60 = vadd.f32 1e-06, %v3019_v46 }
0x1020   : > { %v3016_v3 = vpop.xlane.xlu1 %3015  ;;  %v3078_v50 = vmul.f32 %v11969_v56, %v13229_v10  ;;  %v3084_v5 = vpop.permute.xlu0 %3083 }
0x1021   : > { %v11971_v16 = vpop.eup %11970  ;;  %11978 = vrsqrt.f32 %v3073_v37  ;;  %v3020_v22 = vmul.f32 0.015625, %v3016_v3 }
0x1022   : > { %v3079_v28 = vmul.f32 %v11971_v16, %v13231_v15  ;;  %v3086_v47 = vmul.f32 %v3084_v5, %v3078_v50 }
0x1023   : > { %v11973_v20 = vpop.eup %11972  ;;  %v3024_v21 = vadd.f32 1e-06, %v3020_v22 }
0x1024   : > { %v3087_v33 = vmul.f32 %v3084_v5, %v3079_v28  ;;  %v3029_v39 = vmul.f32 %v11973_v20, %v13229_v10 }
0x1025   : > { %11980 = vrsqrt.f32 %v3024_v21 }
0x1026   : > { %v13271_v62 = vpack.i.bf16 %v3087_v33, %v3086_v47  ;;  %v3033_v18 = vmul.f32 %v3029_v39, %v3000_v32  ;;  %11982 = vrsqrt.f32 %v3023_v60 }
0x1027   : > { %v11975_v24 = vpop.eup %11974 }
0x1028   : > { %11644 = vrot.lane.b32.xlu1 %v13271_v62, %s12359_s13  ;;  %v13275_v26 = vmul.f32 0.25, %v3033_v18  ;;  %v11977_v27 = vpop.eup %11976  ;;  %v3080_v38 = vmul.f32 %v11975_v24, %v13241_v17 }
0x1029   : > { %v3030_v23 = vmul.f32 %v11977_v27, %v13231_v15 }
0x102a   : > { %10599 = vmatprep.mubr.msk.f32.mxu0 %vm801_vm11, %v13275_v26  ;;  %v3088_v30 = vmul.f32 %v3084_v5, %v3080_v38 }
0x102b   : > { %v11979_v25 = vpop.eup %11978  ;;  %v3034_v19 = vmul.f32 %v3030_v23, %v3000_v32 }
0x102c   : > { %v3081_v10 = vmul.f32 %v11979_v25, %v13243_v11 }
0x102d   : > { %v13289_v58 = vmul.f32 0.25, %v3034_v19 }
0x102e   : > { %v3089_v44 = vmul.f32 %v3084_v5, %v3081_v10 }
0x102f   : > { %v11981_v45 = vpop.eup %11980 }
0x1030   : > { %v13282_v29 = vpack.i.bf16 %v3089_v44, %v3088_v30  ;;  %v3032_v40 = vmul.f32 %v11981_v45, %v13243_v11  ;;  %v11983_v48 = vpop.eup %11982 }
0x1031   : > { %v3031_v15 = vmul.f32 %v11983_v48, %v13241_v17 }
0x1032   : > { %11649 = vrot.lane.b32.xlu0 %v13282_v29, %s12359_s13  ;;  %11659 = vrot.lane.b32.xlu1 %v13282_v29, %s12360_s19  ;;  %v3036_v59 = vmul.f32 %v3032_v40, %v3000_v32 }
0x1033   : > { %v3035_v11 = vmul.f32 %v3031_v15, %v3000_v32 }
0x1034   : > { %v13296_v7 = vmul.f32 0.25, %v3036_v59 }
0x1035   : > { %v13302_v49 = vmul.f32 0.25, %v3035_v11 }
0x1036   : > { %11654 = vrot.lane.b32.xlu0 %v13271_v62, %s12360_s19  ;;  %3364 = vrot.lane.b32.xlu1 %v13289_v58, %s12361_s20 }
0x103a   : > { %3362 = vrot.lane.b32.xlu0 %v13275_v26, %s12361_s20  ;;  %3368 = vrot.lane.b32.xlu1 %v13296_v7, %s12361_s20 }
0x103e   : > { %3366 = vrot.lane.b32.xlu0 %v13302_v49, %s12361_s20  ;;  %11669 = vrot.lane.b32.xlu1 %v13282_v29, %s12362_s21 }
0x1042   : > { %11664 = vrot.lane.b32.xlu0 %v13271_v62, %s12362_s21  ;;  %3766 = vrot.lane.b32.xlu1 %v13289_v58, %s12363_s22 }
0x1046   : > { %3764 = vrot.lane.b32.xlu0 %v13275_v26, %s12363_s22  ;;  %3770 = vrot.lane.b32.xlu1 %v13296_v7, %s12363_s22 }
0x104a   : > { %3768 = vrot.lane.b32.xlu0 %v13302_v49, %s12363_s22 }
0x109a   : > { %v11645_v17 = vpop.permute.xlu1 %11644 }
0x109b   : > { %v11647_v55 = vunpack.i.h.bf16 %v11645_v17  ;;  %v11646_v61 = vunpack.i.l.bf16 %v11645_v17 }
0x109d   : > { %v11286_v12 = vpack.c.bf16 %v11647_v55, %v11646_v61 }
0x109f   : > { %11288 = vmatprep.subr.msk.bf16.mxu0 %vm12797_vm1, %v11286_v12 }
0x10a0   : > { %11291 = vmatpush3.bf16.xpose.msk.msra.mxu0 %vm12797_vm1, %v11286_v12 }
0x10a4   : > { %v11650_v0 = vpop.permute.xlu0 %11649  ;;  %v11660_v41 = vpop.permute.xlu1 %11659 }
0x10a5   : > { %v11652_v54 = vunpack.i.h.bf16 %v11650_v0  ;;  %v11651_v14 = vunpack.i.l.bf16 %v11650_v0  ;;  %v11662_v50 = vunpack.i.h.bf16 %v11660_v41  ;;  %v11661_v16 = vunpack.i.l.bf16 %v11660_v41 }
0x10a7   : > { %v11292_v13 = vpack.c.bf16 %v11652_v54, %v11651_v14  ;;  %v11312_v28 = vpack.c.bf16 %v11662_v50, %v11661_v16 }
0x10a8   : > { %v11655_v42 = vpop.permute.xlu0 %11654  ;;  %v3365_v22 = vpop.permute.xlu1 %3364 }
0x10a9   : > { %v11657_v56 = vunpack.i.h.bf16 %v11655_v42  ;;  %v11656_v37 = vunpack.i.l.bf16 %v11655_v42  ;;  %11294 = vmatprep.subr.msk.bf16.mxu0 %vm12797_vm1, %v11292_v13 }
0x10aa   : > { %11297 = vmatpush3.bf16.xpose.msk.msra.mxu0 %vm12797_vm1, %v11292_v13 }
0x10ab   : > { %v11306_v46 = vpack.c.bf16 %v11657_v56, %v11656_v37 }
0x10ac   : > { %v3363_v3 = vpop.permute.xlu0 %3362  ;;  %v3369_v20 = vpop.permute.xlu1 %3368 }
0x10ad   : > { %11308 = vmatprep.subr.msk.bf16.mxu0 %vm12797_vm1, %v11306_v46 }
0x10b0   : > { %v3367_v5 = vpop.permute.xlu0 %3366  ;;  %v11670_v33 = vpop.permute.xlu1 %11669 }
0x10b1   : > { %10600 = vmatmul.mubr.msk.f32.vlgmr.msra.gmra.mrb[36].mxu0 %vm801_vm11, %v13289_v58  ;;  %v11672_v39 = vunpack.i.h.bf16 %v11670_v33  ;;  %v11671_v18 = vunpack.i.l.bf16 %v11670_v33 }
0x10b2   : > { %10602 = vmatprep.mubr.msk.f32.mxu0 %vm801_vm11, %v13302_v49  ;;  %11311 = vmatpush3.bf16.xpose.msk.msra.mxu0 %vm12797_vm1, %v11306_v46 }
0x10b3   : > { %11314 = vmatprep.subr.msk.bf16.mxu0 %vm12797_vm1, %v11312_v28  ;;  %v11332_v24 = vpack.c.bf16 %v11672_v39, %v11671_v18 }
0x10b4   : > { %v11665_v60 = vpop.permute.xlu0 %11664  ;;  %v3767_v38 = vpop.permute.xlu1 %3766 }
0x10b5   : > { %v11667_v21 = vunpack.i.h.bf16 %v11665_v60  ;;  %v11666_v32 = vunpack.i.l.bf16 %v11665_v60  ;;  %10603 = vmatmul.mubr.msk.f32.gmra.mrb[38].mxu0 %vm801_vm11, %v13296_v7 }
0x10b6   : > { %10627 = vmatprep.mubr.msk.f32.mxu0 %vm801_vm11, %v3363_v3 }
0x10b7   : > { %v11326_v47 = vpack.c.bf16 %v11667_v21, %v11666_v32 }
0x10b8   : > { %v3765_v27 = vpop.permute.xlu0 %3764  ;;  %v3771_v10 = vpop.permute.xlu1 %3770 }
0x10ba   : > { %11317 = vmatpush3.bf16.xpose.msk.msra.mxu0 %vm12797_vm1, %v11312_v28 }
0x10bb   : > { %11328 = vmatprep.subr.msk.bf16.mxu0 %vm12797_vm1, %v11326_v47 }
0x10bc   : > { %v3769_v25 = vpop.permute.xlu0 %3768 }
0x10c1   : > { %10628 = vmatmul.mubr.msk.f32.vlgmr.msra.gmra.mrb[40].mxu0 %vm801_vm11, %v3365_v22 }
0x10c2   : > { %10630 = vmatprep.mubr.msk.f32.mxu0 %vm801_vm11, %v3367_v5  ;;  %11331 = vmatpush3.bf16.xpose.msk.msra.mxu0 %vm12797_vm1, %v11326_v47 }
0x10c3   : > { %11334 = vmatprep.subr.msk.bf16.mxu0 %vm12797_vm1, %v11332_v24 }
0x10c5   : > { %10631 = vmatmul.mubr.msk.f32.gmra.mrb[42].mxu0 %vm801_vm11, %v3369_v20 }
0x10c6   : > { %10667 = vmatprep.mubr.msk.f32.mxu0 %vm801_vm11, %v3765_v27 }
0x10ca   : > { %11337 = vmatpush3.bf16.xpose.msk.msra.mxu0 %vm12797_vm1, %v11332_v24 }
0x10d1   : > { %10668 = vmatmul.mubr.msk.f32.vlgmr.msra.gmra.mrb[44].mxu0 %vm801_vm11, %v3767_v38 }
0x10d2   : > { %10670 = vmatprep.mubr.msk.f32.mxu0 %vm801_vm11, %v3769_v25 }
0x10d5   : > { %10671 = vmatmul.mubr.msk.f32.gmra.mrb[46].mxu0 %vm801_vm11, %v3771_v10 }
0x1184   : > { %v10601_v23 = vpop.f32.mrb[36].mxu0 }
0x1185   : > { %v3206_v30 = vadd.f32 %v10601_v23, %v12861_v51  ;;  %v3200_v44 = vpop.f32.mrb[37].mxu0 }
0x1186   : > { %v3201_v45 = vadd.f32 %v3200_v44, %v12864_v36 }
0x1187   : > { %v3222_v19 = vsel %vm1315_vm9, %v3206_v30, -inf }
0x1188   : > { %3223 = vmax.xlane.f32.xlu1 %v3222_v19  ;;  %v10604_v40 = vpop.f32.mrb[38].mxu0  ;;  %v3219_v48 = vsel %vm1315_vm9, %v3201_v45, -inf }
0x1189   : > { %v3216_v59 = vadd.f32 %v10604_v40, %v12881_v9  ;;  %v3210_v15 = vpop.f32.mrb[39].mxu0  ;;  %3220 = vmax.xlane.f32.xlu0 %v3219_v48 }
0x118a   : > { %v3211_v17 = vadd.f32 %v3210_v15, %v12876_v53 }
0x118b   : > { %v3228_v11 = vsel %vm1315_vm9, %v3216_v59, -inf }
0x118c   : > { %v3225_v55 = vsel %vm1315_vm9, %v3211_v17, -inf }
0x118d   : > { %3229 = vmax.xlane.f32.xlu0 %v3228_v11 }
0x1191   : > { %3226 = vmax.xlane.f32.xlu0 %v3225_v55 }
0x1194   : > { %v10629_v61 = vpop.f32.mrb[40].mxu0 }
0x1195   : > { %v3466_v12 = vadd.f32 %v10629_v61, %v12861_v51  ;;  %v3460_v0 = vpop.f32.mrb[41].mxu0 }
0x1196   : > { %v3461_v54 = vadd.f32 %v3460_v0, %v12864_v36 }
0x1197   : > { %v3482_v14 = vsel %vm1315_vm9, %v3466_v12, -inf }
0x1198   : > { %3483 = vmax.xlane.f32.xlu1 %v3482_v14  ;;  %v10632_v13 = vpop.f32.mrb[42].mxu0  ;;  %v3479_v41 = vsel %vm1315_vm9, %v3461_v54, -inf }
0x1199   : > { %v3476_v42 = vadd.f32 %v10632_v13, %v12881_v9  ;;  %v3470_v56 = vpop.f32.mrb[43].mxu0  ;;  %3480 = vmax.xlane.f32.xlu0 %v3479_v41 }
0x119a   : > { %v3471_v37 = vadd.f32 %v3470_v56, %v12876_v53 }
0x119b   : > { %v3488_v46 = vsel %vm1315_vm9, %v3476_v42, -inf }
0x119c   : > { %3489 = vmax.xlane.f32.xlu1 %v3488_v46  ;;  %v3485_v3 = vsel %vm1315_vm9, %v3471_v37, -inf }
0x119d   : > { %3486 = vmax.xlane.f32.xlu0 %v3485_v3 }
0x11a4   : > { %v13372_v50 = vpop.f32.mrb[44].mxu0 }
0x11a5   : > { %v13374_v16 = vpop.f32.mrb[45].mxu0 }
0x11a8   : > { %v13376_v22 = vpop.f32.mrb[46].mxu0 }
0x11a9   : > { %v13378_v5 = vpop.f32.mrb[47].mxu0 }
0x1215   : > { %v3224_v28 = vpop.xlane.xlu1 %3223 }
0x1216   : > { %v3232_v20 = vsub.f32 %v3206_v30, %v3224_v28  ;;  %v3221_v60 = vpop.xlane.xlu0 %3220 }
0x1217   : > { %v3231_v21 = vsub.f32 %v3201_v45, %v3221_v60  ;;  %v13434_v60 = vadd.f32 %v13378_v5, %v12876_v53 }
0x1218   : > { %v3237_v32 = vmul.f32 1.442695, %v3232_v20 }
0x1219   : > { %v3235_v47 = vmul.f32 1.442695, %v3231_v21 }
0x121a   : > { %11984 = vpow2.f32 %v3237_v32  ;;  %v3230_v33 = vpop.xlane.xlu0 %3229 }
0x121b   : > { %11986 = vpow2.f32 %v3235_v47  ;;  %v3234_v39 = vsub.f32 %v3216_v59, %v3230_v33 }
0x121d   : > { %v3241_v18 = vmul.f32 1.442695, %v3234_v39 }
0x121e   : > { %v3227_v24 = vpop.xlane.xlu0 %3226 }
0x121f   : > { %11988 = vpow2.f32 %v3241_v18  ;;  %v3233_v27 = vsub.f32 %v3211_v17, %v3227_v24 }
0x1221   : > { %v3239_v38 = vmul.f32 1.442695, %v3233_v27 }
0x1223   : > { %11990 = vpow2.f32 %v3239_v38 }
0x1224   : > { %v13380_v25 = vpop.eup %11984 }
0x1225   : > { %v13382_v10 = vpop.eup %11986  ;;  %v3484_v23 = vpop.xlane.xlu1 %3483  ;;  %v3246_v30 = vsel %vm1315_vm9, %v13380_v25, 0.0 }
0x1226   : > { %v3492_v44 = vsub.f32 %v3466_v12, %v3484_v23  ;;  %3247 = vadd.xlane.f32.xlu1 %v3246_v30  ;;  %v3481_v45 = vpop.xlane.xlu0 %3480  ;;  %v3243_v19 = vsel %vm1315_vm9, %v13382_v10, 0.0 }
0x1227   : > { %v3491_v40 = vsub.f32 %v3461_v54, %v3481_v45  ;;  %3244 = vadd.xlane.f32.xlu0 %v3243_v19 }
0x1228   : > { %v3497_v48 = vmul.f32 1.442695, %v3492_v44 }
0x1229   : > { %v13388_v59 = vpop.eup %11988  ;;  %v3495_v15 = vmul.f32 1.442695, %v3491_v40  ;;  %v3490_v11 = vpop.xlane.xlu1 %3489 }
0x122a   : > { %11992 = vpow2.f32 %v3497_v48  ;;  %v3494_v17 = vsub.f32 %v3476_v42, %v3490_v11  ;;  %v3487_v55 = vpop.xlane.xlu0 %3486  ;;  %v3252_v61 = vsel %vm1315_vm9, %v13388_v59, 0.0 }
0x122b   : > { %11994 = vpow2.f32 %v3495_v15  ;;  %v3493_v12 = vsub.f32 %v3471_v37, %v3487_v55  ;;  %3253 = vadd.xlane.f32.xlu1 %v3252_v61 }
0x122c   : > { %v3501_v0 = vmul.f32 1.442695, %v3494_v17 }
0x122d   : > { %v13392_v14 = vpop.eup %11990  ;;  %v3499_v13 = vmul.f32 1.442695, %v3493_v12 }
0x122e   : > { %11996 = vpow2.f32 %v3501_v0  ;;  %v3249_v54 = vsel %vm1315_vm9, %v13392_v14, 0.0 }
0x122f   : > { %11998 = vpow2.f32 %v3499_v13  ;;  %3250 = vadd.xlane.f32.xlu0 %v3249_v54 }
0x1234   : > { %v13396_v41 = vpop.eup %11992 }
0x1235   : > { %v13398_v42 = vpop.eup %11994  ;;  %v3506_v56 = vsel %vm1315_vm9, %v13396_v41, 0.0 }
0x1236   : > { %3507 = vadd.xlane.f32.xlu1 %v3506_v56  ;;  %v3503_v37 = vsel %vm1315_vm9, %v13398_v42, 0.0 }
0x1237   : > { %3504 = vadd.xlane.f32.xlu0 %v3503_v37 }
0x1238   : > { %v13404_v46 = vpop.eup %11996 }
0x1239   : > { %v13406_v3 = vpop.eup %11998  ;;  %v3512_v28 = vsel %vm1315_vm9, %v13404_v46, 0.0 }
0x123a   : > { %3513 = vadd.xlane.f32.xlu1 %v3512_v28  ;;  %v3509_v20 = vsel %vm1315_vm9, %v13406_v3, 0.0 }
0x123b   : > { %3510 = vadd.xlane.f32.xlu0 %v3509_v20 }
0x124b   : > { %11679 = vrot.lane.b32.xlu1 %v13248_v31, %s12361_s20 }
0x124f   : > { %11684 = vrot.lane.b32.xlu1 %v13271_v62, %s12365_s23  ;;  %v13430_v62 = vadd.f32 %v13374_v16, %v12864_v36 }
0x1251   : > { %11674 = vrot.lane.b32.xlu0 %v13238_v8, %s12361_s20 }
0x1253   : > { %11689 = vrot.lane.b32.xlu1 %v13282_v29, %s12365_s23  ;;  %v13440_v29 = vadd.f32 %v13372_v50, %v12861_v51  ;;  %v11838_v50 = vld [vmem:[%s14801_s5 + $0x10] ss:$60 sps:$4 sm:$0xff]  }
0x1255   : > { %4103 = vrot.lane.b32.xlu0 %v13275_v26, %s12366_s24  ;;  %v3881_v26 = vsel %vm1315_vm9, %v13430_v62, -inf }
0x1257   : > { %4105 = vrot.lane.b32.xlu1 %v13289_v58, %s12366_s24  ;;  %v13444_v58 = vadd.f32 %v13376_v22, %v12881_v9  ;;  %v11837_v22 = vld [vmem:[%s14801_s5 + $0x88] ss:$60 sps:$4 sm:$0xff]  }
0x1259   : > { %4107 = vrot.lane.b32.xlu0 %v13302_v49, %s12366_s24  ;;  %v3884_v49 = vsel %vm1315_vm9, %v13440_v29, -inf  ;;  %v3890_v16 = vsel %vm1315_vm9, %v13444_v58, -inf }
0x125b   : > { %4109 = vrot.lane.b32.xlu1 %v13296_v7, %s12366_s24  ;;  %v3887_v7 = vsel %vm1315_vm9, %v13434_v60, -inf }
0x1278   : > { %3882 = vmax.xlane.f32.xlu0 %v3881_v26 }
0x127c   : > { %3888 = vmax.xlane.f32.xlu0 %v3887_v7 }
0x127f   : > { %3885 = vmax.xlane.f32.xlu1 %v3884_v49 }
0x1280   : > { %3891 = vmax.xlane.f32.xlu0 %v3890_v16 }
0x1290   : > { %3706 = vrot.lane.b32.xlu1 %v11838_v50, %s12359_s13 }
0x1296   : > { %3643 = vrot.lane.b32.xlu0 %v11837_v22, %s12359_s13 }
0x12b3   : > { %v3248_v5 = vpop.xlane.xlu1 %3247 }
0x12b4   : > { %12000 = vrcp.f32 %v3248_v5  ;;  %v3245_v21 = vpop.xlane.xlu0 %3244 }
0x12b5   : > { %12002 = vrcp.f32 %v3245_v21 }
0x12b8   : > { %v3254_v32 = vpop.xlane.xlu1 %3253 }
0x12b9   : > { %12004 = vrcp.f32 %v3254_v32 }
0x12bc   : > { %v3251_v47 = vpop.xlane.xlu0 %3250 }
0x12bd   : > { %12006 = vrcp.f32 %v3251_v47 }
0x12be   : > { %v12001_v33 = vpop.eup %12000 }
0x12bf   : > { %v12003_v39 = vpop.eup %12002  ;;  %v3260_v24 = vmul.f32 %v12001_v33, %v13380_v25 }
0x12c0   : > { %v3259_v18 = vmul.f32 %v12003_v39, %v13382_v10 }
0x12c2   : > { %10613 = vmatprep.mubr.msk.f32.mxu1 %vm1315_vm9, %v3259_v18 }
0x12c3   : > { %v3508_v27 = vpop.xlane.xlu1 %3507  ;;  %10614 = vmatmul.mubr.msk.f32.vlgmr.msra.gmra.mrb[40].mxu1 %vm1315_vm9, %v3260_v24  ;;  %v12005_v23 = vpop.eup %12004 }
0x12c4   : > { %v3505_v38 = vpop.xlane.xlu0 %3504  ;;  %v3262_v40 = vmul.f32 %v12005_v23, %v13388_v59 }
0x12c5   : > { %12008 = vrcp.f32 %v3505_v38 }
0x12c6   : > { %12010 = vrcp.f32 %v3508_v27 }
0x12c7   : > { %v12007_v30 = vpop.eup %12006  ;;  %v3514_v44 = vpop.xlane.xlu1 %3513 }
0x12c8   : > { %v3511_v45 = vpop.xlane.xlu0 %3510  ;;  %v3261_v19 = vmul.f32 %v12007_v30, %v13392_v14 }
0x12c9   : > { %12012 = vrcp.f32 %v3511_v45 }
0x12ca   : > { %10616 = vmatprep.mubr.msk.f32.mxu1 %vm1315_vm9, %v3261_v19  ;;  %12014 = vrcp.f32 %v3514_v44 }
0x12cb   : > { %v11680_v25 = vpop.permute.xlu1 %11679  ;;  %10617 = vmatmul.mubr.msk.f32.gmra.mrb[42].mxu1 %vm1315_vm9, %v3262_v40 }
0x12cc   : > { %v11675_v10 = vpop.permute.xlu0 %11674  ;;  %v11682_v48 = vunpack.i.h.bf16 %v11680_v25  ;;  %v11681_v15 = vunpack.i.l.bf16 %v11680_v25 }
0x12cd   : > { %v11677_v11 = vunpack.i.h.bf16 %v11675_v10  ;;  %v11676_v17 = vunpack.i.l.bf16 %v11675_v10 }
0x12ce   : > { %v11322_v54 = vpack.c.bf16 %v11682_v48, %v11681_v15 }
0x12cf   : > { %v12009_v55 = vpop.eup %12008  ;;  %v11318_v61 = vpack.c.bf16 %v11677_v11, %v11676_v17  ;;  %v11685_v12 = vpop.permute.xlu1 %11684 }
0x12d0   : > { %v11687_v0 = vunpack.i.h.bf16 %v11685_v12  ;;  %v11686_v14 = vunpack.i.l.bf16 %v11685_v12  ;;  %v4104_v13 = vpop.permute.xlu0 %4103  ;;  %v3519_v59 = vmul.f32 %v12009_v55, %v13398_v42  ;;  %v12011_v28 = vpop.eup %12010 }
0x12d1   : > { %11319 = vmatprep.subr.bf16.mxu1 %v11318_v61  ;;  %10701 = vmatprep.mubr.msk.f32.mxu0 %vm801_vm11, %v4104_v13  ;;  %v3520_v49 = vmul.f32 %v12011_v28, %v13396_v41 }
0x12d2   : > { %v11346_v56 = vpack.c.bf16 %v11687_v0, %v11686_v14  ;;  %11321 = vmatpush3.bf16.msra.mxu1 %v11318_v61  ;;  %10641 = vmatprep.mubr.msk.f32.mxu1 %vm1315_vm9, %v3519_v59 }
0x12d3   : > { %v11690_v37 = vpop.permute.xlu1 %11689  ;;  %11323 = vmatprep.subr.bf16.mxu1 %v11322_v54  ;;  %v12013_v7 = vpop.eup %12012 }
0x12d4   : > { %v11692_v20 = vunpack.i.h.bf16 %v11690_v37  ;;  %v11691_v26 = vunpack.i.l.bf16 %v11690_v37  ;;  %11348 = vmatprep.subr.msk.bf16.mxu0 %vm12797_vm1, %v11346_v56  ;;  %v12015_v16 = vpop.eup %12014  ;;  %v3521_v50 = vmul.f32 %v12013_v7, %v13406_v3  ;;  %v4108_v21 = vpop.permute.xlu0 %4107 }
0x12d5   : > { %11351 = vmatpush3.bf16.xpose.msk.msra.mxu0 %vm12797_vm1, %v11346_v56  ;;  %v3522_v22 = vmul.f32 %v12015_v16, %v13404_v46 }
0x12d6   : > { %v11352_v42 = vpack.c.bf16 %v11692_v20, %v11691_v26  ;;  %11325 = vmatpush3.bf16.msra.mxu1 %v11322_v54 }
0x12d7   : > { %v4106_v5 = vpop.permute.xlu1 %4105 }
0x12d8   : > { %11354 = vmatprep.subr.msk.bf16.mxu0 %vm12797_vm1, %v11352_v42 }
0x12d9   : > { %10642 = vmatmul.mubr.msk.f32.vlgmr.msra.gmra.mrb[44].mxu1 %vm1315_vm9, %v3520_v49 }
0x12da   : > { %10644 = vmatprep.mubr.msk.f32.mxu1 %vm1315_vm9, %v3521_v50 }
0x12db   : > { %v4110_v41 = vpop.permute.xlu1 %4109 }
0x12dd   : > { %10645 = vmatmul.mubr.msk.f32.gmra.mrb[46].mxu1 %vm1315_vm9, %v3522_v22  ;;  %11357 = vmatpush3.bf16.xpose.msk.msra.mxu0 %vm12797_vm1, %v11352_v42 }
0x12e4   : > { %10702 = vmatmul.mubr.msk.f32.vlgmr.msra.gmra.mrb[48].mxu0 %vm801_vm11, %v4106_v5 }
0x12e5   : > { %10704 = vmatprep.mubr.msk.f32.mxu0 %vm801_vm11, %v4108_v21 }
0x12e8   : > { %10705 = vmatmul.mubr.msk.f32.gmra.mrb[50].mxu0 %vm801_vm11, %v4110_v41 }
0x1305   : > { %v3883_v3 = vpop.xlane.xlu0 %3882 }
0x1306   : > { %v3893_v32 = vsub.f32 %v13430_v62, %v3883_v3 }
0x1308   : > { %v3897_v47 = vmul.f32 1.442695, %v3893_v32 }
0x1309   : > { %v3889_v33 = vpop.xlane.xlu0 %3888 }
0x130a   : > { %12016 = vpow2.f32 %v3897_v47  ;;  %v3895_v27 = vsub.f32 %v13434_v60, %v3889_v33 }
0x130c   : > { %v3886_v46 = vpop.xlane.xlu1 %3885  ;;  %v3901_v30 = vmul.f32 1.442695, %v3895_v27 }
0x130d   : > { %v3894_v39 = vsub.f32 %v13440_v29, %v3886_v46  ;;  %v3892_v18 = vpop.xlane.xlu0 %3891 }
0x130e   : > { %v3896_v24 = vsub.f32 %v13444_v58, %v3892_v18 }
0x130f   : > { %v3899_v38 = vmul.f32 1.442695, %v3894_v39 }
0x1310   : > { %v3903_v23 = vmul.f32 1.442695, %v3896_v24  ;;  %v3707_v10 = vpop.permute.xlu1 %3706 }
0x1311   : > { %12018 = vpow2.f32 %v3899_v38  ;;  %v3644_v19 = vpop.permute.xlu0 %3643 }
0x1312   : > { %12020 = vpow2.f32 %v3903_v23  ;;  %10647 = vmatprep.subr.bf16.mxu1 %v3644_v19 }
0x1313   : > { %12022 = vpow2.f32 %v3901_v30  ;;  %10648 = vmatpush3.bf16.msra.mxu1 %v3644_v19 }
0x1314   : > { %v13492_v44 = vpop.eup %12016  ;;  %10653 = vmatprep.subr.bf16.mxu1 %v3707_v10 }
0x1315   : > { %v3905_v62 = vsel %vm1315_vm9, %v13492_v44, 0.0 }
0x1316   : > { %3906 = vadd.xlane.f32.xlu0 %v3905_v62 }
0x131b   : > { %v13496_v45 = vpop.eup %12018 }
0x131c   : > { %v3908_v29 = vsel %vm1315_vm9, %v13496_v45, 0.0  ;;  %v13500_v58 = vpop.eup %12020 }
0x131d   : > { %3909 = vadd.xlane.f32.xlu1 %v3908_v29  ;;  %v3914_v60 = vsel %vm1315_vm9, %v13500_v58, 0.0  ;;  %v13504_v40 = vpop.eup %12022 }
0x131e   : > { %v3911_v25 = vsel %vm1315_vm9, %v13504_v40, 0.0 }
0x1321   : > { %3915 = vadd.xlane.f32.xlu1 %v3914_v60 }
0x1325   : > { %3912 = vadd.xlane.f32.xlu1 %v3911_v25 }
0x132c   : > { %11694 = vrot.lane.b32.xlu0 %v13238_v8, %s12363_s22 }
0x1336   : > { %11699 = vrot.lane.b32.xlu1 %v13248_v31, %s12363_s22 }
0x1396   : > { %v10615_v48 = vpop.f32.mrb[40].mxu1 }
0x1397   : > { %v3341_v15 = vpop.f32.mrb[41].mxu1 }
0x1398   : > { %v3360_v11 = vpack.c.bf16 %v10615_v48, %v3341_v15 }
0x139e   : > { %v10618_v17 = vpop.f32.mrb[42].mxu1 }
0x139f   : > { %v3351_v55 = vpop.f32.mrb[43].mxu1 }
0x13a0   : > { %v3361_v61 = vpack.c.bf16 %v10618_v17, %v3351_v55 }
0x13a3   : > { %v3907_v12 = vpop.xlane.xlu0 %3906 }
0x13a4   : > { %12024 = vrcp.f32 %v3907_v12 }
0x13a7   : > { %v11695_v13 = vpop.permute.xlu0 %11694 }
0x13a8   : > { %v11697_v37 = vunpack.i.h.bf16 %v11695_v13  ;;  %v11696_v28 = vunpack.i.l.bf16 %v11695_v13 }
0x13aa   : > { %v3910_v0 = vpop.xlane.xlu1 %3909  ;;  %v11338_v49 = vpack.c.bf16 %v11697_v37, %v11696_v28  ;;  %v11840_v37 = vld [vmem:[%s14801_s5 + $0x178] ss:$60 sps:$4 sm:$0xff]  }
0x13ab   : > { %12026 = vrcp.f32 %v3910_v0 }
0x13ac   : > { %v10643_v14 = vpop.f32.mrb[44].mxu1 }
0x13ad   : > { %v3617_v59 = vpop.f32.mrb[45].mxu1 }
0x13ae   : > { %v3636_v54 = vpack.c.bf16 %v10643_v14, %v3617_v59  ;;  %v3916_v56 = vpop.xlane.xlu1 %3915  ;;  %v12025_v47 = vpop.eup %12024 }
0x13b0   : > { %v10646_v20 = vpop.f32.mrb[46].mxu1  ;;  %10649 = vmatprep.mubr.msk.bf16.mxu1 %vm801_vm11, %v3636_v54 }
0x13b1   : > { %v3627_v26 = vpop.f32.mrb[47].mxu1 }
0x13b2   : > { %v3637_v7 = vpack.c.bf16 %v10646_v20, %v3627_v26  ;;  %v3913_v42 = vpop.xlane.xlu1 %3912 }
0x13b3   : > { %12028 = vrcp.f32 %v3913_v42 }
0x13b4   : > { %10650 = vmatmul.mubr.msk.bf16.vlgmr.msra.gmra.mrb[48].mxu1 %vm801_vm11, %v3637_v7  ;;  %12030 = vrcp.f32 %v3916_v56  ;;  %v11839_v56 = vld [vmem:[%s14801_s5 + $0x100] ss:$60 sps:$4 sm:$0xff]  }
0x13b5   : > { %10654 = vmatpush3.bf16.msra.mxu1 %v3707_v10  ;;  %10655 = vmatprep.mubr.msk.bf16.mxu1 %vm801_vm11, %v3360_v11  ;;  %v12027_v38 = vpop.eup %12026 }
0x13b6   : > { %11339 = vmatprep.subr.bf16.mxu1 %v11338_v49  ;;  %v11700_v5 = vpop.permute.xlu1 %11699 }
0x13b7   : > { %v10703_v16 = vpop.f32.mrb[48].mxu0  ;;  %v11702_v33 = vunpack.i.h.bf16 %v11700_v5  ;;  %v11701_v46 = vunpack.i.l.bf16 %v11700_v5 }
0x13b8   : > { %v4207_v50 = vadd.f32 %v10703_v16, %v12861_v51  ;;  %v4201_v22 = vpop.f32.mrb[49].mxu0 }
0x13b9   : > { %v4202_v21 = vadd.f32 %v4201_v22, %v12864_v36  ;;  %v3921_v36 = vmul.f32 %v12025_v47, %v13492_v44  ;;  %v11342_v27 = vpack.c.bf16 %v11702_v33, %v11701_v46 }
0x13ba   : > { %v4223_v41 = vsel %vm1315_vm9, %v4207_v50, -inf }
0x13bb   : > { %v10706_v3 = vpop.f32.mrb[50].mxu0  ;;  %4224 = vmax.xlane.f32.xlu1 %v4223_v41  ;;  %v4220_v32 = vsel %vm1315_vm9, %v4202_v21, -inf }
0x13bc   : > { %v4211_v39 = vpop.f32.mrb[51].mxu0  ;;  %4221 = vmax.xlane.f32.xlu0 %v4220_v32  ;;  %v4217_v18 = vadd.f32 %v10706_v3, %v12881_v9 }
0x13bd   : > { %v4212_v51 = vadd.f32 %v4211_v39, %v12876_v53  ;;  %v12029_v30 = vpop.eup %12028  ;;  %v3922_v53 = vmul.f32 %v12027_v38, %v13496_v45 }
0x13be   : > { %v4229_v23 = vsel %vm1315_vm9, %v4217_v18, -inf  ;;  %v12031_v9 = vpop.eup %12030  ;;  %v3923_v62 = vmul.f32 %v12029_v30, %v13504_v40 }
0x13bf   : > { %v4226_v24 = vsel %vm1315_vm9, %v4212_v51, -inf  ;;  %v3924_v44 = vmul.f32 %v12031_v9, %v13500_v58 }
0x13c0   : > { %4227 = vmax.xlane.f32.xlu0 %v4226_v24  ;;  %10656 = vmatmul.mubr.msk.bf16.vlgmr.msra.gmra.mrb[48].mxu1 %vm801_vm11, %v3361_v61 }
0x13c1   : > { %11341 = vmatpush3.bf16.msra.mxu1 %v11338_v49  ;;  %10681 = vmatprep.mubr.msk.f32.mxu1 %vm1315_vm9, %v3921_v36 }
0x13c2   : > { %11343 = vmatprep.subr.bf16.mxu1 %v11342_v27 }
0x13c4   : > { %4230 = vmax.xlane.f32.xlu0 %v4229_v23 }
0x13c5   : > { %11345 = vmatpush3.bf16.msra.mxu1 %v11342_v27 }
0x13c8   : > { %10682 = vmatmul.mubr.msk.f32.vlgmr.msra.gmra.mrb[52].mxu1 %vm1315_vm9, %v3922_v53 }
0x13c9   : > { %10684 = vmatprep.mubr.msk.f32.mxu1 %vm1315_vm9, %v3923_v62 }
0x13cc   : > { %10685 = vmatmul.mubr.msk.f32.gmra.mrb[54].mxu1 %vm1315_vm9, %v3924_v44 }
0x1448   : > { %v4225_v29 = vpop.xlane.xlu1 %4224 }
0x1449   : > { %v4233_v60 = vsub.f32 %v4207_v50, %v4225_v29  ;;  %v4222_v19 = vpop.xlane.xlu0 %4221 }
0x144a   : > { %v4232_v25 = vsub.f32 %v4202_v21, %v4222_v19  ;;  %v4442_v19 = vld [vmem:[%s14800_s4 + $0x31] ss:$0 sm:$0xff] }
0x144b   : > { %v4238_v10 = vmul.f32 1.442695, %v4233_v60 }
0x144c   : > { %v4236_v48 = vmul.f32 1.442695, %v4232_v25 }
0x144d   : > { %12032 = vpow2.f32 %v4238_v10  ;;  %v4228_v15 = vpop.xlane.xlu0 %4227  ;;  %v4447_v10 = vld [vmem:[%s14800_s4 + $0x32] ss:$0 sm:$0xff] }
0x144e   : > { %12034 = vpow2.f32 %v4236_v48  ;;  %v4234_v45 = vsub.f32 %v4212_v51, %v4228_v15 }
0x1450   : > { %v4240_v11 = vmul.f32 1.442695, %v4234_v45 }
0x1451   : > { %v4231_v40 = vpop.xlane.xlu0 %4230 }
0x1452   : > { %12036 = vpow2.f32 %v4240_v11  ;;  %v4235_v17 = vsub.f32 %v4217_v18, %v4231_v40 }
0x1454   : > { %v4242_v55 = vmul.f32 1.442695, %v4235_v17 }
0x1456   : > { %12038 = vpow2.f32 %v4242_v55 }
0x1457   : > { %v12033_v61 = vpop.eup %12032 }
0x1458   : > { %v12035_v58 = vpop.eup %12034  ;;  %v4247_v12 = vsel %vm1315_vm9, %v12033_v61, 0.0 }
0x1459   : > { %4248 = vadd.xlane.f32.xlu1 %v4247_v12  ;;  %v4244_v0 = vsel %vm1315_vm9, %v12035_v58, 0.0 }
0x145a   : > { %4245 = vadd.xlane.f32.xlu0 %v4244_v0 }
0x145c   : > { %v12037_v14 = vpop.eup %12036 }
0x145d   : > { %v4250_v13 = vsel %vm1315_vm9, %v12037_v14, 0.0 }
0x145e   : > { %4251 = vadd.xlane.f32.xlu0 %v4250_v13 }
0x1460   : > { %v12039_v59 = vpop.eup %12038 }
0x1461   : > { %v4253_v54 = vsel %vm1315_vm9, %v12039_v59, 0.0 }
0x1462   : > { %4254 = vadd.xlane.f32.xlu1 %v4253_v54 }
0x1473   : > { %11704 = vrot.lane.b32.xlu1 %v13238_v8, %s12366_s24 }
0x1474   : > { %4041 = vrot.lane.b32.xlu0 %v11839_v56, %s12359_s13 }
0x1477   : > { %11709 = vrot.lane.b32.xlu1 %v13248_v31, %s12366_s24 }
0x147b   : > { %4380 = vrot.lane.b32.xlu1 %v11840_v37, %s12359_s13 }
0x149b   : > { %v10683_v28 = vpop.f32.mrb[52].mxu1 }
0x149c   : > { %v4015_v20 = vpop.f32.mrb[53].mxu1 }
0x149d   : > { %v4034_v26 = vpack.c.bf16 %v10683_v28, %v4015_v20 }
0x149f   : > { %v10686_v7 = vpop.f32.mrb[54].mxu1  ;;  %10689 = vmatprep.mubr.msk.bf16.mxu1 %vm801_vm11, %v4034_v26  ;;  %v12092_v26 = vld [vmem:[%s14802_s6 + $0x18] ss:$12 sps:$4 sm:$0xff]  }
0x14a0   : > { %v4025_v42 = vpop.f32.mrb[55].mxu1 }
0x14a1   : > { %v4035_v49 = vpack.c.bf16 %v10686_v7, %v4025_v42  ;;  %v12093_v7 = vld [vmem:[%s14802_s6 + $0x30] ss:$12 sps:$4 sm:$0xff]  }
0x14a2   : > { %v11841_v42 = vld [vmem:[%s14801_s5 + $0x14] ss:$60 sps:$4 sm:$0xff]  }
0x14a3   : > { %10727 = vmatprep.subr.bf16.mxu0 %v11841_v42 }
0x14a4   : > { %10728 = vmatpush3.bf16.msra.mxu0 %v11841_v42 }
0x14e6   : > { %v4249_v16 = vpop.xlane.xlu1 %4248 }
0x14e7   : > { %v4246_v8 = vpop.xlane.xlu0 %4245 }
0x14e8   : > { %12040 = vrcp.f32 %v4246_v8  ;;  %v11842_v8 = vld [vmem:[%s14801_s5 + $0x8c] ss:$60 sps:$4 sm:$0xff]  }
0x14e9   : > { %12042 = vrcp.f32 %v4249_v16  ;;  %v12095_v16 = vld [vmem:[%s14802_s6] ss:$12 sps:$4 sm:$0xff]   ;;  %10729 = vmatprep.subr.bf16.mxu0 %v11842_v8 }
0x14ea   : > { %10730 = vmatpush3.bf16.msra.mxu0 %v11842_v8 }
0x14eb   : > { %v4252_v50 = vpop.xlane.xlu0 %4251 }
0x14ec   : > { %12044 = vrcp.f32 %v4252_v50  ;;  %v12096_v50 = vld [vmem:[%s14802_s6 + $0x78] ss:$12 sps:$4 sm:$0xff]  }
0x14ef   : > { %v4255_v22 = vpop.xlane.xlu1 %4254  ;;  %v4042_v31 = vpop.permute.xlu0 %4041 }
0x14f0   : > { %10687 = vmatprep.subr.bf16.mxu1 %v4042_v31  ;;  %12046 = vrcp.f32 %v4255_v22  ;;  %v11843_v22 = vld [vmem:[%s14801_s5 + $0x104] ss:$60 sps:$4 sm:$0xff]  }
0x14f1   : > { %10688 = vmatpush3.bf16.msra.mxu1 %v4042_v31  ;;  %v12097_v31 = vld [vmem:[%s14802_s6 + $0x60] ss:$12 sps:$4 sm:$0xff]   ;;  %10731 = vmatprep.subr.bf16.mxu0 %v11843_v22 }
0x14f2   : > { %v12041_v5 = vpop.eup %12040  ;;  %10732 = vmatpush3.bf16.msra.mxu0 %v11843_v22 }
0x14f3   : > { %v11705_v21 = vpop.permute.xlu1 %11704  ;;  %v4260_v41 = vmul.f32 %v12041_v5, %v12035_v58  ;;  %v12043_v18 = vpop.eup %12042  ;;  %v12098_v5 = vld [vmem:[%s14802_s6 + $0xa8] ss:$12 sps:$4 sm:$0xff]  }
0x14f4   : > { %v11707_v3 = vunpack.i.h.bf16 %v11705_v21  ;;  %v11706_v32 = vunpack.i.l.bf16 %v11705_v21  ;;  %10690 = vmatmul.mubr.msk.bf16.vlgmr.msra.gmra.mrb[48].mxu1 %vm801_vm11, %v4035_v49  ;;  %v4261_v36 = vmul.f32 %v12043_v18, %v12033_v61  ;;  %v12094_v49 = vld [vmem:[%s14802_s6 + $0x48] ss:$12 sps:$4 sm:$0xff]   ;;  %v11844_v21 = vld [vmem:[%s14801_s5 + $0x17c] ss:$60 sps:$4 sm:$0xff]  }
0x14f5   : > { %10715 = vmatprep.mubr.msk.f32.mxu1 %vm1315_vm9, %v4260_v41  ;;  %v12099_v41 = vld [vmem:[%s14802_s6 + $0x90] ss:$12 sps:$4 sm:$0xff]   ;;  %10733 = vmatprep.subr.bf16.mxu0 %v11844_v21 }
0x14f6   : > { %v11358_v47 = vpack.c.bf16 %v11707_v3, %v11706_v32  ;;  %v12045_v24 = vpop.eup %12044  ;;  %10734 = vmatpush3.bf16.msra.mxu0 %v11844_v21 }
0x14f7   : > { %v11710_v33 = vpop.permute.xlu1 %11709  ;;  %v4262_v38 = vmul.f32 %v12045_v24, %v12037_v14 }
0x14f8   : > { %v11712_v46 = vunpack.i.h.bf16 %v11710_v33  ;;  %v11711_v39 = vunpack.i.l.bf16 %v11710_v33  ;;  %11359 = vmatprep.subr.bf16.mxu1 %v11358_v47 }
0x14f9   : > { %11361 = vmatpush3.bf16.msra.mxu1 %v11358_v47 }
0x14fa   : > { %v11362_v51 = vpack.c.bf16 %v11712_v46, %v11711_v39  ;;  %v12047_v27 = vpop.eup %12046 }
0x14fb   : > { %v4263_v23 = vmul.f32 %v12047_v27, %v12039_v59  ;;  %v4381_v30 = vpop.permute.xlu1 %4380 }
0x14fc   : > { %11363 = vmatprep.subr.bf16.mxu1 %v11362_v51 }
0x14fd   : > { %11365 = vmatpush3.bf16.msra.mxu1 %v11362_v51 }
0x14fe   : > { %10721 = vmatprep.subr.bf16.mxu1 %v4381_v30 }
0x1500   : > { %10716 = vmatmul.mubr.msk.f32.vlgmr.msra.gmra.mrb[56].mxu1 %vm1315_vm9, %v4261_v36 }
0x1501   : > { %10718 = vmatprep.mubr.msk.f32.mxu1 %vm1315_vm9, %v4262_v38  ;;  %10722 = vmatpush3.bf16.msra.mxu1 %v4381_v30 }
0x1504   : > { %10719 = vmatmul.mubr.msk.f32.gmra.mrb[58].mxu1 %vm1315_vm9, %v4263_v23 }
0x15d3   : > { %v10717_v53 = vpop.f32.mrb[56].mxu1 }
0x15d4   : > { %v4354_v9 = vpop.f32.mrb[57].mxu1 }
0x15d5   : > { %v4373_v62 = vpack.c.bf16 %v10717_v53, %v4354_v9  ;;  %v4456_v9 = vld [vmem:[%s14800_s4 + $0x33] ss:$0 sm:$0xff] }
0x15d7   : > { %v10720_v44 = vpop.f32.mrb[58].mxu1  ;;  %10723 = vmatprep.mubr.msk.bf16.mxu1 %vm801_vm11, %v4373_v62 }
0x15d8   : > { %v4364_v29 = vpop.f32.mrb[59].mxu1 }
0x15d9   : > { %v4374_v60 = vpack.c.bf16 %v10720_v44, %v4364_v29 }
0x15db   : > { %10724 = vmatmul.mubr.msk.bf16.vlgmr.msra.gmra.mrb[48].mxu1 %vm801_vm11, %v4374_v60 }
0x16ae   : > { %v10725_v25 = vpop.f32.mrb[48].mxu1 }
0x16af   : > { %v4445_v48 = vadd.f32 %v10725_v25, %v4442_v19  ;;  %v4423_v15 = vpop.f32.mrb[49].mxu1 }
0x16b0   : > { %v4443_v45 = vadd.f32 %v4442_v19, %v4423_v15  ;;  %v10726_v11 = vpop.f32.mrb[50].mxu1 }
0x16b1   : > { %v4450_v40 = vmul.f32 %v4447_v10, %v4445_v48  ;;  %v4446_v17 = vadd.f32 %v10726_v11, %v4442_v19  ;;  %v4426_v55 = vpop.f32.mrb[51].mxu1 }
0x16b2   : > { %v4448_v61 = vmul.f32 %v4447_v10, %v4443_v45  ;;  %v4444_v58 = vadd.f32 %v4442_v19, %v4426_v55 }
0x16b3   : > { %v13563_v12 = vadd.f32 %v4450_v40, %v13165_v4  ;;  %v4451_v14 = vmul.f32 %v4447_v10, %v4446_v17 }
0x16b4   : > { %v13566_v0 = vadd.f32 %v4448_v61, %v13168_v34  ;;  %v4449_v13 = vmul.f32 %v4447_v10, %v4444_v58 }
0x16b5   : > { %v13574_v56 = vadd.f32 %v4451_v14, %v13171_v63  ;;  %v4459_v34 = vmul.f32 %v13563_v12, %v13563_v12 }
0x16b6   : > { %v13569_v59 = vadd.f32 %v4449_v13, %v13174_v6  ;;  %v4457_v54 = vmul.f32 %v13566_v0, %v13566_v0 }
0x16b7   : > { %v4467_v6 = vsel %vm940_vm15, %v4459_v34, 0.0  ;;  %v4460_v20 = vmul.f32 %v13574_v56, %v13574_v56 }
0x16b8   : > { %v4461_v37 = vsel %vm940_vm15, %v4457_v54, 0.0  ;;  %v4458_v4 = vmul.f32 %v13569_v59, %v13569_v59 }
0x16b9   : > { %4462 = vadd.xlane.f32.xlu0 %v4461_v37  ;;  %v4470_v63 = vsel %vm940_vm15, %v4460_v20, 0.0  ;;  %v4503_v37 = vld [vmem:[%s14800_s4 + $0x34] ss:$0 sm:$0xff] }
0x16ba   : > { %v4464_v28 = vsel %vm940_vm15, %v4458_v4, 0.0 }
0x16bb   : > { %4465 = vadd.xlane.f32.xlu1 %v4464_v28 }
0x16bd   : > { %4468 = vadd.xlane.f32.xlu0 %v4467_v6 }
0x16c1   : > { %4471 = vadd.xlane.f32.xlu0 %v4470_v63 }
0x16cc   : > { %4624 = vrot.lane.b32.xlu1 %v12092_v26, %s12359_s13 }
0x16d0   : > { %4626 = vrot.lane.b32.xlu1 %v12093_v7, %s12359_s13 }
0x16d4   : > { %4628 = vrot.lane.b32.xlu1 %v12094_v49, %s12359_s13 }
0x16d7   : > { %4622 = vrot.lane.b32.xlu0 %v12095_v16, %s12359_s13 }
0x16d8   : > { %4632 = vrot.lane.b32.xlu1 %v12096_v50, %s12359_s13 }
0x16db   : > { %4630 = vrot.lane.b32.xlu0 %v12097_v31, %s12359_s13 }
0x16dc   : > { %4636 = vrot.lane.b32.xlu1 %v12098_v5, %s12359_s13 }
0x16df   : > { %4634 = vrot.lane.b32.xlu0 %v12099_v41, %s12359_s13 }
0x1746   : > { %v4463_v3 = vpop.xlane.xlu0 %4462 }
0x1747   : > { %v4473_v32 = vmul.f32 0.015625, %v4463_v3 }
0x1748   : > { %v4466_v47 = vpop.xlane.xlu1 %4465 }
0x1749   : > { %v4477_v33 = vadd.f32 1e-06, %v4473_v32  ;;  %v4474_v46 = vmul.f32 0.015625, %v4466_v47 }
0x174a   : > { %v4469_v39 = vpop.xlane.xlu0 %4468 }
0x174b   : > { %12048 = vrsqrt.f32 %v4477_v33  ;;  %v4478_v51 = vadd.f32 1e-06, %v4474_v46  ;;  %v4475_v18 = vmul.f32 0.015625, %v4469_v39 }
0x174c   : > { %v4625_v17 = vpop.permute.xlu1 %4624 }
0x174d   : > { %12050 = vrsqrt.f32 %v4478_v51  ;;  %v4479_v24 = vadd.f32 1e-06, %v4475_v18 }
0x174e   : > { %v4472_v36 = vpop.xlane.xlu0 %4471 }
0x174f   : > { %12052 = vrsqrt.f32 %v4479_v24  ;;  %v4476_v27 = vmul.f32 0.015625, %v4472_v36 }
0x1750   : > { %v4627_v55 = vpop.permute.xlu1 %4626 }
0x1751   : > { %v4480_v38 = vadd.f32 1e-06, %v4476_v27 }
0x1752   : > { %v4623_v40 = vpop.permute.xlu0 %4622 }
0x1753   : > { %12054 = vrsqrt.f32 %v4480_v38  ;;  %10739 = vmatprep.subr.bf16.mxu1 %v4623_v40 }
0x1754   : > { %10740 = vmatpush3.bf16.msra.mxu1 %v4623_v40  ;;  %v4629_v61 = vpop.permute.xlu1 %4628 }
0x1755   : > { %v12049_v23 = vpop.eup %12048  ;;  %10741 = vmatprep.subr.bf16.mxu1 %v4625_v17 }
0x1756   : > { %v4485_v30 = vmul.f32 %v12049_v23, %v13566_v0  ;;  %v4631_v58 = vpop.permute.xlu0 %4630 }
0x1757   : > { %v12051_v53 = vpop.eup %12050 }
0x1758   : > { %v4486_v62 = vmul.f32 %v12051_v53, %v13569_v59  ;;  %v4489_v29 = vmul.f32 %v4485_v30, %v4456_v9  ;;  %10742 = vmatpush3.bf16.msra.mxu1 %v4625_v17  ;;  %v4633_v14 = vpop.permute.xlu1 %4632  ;;  %v12367_v17 = vmov 0.0|0.0  }
0x1759   : > { %v12053_v44 = vpop.eup %12052  ;;  %10743 = vmatprep.subr.bf16.mxu1 %v4627_v55  ;;  %11366 = vmatprep.subr.bf16.mxu0 %v12367_v17 }
0x175a   : > { %v4490_v60 = vmul.f32 %v4486_v62, %v4456_v9  ;;  %v4487_v19 = vmul.f32 %v12053_v44, %v13563_v12  ;;  %v4635_v13 = vpop.permute.xlu0 %4634 }
0x175c   : > { %v4501_v25 = vpack.c.bf16 %v4490_v60, %v4489_v29  ;;  %v4491_v15 = vmul.f32 %v4487_v19, %v4456_v9  ;;  %10744 = vmatpush3.bf16.msra.mxu1 %v4627_v55  ;;  %v4637_v54 = vpop.permute.xlu1 %4636  ;;  %v4621_v55 = vld [vmem:[%s14800_s4 + $0x35] ss:$0 sm:$0xff] }
0x175d   : > { %v12055_v10 = vpop.eup %12054  ;;  %10745 = vmatprep.subr.bf16.mxu1 %v4629_v61 }
0x175e   : > { %v4488_v48 = vmul.f32 %v12055_v10, %v13574_v56  ;;  %10735 = vmatprep.mubr.msk.bf16.mxu0 %vm940_vm15, %v4501_v25 }
0x1760   : > { %v4492_v45 = vmul.f32 %v4488_v48, %v4456_v9  ;;  %10746 = vmatpush3.bf16.msra.mxu1 %v4629_v61 }
0x1761   : > { %10747 = vmatprep.subr.bf16.mxu1 %v4631_v58 }
0x1762   : > { %v4502_v11 = vpack.c.bf16 %v4492_v45, %v4491_v15 }
0x1764   : > { %10736 = vmatmul.mubr.msk.bf16.vlgmr.msra.gmra.mrb[52].mxu0 %vm940_vm15, %v4502_v11  ;;  %10748 = vmatpush3.bf16.msra.mxu1 %v4631_v58  ;;  %v4695_v58 = vld [vmem:[%s14800_s4 + $0x36] ss:$0 sm:$0xff] }
0x1765   : > { %10767 = vmatprep.mubr.msk.f32.mxu0 %vm12356_vm0, %v12355_v2  ;;  %10749 = vmatprep.subr.bf16.mxu1 %v4633_v14 }
0x1768   : > { %10750 = vmatpush3.bf16.msra.mxu1 %v4633_v14 }
0x1769   : > { %10751 = vmatprep.subr.bf16.mxu1 %v4635_v13 }
0x176c   : > { %10752 = vmatpush3.bf16.msra.mxu1 %v4635_v13 }
0x176d   : > { %10753 = vmatprep.subr.bf16.mxu1 %v4637_v54 }
0x1770   : > { %10754 = vmatpush3.bf16.msra.mxu1 %v4637_v54 }
0x1837   : > { %v10737_v4 = vpop.f32.mrb[52].mxu0 }
0x1838   : > { %v4577_v34 = vadd.f32 %v10737_v4, %v4503_v37  ;;  %v4568_v28 = vpop.f32.mrb[53].mxu0 }
0x1839   : > { %v4569_v6 = vadd.f32 %v4568_v28, %v4503_v37  ;;  %v10738_v20 = vpop.f32.mrb[54].mxu0 }
0x183a   : > { %v4585_v63 = vmul.f32 %v4577_v34, %v4577_v34  ;;  %v4580_v26 = vadd.f32 %v10738_v20, %v4503_v37  ;;  %v4571_v7 = vpop.f32.mrb[55].mxu0 }
0x183b   : > { %v4583_v42 = vmul.f32 %v4569_v6, %v4569_v6  ;;  %v4572_v49 = vadd.f32 %v4571_v7, %v4503_v37 }
0x183c   : > { %v4589_v8 = vmul.f32 %v4585_v63, %v4577_v34  ;;  %v4586_v16 = vmul.f32 %v4580_v26, %v4580_v26 }
0x183d   : > { %v4587_v50 = vmul.f32 %v4583_v42, %v4569_v6  ;;  %v4584_v22 = vmul.f32 %v4572_v49, %v4572_v49 }
0x183e   : > { %v4593_v31 = vmul.f32 0.044715, %v4589_v8  ;;  %v4590_v5 = vmul.f32 %v4586_v16, %v4580_v26 }
0x183f   : > { %v4591_v21 = vmul.f32 0.044715, %v4587_v50  ;;  %v4588_v41 = vmul.f32 %v4584_v22, %v4572_v49 }
0x1840   : > { %v4597_v3 = vadd.f32 %v4593_v31, %v4577_v34  ;;  %v4594_v32 = vmul.f32 0.044715, %v4590_v5 }
0x1841   : > { %v4595_v47 = vadd.f32 %v4591_v21, %v4569_v6  ;;  %v4592_v33 = vmul.f32 0.044715, %v4588_v41 }
0x1842   : > { %v4601_v46 = vmul.f32 0.7978846, %v4597_v3  ;;  %v4598_v39 = vadd.f32 %v4594_v32, %v4580_v26 }
0x1843   : > { %v4599_v51 = vmul.f32 0.7978846, %v4595_v47  ;;  %v4596_v18 = vadd.f32 %v4592_v33, %v4572_v49  ;;  %v11845_v47 = vld [vmem:[%s14801_s5 + $0x18] ss:$60 sps:$4 sm:$0xff]   ;;  %v11846_v33 = vld [vmem:[%s14801_s5 + $0x90] ss:$60 sps:$4 sm:$0xff]  }
0x1844   : > { %12056 = vtanh.f32 %v4601_v46  ;;  %v4602_v24 = vmul.f32 0.7978846, %v4598_v39  ;;  %v11847_v46 = vld [vmem:[%s14801_s5 + $0x108] ss:$60 sps:$4 sm:$0xff]   ;;  %v11848_v39 = vld [vmem:[%s14801_s5 + $0x180] ss:$60 sps:$4 sm:$0xff]  }
0x1845   : > { %12058 = vtanh.f32 %v4599_v51  ;;  %v4600_v36 = vmul.f32 0.7978846, %v4596_v18 }
0x1846   : > { %12060 = vtanh.f32 %v4602_v24 }
0x1847   : > { %12062 = vtanh.f32 %v4600_v36 }
0x184e   : > { %v12057_v27 = vpop.eup %12056 }
0x184f   : > { %v12059_v38 = vpop.eup %12058  ;;  %v4609_v23 = vadd.f32 1.0, %v12057_v27 }
0x1850   : > { %v12061_v30 = vpop.eup %12060  ;;  %v4607_v53 = vadd.f32 1.0, %v12059_v38 }
0x1851   : > { %v12063_v9 = vpop.eup %12062  ;;  %v4613_v62 = vmul.f32 0.5, %v4609_v23  ;;  %v4610_v44 = vadd.f32 1.0, %v12061_v30 }
0x1852   : > { %v4608_v29 = vadd.f32 1.0, %v12063_v9  ;;  %v4611_v60 = vmul.f32 0.5, %v4607_v53 }
0x1853   : > { %v4614_v19 = vmul.f32 0.5, %v4610_v44  ;;  %v4617_v10 = vmul.f32 %v4613_v62, %v4577_v34 }
0x1854   : > { %v4612_v25 = vmul.f32 0.5, %v4608_v29  ;;  %v4615_v15 = vmul.f32 %v4611_v60, %v4569_v6 }
0x1855   : > { %v4618_v48 = vmul.f32 %v4614_v19, %v4580_v26 }
0x1856   : > { %v4616_v45 = vmul.f32 %v4612_v25, %v4572_v49 }
0x1857   : > { %v4620_v11 = vpack.c.bf16 %v4618_v48, %v4617_v10 }
0x1858   : > { %v4619_v40 = vpack.c.bf16 %v4616_v45, %v4615_v15 }
0x185a   : > { %10755 = vmatprep.mubr.bf16.mxu1 %v4619_v40  ;;  %v13725_v40 = vld [vmem:[%s14801_s5 + $0x94] ss:$60 sps:$4 sm:$0xff]  }
0x185b   : > { %10756 = vmatmul.mubr.bf16.vlgmr.msra.gmra.mrb[60].mxu1 %v4620_v11  ;;  %v13717_v11 = vld [vmem:[%s14801_s5 + $0x1c] ss:$60 sps:$4 sm:$0xff]  }
0x185c   : > { %10794 = vmatprep.subr.bf16.mxu1 %v13717_v11 }
0x185d   : > { %10795 = vmatpush3.bf16.msra.mxu1 %v13717_v11 }
0x185e   : > { %10796 = vmatprep.subr.bf16.mxu1 %v13725_v40 }
0x1861   : > { %10797 = vmatpush3.bf16.msra.mxu1 %v13725_v40 }
0x192e   : > { %v10757_v61 = vpop.f32.mrb[60].mxu1 }
0x192f   : > { %v4680_v14 = vpop.f32.mrb[61].mxu1  ;;  %v4689_v34 = vadd.f32 %v10757_v61, %v4621_v55  ;;  %v13740_v61 = vld [vmem:[%s14801_s5 + $0x184] ss:$60 sps:$4 sm:$0xff]  }
0x1930   : > { %v4681_v13 = vadd.f32 %v4680_v14, %v4621_v55  ;;  %v10758_v54 = vpop.f32.mrb[62].mxu1 }
0x1931   : > { %v4692_v37 = vadd.f32 %v10758_v54, %v4621_v55  ;;  %v4683_v4 = vpop.f32.mrb[63].mxu1  ;;  %v4698_v7 = vmul.f32 %v4695_v58, %v4689_v34 }
0x1932   : > { %v4696_v28 = vmul.f32 %v4695_v58, %v4681_v13  ;;  %v4684_v6 = vadd.f32 %v4683_v4, %v4621_v55  ;;  %v13733_v55 = vld [vmem:[%s14801_s5 + $0x10c] ss:$60 sps:$4 sm:$0xff]  }
0x1933   : > { %v4699_v63 = vmul.f32 %v4695_v58, %v4692_v37  ;;  %v4702_v50 = vadd.f32 %v4698_v7, %v13563_v12  ;;  %10798 = vmatprep.subr.bf16.mxu1 %v13733_v55 }
0x1934   : > { %v4700_v20 = vadd.f32 %v4696_v28, %v13566_v0  ;;  %v4697_v26 = vmul.f32 %v4695_v58, %v4684_v6  ;;  %10799 = vmatpush3.bf16.msra.mxu1 %v13733_v55 }
0x1935   : > { %v4703_v8 = vadd.f32 %v4699_v63, %v13574_v56  ;;  %v4706_v56 = vsel %vm13661_vm14, 0.11111111, %v12355_v2  ;;  %v4883_v21 = vsel %vm940_vm15, %v4702_v50, 0.0  ;;  %10800 = vmatprep.subr.bf16.mxu1 %v13740_v61 }
0x1936   : > { %v4701_v42 = vadd.f32 %v4697_v26, %v13569_v59  ;;  %v4877_v49 = vsel %vm940_vm15, %v4700_v20, 0.0 }
0x1937   : > { %4878 = vadd.xlane.f32.xlu1 %v4877_v49  ;;  %v11370_v59 = vpack.c.bf16 %v4703_v8, %v4702_v50  ;;  %v4886_v41 = vsel %vm940_vm15, %v4703_v8, 0.0 }
0x1938   : > { %v11367_v16 = vpack.c.bf16 %v4701_v42, %v4700_v20  ;;  %v4880_v31 = vsel %vm940_vm15, %v4701_v42, 0.0  ;;  %10801 = vmatpush3.bf16.msra.mxu1 %v13740_v61 }
0x1939   : > { %11380 = vmatprep.subr.bf16.mxu1 %v12367_v17 }
0x193a   : > { %11368 = vmatpush3.bf16.msra.mxu0 %v11367_v16 }
0x193b   : > { %11369 = vmatprep.subr.bf16.mxu0 %v12367_v17 }
0x193e   : > { %11371 = vmatpush3.bf16.msra.mxu0 %v11370_v59  ;;  %v5007_v59 = vld [vmem:[%s14800_s4 + $0x43] ss:$0 sm:$0xff] }
0x193f   : > { %10770 = vmatprep.subr.bf16.mxu0 %v12355_v2 }
0x1941   : > { %10768 = vmatmul.mubr.msk.f32.vlgmr.msra.gmra.mrb[56].mxu0 %vm1315_vm9, %v4706_v56 }
0x1942   : > { %10778 = vmatprep.mubr.msk.bf16.mxu0 %vm12356_vm0, %v12355_v2  ;;  %10771 = vmatpush3.bf16.msra.mxu0 %v11845_v47 }
0x1943   : > { %10772 = vmatprep.subr.bf16.mxu0 %v12355_v2 }
0x1946   : > { %10773 = vmatpush3.bf16.msra.mxu0 %v11846_v33 }
0x1947   : > { %10774 = vmatprep.subr.bf16.mxu0 %v12355_v2 }
0x194a   : > { %10775 = vmatpush3.bf16.msra.mxu0 %v11847_v46 }
0x194b   : > { %10776 = vmatprep.subr.bf16.mxu0 %v12355_v2 }
0x194e   : > { %10777 = vmatpush3.bf16.msra.mxu0 %v11848_v39 }
0x19c4   : > { %v4879_v12 = vpop.xlane.xlu1 %4878 }
0x19c5   : > { %v4889_v22 = vmul.f32 0.015625, %v4879_v12  ;;  %v4875_v12 = vld [vmem:[%s14800_s4 + $0x41] ss:$0 sm:$0xff] }
0x19c7   : > { %v13674_v5 = vsub.f32 %v4700_v20, %v4889_v22 }
0x19c9   : > { %v4897_v3 = vmul.f32 %v13674_v5, %v13674_v5 }
0x19cb   : > { %v4901_v32 = vsel %vm940_vm15, %v4897_v3, 0.0 }
0x1a14   : > { %v4776_v35 = vpop.f32.mrb[56].mxu0 }
0x1a15   : > { %v4783_v57 = vsel %vm4782_vm3, %v4776_v35, 0.0  ;;  %v10769_v43 = vpop.f32.mrb[57].mxu0 }
0x1a16   : > { %4784 = vadd.xlane.f32.xlu0 %v4783_v57  ;;  %v5008_v43 = vld [vmem:[%s14800_s4 + $0x44] ss:$0 sm:$0xff] }
0x1a1a   : > { %4881 = vadd.xlane.f32.xlu0 %v4880_v31 }
0x1a1e   : > { %4884 = vadd.xlane.f32.xlu0 %v4883_v21 }
0x1a22   : > { %4887 = vadd.xlane.f32.xlu0 %v4886_v41 }
0x1a26   : > { %4902 = vadd.xlane.f32.xlu0 %v4901_v32 }
0x1aa3   : > { %v4785_v51 = vpop.xlane.xlu0 %4784 }
0x1aa4   : > { %v4786_v18 = vmul.f32 0.015625, %v4785_v51 }
0x1aa6   : > { %v13696_v27 = vsub.f32 %v4776_v35, %v4786_v18 }
0x1aa7   : > { %v4882_v24 = vpop.xlane.xlu0 %4881 }
0x1aa8   : > { %v4890_v36 = vmul.f32 0.015625, %v4882_v24  ;;  %v4788_v44 = vmul.f32 %v13696_v27, %v13696_v27  ;;  %v4876_v24 = vld [vmem:[%s14800_s4 + $0x42] ss:$0 sm:$0xff] }
0x1aaa   : > { %v4894_v38 = vsub.f32 %v4701_v42, %v4890_v36  ;;  %v4789_v10 = vsel %vm4782_vm3, %v4788_v44, 0.0 }
0x1aab   : > { %v4885_v23 = vpop.xlane.xlu0 %4884 }
0x1aac   : > { %v4891_v30 = vmul.f32 0.015625, %v4885_v23  ;;  %v4898_v53 = vmul.f32 %v4894_v38, %v4894_v38 }
0x1aae   : > { %v13698_v9 = vsub.f32 %v4702_v50, %v4891_v30  ;;  %v4904_v62 = vsel %vm940_vm15, %v4898_v53, 0.0 }
0x1aaf   : > { %4905 = vadd.xlane.f32.xlu1 %v4904_v62  ;;  %v4888_v29 = vpop.xlane.xlu0 %4887 }
0x1ab0   : > { %v4892_v60 = vmul.f32 0.015625, %v4888_v29  ;;  %v4899_v19 = vmul.f32 %v13698_v9, %v13698_v9 }
0x1ab2   : > { %v13705_v25 = vsub.f32 %v4703_v8, %v4892_v60  ;;  %v4907_v48 = vsel %vm940_vm15, %v4899_v19, 0.0 }
0x1ab3   : > { %4790 = vadd.xlane.f32.xlu1 %v4789_v10  ;;  %4908 = vadd.xlane.f32.xlu0 %v4907_v48  ;;  %v4903_v58 = vpop.xlane.xlu0 %4902 }
0x1ab4   : > { %v4900_v15 = vmul.f32 %v13705_v25, %v13705_v25  ;;  %v4913_v14 = vmul.f32 0.015625, %v4903_v58 }
0x1ab6   : > { %v4910_v45 = vsel %vm940_vm15, %v4900_v15, 0.0  ;;  %v4917_v13 = vadd.f32 1e-05, %v4913_v14 }
0x1ab7   : > { %4911 = vadd.xlane.f32.xlu1 %v4910_v45 }
0x1ab8   : > { %12064 = vrsqrt.f32 %v4917_v13 }
0x1ac2   : > { %v12065_v49 = vpop.eup %12064 }
0x1ac3   : > { %v4925_v50 = vmul.f32 %v12065_v49, %v13674_v5  ;;  %v4780_v5 = vld [vmem:[%s14800_s4 + $0x37] ss:$0 sm:$0xff] }
0x1ac5   : > { %v5009_v57 = vmul.f32 %v5007_v59, %v4925_v50 }
0x1ac7   : > { %v5013_v32 = vadd.f32 %v5009_v57, %v5008_v43  ;;  %v4939_v57 = vld [vmem:[%s14800_s4 + $0x46] ss:$0 sm:$0xff] }
0x1ac8   : > { %4942 = vrot.lane.b32.xlu1 %v11846_v33, %s12359_s13 }
0x1ac9   : > { %4940 = vrot.lane.b32.xlu0 %v11845_v47, %s12359_s13 }
0x1acc   : > { %4944 = vrot.lane.b32.xlu1 %v11847_v46, %s12359_s13  ;;  %v4781_v46 = vld [vmem:[%s14800_s4 + $0x40] ss:$0 sm:$0xff] }
0x1ad0   : > { %4946 = vrot.lane.b32.xlu1 %v11848_v39, %s12359_s13  ;;  %v4929_v39 = vmul.f32 %v4925_v50, %v4875_v12 }
0x1b3c   : > { %v4906_v54 = vpop.xlane.xlu1 %4905 }
0x1b3d   : > { %v4914_v37 = vmul.f32 0.015625, %v4906_v54 }
0x1b3f   : > { %v4918_v4 = vadd.f32 1e-05, %v4914_v37 }
0x1b40   : > { %v4791_v34 = vpop.xlane.xlu1 %4790  ;;  %v4909_v28 = vpop.xlane.xlu0 %4908 }
0x1b41   : > { %12066 = vrsqrt.f32 %v4918_v4  ;;  %v4792_v6 = vmul.f32 0.015625, %v4791_v34  ;;  %v4915_v20 = vmul.f32 0.015625, %v4909_v28 }
0x1b43   : > { %v4793_v63 = vadd.f32 1e-05, %v4792_v6  ;;  %v4919_v26 = vadd.f32 1e-05, %v4915_v20  ;;  %v5027_v6 = vld [vmem:[%s14800_s4 + $0x47] ss:$0 sm:$0xff] }
0x1b44   : > { %v4912_v7 = vpop.xlane.xlu1 %4911  ;;  %v4941_v42 = vpop.permute.xlu0 %4940 }
0x1b45   : > { %12068 = vrsqrt.f32 %v4793_v63  ;;  %v4916_v8 = vmul.f32 0.015625, %v4912_v7  ;;  %10782 = vmatprep.subr.bf16.mxu0 %v4941_v42 }
0x1b46   : > { %12070 = vrsqrt.f32 %v4919_v26 }
0x1b47   : > { %v4920_v16 = vadd.f32 1e-05, %v4916_v8 }
0x1b48   : > { %v4943_v23 = vpop.permute.xlu1 %4942 }
0x1b49   : > { %12072 = vrsqrt.f32 %v4920_v16 }
0x1b4b   : > { %v12067_v56 = vpop.eup %12066 }
0x1b4c   : > { %v4926_v35 = vmul.f32 %v12067_v56, %v4894_v38  ;;  %v4945_v10 = vpop.permute.xlu1 %4944 }
0x1b4e   : > { %v5010_v22 = vmul.f32 %v5007_v59, %v4926_v35  ;;  %v4930_v21 = vmul.f32 %v4926_v35, %v4875_v12 }
0x1b4f   : > { %v12069_v31 = vpop.eup %12068 }
0x1b50   : > { %v12071_v41 = vpop.eup %12070  ;;  %v4795_v3 = vmul.f32 %v12069_v31, %v13696_v27  ;;  %v5014_v47 = vadd.f32 %v5010_v22, %v5008_v43  ;;  %v4934_v38 = vadd.f32 %v4930_v21, %v4876_v24  ;;  %v4947_v15 = vpop.permute.xlu1 %4946 }
0x1b51   : > { %v4927_v33 = vmul.f32 %v12071_v41, %v13698_v9  ;;  %v4933_v9 = vadd.f32 %v4929_v39, %v4876_v24 }
0x1b52   : > { %v5025_v51 = vpack.c.bf16 %v5014_v47, %v5013_v32  ;;  %v4796_v18 = vmul.f32 %v4795_v3, %v4780_v5 }
0x1b53   : > { %v12073_v36 = vpop.eup %12072  ;;  %v5011_v30 = vmul.f32 %v5007_v59, %v4927_v33  ;;  %v4937_v29 = vpack.c.bf16 %v4934_v38, %v4933_v9  ;;  %v4931_v45 = vmul.f32 %v4927_v33, %v4875_v12 }
0x1b54   : > { %v4928_v27 = vmul.f32 %v12073_v36, %v13705_v25  ;;  %10802 = vmatprep.mubr.msk.bf16.mxu1 %vm940_vm15, %v5025_v51  ;;  %v4797_v53 = vadd.f32 %v4796_v18, %v4781_v46  ;;  %v4807_v46 = vld [vmem:[%s14800_s4 + $0x45] ss:$0 sm:$0xff]  ;;  %v13811_v18 = vsel %vm13661_vm14, 0.0, %v12364_v52 }
0x1b55   : > { %v5015_v60 = vadd.f32 %v5011_v30, %v5008_v43  ;;  %v4935_v14 = vadd.f32 %v4931_v45, %v4876_v24 }
0x1b56   : > { %v5012_v62 = vmul.f32 %v5007_v59, %v4928_v27  ;;  %v4806_v44 = vpack.c.bf16 %v4797_v53, %v4797_v53  ;;  %v4932_v25 = vmul.f32 %v4928_v27, %v4875_v12 }
0x1b58   : > { %10779 = vmatmul.mubr.msk.bf16.vlgmr.msra.gmra.mrb[60].mxu0 %vm940_vm15, %v4806_v44  ;;  %v5016_v19 = vadd.f32 %v5012_v62, %v5008_v43  ;;  %v4936_v58 = vadd.f32 %v4932_v25, %v4876_v24 }
0x1b59   : > { %10783 = vmatpush3.bf16.msra.mxu0 %v4941_v42  ;;  %10790 = vmatprep.mubr.msk.bf16.mxu0 %vm940_vm15, %v4937_v29 }
0x1b5a   : > { %10784 = vmatprep.subr.bf16.mxu0 %v4943_v23  ;;  %v5026_v48 = vpack.c.bf16 %v5016_v19, %v5015_v60  ;;  %v4938_v13 = vpack.c.bf16 %v4936_v58, %v4935_v14 }
0x1b5c   : > { %10803 = vmatmul.mubr.msk.bf16.vlgmr.msra.gmra.mrb[64].mxu1 %vm940_vm15, %v5026_v48 }
0x1b5d   : > { %10785 = vmatpush3.bf16.msra.mxu0 %v4943_v23  ;;  %10825 = vmatprep.mubr.msk.f32.mxu1 %vm12356_vm0, %v12355_v2 }
0x1b5e   : > { %10786 = vmatprep.subr.bf16.mxu0 %v4945_v10 }
0x1b61   : > { %10787 = vmatpush3.bf16.msra.mxu0 %v4945_v10 }
0x1b62   : > { %10788 = vmatprep.subr.bf16.mxu0 %v4947_v15 }
0x1b65   : > { %10789 = vmatpush3.bf16.msra.mxu0 %v4947_v15 }
0x1b66   : > { %11372 = vmatprep.subr.bf16.mxu0 %v12367_v17 }
0x1b68   : > { %10791 = vmatmul.mubr.msk.bf16.vlgmr.msra.gmra.mrb[64].mxu0 %vm940_vm15, %v4938_v13  ;;  %vm5194_vm15 = vcmask 254976  }
0x1b69   : > { %10814 = vmatprep.mubr.msk.f32.mxu0 %vm12356_vm0, %v12355_v2 }
0x1c2b   : > { %v4869_v54 = vpop.f32.mrb[60].mxu0 }
0x1c2c   : > { %v10780_v37 = vpop.f32.mrb[61].mxu0  ;;  %v4870_v39 = vadd.f32 %v4869_v54, %v4807_v46 }
0x1c2d   : > { %v4872_v4 = vpop.f32.mrb[62].mxu0 }
0x1c2e   : > { %v10781_v34 = vpop.f32.mrb[63].mxu0  ;;  %v13802_v51 = vmul.f32 0.25, %v4870_v39 }
0x1c2f   : > { %v10804_v28 = vpop.f32.mrb[64].mxu1 }
0x1c30   : > { %v5092_v20 = vpop.f32.mrb[65].mxu1  ;;  %v5101_v26 = vadd.f32 %v10804_v28, %v5027_v6 }
0x1c31   : > { %v10805_v63 = vpop.f32.mrb[66].mxu1  ;;  %v5093_v49 = vadd.f32 %v5092_v20, %v5027_v6 }
0x1c32   : > { %v5104_v7 = vadd.f32 %v10805_v63, %v5027_v6  ;;  %v5095_v42 = vpop.f32.mrb[67].mxu1 }
0x1c33   : > { %v5096_v8 = vadd.f32 %v5095_v42, %v5027_v6 }
0x1c34   : > { %v11384_v16 = vpack.c.bf16 %v5104_v7, %v5101_v26  ;;  %v13780_v50 = vpack.i.bf16 %v5104_v7, %v5101_v26 }
0x1c35   : > { %v11381_v59 = vpack.c.bf16 %v5096_v8, %v5093_v49  ;;  %v13782_v56 = vpack.i.bf16 %v5096_v8, %v5093_v49 }
0x1c37   : > { %11382 = vmatpush3.bf16.msra.mxu1 %v11381_v59 }
0x1c38   : > { %11383 = vmatprep.subr.bf16.mxu1 %v12367_v17 }
0x1c3b   : > { %v10792_v35 = vpop.f32.mrb[64].mxu0  ;;  %11385 = vmatpush3.bf16.msra.mxu1 %v11384_v16 }
0x1c3c   : > { %v4992_v43 = vpop.f32.mrb[65].mxu0  ;;  %11386 = vmatprep.subr.bf16.mxu1 %v12367_v17  ;;  %v5001_v22 = vadd.f32 %v10792_v35, %v4939_v57 }
0x1c3d   : > { %v10793_v12 = vpop.f32.mrb[66].mxu0  ;;  %v4993_v21 = vadd.f32 %v4992_v43, %v4939_v57 }
0x1c3e   : > { %v5004_v31 = vadd.f32 %v10793_v12, %v4939_v57  ;;  %v4995_v5 = vpop.f32.mrb[67].mxu0 }
0x1c3f   : > { %v4996_v41 = vadd.f32 %v4995_v5, %v4939_v57 }
0x1c40   : > { %v11377_v3 = vpack.c.bf16 %v5004_v31, %v5001_v22  ;;  %v13789_v32 = vpack.i.bf16 %v5004_v31, %v5001_v22 }
0x1c41   : > { %v11373_v47 = vpack.c.bf16 %v4996_v41, %v4993_v21  ;;  %v13791_v33 = vpack.i.bf16 %v4996_v41, %v4993_v21 }
0x1c43   : > { %11375 = vmatpush3.bf16.xpose.msk.msra.mxu0 %vm12797_vm1, %v11373_v47 }
0x1c44   : > { %11376 = vmatprep.subr.bf16.mxu0 %v12367_v17 }
0x1c4b   : > { %11379 = vmatpush3.bf16.xpose.msk.msra.mxu0 %vm12797_vm1, %v11377_v3 }
0x1c4c   : > { %11394 = vmatprep.subr.bf16.mxu0 %v12367_v17 }
0x1c52   : > { %10815 = vmatmul.mubr.msk.f32.vlgmr.msra.gmra.mrb[58].mxu0 %vm801_vm11, %v13802_v51 }
0x1c53   : > { %10847 = vmatprep.mubr.msk.f32.mxu0 %vm12356_vm0, %v12355_v2 }
0x1d25   : > { %v5190_v24 = vpop.f32.mrb[58].mxu0 }
0x1d26   : > { %v5191_v36 = vadd.f32 %v5190_v24, %v13811_v18  ;;  %v10816_v38 = vpop.f32.mrb[59].mxu0 }
0x1d28   : > { %v5195_v23 = vsel %vm5194_vm15, %v5191_v36, -inf }
0x1d29   : > { %5196 = vmax.xlane.f32.xlu0 %v5195_v23 }
0x1d3f   : > { %11714 = vrot.lane.b32.xlu0 %v13791_v33, %s12361_s20 }
0x1d43   : > { %5280 = vrot.lane.b32.xlu0 %v13802_v51, %s12361_s20 }
0x1db6   : > { %v5197_v30 = vpop.xlane.xlu0 %5196 }
0x1db7   : > { %v5198_v27 = vsub.f32 %v5191_v36, %v5197_v30 }
0x1db9   : > { %v5199_v53 = vmul.f32 1.442695, %v5198_v27 }
0x1dba   : > { %v11715_v62 = vpop.permute.xlu0 %11714 }
0x1dbb   : > { %12074 = vpow2.f32 %v5199_v53  ;;  %v11717_v44 = vunpack.i.h.bf16 %v11715_v62  ;;  %v11716_v29 = vunpack.i.l.bf16 %v11715_v62 }
0x1dbd   : > { %v11387_v10 = vpack.c.bf16 %v11717_v44, %v11716_v29 }
0x1dbe   : > { %v5281_v58 = vpop.permute.xlu0 %5280 }
0x1dc5   : > { %v12075_v52 = vpop.eup %12074 }
0x1dc6   : > { %v5201_v0 = vsel %vm5194_vm15, %v12075_v52, 0.0 }
0x1dc7   : > { %5202 = vadd.xlane.f32.xlu1 %v5201_v0 }
0x1dd8   : > { %11719 = vrot.lane.b32.xlu1 %v13789_v32, %s12361_s20 }
0x1e54   : > { %v5203_v9 = vpop.xlane.xlu1 %5202 }
0x1e55   : > { %12076 = vrcp.f32 %v5203_v9 }
0x1e58   : > { %v11720_v48 = vpop.permute.xlu1 %11719 }
0x1e59   : > { %v11722_v25 = vunpack.i.h.bf16 %v11720_v48  ;;  %v11721_v15 = vunpack.i.l.bf16 %v11720_v48 }
0x1e5b   : > { %v11391_v45 = vpack.c.bf16 %v11722_v25, %v11721_v15 }
0x1e5f   : > { %v12077_v60 = vpop.eup %12076 }
0x1e60   : > { %v5205_v19 = vmul.f32 %v12077_v60, %v12075_v52 }
0x1e62   : > { %10826 = vmatmul.mubr.msk.f32.vlgmr.msra.gmra.mrb[68].mxu1 %vm1315_vm9, %v5205_v19 }
0x1e63   : > { %11389 = vmatpush3.bf16.xpose.msk.msra.mxu1 %vm12797_vm1, %v11387_v10  ;;  %10836 = vmatprep.mubr.msk.f32.mxu1 %vm12356_vm0, %v12355_v2 }
0x1e64   : > { %11390 = vmatprep.subr.bf16.mxu1 %v12367_v17 }
0x1e6b   : > { %11393 = vmatpush3.bf16.xpose.msk.msra.mxu1 %vm12797_vm1, %v11391_v45 }
0x1e6c   : > { %10856 = vmatprep.subr.bf16.mxu1 %v12355_v2 }
0x1e72   : > { %10837 = vmatmul.mubr.msk.f32.vlgmr.msra.gmra.mrb[70].mxu1 %vm801_vm11, %v5281_v58 }
0x1e73   : > { %10858 = vmatprep.mubr.msk.bf16.mxu1 %vm12356_vm0, %v12355_v2 }
0x1f35   : > { %v13834_v14 = vpop.f32.mrb[68].mxu1 }
0x1f36   : > { %v10827_v13 = vpop.f32.mrb[69].mxu1 }
0x1f37   : > { %v5279_v13 = vpack.c.bf16 %v13834_v14, %v13834_v14 }
0x1f45   : > { %v5366_v54 = vpop.f32.mrb[70].mxu1 }
0x1f46   : > { %v5367_v37 = vadd.f32 %v5366_v54, %v13811_v18  ;;  %v10838_v4 = vpop.f32.mrb[71].mxu1 }
0x1f48   : > { %v5370_v34 = vsel %vm5194_vm15, %v5367_v37, -inf }
0x1f49   : > { %5371 = vmax.xlane.f32.xlu1 %v5370_v34 }
0x1f5a   : > { %11729 = vrot.lane.b32.xlu1 %v13780_v50, %s12361_s20 }
0x1f5e   : > { %5471 = vrot.lane.b32.xlu1 %v13725_v40, %s12359_s13 }
0x1f62   : > { %11739 = vrot.lane.b32.xlu1 %v13789_v32, %s12363_s22 }
0x1fd6   : > { %v5372_v28 = vpop.xlane.xlu1 %5371 }
0x1fd7   : > { %v5373_v6 = vsub.f32 %v5367_v37, %v5372_v28 }
0x1fd9   : > { %v5374_v20 = vmul.f32 1.442695, %v5373_v6 }
0x1fda   : > { %v11730_v7 = vpop.permute.xlu1 %11729 }
0x1fdb   : > { %12078 = vpow2.f32 %v5374_v20  ;;  %v11732_v16 = vunpack.i.h.bf16 %v11730_v7  ;;  %v11731_v59 = vunpack.i.l.bf16 %v11730_v7 }
0x1fdd   : > { %v11398_v43 = vpack.c.bf16 %v11732_v16, %v11731_v59 }
0x1fde   : > { %v5472_v22 = vpop.permute.xlu1 %5471 }
0x1fe2   : > { %v11740_v39 = vpop.permute.xlu1 %11739 }
0x1fe3   : > { %v11742_v24 = vunpack.i.h.bf16 %v11740_v39  ;;  %v11741_v36 = vunpack.i.l.bf16 %v11740_v39 }
0x1fe5   : > { %v12079_v63 = vpop.eup %12078  ;;  %v11405_v38 = vpack.c.bf16 %v11742_v24, %v11741_v36 }
0x1fe6   : > { %v5376_v26 = vsel %vm5194_vm15, %v12079_v63, 0.0 }
0x1fe7   : > { %5377 = vadd.xlane.f32.xlu0 %v5376_v26 }
0x1ffd   : > { %11724 = vrot.lane.b32.xlu0 %v13782_v56, %s12361_s20 }
0x2001   : > { %11734 = vrot.lane.b32.xlu0 %v13791_v33, %s12363_s22 }
0x2005   : > { %5563 = vrot.lane.b32.xlu0 %v13802_v51, %s12363_s22 }
0x2074   : > { %v5378_v40 = vpop.xlane.xlu0 %5377 }
0x2075   : > { %12080 = vrcp.f32 %v5378_v40 }
0x2078   : > { %v11725_v42 = vpop.permute.xlu0 %11724 }
0x2079   : > { %v11727_v49 = vunpack.i.h.bf16 %v11725_v42  ;;  %v11726_v8 = vunpack.i.l.bf16 %v11725_v42 }
0x207b   : > { %v11395_v35 = vpack.c.bf16 %v11727_v49, %v11726_v8 }
0x207c   : > { %v11735_v31 = vpop.permute.xlu0 %11734 }
0x207d   : > { %11396 = vmatpush3.bf16.msra.mxu0 %v11395_v35  ;;  %v11737_v5 = vunpack.i.h.bf16 %v11735_v31  ;;  %v11736_v21 = vunpack.i.l.bf16 %v11735_v31 }
0x207e   : > { %11397 = vmatprep.subr.bf16.mxu0 %v12367_v17 }
0x207f   : > { %v12081_v57 = vpop.eup %12080  ;;  %v11401_v46 = vpack.c.bf16 %v11737_v5, %v11736_v21 }
0x2080   : > { %v5380_v12 = vmul.f32 %v12081_v57, %v12079_v63  ;;  %v5564_v23 = vpop.permute.xlu0 %5563 }
0x2081   : > { %11399 = vmatpush3.bf16.msra.mxu0 %v11398_v43 }
0x2082   : > { %10850 = vmatprep.subr.bf16.mxu0 %v12355_v2 }
0x2084   : > { %10848 = vmatmul.mubr.msk.f32.vlgmr.msra.gmra.mrb[68].mxu0 %vm1315_vm9, %v5380_v12 }
0x2085   : > { %10851 = vmatpush3.bf16.msra.mxu0 %v5472_v22  ;;  %10852 = vmatprep.mubr.msk.bf16.mxu0 %vm12356_vm0, %v12355_v2 }
0x2086   : > { %11400 = vmatprep.subr.bf16.mxu0 %v12367_v17 }
0x2157   : > { %v5466_v41 = vpop.f32.mrb[68].mxu0 }
0x2158   : > { %v5470_v3 = vpack.c.bf16 %v5466_v41, %v5466_v41  ;;  %v10849_v47 = vpop.f32.mrb[69].mxu0 }
0x215a   : > { %10853 = vmatmul.mubr.msk.bf16.vlgmr.msra.gmra.mrb[72].mxu0 %vm801_vm11, %v5470_v3 }
0x215b   : > { %11403 = vmatpush3.bf16.xpose.msk.msra.mxu0 %vm12797_vm1, %v11401_v46  ;;  %10870 = vmatprep.mubr.msk.f32.mxu0 %vm12356_vm0, %v12355_v2 }
0x215c   : > { %11404 = vmatprep.subr.bf16.mxu0 %v12367_v17 }
0x2163   : > { %11407 = vmatpush3.bf16.xpose.msk.msra.mxu0 %vm12797_vm1, %v11405_v38 }
0x2164   : > { %11422 = vmatprep.subr.bf16.mxu0 %v12367_v17 }
0x216a   : > { %10871 = vmatmul.mubr.msk.f32.vlgmr.msra.gmra.mrb[70].mxu0 %vm801_vm11, %v5564_v23 }
0x216b   : > { %10909 = vmatprep.mubr.msk.f32.mxu0 %vm12356_vm0, %v12355_v2 }
0x222d   : > { %v5511_v30 = vpop.f32.mrb[72].mxu0 }
0x222e   : > { %v10854_v27 = vpop.f32.mrb[73].mxu0 }
0x222f   : > { %v5514_v53 = vpop.f32.mrb[74].mxu0 }
0x2230   : > { %v10855_v52 = vpop.f32.mrb[75].mxu0 }
0x223d   : > { %v5649_v0 = vpop.f32.mrb[70].mxu0 }
0x223e   : > { %v5650_v9 = vadd.f32 %v5649_v0, %v13811_v18  ;;  %v10872_v62 = vpop.f32.mrb[71].mxu0 }
0x2240   : > { %v5653_v44 = vsel %vm5194_vm15, %v5650_v9, -inf }
0x2241   : > { %5654 = vmax.xlane.f32.xlu1 %v5653_v44 }
0x2252   : > { %11744 = vrot.lane.b32.xlu1 %v13782_v56, %s12363_s22 }
0x2256   : > { %11749 = vrot.lane.b32.xlu1 %v13780_v50, %s12363_s22 }
0x225a   : > { %11754 = vrot.lane.b32.xlu1 %v13791_v33, %s12366_s24 }
0x225e   : > { %5797 = vrot.lane.b32.xlu1 %v13802_v51, %s12366_s24 }
0x22ce   : > { %v5655_v29 = vpop.xlane.xlu1 %5654 }
0x22cf   : > { %v5656_v60 = vsub.f32 %v5650_v9, %v5655_v29 }
0x22d1   : > { %v5657_v19 = vmul.f32 1.442695, %v5656_v60 }
0x22d2   : > { %v11745_v33 = vpop.permute.xlu1 %11744 }
0x22d3   : > { %12082 = vpow2.f32 %v5657_v19  ;;  %v11747_v51 = vunpack.i.h.bf16 %v11745_v33  ;;  %v11746_v15 = vunpack.i.l.bf16 %v11745_v33 }
0x22d6   : > { %v11750_v45 = vpop.permute.xlu1 %11749 }
0x22d7   : > { %v11752_v54 = vunpack.i.h.bf16 %v11750_v45  ;;  %v11751_v37 = vunpack.i.l.bf16 %v11750_v45 }
0x22da   : > { %v11755_v63 = vpop.permute.xlu1 %11754 }
0x22db   : > { %v11757_v40 = vunpack.i.h.bf16 %v11755_v63  ;;  %v11756_v7 = vunpack.i.l.bf16 %v11755_v63 }
0x22dd   : > { %v12083_v10 = vpop.eup %12082  ;;  %v11415_v16 = vpack.c.bf16 %v11757_v40, %v11756_v7 }
0x22de   : > { %v5659_v48 = vsel %vm5194_vm15, %v12083_v10, 0.0  ;;  %v5798_v12 = vpop.permute.xlu1 %5797 }
0x22df   : > { %5660 = vadd.xlane.f32.xlu0 %v5659_v48 }
0x22f5   : > { %5517 = vrot.lane.b32.xlu0 %v13717_v11, %s12359_s13  ;;  %v11409_v11 = vpack.c.bf16 %v11747_v51, %v11746_v15 }
0x22f9   : > { %5750 = vrot.lane.b32.xlu0 %v13733_v55, %s12359_s13 }
0x22fd   : > { %11759 = vrot.lane.b32.xlu0 %v13789_v32, %s12366_s24  ;;  %v11412_v32 = vpack.c.bf16 %v11752_v54, %v11751_v37 }
0x236c   : > { %v5661_v25 = vpop.xlane.xlu0 %5660 }
0x236d   : > { %12084 = vrcp.f32 %v5661_v25 }
0x2370   : > { %v5518_v58 = vpop.permute.xlu0 %5517 }
0x2371   : > { %10857 = vmatpush3.bf16.msra.mxu1 %v5518_v58 }
0x2372   : > { %11408 = vmatprep.subr.bf16.mxu1 %v12367_v17 }
0x2374   : > { %10859 = vmatmul.mubr.msk.bf16.vlgmr.msra.gmra.mrb[72].mxu1 %vm801_vm11, %v5279_v13  ;;  %v5751_v14 = vpop.permute.xlu0 %5750 }
0x2375   : > { %11410 = vmatpush3.bf16.msra.mxu1 %v11409_v11  ;;  %10881 = vmatprep.mubr.msk.f32.mxu1 %vm12356_vm0, %v12355_v2 }
0x2376   : > { %11411 = vmatprep.subr.bf16.mxu1 %v12367_v17 }
0x2377   : > { %v12085_v55 = vpop.eup %12084 }
0x2378   : > { %v5663_v4 = vmul.f32 %v12085_v55, %v12083_v10  ;;  %v11760_v59 = vpop.permute.xlu0 %11759  ;;  %v6031_v10 = vld [vmem:[%s14800_s4 + $0x50] ss:$0 sm:$0xff]  ;;  %v11853_v55 = vld [vmem:[%s14804_s8] sm:$0xff]  }
0x2379   : > { %11413 = vmatpush3.bf16.msra.mxu1 %v11412_v32  ;;  %v11762_v35 = vunpack.i.h.bf16 %v11760_v59  ;;  %v11761_v57 = vunpack.i.l.bf16 %v11760_v59  ;;  %v11854_v32 = vld [vmem:[%s14804_s8 + $0x8] sm:$0xff]  }
0x237a   : > { %10884 = vmatprep.subr.bf16.mxu1 %v12355_v2 }
0x237b   : > { %v11419_v43 = vpack.c.bf16 %v11762_v35, %v11761_v57 }
0x237c   : > { %10882 = vmatmul.mubr.msk.f32.vlgmr.msra.gmra.mrb[76].mxu1 %vm1315_vm9, %v5663_v4  ;;  %v11855_v4 = vld [vmem:[%s14804_s8 + $0x10] sm:$0xff]  }
0x237d   : > { %10885 = vmatpush3.bf16.msra.mxu1 %v5751_v14  ;;  %10886 = vmatprep.mubr.msk.bf16.mxu1 %vm12356_vm0, %v12355_v2 }
0x237e   : > { %11414 = vmatprep.subr.bf16.mxu1 %v12367_v17 }
0x2447   : > { %v5557_v34 = vpop.f32.mrb[72].mxu1 }
0x2448   : > { %v5558_v28 = vadd.f32 %v5557_v34, %v5511_v30  ;;  %v10860_v6 = vpop.f32.mrb[73].mxu1 }
0x2449   : > { %v5560_v20 = vpop.f32.mrb[74].mxu1 }
0x244a   : > { %v10861_v26 = vpop.f32.mrb[75].mxu1  ;;  %v6033_v20 = vld [vmem:[%s14800_s4 + $0x51] ss:$0 sm:$0xff] }
0x244f   : > { %v5745_v42 = vpop.f32.mrb[76].mxu1 }
0x2450   : > { %v5749_v49 = vpack.c.bf16 %v5745_v42, %v5745_v42  ;;  %v10883_v8 = vpop.f32.mrb[77].mxu1  ;;  %v6059_v42 = vld [vmem:[%s14800_s4 + $0x53] ss:$0 sm:$0xff] }
0x2452   : > { %10887 = vmatmul.mubr.msk.bf16.vlgmr.msra.gmra.mrb[80].mxu1 %vm801_vm11, %v5749_v49 }
0x2453   : > { %11417 = vmatpush3.bf16.xpose.msk.msra.mxu1 %vm12797_vm1, %v11415_v16  ;;  %10898 = vmatprep.mubr.msk.f32.mxu1 %vm12356_vm0, %v12355_v2 }
0x2454   : > { %11418 = vmatprep.subr.bf16.mxu1 %v12367_v17 }
0x245b   : > { %11421 = vmatpush3.bf16.xpose.msk.msra.mxu1 %vm12797_vm1, %v11419_v43  ;;  %vm6035_vm1 = vcmask 386048  }
0x2462   : > { %10899 = vmatmul.mubr.msk.f32.vlgmr.msra.gmra.mrb[78].mxu1 %vm801_vm11, %v5798_v12 }
0x2525   : > { %v5790_v22 = vpop.f32.mrb[80].mxu1 }
0x2526   : > { %v5796_v31 = vadd.f32 %v5790_v22, %v5558_v28  ;;  %v10888_v5 = vpop.f32.mrb[81].mxu1 }
0x2527   : > { %v5793_v21 = vpop.f32.mrb[82].mxu1 }
0x2528   : > { %v10889_v41 = vpop.f32.mrb[83].mxu1 }
0x2535   : > { %v5883_v3 = vpop.f32.mrb[78].mxu1 }
0x2536   : > { %v5884_v47 = vadd.f32 %v5883_v3, %v13811_v18  ;;  %v10900_v46 = vpop.f32.mrb[79].mxu1 }
0x2538   : > { %v5887_v39 = vsel %vm5194_vm15, %v5884_v47, -inf }
0x2539   : > { %5888 = vmax.xlane.f32.xlu0 %v5887_v39 }
0x254f   : > { %11764 = vrot.lane.b32.xlu0 %v13782_v56, %s12366_s24 }
0x2553   : > { %5984 = vrot.lane.b32.xlu0 %v13740_v61, %s12359_s13 }
0x25c6   : > { %v5889_v1 = vpop.xlane.xlu0 %5888 }
0x25c7   : > { %v5890_v24 = vsub.f32 %v5884_v47, %v5889_v1 }
0x25c9   : > { %v5891_v36 = vmul.f32 1.442695, %v5890_v24 }
0x25ca   : > { %v11765_v38 = vpop.permute.xlu0 %11764 }
0x25cb   : > { %12086 = vpow2.f32 %v5891_v36  ;;  %v11767_v23 = vunpack.i.h.bf16 %v11765_v38  ;;  %v11766_v30 = vunpack.i.l.bf16 %v11765_v38 }
0x25cd   : > { %v11423_v27 = vpack.c.bf16 %v11767_v23, %v11766_v30 }
0x25ce   : > { %v5985_v29 = vpop.permute.xlu0 %5984 }
0x25cf   : > { %11424 = vmatpush3.bf16.msra.mxu0 %v11423_v27 }
0x25d0   : > { %11425 = vmatprep.subr.bf16.mxu0 %v12367_v17 }
0x25d5   : > { %v12087_v18 = vpop.eup %12086 }
0x25d6   : > { %v5893_v53 = vsel %vm5194_vm15, %v12087_v18, 0.0 }
0x25d7   : > { %5894 = vadd.xlane.f32.xlu1 %v5893_v53 }
0x25e8   : > { %11769 = vrot.lane.b32.xlu1 %v13780_v50, %s12366_s24 }
0x2664   : > { %v5895_v56 = vpop.xlane.xlu1 %5894 }
0x2665   : > { %12088 = vrcp.f32 %v5895_v56 }
0x2668   : > { %v11770_v61 = vpop.permute.xlu1 %11769 }
0x2669   : > { %v11772_v52 = vunpack.i.h.bf16 %v11770_v61  ;;  %v11771_v0 = vunpack.i.l.bf16 %v11770_v61 }
0x266b   : > { %v11426_v9 = vpack.c.bf16 %v11772_v52, %v11771_v0 }
0x266d   : > { %11427 = vmatpush3.bf16.msra.mxu0 %v11426_v9 }
0x266e   : > { %10912 = vmatprep.subr.bf16.mxu0 %v12355_v2 }
0x266f   : > { %v12089_v62 = vpop.eup %12088 }
0x2670   : > { %v5897_v44 = vmul.f32 %v12089_v62, %v12087_v18 }
0x2672   : > { %10910 = vmatmul.mubr.msk.f32.vlgmr.msra.gmra.mrb[76].mxu0 %vm1315_vm9, %v5897_v44 }
0x2673   : > { %10913 = vmatpush3.bf16.msra.mxu0 %v5985_v29  ;;  %10914 = vmatprep.mubr.msk.bf16.mxu0 %vm12356_vm0, %v12355_v2 }
0x2674   : > { %10918 = vmatprep.subr.bf16.mxu0 %v12355_v2 }
0x2745   : > { %v5979_v17 = vpop.f32.mrb[76].mxu0 }
0x2746   : > { %v5983_v50 = vpack.c.bf16 %v5979_v17, %v5979_v17  ;;  %v10911_v60 = vpop.f32.mrb[77].mxu0 }
0x2748   : > { %10915 = vmatmul.mubr.msk.bf16.vlgmr.msra.gmra.mrb[80].mxu0 %vm801_vm11, %v5983_v50 }
0x2749   : > { %10924 = vmatprep.mubr.msk.bf16.mxu0 %vm12356_vm0, %v12355_v2  ;;  %10919 = vmatpush3.bf16.msra.mxu0 %v11853_v55  ;;  %vm6078_vm0 = vcmask 392192  }
0x274a   : > { %10920 = vmatprep.subr.bf16.mxu0 %v12355_v2 }
0x274d   : > { %10921 = vmatpush3.bf16.msra.mxu0 %v11854_v32 }
0x274e   : > { %10922 = vmatprep.subr.bf16.mxu0 %v12355_v2  ;;  %v6034_v2 = vld [vmem:[%s14800_s4 + $0x52] ss:$0 sm:$0xff] }
0x2751   : > { %10923 = vmatpush3.bf16.msra.mxu0 %v11855_v4 }
0x281b   : > { %v6024_v19 = vpop.f32.mrb[80].mxu0 }
0x281c   : > { %v6030_v48 = vadd.f32 %v6024_v19, %v5796_v31  ;;  %v10916_v33 = vpop.f32.mrb[81].mxu0 }
0x281d   : > { %v6027_v25 = vpop.f32.mrb[82].mxu0 }
0x281e   : > { %v6032_v51 = vadd.f32 %v6031_v10, %v6030_v48  ;;  %v10917_v15 = vpop.f32.mrb[83].mxu0 }
0x2820   : > { %v6036_v45 = vsel %vm6035_vm1, %v6032_v51, 0.0 }
0x2821   : > { %6037 = vadd.xlane.f32.xlu1 %v6036_v45 }
0x28ae   : > { %v6038_v58 = vpop.xlane.xlu1 %6037 }
0x28af   : > { %v6040_v13 = vmul.f32 0.020833334, %v6038_v58 }
0x28b1   : > { %v6041_v11 = vsub.f32 %v6032_v51, %v6040_v13 }
0x28b3   : > { %v6042_v54 = vmul.f32 %v6041_v11, %v6041_v11 }
0x28b5   : > { %v6043_v37 = vsel %vm6035_vm1, %v6042_v54, 0.0 }
0x28b6   : > { %6044 = vadd.xlane.f32.xlu0 %v6043_v37 }
0x2943   : > { %v6045_v14 = vpop.xlane.xlu0 %6044 }
0x2944   : > { %v6046_v34 = vmul.f32 0.020833334, %v6045_v14 }
0x2946   : > { %v6047_v28 = vadd.f32 1e-05, %v6046_v34 }
0x2948   : > { %12090 = vrsqrt.f32 %v6047_v28 }
0x2952   : > { %v12091_v6 = vpop.eup %12090 }
0x2953   : > { %v6049_v63 = vmul.f32 %v12091_v6, %v6041_v11 }
0x2955   : > { %v6050_v26 = vmul.f32 %v6049_v63, %v6033_v20 }
0x2957   : > { %v6051_v40 = vadd.f32 %v6050_v26, %v6034_v2 }
0x2959   : > { %v6058_v7 = vpack.c.bf16 %v6051_v40, %v6051_v40 }
0x295b   : > { %10925 = vmatmul.mubr.msk.bf16.vlgmr.msra.gmra.mrb[84].mxu0 %vm6078_vm0, %v6058_v7 }
0x2a2e   : > { %v6116_v49 = vpop.f32.mrb[84].mxu0 }
0x2a2f   : > { %v6117_v8 = vadd.f32 %v6116_v49, %v6059_v42  ;;  %v10926_v16 = vpop.f32.mrb[85].mxu0 }
0x2a30   : > { %v6119_v59 = vpop.f32.mrb[86].mxu0 }
0x2a31   : > { %6122 = vst.msk [vmem:[%s12446_s15] sm:$0x3] %vm5194_vm15, %v6117_v8  ;;  %v10927_v35 = vpop.f32.mrb[87].mxu0 }
0x2a32 PF: > { %p9814_p5 = scmp.ne.s32.totalorder %s12437_s10, 1 }
0x2a33   : > { %v6129_v57 = vld [vmem:[%s14797_s1] sm:$0xff] (!%p9814_p5)  ;;  %v12368_v43 = vmov (!%p9814_p5), 0   ;;  %v6127_v12 = vlaneseq (!%p9814_p5)  ;;  %v12369_v22 = vmov (!%p9814_p5), 0.0   ;;  %v12171_v31 = vld [vmem:[%s14802_s6 + $0x8] ss:$12 sps:$4 sm:$0xff] (!%p9814_p5)   ;;  %vm6175_vm11 = vcmask (!%p9814_p5), 1043456  }
0x2a34   : > { %6126 = sbr.rel (%p9814_p5) target bundleno = 19857 (0x4d91), region = 64  ;;  %12100 = vset.pattern.permute.xlu0 (!%p9814_p5), %v12368_v43  ;;  %10933 = vmatprep.subr.bf16.mxu1 (!%p9814_p5), %v12369_v22  ;;  %v6130_v5 = vld [vmem:[%s14797_s1 + $0x8] sm:$0xff] (!%p9814_p5)  ;;  %v12173_v47 = vld [vmem:[%s14802_s6 + $0x38] ss:$12 sps:$4 sm:$0xff] (!%p9814_p5)   ;;  %v6171_v46 = vld [vmem:[%s14800_s4 + $0x50] sm:$0xf0] (!%p9814_p5) }
0x2a35   : > { %6132 = vperm.xlu0 (!%p9814_p5), %12100, %v6129_v57   ;;  %10934 = vmatpush3.bf16.msra.mxu1 (!%p9814_p5), %v12171_v31  ;;  %v12172_v21 = vld [vmem:[%s14802_s6 + $0x20] ss:$12 sps:$4 sm:$0xff] (!%p9814_p5)   ;;  %v13965_v41 = vshrl.u32 (!%p9814_p5), %v6127_v12, 7  ;;  %v6128_v3 = vand.u32 (!%p9814_p5), 127, %v6127_v12  ;;  %v6176_v24 = vrot.slane (!%p9814_p5), %v6171_v46, 4  ;;  %vm6180_vm4 = vcmask (!%p9814_p5), 64512  }
0x2a36   : > { %10935 = vmatprep.subr.bf16.mxu1 (!%p9814_p5), %v12369_v22  ;;  %v6172_v39 = vld [vmem:[%s14800_s4 + $0x60] sm:$0xf] (!%p9814_p5)  ;;  %v12174_v38 = vld [vmem:[%s14802_s6 + $0x50] ss:$12 sps:$4 sm:$0xff] (!%p9814_p5)   ;;  %vm12370_vm5 = vmmov (!%p9814_p5), 0   ;;  %s12371_s27 = smov (!%p9814_p5), 16  }
0x2a37   : > { %v6163_v1 = vand.u32 (!%p9814_p5), 7, %v13965_v41  ;;  %v6177_v36 = vrot.slane (!%p9814_p5), %v6172_v39, 4  ;;  %v12179_v27 = vld [vmem:[%s14801_s5 + $0x20] ss:$60 sps:$4 sm:$0xff] (!%p9814_p5)   ;;  %v13989_v18 = vshra.s32 (!%p9814_p5), %v6128_v3, 3  ;;  %v13991_v53 = vand.u32 (!%p9814_p5), 7, %v6128_v3  ;;  %10949 = vmatprep.mubr.msk.bf16.mxu1 (!%p9814_p5), %vm12370_vm5, %v12369_v22 }
0x2a38   : > { %v6162_v56 = vadd.s32 (!%p9814_p5), 8, %v13965_v41  ;;  %6491 = vrot.lane.b32.xlu1 (!%p9814_p5), %v12179_v27, %s12371_s27  ;;  %v14001_v0 = vld [vmem:[%s14801_s5 + $0x24] ss:$60 sps:$4 sm:$0xff] (!%p9814_p5)   ;;  %v12175_v9 = vld [vmem:[%s14802_s6 + $0x68] ss:$12 sps:$4 sm:$0xff] (!%p9814_p5)   ;;  %vm6513_vm14 = vcmask (!%p9814_p5), 130048  }
0x2a39   : > { %6135 = vperm.xlu0 (!%p9814_p5), %12100, %v6130_v5   ;;  %10936 = vmatpush3.bf16.msra.mxu1 (!%p9814_p5), %v12172_v21  ;;  %vm6165_vm2 = vcmp.eq.s32.totalorder (!%p9814_p5), %v6128_v3, %v6163_v1  ;;  %v6178_v23 = vsel (!%p9814_p5), %vm6175_vm11, %v6176_v24, %v6177_v36  ;;  %v12176_v17 = vld [vmem:[%s14802_s6 + $0x80] ss:$12 sps:$4 sm:$0xff] (!%p9814_p5)   ;;  %v12177_v50 = vld [vmem:[%s14802_s6 + $0x98] ss:$12 sps:$4 sm:$0xff] (!%p9814_p5)   ;;  %v12178_v60 = vld [vmem:[%s14802_s6 + $0xb0] ss:$12 sps:$4 sm:$0xff] (!%p9814_p5)   ;;  %vm6357_vm11 = vcmp.le.s32.totalorder (!%p9814_p5), %v13991_v53, %v6163_v1 }
0x2a3a   : > { %10937 = vmatprep.subr.bf16.mxu1 (!%p9814_p5), %v12369_v22  ;;  %v9817_v30 = vsel (!%p9814_p5), %vm6165_vm2, 1.0, %v12369_v22  ;;  %10928 = vmatprep.subr.mxu0 (!%p9814_p5), %v6178_v23  ;;  %v6164_v61 = vand.u32 (!%p9814_p5), 7, %v6162_v56  ;;  %v6352_v52 = vshra.s32 (!%p9814_p5), %v6162_v56, 3  ;;  %v12372_v48 = vmov (!%p9814_p5), 1.0|1.0   ;;  %s12373_s28 = smov (!%p9814_p5), 64   ;;  %vm14139_vm15 = vmpackc.low (!%p9814_p5), %vm6513_vm14, %vm6513_vm14 }
0x2a3b   : > { %10929 = vmatpush3.msra.mxu0 %v6178_v23  ;;  %10930 = vmatprep.mubr.msk.f32.mxu0 %vm6180_vm4, %v9817_v30  ;;  %vm6375_vm3 = vcmask 523264   ;;  %v12181_v14 = vld [vmem:[%s14801_s5 + $0x1c] ss:$60 sps:$4 sm:$0xff]   ;;  %v12185_v28 = vld [vmem:[%s14801_s5 + $0x94] ss:$60 sps:$4 sm:$0xff]   ;;  %s12375_s12 = smov 112  }
0x2a3c   : > { %vm6166_vm6 = vcmp.eq.s32.totalorder %v6128_v3, %v6164_v61  ;;  %vm14008_vm7 = vcmp.eq.s32.totalorder %v6352_v52, %v13989_v18  ;;  %vm14013_vm8 = vcmp.le.s32.totalorder %v13991_v53, %v6164_v61  ;;  %6493 = vrot.lane.b32.xlu1 %v14001_v0, %s12371_s27  ;;  %v12183_v34 = vld [vmem:[%s14801_s5 + $0x98] ss:$60 sps:$4 sm:$0xff]   ;;  %v12186_v6 = vld [vmem:[%s14801_s5 + $0x110] ss:$60 sps:$4 sm:$0xff]   ;;  %v12190_v2 = vld [vmem:[%s14801_s5 + $0x188] ss:$60 sps:$4 sm:$0xff]  }
0x2a3d   : > { %10938 = vmatpush3.bf16.msra.mxu1 %v12173_v47  ;;  %v9818_v29 = vsel %vm6166_vm6, 1.0, %v12369_v22  ;;  %vm6360_vm10 = vmand %vm14008_vm7, %vm14013_vm8  ;;  %v14069_v20 = vld [vmem:[%s14801_s5 + $0x114] ss:$60 sps:$4 sm:$0xff]   ;;  %v12189_v63 = vld [vmem:[%s14801_s5 + $0x10c] ss:$60 sps:$4 sm:$0xff]   ;;  %s12376_s13 = smov 48   ;;  %vm9309_vm7 = vcmp.eq.s32.totalorder %v13989_v18, %v13965_v41 }
0x2a3e   : > { %10939 = vmatprep.subr.bf16.mxu1 %v12369_v22  ;;  %10931 = vmatmul.mubr.msk.f32.vlgmr.msra.gmra.mrb[0].mxu0 %vm6180_vm4, %v9818_v29  ;;  %v12194_v5 = vld [vmem:[%s14801_s5 + $0x184] ss:$60 sps:$4 sm:$0xff]   ;;  %v14092_v21 = vld [vmem:[%s14801_s5 + $0x9c] ss:$60 sps:$4 sm:$0xff]   ;;  %s12377_s20 = smov 32   ;;  %s12378_s10 = smov 96  }
0x2a3f   : > { %6565 = vmatprep.mubr.bf16.mxu0 %v12368_v43  ;;  %s12379_s22 = smov 80   ;;  %vm9322_vm8 = vcmask 123904  }
0x2a41   : > { %10940 = vmatpush3.bf16.msra.mxu1 %v12174_v38 }
0x2a42   : > { %10941 = vmatprep.subr.bf16.mxu1 %v12369_v22 }
0x2a45   : > { %10942 = vmatpush3.bf16.msra.mxu1 %v12175_v9 }
0x2a46   : > { %10943 = vmatprep.subr.bf16.mxu1 %v12369_v22 }
0x2a49   : > { %10944 = vmatpush3.bf16.msra.mxu1 %v12176_v17 }
0x2a4a   : > { %10945 = vmatprep.subr.bf16.mxu1 %v12369_v22 }
0x2a4d   : > { %10946 = vmatpush3.bf16.msra.mxu1 %v12177_v50 }
0x2a4e   : > { %10947 = vmatprep.subr.bf16.mxu1 %v12369_v22 }
0x2a51   : > { %10948 = vmatpush3.bf16.msra.mxu1 %v12178_v60 }
0x2a52   : > { %10987 = vmatprep.subr.bf16.mxu1 %v12369_v22 }
0x2aaa   : > { %v6492_v51 = vpop.permute.xlu1 %6491 }
0x2aae   : > { %v6494_v15 = vpop.permute.xlu1 %6493 }
0x2aaf   : > { %v6515_v45 = vsel %vm6513_vm14, %v6492_v51, %v6494_v15  ;;  %v6373_v15 = vld [vmem:[%s14800_s4 + $0x64] ss:$0 sm:$0xff] }
0x2ab0   : > { %6533 = vmatprep.subr.bf16.mxu0 %v6515_v45 }
0x2ab4   : > { %v6133_v19 = vpop.permute.xlu0 %6132 }
0x2ab5   : > { %vm6137_vm9 = vcmp.eq.s32.totalorder %v6128_v3, %v6133_v19 }
0x2ab8   : > { %v6136_v10 = vpop.permute.xlu0 %6135 }
0x2ab9   : > { %vm6138_vm12 = vcmp.eq.s32.totalorder %v6128_v3, %v6136_v10  ;;  %v14100_v3 = vld [vmem:[%s14801_s5 + $0x18c] ss:$60 sps:$4 sm:$0xff]  }
0x2aba   : > { %vm9829_vm13 = vmpackc.low %vm6138_vm12, %vm6137_vm9 }
0x2abb   : > { %10950 = vmatmul.mubr.msk.bf16.vlgmr.msra.gmra.mrb[0].mxu1 %vm9829_vm13, %v12372_v48 }
0x2abc   : > { %10989 = vmatprep.mubr.msk.bf16.mxu1 %vm12370_vm5, %v12369_v22 }
0x2b11   : > { %v10932_v33 = vpop.f32.mrb[0].mxu0 }
0x2b12   : > { %v6253_v25 = vpop.f32.mrb[1].mxu0 }
0x2b8e   : > { %v6344_v58 = vpop.f32.mrb[0].mxu1 }
0x2b8f   : > { %v14042_v13 = vadd.f32 %v6344_v58, %v6253_v25  ;;  %v10951_v11 = vpop.f32.mrb[1].mxu1 }
0x2b90   : > { %v6347_v54 = vpop.f32.mrb[2].mxu1 }
0x2b91   : > { %v14044_v37 = vadd.f32 %v10932_v33, %v6347_v54  ;;  %v10952_v55 = vpop.f32.mrb[3].mxu1  ;;  %v6376_v32 = vsel %vm6375_vm3, %v14042_v13, 0.0  ;;  %v6374_v54 = vld [vmem:[%s14800_s4 + $0x65] ss:$0 sm:$0xff] }
0x2b92   : > { %6377 = vadd.xlane.f32.xlu1 %v6376_v32 }
0x2b93   : > { %v6379_v4 = vsel %vm6375_vm3, %v14044_v37, 0.0 }
0x2b96   : > { %6380 = vadd.xlane.f32.xlu1 %v6379_v4 }
0x2ba7   : > { %6489 = vrot.lane.b32.xlu1 %v12181_v14, %s12371_s27 }
0x2bab   : > { %6497 = vrot.lane.b32.xlu1 %v12183_v34, %s12371_s27  ;;  %v14118_v34 = vsub.s32 0, %v13965_v41 }
0x2baf   : > { %6495 = vrot.lane.b32.xlu1 %v12185_v28, %s12371_s27  ;;  %v9831_v28 = vld [vmem:[%s14800_s4 + $0x66] ss:$8 sm:$0x3] }
0x2bb3   : > { %6503 = vrot.lane.b32.xlu1 %v12186_v6, %s12371_s27  ;;  %v6433_v6 = vsub.s32 1, %v13965_v41 }
0x2bb7   : > { %6505 = vrot.lane.b32.xlu1 %v14069_v20, %s12371_s27 }
0x2bbb   : > { %6501 = vrot.lane.b32.xlu1 %v12189_v63, %s12371_s27  ;;  %v6430_v63 = vrot.slane %v9831_v28, %v14118_v34 }
0x2bbf   : > { %6509 = vrot.lane.b32.xlu1 %v12190_v2, %s12371_s27 }
0x2c1f   : > { %v6378_v26 = vpop.xlane.xlu1 %6377 }
0x2c20   : > { %v6383_v40 = vmul.f32 0.015625, %v6378_v26  ;;  %v6434_v26 = vrot.slane %v9831_v28, %v6433_v6 }
0x2c22   : > { %v6385_v7 = vsub.f32 %v14042_v13, %v6383_v40 }
0x2c23   : > { %v6381_v42 = vpop.xlane.xlu1 %6380 }
0x2c24   : > { %v6384_v49 = vmul.f32 0.015625, %v6381_v42  ;;  %v6387_v8 = vmul.f32 %v6385_v7, %v6385_v7 }
0x2c26   : > { %v6386_v16 = vsub.f32 %v14044_v37, %v6384_v49  ;;  %v6389_v59 = vsel %vm6375_vm3, %v6387_v8, 0.0 }
0x2c27   : > { %6390 = vadd.xlane.f32.xlu0 %v6389_v59  ;;  %v6490_v35 = vpop.permute.xlu1 %6489 }
0x2c28   : > { %v6514_v57 = vsel %vm6513_vm14, %v6490_v35, %v6492_v51  ;;  %v6388_v12 = vmul.f32 %v6386_v16, %v6386_v16 }
0x2c29   : > { %6534 = vmatpush1.bf16.msra.mxu0 %v6514_v57 }
0x2c2a   : > { %v6392_v31 = vsel %vm6375_vm3, %v6388_v12, 0.0 }
0x2c2b   : > { %6393 = vadd.xlane.f32.xlu1 %v6392_v31  ;;  %v6498_v47 = vpop.permute.xlu1 %6497 }
0x2c2f   : > { %v6496_v46 = vpop.permute.xlu1 %6495 }
0x2c30   : > { %v6516_v29 = vsel %vm6513_vm14, %v6496_v46, %v6498_v47 }
0x2c33   : > { %v6504_v39 = vpop.permute.xlu1 %6503 }
0x2c37   : > { %v6506_v24 = vpop.permute.xlu1 %6505 }
0x2c38   : > { %v6519_v50 = vsel %vm6513_vm14, %v6504_v39, %v6506_v24 }
0x2c3b   : > { %v6502_v36 = vpop.permute.xlu1 %6501 }
0x2c3c   : > { %6507 = vrot.lane.b32.xlu1 %v12194_v5, %s12371_s27  ;;  %v6518_v19 = vsel %vm6513_vm14, %v6502_v36, %v6504_v39 }
0x2c3d   : > { %6499 = vrot.lane.b32.xlu0 %v14092_v21, %s12371_s27 }
0x2c3f   : > { %v6510_v38 = vpop.permute.xlu1 %6509 }
0x2c41   : > { %6511 = vrot.lane.b32.xlu0 %v14100_v3, %s12371_s27 }
0x2cb4   : > { %v6391_v23 = vpop.xlane.xlu0 %6390 }
0x2cb5   : > { %v6395_v30 = vmul.f32 0.015625, %v6391_v23 }
0x2cb7   : > { %v6397_v27 = vadd.f32 1e-05, %v6395_v30  ;;  %v6351_v30 = vshra.s32 %v13965_v41, 3  ;;  %v12380_v41 = vmov 0.0|0.0  }
0x2cb8   : > { %v6500_v56 = vpop.permute.xlu0 %6499  ;;  %v6394_v61 = vpop.xlane.xlu1 %6393 }
0x2cb9   : > { %12255 = vrsqrt.f32 %v6397_v27  ;;  %v6396_v52 = vmul.f32 0.015625, %v6394_v61  ;;  %v6517_v9 = vsel %vm6513_vm14, %v6498_v47, %v6500_v56  ;;  %vm6354_vm0 = vcmp.eq.s32.totalorder %v6351_v30, %v13989_v18  ;;  %v12243_v18 = vld [vmem:[%s14801_s5 + $0x38] ss:$60 sps:$4 sm:$0xff]  }
0x2cba   : > { %6535 = vmatprep.subr.bf16.mxu0 %v6517_v9  ;;  %vm6359_vm4 = vmand %vm6354_vm0, %vm6357_vm11  ;;  %v12374_v56 = vmov -1e+09  }
0x2cbb   : > { %v6398_v17 = vadd.f32 1e-05, %v6396_v52  ;;  %6536 = vmatpush1.bf16.msra.mxu0 %v6516_v29 }
0x2cbc   : > { %v6512_v60 = vpop.permute.xlu0 %6511  ;;  %6537 = vmatprep.subr.bf16.mxu0 %v6519_v50  ;;  %v6508_v10 = vpop.permute.xlu1 %6507 }
0x2cbd   : > { %12257 = vrsqrt.f32 %v6398_v17  ;;  %v6521_v48 = vsel %vm6513_vm14, %v6510_v38, %v6512_v60  ;;  %v6520_v33 = vsel %vm6513_vm14, %v6508_v10, %v6510_v38  ;;  %v6361_v38 = vld [vmem:[%s14799_s3] sm:$0x1] }
0x2cbe   : > { %vm6362_vm1 = vcmp.gt.s32.totalorder %v6361_v38, 0 }
0x2cbf   : > { %6538 = vmatpush1.bf16.msra.mxu0 %v6518_v19  ;;  %v6363_v23 = vsel %vm6362_vm1, 1, %v12368_v43 }
0x2cc0   : > { %6539 = vmatprep.subr.bf16.mxu0 %v6521_v48  ;;  %v6367_v27 = vrot.slane %v6363_v23, %v14118_v34 }
0x2cc2   : > { %vm6368_vm2 = vcmp.eq.s32.totalorder %v6367_v27, 1 }
0x2cc3   : > { %v12256_v25 = vpop.eup %12255  ;;  %6540 = vmatpush1.bf16.msra.mxu0 %v6520_v33  ;;  %vm6370_vm6 = vmand %vm6360_vm10, %vm6368_vm2 }
0x2cc4   : > { %v6401_v51 = vmul.f32 %v12256_v25, %v6385_v7  ;;  %vm6369_vm9 = vmand %vm6359_vm4, %vm6368_vm2  ;;  %v14166_v61 = vsel %vm6370_vm6, 0.0, %v12374_v56 }
0x2cc5   : > { %v14168_v52 = vsel %vm6369_vm9, 0.0, %v12374_v56 }
0x2cc6   : > { %v6403_v58 = vmul.f32 %v6401_v51, %v6373_v15 }
0x2cc7   : > { %v12258_v45 = vpop.eup %12257 }
0x2cc8   : > { %v6402_v11 = vmul.f32 %v12258_v45, %v6386_v16  ;;  %v6405_v32 = vadd.f32 %v6403_v58, %v6374_v54 }
0x2cca   : > { %v6404_v55 = vmul.f32 %v6402_v11, %v6373_v15 }
0x2ccc   : > { %v6406_v4 = vadd.f32 %v6404_v55, %v6374_v54 }
0x2cce   : > { %v6423_v14 = vpack.c.bf16 %v6406_v4, %v6405_v32 }
0x2cd0   : > { %9844 = vmatmul.mubr.msk.bf16.vlgmr.msra.gmra.mrb[4].mxu0 %vm6375_vm3, %v6423_v14 }
0x2da3   : > { %v6567_v2 = vpop.f32.mrb[4].mxu0 }
0x2da4   : > { %v6568_v40 = vadd.f32 %v6567_v2, %v6430_v63  ;;  %v6569_v7 = vpop.f32.mrb[5].mxu0 }
0x2da5   : > { %v6571_v42 = vpop.f32.mrb[6].mxu0  ;;  %v6570_v59 = vadd.f32 %v6569_v7, %v6434_v26 }
0x2da6   : > { %v6572_v49 = vadd.f32 %v6571_v42, %v6430_v63  ;;  %v6573_v8 = vpop.f32.mrb[7].mxu0  ;;  %v14127_v16 = vmul.f32 0.25, %v6568_v40 }
0x2da7   : > { %v6574_v35 = vadd.f32 %v6573_v8, %v6434_v26 }
0x2da8   : > { %10957 = vmatprep.mubr.msk.f32.mxu0 %vm6513_vm14, %v14127_v16  ;;  %v14131_v57 = vpack.i.bf16 %v6572_v49, %v6568_v40  ;;  %v14147_v36 = vmul.f32 0.25, %v6572_v49 }
0x2da9   : > { %v11434_v12 = vpack.c.bf16 %v6574_v35, %v6570_v59  ;;  %v14133_v31 = vpack.i.bf16 %v6574_v35, %v6570_v59 }
0x2daa   : > { %12102 = vrot.lane.b32.xlu0 %v14131_v57, %s12373_s28 }
0x2e1c   : > { %v12103_v5 = vpop.permute.xlu0 %12102 }
0x2e1d   : > { %v12105_v47 = vunpack.i.h.bf16 %v12103_v5  ;;  %v12104_v46 = vunpack.i.l.bf16 %v12103_v5 }
0x2e1f   : > { %v11428_v24 = vpack.c.bf16 %v12105_v47, %v12104_v46 }
0x2e21   : > { %11430 = vmatprep.subr.msk.bf16.mxu0 %vm14139_vm15, %v11428_v24 }
0x2e22   : > { %11433 = vmatpush3.bf16.xpose.msk.msra.mxu0 %vm14139_vm15, %v11428_v24 }
0x2e23   : > { %11435 = vmatprep.subr.bf16.mxu0 %v11434_v12 }
0x2e29   : > { %10958 = vmatmul.mubr.msk.f32.vlgmr.msra.gmra.mrb[2].mxu0 %vm6513_vm14, %v14147_v36 }
0x2e2a   : > { %11437 = vmatpush3.bf16.msra.mxu0 %v11434_v12 }
0x2efc   : > { %v10959_v9 = vpop.f32.mrb[2].mxu0 }
0x2efd   : > { %v6667_v29 = vadd.f32 %v10959_v9, %v14166_v61  ;;  %v6661_v17 = vpop.f32.mrb[3].mxu0 }
0x2efe   : > { %v6662_v1 = vadd.f32 %v6661_v17, %v14168_v52 }
0x2eff   : > { %v6673_v50 = vsel %vm6513_vm14, %v6667_v29, -inf }
0x2f00   : > { %6674 = vmax.xlane.f32.xlu0 %v6673_v50  ;;  %v6670_v62 = vsel %vm6513_vm14, %v6662_v1, -inf }
0x2f01   : > { %6671 = vmax.xlane.f32.xlu1 %v6670_v62 }
0x2f8d   : > { %v6675_v44 = vpop.xlane.xlu0 %6674 }
0x2f8e   : > { %v6677_v60 = vsub.f32 %v6667_v29, %v6675_v44  ;;  %v6672_v19 = vpop.xlane.xlu1 %6671 }
0x2f8f   : > { %v6676_v10 = vsub.f32 %v6662_v1, %v6672_v19 }
0x2f90   : > { %v6680_v48 = vmul.f32 1.442695, %v6677_v60 }
0x2f91   : > { %v6678_v33 = vmul.f32 1.442695, %v6676_v10 }
0x2f92   : > { %12259 = vpow2.f32 %v6680_v48 }
0x2f93   : > { %12261 = vpow2.f32 %v6678_v33 }
0x2f9c   : > { %v12260_v25 = vpop.eup %12259 }
0x2f9d   : > { %v12262_v51 = vpop.eup %12261  ;;  %v6685_v15 = vsel %vm6513_vm14, %v12260_v25, 0.0 }
0x2f9e   : > { %6686 = vadd.xlane.f32.xlu1 %v6685_v15  ;;  %v6682_v45 = vsel %vm6513_vm14, %v12262_v51, 0.0 }
0x2f9f   : > { %6683 = vadd.xlane.f32.xlu0 %v6682_v45 }
0x2faf   : > { %6774 = vrot.lane.b32.xlu1 %v14127_v16, %s12375_s12 }
0x2fb3   : > { %6776 = vrot.lane.b32.xlu1 %v14147_v36, %s12375_s12 }
0x2fb5   : > { %12107 = vrot.lane.b32.xlu0 %v14131_v57, %s12376_s13 }
0x302b   : > { %v6687_v58 = vpop.xlane.xlu1 %6686 }
0x302c   : > { %12263 = vrcp.f32 %v6687_v58  ;;  %v6684_v11 = vpop.xlane.xlu0 %6683 }
0x302d   : > { %12265 = vrcp.f32 %v6684_v11 }
0x302f   : > { %v6775_v26 = vpop.permute.xlu1 %6774 }
0x3030   : > { %v12108_v54 = vpop.permute.xlu0 %12107 }
0x3031   : > { %v12110_v55 = vunpack.i.h.bf16 %v12108_v54  ;;  %v12109_v32 = vunpack.i.l.bf16 %v12108_v54 }
0x3033   : > { %v11438_v4 = vpack.c.bf16 %v12110_v55, %v12109_v32  ;;  %v6777_v40 = vpop.permute.xlu1 %6776 }
0x3035   : > { %11440 = vmatprep.subr.msk.bf16.mxu0 %vm14139_vm15, %v11438_v4 }
0x3036   : > { %v12264_v14 = vpop.eup %12263 }
0x3037   : > { %v12266_v28 = vpop.eup %12265  ;;  %v6691_v2 = vmul.f32 %v12264_v14, %v12260_v25 }
0x3038   : > { %v6690_v63 = vmul.f32 %v12266_v28, %v12262_v51 }
0x303a   : > { %10964 = vmatprep.mubr.msk.f32.mxu0 %vm6513_vm14, %v6690_v63 }
0x303b   : > { %10965 = vmatmul.mubr.msk.f32.vlgmr.msra.gmra.mrb[8].mxu0 %vm6513_vm14, %v6691_v2 }
0x303c   : > { %11443 = vmatpush3.bf16.xpose.msk.msra.mxu0 %vm14139_vm15, %v11438_v4  ;;  %10971 = vmatprep.mubr.msk.f32.mxu0 %vm6513_vm14, %v6775_v26 }
0x3043   : > { %10972 = vmatmul.mubr.msk.f32.vlgmr.msra.gmra.mrb[10].mxu0 %vm6513_vm14, %v6777_v40 }
0x310e   : > { %v14190_v7 = vpop.f32.mrb[8].mxu0 }
0x310f   : > { %v14192_v42 = vpop.f32.mrb[9].mxu0 }
0x3110   : > { %v6773_v49 = vpack.c.bf16 %v14190_v7, %v14192_v42 }
0x3116   : > { %v10973_v8 = vpop.f32.mrb[10].mxu0 }
0x3117   : > { %v6862_v59 = vadd.f32 %v10973_v8, %v14166_v61  ;;  %v6856_v35 = vpop.f32.mrb[11].mxu0 }
0x3118   : > { %v6857_v12 = vadd.f32 %v6856_v35, %v14168_v52 }
0x3119   : > { %v6868_v5 = vsel %vm6513_vm14, %v6862_v59, -inf }
0x311a   : > { %6869 = vmax.xlane.f32.xlu1 %v6868_v5  ;;  %v6865_v47 = vsel %vm6513_vm14, %v6857_v12, -inf }
0x311b   : > { %6866 = vmax.xlane.f32.xlu0 %v6865_v47 }
0x312b   : > { %12112 = vrot.lane.b32.xlu1 %v14133_v31, %s12375_s12 }
0x312f   : > { %12117 = vrot.lane.b32.xlu1 %v14131_v57, %s12377_s20 }
0x3133   : > { %7071 = vrot.lane.b32.xlu1 %v14127_v16, %s12378_s10 }
0x31a7   : > { %v6870_v46 = vpop.xlane.xlu1 %6869 }
0x31a8   : > { %v6872_v24 = vsub.f32 %v6862_v59, %v6870_v46  ;;  %v6867_v38 = vpop.xlane.xlu0 %6866 }
0x31a9   : > { %v6871_v23 = vsub.f32 %v6857_v12, %v6867_v38 }
0x31aa   : > { %v6875_v30 = vmul.f32 1.442695, %v6872_v24 }
0x31ab   : > { %v6873_v27 = vmul.f32 1.442695, %v6871_v23  ;;  %v12113_v56 = vpop.permute.xlu1 %12112 }
0x31ac   : > { %v12115_v9 = vunpack.i.h.bf16 %v12113_v56  ;;  %v12114_v29 = vunpack.i.l.bf16 %v12113_v56 }
0x31ad   : > { %12267 = vpow2.f32 %v6873_v27 }
0x31ae   : > { %v11444_v17 = vpack.c.bf16 %v12115_v9, %v12114_v29  ;;  %12269 = vpow2.f32 %v6875_v30 }
0x31af   : > { %v12118_v48 = vpop.permute.xlu1 %12117 }
0x31b0   : > { %11445 = vmatprep.subr.bf16.mxu0 %v11444_v17  ;;  %v12120_v25 = vunpack.i.h.bf16 %v12118_v48  ;;  %v12119_v51 = vunpack.i.l.bf16 %v12118_v48 }
0x31b1   : > { %11447 = vmatpush3.bf16.msra.mxu0 %v11444_v17 }
0x31b2   : > { %10981 = vmatprep.subr.bf16.mxu0 %v12369_v22  ;;  %v11448_v58 = vpack.c.bf16 %v12120_v25, %v12119_v51 }
0x31b3   : > { %v7072_v32 = vpop.permute.xlu1 %7071 }
0x31b7   : > { %v12268_v1 = vpop.eup %12267 }
0x31b8   : > { %v6877_v50 = vsel %vm6513_vm14, %v12268_v1, 0.0  ;;  %v12270_v62 = vpop.eup %12269 }
0x31b9   : > { %6878 = vadd.xlane.f32.xlu0 %v6877_v50  ;;  %v6880_v44 = vsel %vm6513_vm14, %v12270_v62, 0.0 }
0x31bd   : > { %6881 = vadd.xlane.f32.xlu0 %v6880_v44 }
0x31d3   : > { %6977 = vrot.lane.b32.xlu0 %v14092_v21, %s12379_s22 }
0x31d7   : > { %7073 = vrot.lane.b32.xlu0 %v14147_v36, %s12378_s10 }
0x3246   : > { %v6879_v60 = vpop.xlane.xlu0 %6878 }
0x3247   : > { %12271 = vrcp.f32 %v6879_v60 }
0x324a   : > { %v6882_v19 = vpop.xlane.xlu0 %6881 }
0x324b   : > { %12273 = vrcp.f32 %v6882_v19 }
0x324e   : > { %v6978_v11 = vpop.permute.xlu0 %6977 }
0x3251   : > { %v12272_v10 = vpop.eup %12271 }
0x3252   : > { %v6885_v33 = vmul.f32 %v12272_v10, %v12268_v1  ;;  %v7074_v4 = vpop.permute.xlu0 %7073 }
0x3254   : > { %10978 = vmatprep.mubr.msk.f32.mxu0 %vm6513_vm14, %v6885_v33 }
0x3255   : > { %v12274_v15 = vpop.eup %12273 }
0x3256   : > { %v6886_v45 = vmul.f32 %v12274_v15, %v12270_v62 }
0x3258   : > { %10979 = vmatmul.mubr.msk.f32.vlgmr.msra.gmra.mrb[12].mxu0 %vm6513_vm14, %v6886_v45 }
0x3259   : > { %10982 = vmatpush3.bf16.msra.mxu0 %v6978_v11  ;;  %10983 = vmatprep.mubr.msk.bf16.mxu0 %vm12370_vm5, %v12369_v22 }
0x325a   : > { %11450 = vmatprep.subr.msk.bf16.mxu0 %vm14139_vm15, %v11448_v58 }
0x332b   : > { %v10980_v21 = vpop.f32.mrb[12].mxu0 }
0x332c   : > { %v6967_v54 = vpop.f32.mrb[13].mxu0 }
0x332d   : > { %v6976_v55 = vpack.c.bf16 %v10980_v21, %v6967_v54 }
0x332f   : > { %10984 = vmatmul.mubr.msk.bf16.vlgmr.msra.gmra.mrb[16].mxu0 %vm6513_vm14, %v6976_v55 }
0x3330   : > { %11453 = vmatpush3.bf16.xpose.msk.msra.mxu0 %vm14139_vm15, %v11448_v58  ;;  %10997 = vmatprep.mubr.msk.f32.mxu0 %vm6513_vm14, %v7072_v32 }
0x3331   : > { %11007 = vmatprep.subr.bf16.mxu0 %v12369_v22 }
0x3337   : > { %10998 = vmatmul.mubr.msk.f32.vlgmr.msra.gmra.mrb[14].mxu0 %vm6513_vm14, %v7074_v4 }
0x3338   : > { %11009 = vmatprep.mubr.msk.bf16.mxu0 %vm12370_vm5, %v12369_v22 }
0x3402   : > { %v14227_v14 = vpop.f32.mrb[16].mxu0 }
0x3403   : > { %v10985_v28 = vpop.f32.mrb[17].mxu0 }
0x3404   : > { %v14229_v63 = vpop.f32.mrb[18].mxu0 }
0x3405   : > { %v10986_v2 = vpop.f32.mrb[19].mxu0 }
0x340a   : > { %v10999_v26 = vpop.f32.mrb[14].mxu0 }
0x340b   : > { %v7159_v40 = vadd.f32 %v10999_v26, %v14166_v61  ;;  %v7153_v8 = vpop.f32.mrb[15].mxu0 }
0x340c   : > { %v7154_v59 = vadd.f32 %v7153_v8, %v14168_v52 }
0x340d   : > { %v7165_v35 = vsel %vm6513_vm14, %v7159_v40, -inf }
0x340e   : > { %7166 = vmax.xlane.f32.xlu0 %v7165_v35  ;;  %v7162_v12 = vsel %vm6513_vm14, %v7154_v59, -inf }
0x340f   : > { %7163 = vmax.xlane.f32.xlu1 %v7162_v12 }
0x349b   : > { %v7167_v5 = vpop.xlane.xlu0 %7166 }
0x349c   : > { %v7169_v47 = vsub.f32 %v7159_v40, %v7167_v5  ;;  %v7164_v46 = vpop.xlane.xlu1 %7163 }
0x349d   : > { %v7168_v24 = vsub.f32 %v7154_v59, %v7164_v46 }
0x349e   : > { %v7172_v38 = vmul.f32 1.442695, %v7169_v47 }
0x349f   : > { %v7170_v23 = vmul.f32 1.442695, %v7168_v24 }
0x34a0   : > { %12275 = vpow2.f32 %v7172_v38 }
0x34a1   : > { %12277 = vpow2.f32 %v7170_v23 }
0x34aa   : > { %v12276_v30 = vpop.eup %12275 }
0x34ab   : > { %v12278_v27 = vpop.eup %12277  ;;  %v7177_v56 = vsel %vm6513_vm14, %v12276_v30, 0.0 }
0x34ac   : > { %7178 = vadd.xlane.f32.xlu1 %v7177_v56  ;;  %v7174_v9 = vsel %vm6513_vm14, %v12278_v27, 0.0 }
0x34ad   : > { %7175 = vadd.xlane.f32.xlu0 %v7174_v9 }
0x34bd   : > { %12122 = vrot.lane.b32.xlu1 %v14133_v31, %s12378_s10 }
0x34c1   : > { %12127 = vrot.lane.b32.xlu1 %v14131_v57, %s12371_s27 }
0x34c3   : > { %7024 = vrot.lane.b32.xlu0 %v14001_v0, %s12379_s22 }
0x34c5   : > { %7323 = vrot.lane.b32.xlu1 %v14147_v36, %s12379_s22 }
0x34c7   : > { %7321 = vrot.lane.b32.xlu0 %v14127_v16, %s12379_s22 }
0x3539   : > { %v7179_v29 = vpop.xlane.xlu1 %7178 }
0x353a   : > { %12279 = vrcp.f32 %v7179_v29  ;;  %v7176_v17 = vpop.xlane.xlu0 %7175 }
0x353b   : > { %12281 = vrcp.f32 %v7176_v17 }
0x353d   : > { %v12123_v1 = vpop.permute.xlu1 %12122 }
0x353e   : > { %v12125_v50 = vunpack.i.h.bf16 %v12123_v1  ;;  %v12124_v62 = vunpack.i.l.bf16 %v12123_v1  ;;  %v7025_v44 = vpop.permute.xlu0 %7024 }
0x353f   : > { %10988 = vmatpush3.bf16.msra.mxu1 %v7025_v44 }
0x3540   : > { %v11454_v60 = vpack.c.bf16 %v12125_v50, %v12124_v62 }
0x3541   : > { %v12128_v57 = vpop.permute.xlu1 %12127 }
0x3542   : > { %v12130_v19 = vunpack.i.h.bf16 %v12128_v57  ;;  %v12129_v10 = vunpack.i.l.bf16 %v12128_v57  ;;  %10990 = vmatmul.mubr.msk.bf16.vlgmr.msra.gmra.mrb[4].mxu1 %vm6513_vm14, %v6773_v49  ;;  %11455 = vmatprep.subr.bf16.mxu1 %v11454_v60  ;;  %v7322_v25 = vpop.permute.xlu0 %7321 }
0x3543   : > { %11457 = vmatpush3.bf16.msra.mxu1 %v11454_v60 }
0x3544   : > { %v12280_v0 = vpop.eup %12279  ;;  %v11458_v16 = vpack.c.bf16 %v12130_v19, %v12129_v10 }
0x3545   : > { %v12282_v36 = vpop.eup %12281  ;;  %v7183_v33 = vmul.f32 %v12280_v0, %v12276_v30  ;;  %v7324_v7 = vpop.permute.xlu1 %7323 }
0x3546   : > { %11460 = vmatprep.subr.msk.bf16.mxu1 %vm14139_vm15, %v11458_v16  ;;  %v7182_v48 = vmul.f32 %v12282_v36, %v12278_v27  ;;  %v7571_v36 = vld [vmem:[%s14800_s4 + $0x67] ss:$0 sm:$0xff] }
0x3548   : > { %11004 = vmatprep.mubr.msk.f32.mxu1 %vm6513_vm14, %v7182_v48 }
0x354a   : > { %11005 = vmatmul.mubr.msk.f32.vlgmr.msra.gmra.mrb[8].mxu1 %vm6513_vm14, %v7183_v33 }
0x354b   : > { %11017 = vmatprep.mubr.msk.f32.mxu1 %vm6513_vm14, %v7322_v25 }
0x354c   : > { %11463 = vmatpush3.bf16.xpose.msk.msra.mxu1 %vm14139_vm15, %v11458_v16 }
0x354d   : > { %11027 = vmatprep.subr.bf16.mxu1 %v12369_v22 }
0x3553   : > { %11018 = vmatmul.mubr.msk.f32.vlgmr.msra.gmra.mrb[10].mxu1 %vm6513_vm14, %v7324_v7 }
0x3554   : > { %11029 = vmatprep.mubr.msk.bf16.mxu1 %vm12370_vm5, %v12369_v22 }
0x3615   : > { %v7064_v42 = vpop.f32.mrb[4].mxu1 }
0x3616   : > { %v7065_v49 = vadd.f32 %v7064_v42, %v14227_v14  ;;  %v10991_v51 = vpop.f32.mrb[5].mxu1 }
0x3617   : > { %v7067_v15 = vpop.f32.mrb[6].mxu1 }
0x3618   : > { %v7068_v45 = vadd.f32 %v7067_v15, %v14229_v63  ;;  %v10992_v58 = vpop.f32.mrb[7].mxu1 }
0x361d   : > { %v11006_v11 = vpop.f32.mrb[8].mxu1 }
0x361e   : > { %v7262_v21 = vpop.f32.mrb[9].mxu1 }
0x361f   : > { %v7271_v54 = vpack.c.bf16 %v11006_v11, %v7262_v21  ;;  %v12195_v21 = vld [vmem:[%s14801_s5 + $0x28] ss:$60 sps:$4 sm:$0xff]  }
0x3626   : > { %v11019_v55 = vpop.f32.mrb[10].mxu1 }
0x3627   : > { %v7409_v32 = vadd.f32 %v11019_v55, %v14166_v61  ;;  %v7403_v4 = vpop.f32.mrb[11].mxu1  ;;  %v12200_v55 = vld [vmem:[%s14801_s5 + $0xa0] ss:$60 sps:$4 sm:$0xff]  }
0x3628   : > { %v7404_v28 = vadd.f32 %v7403_v4, %v14168_v52 }
0x3629   : > { %v7415_v2 = vsel %vm6513_vm14, %v7409_v32, -inf }
0x362a   : > { %7416 = vmax.xlane.f32.xlu1 %v7415_v2  ;;  %v7412_v26 = vsel %vm6513_vm14, %v7404_v28, -inf }
0x362b   : > { %7413 = vmax.xlane.f32.xlu0 %v7412_v26 }
0x363b   : > { %7272 = vrot.lane.b32.xlu1 %v14069_v20, %s12379_s22 }
0x363f   : > { %7522 = vrot.lane.b32.xlu1 %v14100_v3, %s12379_s22 }
0x36b7   : > { %v7417_v14 = vpop.xlane.xlu1 %7416 }
0x36b8   : > { %v7419_v63 = vsub.f32 %v7409_v32, %v7417_v14  ;;  %v7414_v40 = vpop.xlane.xlu0 %7413 }
0x36b9   : > { %v7418_v8 = vsub.f32 %v7404_v28, %v7414_v40 }
0x36ba   : > { %v7422_v59 = vmul.f32 1.442695, %v7419_v63 }
0x36bb   : > { %v7420_v35 = vmul.f32 1.442695, %v7418_v8  ;;  %v7273_v12 = vpop.permute.xlu1 %7272 }
0x36bc   : > { %12283 = vpow2.f32 %v7422_v59  ;;  %11008 = vmatpush3.bf16.msra.mxu0 %v7273_v12 }
0x36bd   : > { %12285 = vpow2.f32 %v7420_v35 }
0x36bf   : > { %11010 = vmatmul.mubr.msk.bf16.vlgmr.msra.gmra.mrb[20].mxu0 %vm6513_vm14, %v7271_v54  ;;  %v7523_v3 = vpop.permute.xlu1 %7522  ;;  %v12201_v54 = vld [vmem:[%s14801_s5 + $0x114] ss:$60 sps:$4 sm:$0xff]  }
0x36c0   : > { %11028 = vmatpush3.bf16.msra.mxu1 %v7523_v3  ;;  %v12206_v3 = vld [vmem:[%s14801_s5 + $0x18c] ss:$60 sps:$4 sm:$0xff]  }
0x36c1   : > { %11045 = vmatprep.subr.bf16.mxu1 %v12369_v22 }
0x36c6   : > { %v12284_v5 = vpop.eup %12283 }
0x36c7   : > { %v7427_v47 = vsel %vm6513_vm14, %v12284_v5, 0.0  ;;  %v12286_v46 = vpop.eup %12285 }
0x36c8   : > { %7428 = vadd.xlane.f32.xlu0 %v7427_v47  ;;  %v7424_v20 = vsel %vm6513_vm14, %v12286_v46, 0.0 }
0x36cc   : > { %7425 = vadd.xlane.f32.xlu0 %v7424_v20 }
0x36e2   : > { %12132 = vrot.lane.b32.xlu0 %v14133_v31, %s12379_s22 }
0x3755   : > { %v7429_v24 = vpop.xlane.xlu0 %7428 }
0x3756   : > { %12287 = vrcp.f32 %v7429_v24  ;;  %v12203_v24 = vld [vmem:[%s14801_s5 + $0x118] ss:$60 sps:$4 sm:$0xff]  }
0x3759   : > { %v7426_v38 = vpop.xlane.xlu0 %7425 }
0x375a   : > { %12289 = vrcp.f32 %v7426_v38  ;;  %v12204_v38 = vld [vmem:[%s14801_s5 + $0x190] ss:$60 sps:$4 sm:$0xff]  }
0x375d   : > { %v12133_v23 = vpop.permute.xlu0 %12132 }
0x375e   : > { %v12135_v30 = vunpack.i.h.bf16 %v12133_v23  ;;  %v12134_v27 = vunpack.i.l.bf16 %v12133_v23 }
0x3760   : > { %v11464_v56 = vpack.c.bf16 %v12135_v30, %v12134_v27  ;;  %v12288_v9 = vpop.eup %12287 }
0x3761   : > { %v7433_v31 = vmul.f32 %v12288_v9, %v12284_v5 }
0x3762   : > { %11465 = vmatprep.subr.bf16.mxu0 %v11464_v56 }
0x3763   : > { %11467 = vmatpush3.bf16.msra.mxu0 %v11464_v56 }
0x3764   : > { %v12290_v29 = vpop.eup %12289  ;;  %11033 = vmatprep.subr.bf16.mxu0 %v12369_v22 }
0x3765   : > { %v7432_v17 = vmul.f32 %v12290_v29, %v12286_v46 }
0x3767   : > { %11024 = vmatprep.mubr.msk.f32.mxu0 %vm6513_vm14, %v7432_v17 }
0x3768   : > { %11025 = vmatmul.mubr.msk.f32.vlgmr.msra.gmra.mrb[24].mxu0 %vm6513_vm14, %v7433_v31 }
0x3769   : > { %11041 = vmatprep.mubr.msk.bf16.mxu0 %vm12370_vm5, %v12369_v22 }
0x3792   : > { %v7312_v1 = vpop.f32.mrb[20].mxu0 }
0x3793   : > { %v7319_v50 = vadd.f32 %v7312_v1, %v7065_v49  ;;  %v11011_v62 = vpop.f32.mrb[21].mxu0 }
0x3794   : > { %v7315_v44 = vpop.f32.mrb[22].mxu0 }
0x3795   : > { %v7320_v60 = vadd.f32 %v7315_v44, %v7068_v45  ;;  %v11012_v57 = vpop.f32.mrb[23].mxu0 }
0x3796   : > { %v7576_v57 = vld [vmem:[%s14800_s4 + $0x70] ss:$0 sm:$0xff] }
0x383b   : > { %v11026_v19 = vpop.f32.mrb[24].mxu0 }
0x383c   : > { %v7512_v10 = vpop.f32.mrb[25].mxu0 }
0x383d   : > { %v7521_v0 = vpack.c.bf16 %v11026_v19, %v7512_v10 }
0x383f   : > { %11030 = vmatmul.mubr.msk.bf16.vlgmr.msra.gmra.mrb[12].mxu1 %vm6513_vm14, %v7521_v0 }
0x3840   : > { %11061 = vmatprep.mubr.msk.bf16.mxu1 %vm12370_vm5, %v12369_v22 }
0x3912   : > { %v7562_v16 = vpop.f32.mrb[12].mxu1 }
0x3913   : > { %v7569_v48 = vadd.f32 %v7562_v16, %v7319_v50  ;;  %v11031_v33 = vpop.f32.mrb[13].mxu1 }
0x3914   : > { %v7565_v25 = vpop.f32.mrb[14].mxu1 }
0x3915   : > { %v7572_v7 = vadd.f32 %v7571_v36, %v7569_v48  ;;  %v7570_v42 = vadd.f32 %v7565_v25, %v7320_v60  ;;  %v11032_v49 = vpop.f32.mrb[15].mxu1 }
0x3916   : > { %v14360_v49 = vld [vmem:[%s14802_s6 + $0x1c] ss:$12 sps:$4 sm:$0xff]  }
0x3917   : > { %v14290_v51 = vadd.f32 %v7572_v7, %v14042_v13  ;;  %v7573_v15 = vadd.f32 %v7571_v36, %v7570_v42  ;;  %v12198_v13 = vld [vmem:[%s14801_s5 + $0x9c] ss:$60 sps:$4 sm:$0xff]   ;;  %v7577_v36 = vld [vmem:[%s14800_s4 + $0x71] ss:$0 sm:$0xff] }
0x3918   : > { %v14353_v42 = vld [vmem:[%s14802_s6 + $0x4] ss:$12 sps:$4 sm:$0xff]  }
0x3919   : > { %v14293_v45 = vadd.f32 %v7573_v15, %v14044_v37  ;;  %v7578_v58 = vsel %vm6375_vm3, %v14290_v51, 0.0  ;;  %v12197_v37 = vld [vmem:[%s14801_s5 + $0x24] ss:$60 sps:$4 sm:$0xff]   ;;  %11046 = vmatpush3.bf16.msra.mxu1 %v14353_v42  ;;  %v14374_v15 = vld [vmem:[%s14802_s6 + $0x4c] ss:$12 sps:$4 sm:$0xff]  }
0x391a   : > { %7579 = vadd.xlane.f32.xlu1 %v7578_v58  ;;  %11047 = vmatprep.subr.bf16.mxu1 %v12369_v22  ;;  %v14381_v58 = vld [vmem:[%s14802_s6 + $0x64] ss:$12 sps:$4 sm:$0xff]  }
0x391b   : > { %v7581_v11 = vsel %vm6375_vm3, %v14293_v45, 0.0 }
0x391c   : > { %7582 = vadd.xlane.f32.xlu0 %v7581_v11  ;;  %v14388_v11 = vld [vmem:[%s14802_s6 + $0x7c] ss:$12 sps:$4 sm:$0xff]  }
0x391d   : > { %11048 = vmatpush3.bf16.msra.mxu1 %v14360_v49 }
0x391e   : > { %11049 = vmatprep.subr.bf16.mxu1 %v12369_v22 }
0x392b   : > { %7652 = vrot.lane.b32.xlu1 %v12195_v21, %s12371_s27  ;;  %v14395_v21 = vld [vmem:[%s14802_s6 + $0x94] ss:$12 sps:$4 sm:$0xff]  }
0x392f   : > { %7654 = vrot.lane.b32.xlu1 %v12198_v13, %s12371_s27  ;;  %v14402_v13 = vld [vmem:[%s14802_s6 + $0xac] ss:$12 sps:$4 sm:$0xff]  }
0x3932   : > { %7650 = vrot.lane.b32.xlu0 %v12197_v37, %s12371_s27  ;;  %v7617_v37 = vld [vmem:[%s14800_s4 + $0x72] ss:$0 sm:$0xff] }
0x3933   : > { %7658 = vrot.lane.b32.xlu1 %v12201_v54, %s12371_s27 }
0x3936   : > { %7656 = vrot.lane.b32.xlu0 %v12200_v55, %s12371_s27 }
0x39a7   : > { %v7580_v32 = vpop.xlane.xlu1 %7579 }
0x39a8   : > { %v7584_v4 = vmul.f32 0.015625, %v7580_v32 }
0x39a9   : > { %v7583_v28 = vpop.xlane.xlu0 %7582 }
0x39aa   : > { %v7586_v2 = vsub.f32 %v14290_v51, %v7584_v4  ;;  %v7585_v26 = vmul.f32 0.015625, %v7583_v28 }
0x39ab   : > { %v7653_v14 = vpop.permute.xlu1 %7652 }
0x39ac   : > { %v7587_v63 = vsub.f32 %v14293_v45, %v7585_v26  ;;  %v7588_v40 = vmul.f32 %v7586_v2, %v7586_v2 }
0x39ad   : > { %v7651_v8 = vpop.permute.xlu0 %7650 }
0x39ae   : > { %v7590_v59 = vsel %vm6375_vm3, %v7588_v40, 0.0  ;;  %v7589_v35 = vmul.f32 %v7587_v63, %v7587_v63  ;;  %v7666_v12 = vsel %vm6513_vm14, %v7651_v8, %v7653_v14 }
0x39af   : > { %7591 = vadd.xlane.f32.xlu0 %v7590_v59  ;;  %11034 = vmatpush3.bf16.msra.mxu0 %v7666_v12  ;;  %v7655_v5 = vpop.permute.xlu1 %7654 }
0x39b0   : > { %v7593_v47 = vsel %vm6375_vm3, %v7589_v35, 0.0  ;;  %11035 = vmatprep.subr.bf16.mxu0 %v12369_v22 }
0x39b1   : > { %7594 = vadd.xlane.f32.xlu1 %v7593_v47  ;;  %v7657_v46 = vpop.permute.xlu0 %7656 }
0x39b2   : > { %v7667_v20 = vsel %vm6513_vm14, %v7655_v5, %v7657_v46 }
0x39b3   : > { %11036 = vmatpush3.bf16.msra.mxu0 %v7667_v20  ;;  %v7659_v23 = vpop.permute.xlu1 %7658 }
0x39b4   : > { %11037 = vmatprep.subr.bf16.mxu0 %v12369_v22 }
0x39c2   : > { %7662 = vrot.lane.b32.xlu1 %v12206_v3, %s12371_s27 }
0x39c5   : > { %7660 = vrot.lane.b32.xlu0 %v12203_v24, %s12371_s27 }
0x39c9   : > { %7664 = vrot.lane.b32.xlu0 %v12204_v38, %s12371_s27 }
0x3a3c   : > { %v7592_v30 = vpop.xlane.xlu0 %7591 }
0x3a3d   : > { %v7596_v27 = vmul.f32 0.015625, %v7592_v30 }
0x3a3e   : > { %v7595_v56 = vpop.xlane.xlu1 %7594 }
0x3a3f   : > { %v7598_v9 = vadd.f32 1e-05, %v7596_v27  ;;  %v7597_v29 = vmul.f32 0.015625, %v7595_v56 }
0x3a40   : > { %v7661_v17 = vpop.permute.xlu0 %7660 }
0x3a41   : > { %12291 = vrsqrt.f32 %v7598_v9  ;;  %v7599_v31 = vadd.f32 1e-05, %v7597_v29  ;;  %v7668_v1 = vsel %vm6513_vm14, %v7659_v23, %v7661_v17  ;;  %v7844_v29 = vld [vmem:[%s14800_s4 + $0x73] ss:$0 sm:$0xff] }
0x3a42   : > { %11038 = vmatpush3.bf16.msra.mxu0 %v7668_v1  ;;  %v7663_v50 = vpop.permute.xlu1 %7662 }
0x3a43   : > { %12293 = vrsqrt.f32 %v7599_v31  ;;  %11039 = vmatprep.subr.bf16.mxu0 %v12369_v22 }
0x3a44   : > { %v7665_v62 = vpop.permute.xlu0 %7664 }
0x3a45   : > { %v7669_v44 = vsel %vm6513_vm14, %v7663_v50, %v7665_v62 }
0x3a46   : > { %11040 = vmatpush3.bf16.msra.mxu0 %v7669_v44 }
0x3a4b   : > { %v12292_v60 = vpop.eup %12291 }
0x3a4c   : > { %v7602_v19 = vmul.f32 %v12292_v60, %v7586_v2 }
0x3a4d   : > { %v12294_v10 = vpop.eup %12293 }
0x3a4e   : > { %v7604_v0 = vmul.f32 %v7602_v19, %v7576_v57  ;;  %v7603_v16 = vmul.f32 %v12294_v10, %v7587_v63  ;;  %v12216_v10 = vld [vmem:[%s14801_s5 + $0x2c] ss:$60 sps:$4 sm:$0xff]  }
0x3a50   : > { %v7605_v48 = vmul.f32 %v7603_v16, %v7576_v57  ;;  %v7606_v33 = vadd.f32 %v7604_v0, %v7577_v36  ;;  %v14438_v0 = vld [vmem:[%s14801_s5 + $0xa8] ss:$60 sps:$4 sm:$0xff]  }
0x3a51   : > { %v12219_v16 = vld [vmem:[%s14801_s5 + $0xa4] ss:$60 sps:$4 sm:$0xff]  }
0x3a52   : > { %v7607_v25 = vadd.f32 %v7605_v48, %v7577_v36  ;;  %v12223_v36 = vld [vmem:[%s14801_s5 + $0x11c] ss:$60 sps:$4 sm:$0xff]  }
0x3a53   : > { %v12222_v48 = vld [vmem:[%s14801_s5 + $0xa0] ss:$60 sps:$4 sm:$0xff]  }
0x3a54   : > { %v7616_v7 = vpack.c.bf16 %v7607_v25, %v7606_v33  ;;  %v12226_v33 = vld [vmem:[%s14801_s5 + $0x118] ss:$60 sps:$4 sm:$0xff]   ;;  %v14461_v25 = vld [vmem:[%s14801_s5 + $0x120] ss:$60 sps:$4 sm:$0xff]  }
0x3a56   : > { %11042 = vmatmul.mubr.msk.bf16.vlgmr.msra.gmra.mrb[28].mxu0 %vm6375_vm3, %v7616_v7 }
0x3a57   : > { %8036 = vmatprep.mubr.bf16.mxu0 %v12368_v43  ;;  %v14367_v43 = vld [vmem:[%s14802_s6 + $0x34] ss:$12 sps:$4 sm:$0xff]  }
0x3a58   : > { %11050 = vmatpush3.bf16.msra.mxu1 %v14367_v43 }
0x3a59   : > { %11051 = vmatprep.subr.bf16.mxu1 %v12369_v22 }
0x3a5c   : > { %11052 = vmatpush3.bf16.msra.mxu1 %v14374_v15 }
0x3a5d   : > { %11053 = vmatprep.subr.bf16.mxu1 %v12369_v22 }
0x3a60   : > { %11054 = vmatpush3.bf16.msra.mxu1 %v14381_v58 }
0x3a61   : > { %11055 = vmatprep.subr.bf16.mxu1 %v12369_v22 }
0x3a64   : > { %11056 = vmatpush3.bf16.msra.mxu1 %v14388_v11 }
0x3a65   : > { %11057 = vmatprep.subr.bf16.mxu1 %v12369_v22 }
0x3a68   : > { %11058 = vmatpush3.bf16.msra.mxu1 %v14395_v21 }
0x3a69   : > { %11059 = vmatprep.subr.bf16.mxu1 %v12369_v22 }
0x3a6c   : > { %11060 = vmatpush3.bf16.msra.mxu1 %v14402_v13 }
0x3b29   : > { %v7711_v54 = vpop.f32.mrb[28].mxu0 }
0x3b2a   : > { %v7712_v55 = vadd.f32 %v7711_v54, %v7617_v37  ;;  %v11043_v32 = vpop.f32.mrb[29].mxu0 }
0x3b2b   : > { %v7714_v4 = vpop.f32.mrb[30].mxu0 }
0x3b2c   : > { %v7718_v28 = vmul.f32 %v7712_v55, %v7712_v55  ;;  %v7715_v2 = vadd.f32 %v7714_v4, %v7617_v37  ;;  %v11044_v26 = vpop.f32.mrb[31].mxu0 }
0x3b2e   : > { %v7720_v14 = vmul.f32 %v7718_v28, %v7712_v55  ;;  %v7719_v63 = vmul.f32 %v7715_v2, %v7715_v2 }
0x3b30   : > { %v7722_v40 = vmul.f32 0.044715, %v7720_v14  ;;  %v7721_v8 = vmul.f32 %v7719_v63, %v7715_v2 }
0x3b32   : > { %v7724_v59 = vadd.f32 %v7722_v40, %v7712_v55  ;;  %v7723_v35 = vmul.f32 0.044715, %v7721_v8 }
0x3b34   : > { %v7726_v12 = vmul.f32 0.7978846, %v7724_v59  ;;  %v7725_v5 = vadd.f32 %v7723_v35, %v7715_v2 }
0x3b36   : > { %12295 = vtanh.f32 %v7726_v12  ;;  %v7727_v47 = vmul.f32 0.7978846, %v7725_v5 }
0x3b38   : > { %12297 = vtanh.f32 %v7727_v47 }
0x3b40   : > { %v12296_v46 = vpop.eup %12295 }
0x3b41   : > { %v7730_v20 = vadd.f32 1.0, %v12296_v46 }
0x3b42   : > { %v12298_v3 = vpop.eup %12297 }
0x3b43   : > { %v7732_v24 = vmul.f32 0.5, %v7730_v20  ;;  %v7731_v38 = vadd.f32 1.0, %v12298_v3 }
0x3b45   : > { %v7733_v23 = vmul.f32 0.5, %v7731_v38  ;;  %v7734_v30 = vmul.f32 %v7732_v24, %v7712_v55 }
0x3b47   : > { %v7735_v27 = vmul.f32 %v7733_v23, %v7715_v2 }
0x3b49   : > { %v7752_v56 = vpack.c.bf16 %v7735_v27, %v7734_v30  ;;  %v14479_v27 = vld [vmem:[%s14801_s5 + $0x198] ss:$60 sps:$4 sm:$0xff]  }
0x3b4b   : > { %11062 = vmatmul.mubr.bf16.vlgmr.msra.gmra.mrb[16].mxu1 %v7752_v56  ;;  %v12227_v56 = vld [vmem:[%s14801_s5 + $0x194] ss:$60 sps:$4 sm:$0xff]  }
0x3c1e   : > { %v7835_v9 = vpop.f32.mrb[16].mxu1 }
0x3c1f   : > { %v7842_v17 = vadd.f32 %v7835_v9, %v14290_v51  ;;  %v11063_v31 = vpop.f32.mrb[17].mxu1  ;;  %v14424_v51 = vld [vmem:[%s14801_s5 + $0x30] ss:$60 sps:$4 sm:$0xff]  }
0x3c20   : > { %v7838_v1 = vpop.f32.mrb[18].mxu1  ;;  %v12230_v9 = vld [vmem:[%s14801_s5 + $0x190] ss:$60 sps:$4 sm:$0xff]  }
0x3c21   : > { %v14412_v50 = vadd.f32 %v7844_v29, %v7842_v17  ;;  %v7843_v62 = vadd.f32 %v7838_v1, %v14293_v45  ;;  %v11064_v44 = vpop.f32.mrb[19].mxu1  ;;  %v12218_v45 = vld [vmem:[%s14801_s5 + $0x28] ss:$60 sps:$4 sm:$0xff]  }
0x3c23   : > { %v14415_v60 = vadd.f32 %v7844_v29, %v7843_v62  ;;  %v7849_v57 = vsel %vm6375_vm3, %v14412_v50, 0.0 }
0x3c24   : > { %7850 = vadd.xlane.f32.xlu1 %v7849_v57 }
0x3c25   : > { %v7852_v19 = vsel %vm6375_vm3, %v14415_v60, 0.0 }
0x3c26   : > { %7853 = vadd.xlane.f32.xlu0 %v7852_v19 }
0x3c35   : > { %7965 = vrot.lane.b32.xlu1 %v14424_v51, %s12371_s27 }
0x3c39   : > { %7961 = vrot.lane.b32.xlu1 %v12218_v45, %s12371_s27 }
0x3c3c   : > { %7963 = vrot.lane.b32.xlu0 %v12216_v10, %s12371_s27 }
0x3c3d   : > { %7971 = vrot.lane.b32.xlu1 %v14438_v0, %s12371_s27 }
0x3c40   : > { %7969 = vrot.lane.b32.xlu0 %v12219_v16, %s12371_s27 }
0x3c41   : > { %7975 = vrot.lane.b32.xlu1 %v12223_v36, %s12371_s27 }
0x3c44   : > { %7967 = vrot.lane.b32.xlu0 %v12222_v48, %s12371_s27  ;;  %v7847_v48 = vld [vmem:[%s14800_s4 + $0x74] ss:$0 sm:$0xff] }
0x3c45   : > { %7973 = vrot.lane.b32.xlu1 %v12226_v33, %s12371_s27 }
0x3c48   : > { %7977 = vrot.lane.b32.xlu0 %v14461_v25, %s12371_s27 }
0x3cb1   : > { %v7851_v7 = vpop.xlane.xlu1 %7850 }
0x3cb2   : > { %v7855_v37 = vmul.f32 0.015625, %v7851_v7 }
0x3cb3   : > { %v7854_v54 = vpop.xlane.xlu0 %7853 }
0x3cb4   : > { %v7857_v55 = vsub.f32 %v14412_v50, %v7855_v37  ;;  %v7856_v32 = vmul.f32 0.015625, %v7854_v54 }
0x3cb5   : > { %v7966_v4 = vpop.permute.xlu1 %7965 }
0x3cb6   : > { %v7858_v28 = vsub.f32 %v14415_v60, %v7856_v32  ;;  %v7859_v2 = vmul.f32 %v7857_v55, %v7857_v55  ;;  %v7848_v32 = vld [vmem:[%s14800_s4 + $0x75] ss:$0 sm:$0xff] }
0x3cb7   : > { %v7964_v26 = vpop.permute.xlu0 %7963 }
0x3cb8   : > { %v7861_v14 = vsel %vm6375_vm3, %v7859_v2, 0.0  ;;  %v7860_v63 = vmul.f32 %v7858_v28, %v7858_v28  ;;  %v7986_v40 = vsel %vm6513_vm14, %v7964_v26, %v7966_v4 }
0x3cb9   : > { %7862 = vadd.xlane.f32.xlu0 %v7861_v14  ;;  %v7962_v8 = vpop.permute.xlu1 %7961  ;;  %8004 = vmatprep.subr.bf16.mxu0 %v7986_v40 }
0x3cba   : > { %v7864_v59 = vsel %vm6375_vm3, %v7860_v63, 0.0  ;;  %v7985_v35 = vsel %vm6513_vm14, %v7962_v8, %v7964_v26  ;;  %v9890_v63 = vld [vmem:[%s14800_s4 + $0x76] ss:$8 sm:$0x3] }
0x3cbb   : > { %7865 = vadd.xlane.f32.xlu1 %v7864_v59  ;;  %v7970_v12 = vpop.permute.xlu0 %7969  ;;  %8005 = vmatpush1.bf16.msra.mxu0 %v7985_v35  ;;  %v7902_v40 = vrot.slane %v9890_v63, %v14118_v34 }
0x3cbd   : > { %v7972_v5 = vpop.permute.xlu1 %7971 }
0x3cbe   : > { %v7988_v47 = vsel %vm6513_vm14, %v7970_v12, %v7972_v5 }
0x3cbf   : > { %v7968_v46 = vpop.permute.xlu0 %7967  ;;  %8006 = vmatprep.subr.bf16.mxu0 %v7988_v47 }
0x3cc0   : > { %v7987_v20 = vsel %vm6513_vm14, %v7968_v46, %v7970_v12 }
0x3cc1   : > { %v7976_v3 = vpop.permute.xlu1 %7975  ;;  %8007 = vmatpush1.bf16.msra.mxu0 %v7987_v20 }
0x3cc3   : > { %v7978_v24 = vpop.permute.xlu0 %7977 }
0x3cc4   : > { %v7990_v38 = vsel %vm6513_vm14, %v7976_v3, %v7978_v24 }
0x3cc5   : > { %v7974_v23 = vpop.permute.xlu1 %7973  ;;  %8008 = vmatprep.subr.bf16.mxu0 %v7990_v38 }
0x3cc6   : > { %v7989_v30 = vsel %vm6513_vm14, %v7974_v23, %v7976_v3 }
0x3cc7   : > { %8009 = vmatpush1.bf16.msra.mxu0 %v7989_v30 }
0x3ccc   : > { %7983 = vrot.lane.b32.xlu1 %v14479_v27, %s12371_s27 }
0x3ccf   : > { %7981 = vrot.lane.b32.xlu0 %v12227_v56, %s12371_s27 }
0x3cd3   : > { %7979 = vrot.lane.b32.xlu0 %v12230_v9, %s12371_s27 }
0x3d46   : > { %v7863_v29 = vpop.xlane.xlu0 %7862 }
0x3d47   : > { %v7867_v17 = vmul.f32 0.015625, %v7863_v29 }
0x3d48   : > { %v7866_v31 = vpop.xlane.xlu1 %7865 }
0x3d49   : > { %v7869_v1 = vadd.f32 1e-05, %v7867_v17  ;;  %v7868_v62 = vmul.f32 0.015625, %v7866_v31 }
0x3d4a   : > { %v7982_v44 = vpop.permute.xlu0 %7981 }
0x3d4b   : > { %12299 = vrsqrt.f32 %v7869_v1  ;;  %v7870_v57 = vadd.f32 1e-05, %v7868_v62 }
0x3d4c   : > { %v7984_v19 = vpop.permute.xlu1 %7983 }
0x3d4d   : > { %12301 = vrsqrt.f32 %v7870_v57  ;;  %v7992_v45 = vsel %vm6513_vm14, %v7982_v44, %v7984_v19 }
0x3d4e   : > { %v7980_v10 = vpop.permute.xlu0 %7979  ;;  %8010 = vmatprep.subr.bf16.mxu0 %v7992_v45 }
0x3d4f   : > { %v7991_v16 = vsel %vm6513_vm14, %v7980_v10, %v7982_v44 }
0x3d50   : > { %8011 = vmatpush1.bf16.msra.mxu0 %v7991_v16 }
0x3d55   : > { %v12300_v36 = vpop.eup %12299 }
0x3d56   : > { %v7873_v33 = vmul.f32 %v12300_v36, %v7857_v55 }
0x3d57   : > { %v12302_v7 = vpop.eup %12301 }
0x3d58   : > { %v7875_v37 = vmul.f32 %v7873_v33, %v7847_v48  ;;  %v7874_v54 = vmul.f32 %v12302_v7, %v7858_v28  ;;  %v7906_v28 = vrot.slane %v9890_v63, %v6433_v6 }
0x3d5a   : > { %v7876_v4 = vmul.f32 %v7874_v54, %v7847_v48  ;;  %v7877_v2 = vadd.f32 %v7875_v37, %v7848_v32 }
0x3d5c   : > { %v7878_v26 = vadd.f32 %v7876_v4, %v7848_v32 }
0x3d5e   : > { %v7895_v14 = vpack.c.bf16 %v7878_v26, %v7877_v2 }
0x3d60   : > { %9903 = vmatmul.mubr.msk.bf16.vlgmr.msra.gmra.mrb[32].mxu0 %vm6375_vm3, %v7895_v14 }
0x3e33   : > { %v8038_v55 = vpop.f32.mrb[32].mxu0 }
0x3e34   : > { %v8039_v8 = vadd.f32 %v8038_v55, %v7902_v40  ;;  %v8040_v59 = vpop.f32.mrb[33].mxu0 }
0x3e35   : > { %v8042_v35 = vpop.f32.mrb[34].mxu0  ;;  %v8041_v46 = vadd.f32 %v8040_v59, %v7906_v28 }
0x3e36   : > { %v8043_v12 = vadd.f32 %v8042_v35, %v7902_v40  ;;  %v8044_v5 = vpop.f32.mrb[35].mxu0  ;;  %v14506_v47 = vmul.f32 0.25, %v8039_v8 }
0x3e37   : > { %v8045_v20 = vadd.f32 %v8044_v5, %v7906_v28 }
0x3e38   : > { %11069 = vmatprep.mubr.msk.f32.mxu0 %vm6513_vm14, %v14506_v47  ;;  %v14510_v3 = vpack.i.bf16 %v8043_v12, %v8039_v8  ;;  %v14518_v6 = vmul.f32 0.25, %v8043_v12 }
0x3e39   : > { %v11474_v24 = vpack.c.bf16 %v8045_v20, %v8041_v46  ;;  %v14512_v38 = vpack.i.bf16 %v8045_v20, %v8041_v46 }
0x3e3a   : > { %12142 = vrot.lane.b32.xlu0 %v14510_v3, %s12376_s13  ;;  %12137 = vrot.lane.b32.xlu1 %v14510_v3, %s12373_s28 }
0x3e3b   : > { %11475 = vmatprep.subr.bf16.mxu1 %v11474_v24 }
0x3e3c   : > { %11477 = vmatpush3.bf16.msra.mxu1 %v11474_v24 }
0x3e3e   : > { %8246 = vrot.lane.b32.xlu0 %v14518_v6, %s12375_s12  ;;  %8244 = vrot.lane.b32.xlu1 %v14506_v47, %s12375_s12 }
0x3eac   : > { %v12143_v23 = vpop.permute.xlu0 %12142  ;;  %v12138_v30 = vpop.permute.xlu1 %12137 }
0x3ead   : > { %v12145_v56 = vunpack.i.h.bf16 %v12143_v23  ;;  %v12144_v9 = vunpack.i.l.bf16 %v12143_v23  ;;  %v12140_v29 = vunpack.i.h.bf16 %v12138_v30  ;;  %v12139_v17 = vunpack.i.l.bf16 %v12138_v30 }
0x3eaf   : > { %v11468_v31 = vpack.c.bf16 %v12140_v29, %v12139_v17  ;;  %v11478_v1 = vpack.c.bf16 %v12145_v56, %v12144_v9 }
0x3eb0   : > { %v8245_v62 = vpop.permute.xlu1 %8244  ;;  %v8247_v44 = vpop.permute.xlu0 %8246 }
0x3eb1   : > { %11470 = vmatprep.subr.msk.bf16.mxu0 %vm14139_vm15, %v11468_v31 }
0x3eb2   : > { %11473 = vmatpush3.bf16.xpose.msk.msra.mxu0 %vm14139_vm15, %v11468_v31 }
0x3eb3   : > { %11480 = vmatprep.subr.msk.bf16.mxu0 %vm14139_vm15, %v11478_v1 }
0x3eb9   : > { %11070 = vmatmul.mubr.msk.f32.vlgmr.msra.gmra.mrb[26].mxu0 %vm6513_vm14, %v14518_v6 }
0x3eba   : > { %11483 = vmatpush3.bf16.xpose.msk.msra.mxu0 %vm14139_vm15, %v11478_v1  ;;  %11083 = vmatprep.mubr.msk.f32.mxu0 %vm6513_vm14, %v8245_v62 }
0x3ebb   : > { %11099 = vmatprep.subr.bf16.mxu0 %v12369_v22 }
0x3ec1   : > { %11084 = vmatmul.mubr.msk.f32.vlgmr.msra.gmra.mrb[36].mxu0 %vm6513_vm14, %v8247_v44 }
0x3ec2   : > { %11101 = vmatprep.mubr.msk.bf16.mxu0 %vm12370_vm5, %v12369_v22 }
0x3f8c   : > { %v11071_v57 = vpop.f32.mrb[26].mxu0 }
0x3f8d   : > { %v8137_v19 = vadd.f32 %v11071_v57, %v14166_v61  ;;  %v8131_v45 = vpop.f32.mrb[27].mxu0 }
0x3f8e   : > { %v8132_v10 = vadd.f32 %v8131_v45, %v14168_v52 }
0x3f8f   : > { %v8143_v16 = vsel %vm6513_vm14, %v8137_v19, -inf }
0x3f90   : > { %8144 = vmax.xlane.f32.xlu0 %v8143_v16  ;;  %v8140_v36 = vsel %vm6513_vm14, %v8132_v10, -inf }
0x3f91   : > { %8141 = vmax.xlane.f32.xlu1 %v8140_v36 }
0x3f94   : > { %v11085_v48 = vpop.f32.mrb[36].mxu0 }
0x3f95   : > { %v8332_v33 = vadd.f32 %v11085_v48, %v14166_v61  ;;  %v8326_v7 = vpop.f32.mrb[37].mxu0 }
0x3f96   : > { %v8327_v37 = vadd.f32 %v8326_v7, %v14168_v52 }
0x3f97   : > { %v8338_v54 = vsel %vm6513_vm14, %v8332_v33, -inf }
0x3f98   : > { %8339 = vmax.xlane.f32.xlu1 %v8338_v54  ;;  %v8335_v32 = vsel %vm6513_vm14, %v8327_v37, -inf }
0x3f99   : > { %8336 = vmax.xlane.f32.xlu0 %v8335_v32 }
0x401d   : > { %v8145_v4 = vpop.xlane.xlu0 %8144 }
0x401e   : > { %v8147_v2 = vsub.f32 %v8137_v19, %v8145_v4  ;;  %v8142_v26 = vpop.xlane.xlu1 %8141 }
0x401f   : > { %v8146_v14 = vsub.f32 %v8132_v10, %v8142_v26 }
0x4020   : > { %v8150_v63 = vmul.f32 1.442695, %v8147_v2 }
0x4021   : > { %v8148_v40 = vmul.f32 1.442695, %v8146_v14 }
0x4022   : > { %12303 = vpow2.f32 %v8150_v63 }
0x4023   : > { %12305 = vpow2.f32 %v8148_v40 }
0x4025   : > { %v8340_v55 = vpop.xlane.xlu1 %8339 }
0x4026   : > { %v8342_v28 = vsub.f32 %v8332_v33, %v8340_v55  ;;  %v8337_v8 = vpop.xlane.xlu0 %8336 }
0x4027   : > { %v8341_v59 = vsub.f32 %v8327_v37, %v8337_v8 }
0x4028   : > { %v8345_v35 = vmul.f32 1.442695, %v8342_v28 }
0x4029   : > { %v8343_v12 = vmul.f32 1.442695, %v8341_v59 }
0x402a   : > { %12307 = vpow2.f32 %v8345_v35 }
0x402b   : > { %12309 = vpow2.f32 %v8343_v12 }
0x402c   : > { %v12304_v5 = vpop.eup %12303 }
0x402d   : > { %v12306_v46 = vpop.eup %12305  ;;  %v8155_v20 = vsel %vm6513_vm14, %v12304_v5, 0.0 }
0x402e   : > { %8156 = vadd.xlane.f32.xlu1 %v8155_v20  ;;  %v8152_v24 = vsel %vm6513_vm14, %v12306_v46, 0.0 }
0x402f   : > { %8153 = vadd.xlane.f32.xlu0 %v8152_v24 }
0x4034   : > { %v12308_v23 = vpop.eup %12307 }
0x4035   : > { %v12310_v30 = vpop.eup %12309  ;;  %v8350_v56 = vsel %vm6513_vm14, %v12308_v23, 0.0 }
0x4036   : > { %8351 = vadd.xlane.f32.xlu1 %v8350_v56  ;;  %v8347_v9 = vsel %vm6513_vm14, %v12310_v30, 0.0 }
0x4037   : > { %8348 = vadd.xlane.f32.xlu0 %v8347_v9 }
0x4047   : > { %8447 = vrot.lane.b32.xlu1 %v14438_v0, %s12379_s22 }
0x404b   : > { %12152 = vrot.lane.b32.xlu1 %v14510_v3, %s12377_s20 }
0x404d   : > { %12147 = vrot.lane.b32.xlu0 %v14512_v38, %s12375_s12 }
0x404f   : > { %8543 = vrot.lane.b32.xlu1 %v14518_v6, %s12378_s10 }
0x4051   : > { %8541 = vrot.lane.b32.xlu0 %v14506_v47, %s12378_s10 }
0x40bb   : > { %v8157_v29 = vpop.xlane.xlu1 %8156 }
0x40bc   : > { %12311 = vrcp.f32 %v8157_v29  ;;  %v8154_v17 = vpop.xlane.xlu0 %8153 }
0x40bd   : > { %12313 = vrcp.f32 %v8154_v17 }
0x40c3   : > { %v8352_v31 = vpop.xlane.xlu1 %8351 }
0x40c4   : > { %12315 = vrcp.f32 %v8352_v31  ;;  %v8349_v1 = vpop.xlane.xlu0 %8348 }
0x40c5   : > { %12317 = vrcp.f32 %v8349_v1 }
0x40c6   : > { %v12312_v0 = vpop.eup %12311 }
0x40c7   : > { %v12314_v62 = vpop.eup %12313  ;;  %v8448_v44 = vpop.permute.xlu1 %8447  ;;  %v8161_v45 = vmul.f32 %v12312_v0, %v12304_v5 }
0x40c8   : > { %v12148_v57 = vpop.permute.xlu0 %12147  ;;  %v8160_v19 = vmul.f32 %v12314_v62, %v12306_v46 }
0x40c9   : > { %v12150_v10 = vunpack.i.h.bf16 %v12148_v57  ;;  %v12149_v16 = vunpack.i.l.bf16 %v12148_v57 }
0x40ca   : > { %11076 = vmatprep.mubr.msk.f32.mxu1 %vm6513_vm14, %v8160_v19 }
0x40cb   : > { %v11484_v36 = vpack.c.bf16 %v12150_v10, %v12149_v16  ;;  %11077 = vmatmul.mubr.msk.f32.vlgmr.msra.gmra.mrb[20].mxu1 %vm6513_vm14, %v8161_v45  ;;  %v12153_v48 = vpop.permute.xlu1 %12152 }
0x40cc   : > { %v12155_v37 = vunpack.i.h.bf16 %v12153_v48  ;;  %v12154_v54 = vunpack.i.l.bf16 %v12153_v48  ;;  %v8542_v8 = vpop.permute.xlu0 %8541 }
0x40cd   : > { %11485 = vmatprep.subr.bf16.mxu1 %v11484_v36 }
0x40ce   : > { %v12316_v33 = vpop.eup %12315  ;;  %11487 = vmatpush3.bf16.msra.mxu1 %v11484_v36  ;;  %v11488_v2 = vpack.c.bf16 %v12155_v37, %v12154_v54 }
0x40cf   : > { %v12318_v7 = vpop.eup %12317  ;;  %11093 = vmatprep.subr.bf16.mxu1 %v12369_v22  ;;  %v8356_v4 = vmul.f32 %v12316_v33, %v12308_v23  ;;  %v8544_v59 = vpop.permute.xlu1 %8543 }
0x40d0   : > { %v8355_v32 = vmul.f32 %v12318_v7, %v12310_v30 }
0x40d2   : > { %11090 = vmatprep.mubr.msk.f32.mxu1 %vm6513_vm14, %v8355_v32 }
0x40d3   : > { %11091 = vmatmul.mubr.msk.f32.vlgmr.msra.gmra.mrb[22].mxu1 %vm6513_vm14, %v8356_v4 }
0x40d4   : > { %11094 = vmatpush3.bf16.msra.mxu1 %v8448_v44  ;;  %11095 = vmatprep.mubr.msk.bf16.mxu1 %vm12370_vm5, %v12369_v22 }
0x40d5   : > { %11490 = vmatprep.subr.msk.bf16.mxu1 %vm14139_vm15, %v11488_v2 }
0x419e   : > { %v11078_v26 = vpop.f32.mrb[20].mxu1 }
0x419f   : > { %v8234_v14 = vpop.f32.mrb[21].mxu1 }
0x41a0   : > { %v8243_v63 = vpack.c.bf16 %v11078_v26, %v8234_v14 }
0x41a6   : > { %v11092_v40 = vpop.f32.mrb[22].mxu1 }
0x41a7   : > { %v8437_v55 = vpop.f32.mrb[23].mxu1 }
0x41a8   : > { %v8446_v28 = vpack.c.bf16 %v11092_v40, %v8437_v55 }
0x41aa   : > { %11096 = vmatmul.mubr.msk.bf16.vlgmr.msra.gmra.mrb[24].mxu1 %vm6513_vm14, %v8446_v28 }
0x41ab   : > { %11493 = vmatpush3.bf16.xpose.msk.msra.mxu1 %vm14139_vm15, %v11488_v2  ;;  %11109 = vmatprep.mubr.msk.f32.mxu1 %vm6513_vm14, %v8542_v8 }
0x41ac   : > { %11119 = vmatprep.subr.bf16.mxu1 %v12369_v22 }
0x41b2   : > { %11110 = vmatmul.mubr.msk.f32.vlgmr.msra.gmra.mrb[28].mxu1 %vm6513_vm14, %v8544_v59 }
0x41b3   : > { %11121 = vmatprep.mubr.msk.bf16.mxu1 %vm12370_vm5, %v12369_v22 }
0x427d   : > { %v14578_v35 = vpop.f32.mrb[24].mxu1 }
0x427e   : > { %v11097_v12 = vpop.f32.mrb[25].mxu1 }
0x427f   : > { %v14580_v5 = vpop.f32.mrb[26].mxu1 }
0x4280   : > { %v11098_v46 = vpop.f32.mrb[27].mxu1 }
0x4285   : > { %v11111_v20 = vpop.f32.mrb[28].mxu1 }
0x4286   : > { %v8629_v24 = vadd.f32 %v11111_v20, %v14166_v61  ;;  %v8623_v23 = vpop.f32.mrb[29].mxu1 }
0x4287   : > { %v8624_v30 = vadd.f32 %v8623_v23, %v14168_v52 }
0x4288   : > { %v8635_v56 = vsel %vm6513_vm14, %v8629_v24, -inf }
0x4289   : > { %8636 = vmax.xlane.f32.xlu1 %v8635_v56  ;;  %v8632_v9 = vsel %vm6513_vm14, %v8624_v30, -inf }
0x428a   : > { %8633 = vmax.xlane.f32.xlu0 %v8632_v9 }
0x429a   : > { %8494 = vrot.lane.b32.xlu1 %v14424_v51, %s12379_s22 }
0x429e   : > { %12162 = vrot.lane.b32.xlu1 %v14510_v3, %s12371_s27 }
0x42a2   : > { %8791 = vrot.lane.b32.xlu1 %v14506_v47, %s12379_s22 }
0x4316   : > { %v8637_v29 = vpop.xlane.xlu1 %8636 }
0x4317   : > { %v8639_v17 = vsub.f32 %v8629_v24, %v8637_v29  ;;  %v8634_v31 = vpop.xlane.xlu0 %8633 }
0x4318   : > { %v8638_v1 = vsub.f32 %v8624_v30, %v8634_v31 }
0x4319   : > { %v8642_v0 = vmul.f32 1.442695, %v8639_v17 }
0x431a   : > { %v8640_v62 = vmul.f32 1.442695, %v8638_v1  ;;  %v8495_v44 = vpop.permute.xlu1 %8494 }
0x431b   : > { %12319 = vpow2.f32 %v8642_v0  ;;  %11100 = vmatpush3.bf16.msra.mxu0 %v8495_v44 }
0x431c   : > { %12321 = vpow2.f32 %v8640_v62 }
0x431e   : > { %11102 = vmatmul.mubr.msk.bf16.vlgmr.msra.gmra.mrb[40].mxu0 %vm6513_vm14, %v8243_v63  ;;  %v12163_v10 = vpop.permute.xlu1 %12162 }
0x431f   : > { %v12165_v36 = vunpack.i.h.bf16 %v12163_v10  ;;  %v12164_v48 = vunpack.i.l.bf16 %v12163_v10 }
0x4321   : > { %v11498_v54 = vpack.c.bf16 %v12165_v36, %v12164_v48 }
0x4322   : > { %v8792_v26 = vpop.permute.xlu1 %8791 }
0x4325   : > { %v12320_v57 = vpop.eup %12319 }
0x4326   : > { %v8647_v51 = vsel %vm6513_vm14, %v12320_v57, 0.0  ;;  %v12322_v19 = vpop.eup %12321 }
0x4327   : > { %8648 = vadd.xlane.f32.xlu0 %v8647_v51  ;;  %v8644_v3 = vsel %vm6513_vm14, %v12322_v19, 0.0 }
0x432b   : > { %8645 = vadd.xlane.f32.xlu0 %v8644_v3 }
0x4341   : > { %12157 = vrot.lane.b32.xlu0 %v14512_v38, %s12378_s10 }
0x4345   : > { %8793 = vrot.lane.b32.xlu0 %v14518_v6, %s12379_s22 }
0x43b4   : > { %v8649_v47 = vpop.xlane.xlu0 %8648 }
0x43b5   : > { %12323 = vrcp.f32 %v8649_v47 }
0x43b8   : > { %v8646_v45 = vpop.xlane.xlu0 %8645 }
0x43b9   : > { %12325 = vrcp.f32 %v8646_v45 }
0x43bc   : > { %v12158_v16 = vpop.permute.xlu0 %12157 }
0x43bd   : > { %v12160_v33 = vunpack.i.h.bf16 %v12158_v16  ;;  %v12159_v7 = vunpack.i.l.bf16 %v12158_v16 }
0x43bf   : > { %v11494_v37 = vpack.c.bf16 %v12160_v33, %v12159_v7  ;;  %v12324_v32 = vpop.eup %12323 }
0x43c0   : > { %v8653_v2 = vmul.f32 %v12324_v32, %v12320_v57  ;;  %v8794_v14 = vpop.permute.xlu0 %8793 }
0x43c1   : > { %11495 = vmatprep.subr.bf16.mxu0 %v11494_v37 }
0x43c2   : > { %11497 = vmatpush3.bf16.msra.mxu0 %v11494_v37 }
0x43c3   : > { %v12326_v4 = vpop.eup %12325  ;;  %11500 = vmatprep.subr.msk.bf16.mxu0 %vm14139_vm15, %v11498_v54 }
0x43c4   : > { %v8652_v6 = vmul.f32 %v12326_v4, %v12322_v19 }
0x43c6   : > { %11116 = vmatprep.mubr.msk.f32.mxu0 %vm6513_vm14, %v8652_v6 }
0x43c7   : > { %11117 = vmatmul.mubr.msk.f32.vlgmr.msra.gmra.mrb[38].mxu0 %vm6513_vm14, %v8653_v2 }
0x43c8   : > { %11129 = vmatprep.mubr.msk.f32.mxu0 %vm6513_vm14, %v8792_v26  ;;  %v9041_v26 = vld [vmem:[%s14800_s4 + $0x77] ss:$0 sm:$0xff] }
0x43cb   : > { %11503 = vmatpush3.bf16.xpose.msk.msra.mxu0 %vm14139_vm15, %v11498_v54 }
0x43cc   : > { %11139 = vmatprep.subr.bf16.mxu0 %v12369_v22 }
0x43d2   : > { %11130 = vmatmul.mubr.msk.f32.vlgmr.msra.gmra.mrb[44].mxu0 %vm6513_vm14, %v8794_v14 }
0x43d3   : > { %11141 = vmatprep.mubr.msk.bf16.mxu0 %vm12370_vm5, %v12369_v22 }
0x43f1   : > { %v8534_v63 = vpop.f32.mrb[40].mxu0 }
0x43f2   : > { %v8535_v40 = vadd.f32 %v8534_v63, %v14578_v35  ;;  %v11103_v55 = vpop.f32.mrb[41].mxu0 }
0x43f3   : > { %v8537_v28 = vpop.f32.mrb[42].mxu0 }
0x43f4   : > { %v8538_v8 = vadd.f32 %v8537_v28, %v14580_v5  ;;  %v11104_v59 = vpop.f32.mrb[43].mxu0 }
0x449a   : > { %v11118_v12 = vpop.f32.mrb[38].mxu0 }
0x449b   : > { %v8732_v46 = vpop.f32.mrb[39].mxu0 }
0x449c   : > { %v8741_v39 = vpack.c.bf16 %v11118_v12, %v8732_v46 }
0x44a5   : > { %v11131_v20 = vpop.f32.mrb[44].mxu0 }
0x44a6   : > { %v8879_v24 = vadd.f32 %v11131_v20, %v14166_v61  ;;  %v8873_v23 = vpop.f32.mrb[45].mxu0 }
0x44a7   : > { %v8874_v30 = vadd.f32 %v8873_v23, %v14168_v52  ;;  %v12236_v23 = vld [vmem:[%s14801_s5 + $0xac] ss:$60 sps:$4 sm:$0xff]  }
0x44a8   : > { %v8885_v56 = vsel %vm6513_vm14, %v8879_v24, -inf }
0x44a9   : > { %8886 = vmax.xlane.f32.xlu0 %v8885_v56  ;;  %v8882_v9 = vsel %vm6513_vm14, %v8874_v30, -inf  ;;  %v12240_v56 = vld [vmem:[%s14801_s5 + $0x19c] ss:$60 sps:$4 sm:$0xff]  }
0x44aa   : > { %8883 = vmax.xlane.f32.xlu1 %v8882_v9 }
0x4536   : > { %v8887_v35 = vpop.xlane.xlu0 %8886 }
0x4537   : > { %v8889_v29 = vsub.f32 %v8879_v24, %v8887_v35  ;;  %v8884_v17 = vpop.xlane.xlu1 %8883  ;;  %v12233_v24 = vld [vmem:[%s14801_s5 + $0x30] ss:$60 sps:$4 sm:$0xff]  }
0x4538   : > { %v8888_v5 = vsub.f32 %v8874_v30, %v8884_v17  ;;  %v12237_v30 = vld [vmem:[%s14801_s5 + $0x124] ss:$60 sps:$4 sm:$0xff]  }
0x4539   : > { %v8892_v31 = vmul.f32 1.442695, %v8889_v29 }
0x453a   : > { %v8890_v1 = vmul.f32 1.442695, %v8888_v5 }
0x453b   : > { %12327 = vpow2.f32 %v8892_v31 }
0x453c   : > { %12329 = vpow2.f32 %v8890_v1 }
0x4545   : > { %v12328_v0 = vpop.eup %12327 }
0x4546   : > { %v12330_v62 = vpop.eup %12329  ;;  %v8897_v61 = vsel %vm6513_vm14, %v12328_v0, 0.0 }
0x4547   : > { %8898 = vadd.xlane.f32.xlu1 %v8897_v61  ;;  %v8894_v52 = vsel %vm6513_vm14, %v12330_v62, 0.0 }
0x4548   : > { %8895 = vadd.xlane.f32.xlu0 %v8894_v52  ;;  %v12239_v52 = vld [vmem:[%s14801_s5 + $0x120] ss:$60 sps:$4 sm:$0xff]  }
0x4558   : > { %12167 = vrot.lane.b32.xlu1 %v14512_v38, %s12379_s22 }
0x455c   : > { %8992 = vrot.lane.b32.xlu1 %v14479_v27, %s12379_s22 }
0x455e   : > { %8742 = vrot.lane.b32.xlu0 %v14461_v25, %s12379_s22 }
0x45d4   : > { %v8899_v44 = vpop.xlane.xlu1 %8898 }
0x45d5   : > { %12331 = vrcp.f32 %v8899_v44  ;;  %v8896_v57 = vpop.xlane.xlu0 %8895 }
0x45d6   : > { %12333 = vrcp.f32 %v8896_v57  ;;  %v12242_v57 = vld [vmem:[%s14801_s5 + $0x198] ss:$60 sps:$4 sm:$0xff]  }
0x45d8   : > { %v12168_v51 = vpop.permute.xlu1 %12167 }
0x45d9   : > { %v12170_v19 = vunpack.i.h.bf16 %v12168_v51  ;;  %v12169_v3 = vunpack.i.l.bf16 %v12168_v51  ;;  %v8743_v47 = vpop.permute.xlu0 %8742 }
0x45da   : > { %11120 = vmatpush3.bf16.msra.mxu1 %v8743_v47 }
0x45db   : > { %v11504_v45 = vpack.c.bf16 %v12170_v19, %v12169_v3 }
0x45dc   : > { %v8993_v16 = vpop.permute.xlu1 %8992 }
0x45dd   : > { %11122 = vmatmul.mubr.msk.bf16.vlgmr.msra.gmra.mrb[32].mxu1 %vm6513_vm14, %v8741_v39  ;;  %11505 = vmatprep.subr.bf16.mxu1 %v11504_v45 }
0x45de   : > { %11507 = vmatpush3.bf16.msra.mxu1 %v11504_v45  ;;  %11140 = vmatpush3.bf16.msra.mxu0 %v8993_v16 }
0x45df   : > { %v12332_v38 = vpop.eup %12331  ;;  %11145 = vmatprep.subr.bf16.mxu1 %v12369_v22  ;;  %11157 = vmatprep.subr.bf16.mxu0 %v12369_v22 }
0x45e0   : > { %v12334_v27 = vpop.eup %12333  ;;  %v8903_v25 = vmul.f32 %v12332_v38, %v12328_v0 }
0x45e1   : > { %v8902_v10 = vmul.f32 %v12334_v27, %v12330_v62 }
0x45e3   : > { %11136 = vmatprep.mubr.msk.f32.mxu1 %vm6513_vm14, %v8902_v10 }
0x45e5   : > { %11137 = vmatmul.mubr.msk.f32.vlgmr.msra.gmra.mrb[30].mxu1 %vm6513_vm14, %v8903_v25 }
0x45e6   : > { %11153 = vmatprep.mubr.msk.bf16.mxu1 %vm12370_vm5, %v12369_v22 }
0x46b0   : > { %v8782_v36 = vpop.f32.mrb[32].mxu1 }
0x46b1   : > { %v8789_v48 = vadd.f32 %v8782_v36, %v8535_v40  ;;  %v11123_v33 = vpop.f32.mrb[33].mxu1 }
0x46b2   : > { %v8785_v7 = vpop.f32.mrb[34].mxu1 }
0x46b3   : > { %v8790_v37 = vadd.f32 %v8785_v7, %v8538_v8  ;;  %v11124_v54 = vpop.f32.mrb[35].mxu1 }
0x46b4   : > { %v9047_v54 = vld [vmem:[%s14800_s4 + $0x81] ss:$0 sm:$0xff] }
0x46b8   : > { %v11138_v32 = vpop.f32.mrb[30].mxu1 }
0x46b9   : > { %v8982_v4 = vpop.f32.mrb[31].mxu1 }
0x46ba   : > { %v8991_v6 = vpack.c.bf16 %v11138_v32, %v8982_v4 }
0x46bc   : > { %11142 = vmatmul.mubr.msk.bf16.vlgmr.msra.gmra.mrb[48].mxu0 %vm6513_vm14, %v8991_v6 }
0x46bd   : > { %11173 = vmatprep.mubr.msk.bf16.mxu0 %vm12370_vm5, %v12369_v22 }
0x478f   : > { %v9032_v2 = vpop.f32.mrb[48].mxu0 }
0x4790   : > { %v9039_v14 = vadd.f32 %v9032_v2, %v8789_v48  ;;  %v11143_v63 = vpop.f32.mrb[49].mxu0  ;;  %v9046_v48 = vld [vmem:[%s14800_s4 + $0x80] ss:$0 sm:$0xff] }
0x4791   : > { %v9035_v40 = vpop.f32.mrb[50].mxu0 }
0x4792   : > { %v9042_v55 = vadd.f32 %v9041_v26, %v9039_v14  ;;  %v9040_v28 = vadd.f32 %v9035_v40, %v8790_v37  ;;  %v11144_v8 = vpop.f32.mrb[51].mxu0 }
0x4794   : > { %v14638_v59 = vadd.f32 %v9042_v55, %v14412_v50  ;;  %v9043_v12 = vadd.f32 %v9041_v26, %v9040_v28  ;;  %v12231_v50 = vld [vmem:[%s14801_s5 + $0x34] ss:$60 sps:$4 sm:$0xff]  }
0x4796   : > { %v14641_v46 = vadd.f32 %v9043_v12, %v14415_v60  ;;  %v9048_v39 = vsel %vm6375_vm3, %v14638_v59, 0.0  ;;  %v12234_v60 = vld [vmem:[%s14801_s5 + $0xa8] ss:$60 sps:$4 sm:$0xff]  }
0x4797   : > { %9049 = vadd.xlane.f32.xlu0 %v9048_v39  ;;  %v9087_v39 = vld [vmem:[%s14800_s4 + $0x82] ss:$0 sm:$0xff] }
0x4798   : > { %v9051_v20 = vsel %vm6375_vm3, %v14641_v46, 0.0 }
0x4799   : > { %9052 = vadd.xlane.f32.xlu1 %v9051_v20 }
0x47aa   : > { %9120 = vrot.lane.b32.xlu1 %v12233_v24, %s12371_s27 }
0x47ad   : > { %9122 = vrot.lane.b32.xlu0 %v12231_v50, %s12371_s27 }
0x47ae   : > { %9124 = vrot.lane.b32.xlu1 %v12234_v60, %s12371_s27 }
0x47b2   : > { %9126 = vrot.lane.b32.xlu1 %v12236_v23, %s12371_s27 }
0x47b6   : > { %9130 = vrot.lane.b32.xlu1 %v12237_v30, %s12371_s27 }
0x47ba   : > { %9134 = vrot.lane.b32.xlu1 %v12240_v56, %s12371_s27 }
0x47be   : > { %9209 = vrot.lane.b32.xlu1 %v14360_v49, %s12373_s28 }
0x47c2   : > { %9213 = vrot.lane.b32.xlu1 %v14374_v15, %s12373_s28 }
0x47c6   : > { %9217 = vrot.lane.b32.xlu1 %v14388_v11, %s12373_s28 }
0x47ca   : > { %9221 = vrot.lane.b32.xlu1 %v14402_v13, %s12373_s28 }
0x4824   : > { %v9050_v9 = vpop.xlane.xlu0 %9049 }
0x4825   : > { %v9054_v35 = vmul.f32 0.015625, %v9050_v9 }
0x4826   : > { %v9053_v29 = vpop.xlane.xlu1 %9052 }
0x4827   : > { %v9056_v17 = vsub.f32 %v14638_v59, %v9054_v35  ;;  %v9055_v5 = vmul.f32 0.015625, %v9053_v29 }
0x4828   : > { %v9123_v31 = vpop.permute.xlu0 %9122 }
0x4829   : > { %v9057_v1 = vsub.f32 %v14641_v46, %v9055_v5  ;;  %v9058_v0 = vmul.f32 %v9056_v17, %v9056_v17 }
0x482a   : > { %v9121_v49 = vpop.permute.xlu1 %9120 }
0x482b   : > { %v9060_v62 = vsel %vm6375_vm3, %v9058_v0, 0.0  ;;  %v9059_v15 = vmul.f32 %v9057_v1, %v9057_v1  ;;  %v9136_v61 = vsel %vm6513_vm14, %v9121_v49, %v9123_v31 }
0x482c   : > { %9061 = vadd.xlane.f32.xlu0 %v9060_v62  ;;  %11146 = vmatpush3.bf16.msra.mxu1 %v9136_v61 }
0x482d   : > { %11147 = vmatprep.subr.bf16.mxu1 %v12369_v22  ;;  %v9063_v11 = vsel %vm6375_vm3, %v9059_v15, 0.0 }
0x482e   : > { %v9125_v13 = vpop.permute.xlu1 %9124 }
0x4830   : > { %9064 = vadd.xlane.f32.xlu0 %v9063_v11 }
0x4832   : > { %v9127_v44 = vpop.permute.xlu1 %9126 }
0x4833   : > { %v9137_v51 = vsel %vm6513_vm14, %v9125_v13, %v9127_v44 }
0x4834   : > { %11148 = vmatpush3.bf16.msra.mxu1 %v9137_v51 }
0x4835   : > { %11149 = vmatprep.subr.bf16.mxu1 %v12369_v22 }
0x4836   : > { %v9131_v38 = vpop.permute.xlu1 %9130 }
0x4846   : > { %9128 = vrot.lane.b32.xlu0 %v12239_v52, %s12371_s27 }
0x484a   : > { %9132 = vrot.lane.b32.xlu0 %v12242_v57, %s12371_s27 }
0x484e   : > { %9207 = vrot.lane.b32.xlu0 %v14353_v42, %s12373_s28 }
0x4852   : > { %9211 = vrot.lane.b32.xlu0 %v14367_v43, %s12373_s28  ;;  %v9135_v43 = vpop.permute.xlu1 %9134 }
0x4856   : > { %9215 = vrot.lane.b32.xlu0 %v14381_v58, %s12373_s28  ;;  %v9210_v14 = vpop.permute.xlu1 %9209 }
0x485a   : > { %9219 = vrot.lane.b32.xlu0 %v14395_v21, %s12373_s28  ;;  %v9214_v40 = vpop.permute.xlu1 %9213 }
0x485e   : > { %v9218_v28 = vpop.permute.xlu1 %9217 }
0x4862   : > { %v9222_v12 = vpop.permute.xlu1 %9221 }
0x48b9   : > { %v9062_v19 = vpop.xlane.xlu0 %9061 }
0x48ba   : > { %v9066_v3 = vmul.f32 0.015625, %v9062_v19 }
0x48bc   : > { %v9068_v47 = vadd.f32 1e-05, %v9066_v3  ;;  %v9274_v3 = vld [vmem:[%s14800_s4 + $0x83] ss:$0 sm:$0xff] }
0x48bd   : > { %v9065_v45 = vpop.xlane.xlu0 %9064 }
0x48be   : > { %12335 = vrsqrt.f32 %v9068_v47  ;;  %v9067_v27 = vmul.f32 0.015625, %v9065_v45 }
0x48c0   : > { %v9069_v10 = vadd.f32 1e-05, %v9067_v27 }
0x48c1   : > { %v9129_v25 = vpop.permute.xlu0 %9128 }
0x48c2   : > { %12337 = vrsqrt.f32 %v9069_v10  ;;  %v9138_v42 = vsel %vm6513_vm14, %v9129_v25, %v9131_v38 }
0x48c3   : > { %11150 = vmatpush3.bf16.msra.mxu1 %v9138_v42 }
0x48c4   : > { %11151 = vmatprep.subr.bf16.mxu1 %v12369_v22 }
0x48c5   : > { %v9133_v58 = vpop.permute.xlu0 %9132 }
0x48c6   : > { %v9139_v16 = vsel %vm6513_vm14, %v9133_v58, %v9135_v43 }
0x48c7   : > { %11152 = vmatpush3.bf16.msra.mxu1 %v9139_v16  ;;  %v9310_v16 = vld [vmem:[%s14798_s2] sm:$0x1] }
0x48c8   : > { %v12336_v21 = vpop.eup %12335  ;;  %11508 = vmatprep.subr.bf16.mxu1 %v12380_v41 }
0x48c9   : > { %v9072_v36 = vmul.f32 %v12336_v21, %v9056_v17  ;;  %v9208_v26 = vpop.permute.xlu0 %9207  ;;  %v9311_v21 = vcvt.s32.f32 %v9310_v16 }
0x48ca   : > { %11158 = vmatpush3.bf16.msra.mxu0 %v9208_v26 }
0x48cb   : > { %v9074_v7 = vmul.f32 %v9072_v36, %v9046_v48  ;;  %11159 = vmatprep.subr.bf16.mxu0 %v12369_v22  ;;  %v9312_v36 = vmul.f32 8.0, %v9311_v21 }
0x48cc   : > { %v12338_v33 = vpop.eup %12337 }
0x48cd   : > { %v9073_v37 = vmul.f32 %v12338_v33, %v9057_v1  ;;  %v9076_v4 = vadd.f32 %v9074_v7, %v9047_v54  ;;  %v9212_v63 = vpop.permute.xlu0 %9211 }
0x48ce   : > { %11160 = vmatpush3.bf16.msra.mxu0 %v9210_v14 }
0x48cf   : > { %v9075_v32 = vmul.f32 %v9073_v37, %v9046_v48  ;;  %11161 = vmatprep.subr.bf16.mxu0 %v12369_v22  ;;  %v9318_v48 = vrot.slane %v9312_v36, %v14118_v34 }
0x48d1   : > { %v9077_v6 = vadd.f32 %v9075_v32, %v9047_v54  ;;  %v9216_v55 = vpop.permute.xlu0 %9215 }
0x48d2   : > { %11162 = vmatpush3.bf16.msra.mxu0 %v9212_v63  ;;  %v12245_v63 = vld [vmem:[%s14801_s5 + $0x34] ss:$60 sps:$4 sm:$0xff]  }
0x48d3   : > { %v9086_v2 = vpack.c.bf16 %v9077_v6, %v9076_v4  ;;  %11163 = vmatprep.subr.bf16.mxu0 %v12369_v22 }
0x48d5   : > { %11154 = vmatmul.mubr.msk.bf16.vlgmr.msra.gmra.mrb[36].mxu1 %vm6375_vm3, %v9086_v2  ;;  %v9220_v8 = vpop.permute.xlu0 %9219 }
0x48d6   : > { %11181 = vmatprep.mubr.msk.f32.mxu1 %vm12370_vm5, %v12369_v22  ;;  %11164 = vmatpush3.bf16.msra.mxu0 %v9214_v40  ;;  %v12246_v40 = vld [vmem:[%s14801_s5 + $0xac] ss:$60 sps:$4 sm:$0xff]  }
0x48d7   : > { %11165 = vmatprep.subr.bf16.mxu0 %v12369_v22 }
0x48da   : > { %11166 = vmatpush3.bf16.msra.mxu0 %v9216_v55  ;;  %v12248_v55 = vld [vmem:[%s14801_s5 + $0xb0] ss:$60 sps:$4 sm:$0xff]  }
0x48db   : > { %11167 = vmatprep.subr.bf16.mxu0 %v12369_v22 }
0x48de   : > { %11168 = vmatpush3.bf16.msra.mxu0 %v9218_v28  ;;  %v12249_v28 = vld [vmem:[%s14801_s5 + $0x124] ss:$60 sps:$4 sm:$0xff]  }
0x48df   : > { %11169 = vmatprep.subr.bf16.mxu0 %v12369_v22 }
0x48e2   : > { %11170 = vmatpush3.bf16.msra.mxu0 %v9220_v8  ;;  %v12251_v8 = vld [vmem:[%s14801_s5 + $0x128] ss:$60 sps:$4 sm:$0xff]  }
0x48e3   : > { %11171 = vmatprep.subr.bf16.mxu0 %v12369_v22 }
0x48e6   : > { %11172 = vmatpush3.bf16.msra.mxu0 %v9222_v12  ;;  %v12252_v12 = vld [vmem:[%s14801_s5 + $0x19c] ss:$60 sps:$4 sm:$0xff]  }
0x49a8   : > { %v9181_v20 = vpop.f32.mrb[36].mxu1 }
0x49a9   : > { %v9182_v24 = vadd.f32 %v9181_v20, %v9087_v39  ;;  %v11155_v50 = vpop.f32.mrb[37].mxu1 }
0x49aa   : > { %v9184_v60 = vpop.f32.mrb[38].mxu1 }
0x49ab   : > { %v9188_v23 = vmul.f32 %v9182_v24, %v9182_v24  ;;  %v9185_v30 = vadd.f32 %v9184_v60, %v9087_v39  ;;  %v11156_v56 = vpop.f32.mrb[39].mxu1  ;;  %v12254_v39 = vld [vmem:[%s14801_s5 + $0x1a0] ss:$60 sps:$4 sm:$0xff]  }
0x49ad   : > { %v9190_v9 = vmul.f32 %v9188_v23, %v9182_v24  ;;  %v9189_v35 = vmul.f32 %v9185_v30, %v9185_v30 }
0x49af   : > { %v9192_v29 = vmul.f32 0.044715, %v9190_v9  ;;  %v9191_v17 = vmul.f32 %v9189_v35, %v9185_v30 }
0x49b1   : > { %v9194_v5 = vadd.f32 %v9192_v29, %v9182_v24  ;;  %v9193_v31 = vmul.f32 0.044715, %v9191_v17  ;;  %v9277_v29 = vld [vmem:[%s14800_s4 + $0x84] ss:$0 sm:$0xff] }
0x49b3   : > { %v9196_v1 = vmul.f32 0.7978846, %v9194_v5  ;;  %v9195_v0 = vadd.f32 %v9193_v31, %v9185_v30 }
0x49b5   : > { %12339 = vtanh.f32 %v9196_v1  ;;  %v9197_v49 = vmul.f32 0.7978846, %v9195_v0 }
0x49b7   : > { %12341 = vtanh.f32 %v9197_v49  ;;  %v9278_v49 = vld [vmem:[%s14800_s4 + $0x85] ss:$0 sm:$0xff] }
0x49bf   : > { %v12340_v62 = vpop.eup %12339 }
0x49c0   : > { %v9200_v15 = vadd.f32 1.0, %v12340_v62 }
0x49c1   : > { %v12342_v61 = vpop.eup %12341 }
0x49c2   : > { %v9202_v11 = vmul.f32 0.5, %v9200_v15  ;;  %v9201_v13 = vadd.f32 1.0, %v12342_v61 }
0x49c4   : > { %v9203_v52 = vmul.f32 0.5, %v9201_v13  ;;  %v9204_v44 = vmul.f32 %v9202_v11, %v9182_v24 }
0x49c6   : > { %v9205_v57 = vmul.f32 %v9203_v52, %v9185_v30 }
0x49c8   : > { %v9206_v51 = vpack.c.bf16 %v9205_v57, %v9204_v44 }
0x49ca   : > { %11174 = vmatmul.mubr.bf16.vlgmr.msra.gmra.mrb[52].mxu0 %v9206_v51 }
0x4a9d   : > { %v9265_v19 = vpop.f32.mrb[52].mxu0 }
0x4a9e   : > { %v9272_v47 = vadd.f32 %v9265_v19, %v14638_v59  ;;  %v11175_v45 = vpop.f32.mrb[53].mxu0  ;;  %v9313_v59 = vcvt.s32.f32 %v13991_v53 }
0x4a9f   : > { %v9268_v38 = vpop.f32.mrb[54].mxu0 }
0x4aa0   : > { %v9275_v27 = vadd.f32 %v9274_v3, %v9272_v47  ;;  %v9273_v10 = vadd.f32 %v9268_v38, %v14641_v46  ;;  %v11176_v25 = vpop.f32.mrb[55].mxu0  ;;  %v9320_v46 = vsub.f32 %v9318_v48, %v9313_v59 }
0x4aa2   : > { %v9276_v42 = vadd.f32 %v9274_v3, %v9273_v10  ;;  %v9279_v43 = vsel %vm6375_vm3, %v9275_v27, 0.0  ;;  %v9321_v33 = vsel %vm9309_vm7, %v9320_v46, -1000000.0 }
0x4aa3   : > { %9280 = vadd.xlane.f32.xlu0 %v9279_v43  ;;  %v9323_v7 = vsel %vm9322_vm8, %v9321_v33, -inf }
0x4aa4   : > { %v9282_v58 = vsel %vm6375_vm3, %v9276_v42, 0.0 }
0x4aa5   : > { %9283 = vadd.xlane.f32.xlu1 %v9282_v58 }
0x4aa9   : > { %9324 = vmax.xlane.f32.xlu1 %v9323_v7 }
0x4aba   : > { %9445 = vrot.lane.b32.xlu1 %v12243_v18, %s12371_s27 }
0x4abe   : > { %9447 = vrot.lane.b32.xlu1 %v12246_v40, %s12371_s27 }
0x4ac2   : > { %9451 = vrot.lane.b32.xlu1 %v12249_v28, %s12371_s27 }
0x4ac6   : > { %9455 = vrot.lane.b32.xlu1 %v12252_v12, %s12371_s27 }
0x4b30   : > { %v9281_v37 = vpop.xlane.xlu0 %9280 }
0x4b31   : > { %v9285_v54 = vmul.f32 0.015625, %v9281_v37 }
0x4b32   : > { %v9284_v32 = vpop.xlane.xlu1 %9283 }
0x4b33   : > { %v9287_v4 = vsub.f32 %v9275_v27, %v9285_v54  ;;  %v9286_v6 = vmul.f32 0.015625, %v9284_v32 }
0x4b35   : > { %v9288_v2 = vsub.f32 %v9276_v42, %v9286_v6  ;;  %v9289_v26 = vmul.f32 %v9287_v4, %v9287_v4 }
0x4b36   : > { %v9325_v35 = vpop.xlane.xlu1 %9324 }
0x4b37   : > { %v9291_v14 = vsel %vm6375_vm3, %v9289_v26, 0.0  ;;  %v9290_v53 = vmul.f32 %v9288_v2, %v9288_v2  ;;  %vm9326_vm10 = vcmp.eq.f32.partialorder %v9321_v33, %v9325_v35 }
0x4b38   : > { %9292 = vadd.xlane.f32.xlu0 %v9291_v14  ;;  %v9941_v44 = vsel %vm9326_vm10, 1.0, %v12369_v22 }
0x4b39   : > { %v9294_v34 = vsel %vm6375_vm3, %v9290_v53, 0.0 }
0x4b3a   : > { %v9446_v0 = vpop.permute.xlu1 %9445 }
0x4b3c   : > { %9295 = vadd.xlane.f32.xlu0 %v9294_v34 }
0x4b3e   : > { %v9448_v52 = vpop.permute.xlu1 %9447 }
0x4b42   : > { %v9452_v19 = vpop.permute.xlu1 %9451 }
0x4b46   : > { %v9456_v38 = vpop.permute.xlu1 %9455 }
0x4b52   : > { %9443 = vrot.lane.b32.xlu0 %v12245_v63, %s12371_s27 }
0x4b56   : > { %9449 = vrot.lane.b32.xlu0 %v12248_v55, %s12371_s27 }
0x4b5a   : > { %9453 = vrot.lane.b32.xlu0 %v12251_v8, %s12371_s27 }
0x4b5e   : > { %9457 = vrot.lane.b32.xlu0 %v12254_v39, %s12371_s27 }
0x4bc5   : > { %v9293_v20 = vpop.xlane.xlu0 %9292 }
0x4bc6   : > { %v9297_v24 = vmul.f32 0.015625, %v9293_v20 }
0x4bc8   : > { %v9299_v50 = vadd.f32 1e-05, %v9297_v24 }
0x4bc9   : > { %v9296_v60 = vpop.xlane.xlu0 %9295 }
0x4bca   : > { %12343 = vrsqrt.f32 %v9299_v50  ;;  %v9298_v23 = vmul.f32 0.015625, %v9296_v60 }
0x4bcc   : > { %v9300_v30 = vadd.f32 1e-05, %v9298_v23 }
0x4bcd   : > { %v9444_v1 = vpop.permute.xlu0 %9443 }
0x4bce   : > { %12345 = vrsqrt.f32 %v9300_v30  ;;  %v9459_v57 = vsel %vm6513_vm14, %v9444_v1, %v9446_v0 }
0x4bd1   : > { %v9450_v13 = vpop.permute.xlu0 %9449 }
0x4bd2   : > { %v9460_v3 = vsel %vm6513_vm14, %v9448_v52, %v9450_v13 }
0x4bd4   : > { %v12344_v56 = vpop.eup %12343 }
0x4bd5   : > { %v9303_v9 = vmul.f32 %v12344_v56, %v9287_v4  ;;  %v9454_v51 = vpop.permute.xlu0 %9453 }
0x4bd6   : > { %v9461_v47 = vsel %vm6513_vm14, %v9452_v19, %v9454_v51 }
0x4bd7   : > { %v9305_v31 = vmul.f32 %v9303_v9, %v9277_v29 }
0x4bd8   : > { %v12346_v17 = vpop.eup %12345 }
0x4bd9   : > { %v9304_v5 = vmul.f32 %v12346_v17, %v9288_v2  ;;  %v9307_v15 = vadd.f32 %v9305_v31, %v9278_v49  ;;  %v9458_v45 = vpop.permute.xlu0 %9457 }
0x4bda   : > { %v9462_v27 = vsel %vm6513_vm14, %v9456_v38, %v9458_v45 }
0x4bdb   : > { %v9306_v62 = vmul.f32 %v9304_v5, %v9277_v29 }
0x4bdd   : > { %v9308_v61 = vadd.f32 %v9306_v62, %v9278_v49 }
0x4bdf   : > { %v11509_v11 = vpack.c.bf16 %v9308_v61, %v9307_v15 }
0x4be1   : > { %11510 = vmatpush3.bf16.msra.mxu1 %v11509_v11 }
0x4be2   : > { %11184 = vmatprep.subr.bf16.mxu1 %v12369_v22 }
0x4be4   : > { %11182 = vmatmul.mubr.msk.f32.vlgmr.msra.gmra.mrb[40].mxu1 %vm6513_vm14, %v9941_v44 }
0x4be5   : > { %11185 = vmatpush3.bf16.msra.mxu1 %v9459_v57  ;;  %11192 = vmatprep.mubr.msk.bf16.mxu1 %vm12370_vm5, %v12369_v22  ;;  %vm9510_vm5 = vcmask 254976  }
0x4be6   : > { %11186 = vmatprep.subr.bf16.mxu1 %v12369_v22 }
0x4be9   : > { %11187 = vmatpush3.bf16.msra.mxu1 %v9460_v3 }
0x4bea   : > { %11188 = vmatprep.subr.bf16.mxu1 %v12369_v22 }
0x4bed   : > { %11189 = vmatpush3.bf16.msra.mxu1 %v9461_v47 }
0x4bee   : > { %11190 = vmatprep.subr.bf16.mxu1 %v12369_v22 }
0x4bf1   : > { %11191 = vmatpush3.bf16.msra.mxu1 %v9462_v27 }
0x4cb7   : > { %v9398_v10 = vpop.f32.mrb[40].mxu1 }
0x4cb8   : > { %v9410_v25 = vpack.c.bf16 %v9398_v10, %v9398_v10  ;;  %v11183_v42 = vpop.f32.mrb[41].mxu1 }
0x4cba   : > { %11193 = vmatmul.mubr.msk.bf16.vlgmr.msra.gmra.mrb[44].mxu1 %vm6375_vm3, %v9410_v25 }
0x4d8d   : > { %v9504_v43 = vpop.f32.mrb[44].mxu1 }
0x4d8e   : > { %9511 = vst.msk [vmem:[%s12446_s15] sm:$0x3] %vm9510_vm5, %v9504_v43  ;;  %v11194_v58 = vpop.f32.mrb[45].mxu1 }
0x4d8f   : > { %v9507_v16 = vpop.f32.mrb[46].mxu1 }
0x4d90   : > { %v11195_v21 = vpop.f32.mrb[47].mxu1 }
0x4d91 PF: > { %s19_s30 = sadd.s32 1, %s12353_s30  }
0x4d92   : > { %p16_p6 = scmp.ge.s32.totalorder %s19_s30, 4  }
0x4d94   :  { %18 = sbr.rel (!%p16_p6) target bundleno = 1 (0x1), region = 95 }

</bundles_post_ra>
